<compile_context>
chip_gen: v7x
topology: tpu7x:2x2x1
jax: 0.10.0
libtpu: 0.0.40
codegen_flags: <defaults>
</compile_context>

<pallas_src>
import functools

import jax
import jax.numpy as jnp
from jax.experimental import pallas as pl
from jax.experimental.pallas import tpu as pltpu

_BN_EPS = 1e-5


# ---------------------------------------------------------------------------
# Fused conv block kernel:
#   (pool-tap-major im2col patches) @ W -> max over 4 taps -> relu(.+b)+shift
#   ==  Conv2d(3x3,pad=1) -> ReLU -> BatchNorm2d(running stats) -> MaxPool2x2
# One grid step per M-tile; no reduction axis, no accumulator scratch.
# ---------------------------------------------------------------------------
def _conv_pool_kernel(x_ref, w_ref, b_ref, shift_ref, o_ref):
    tm = o_ref.shape[0]
    z = jnp.dot(x_ref[...], w_ref[...], preferred_element_type=jnp.float32)
    # 2x2 max-pool == max over the four tap row-groups (sublane-aligned slices).
    z = jnp.maximum(jnp.maximum(z[0 * tm:1 * tm], z[1 * tm:2 * tm]),
                    jnp.maximum(z[2 * tm:3 * tm], z[3 * tm:4 * tm]))
    # Epilogue applied once after the max: max_t(relu(z_t+b)+s) == relu(max_t z_t + b)+s.
    o_ref[...] = (jnp.maximum(z + b_ref[...], 0.0) + shift_ref[...]).astype(o_ref.dtype)


def conv_relu_bn_pool(patches, w_mat, b, shift, *, mt):
    """patches: (4*m4, K) bf16 (tap-major per M-tile), w: (K,N) bf16,
    b/shift: (1,N) f32  ->  (m4, N) bf16 pooled output."""
    m_tot, K = patches.shape
    K2, N = w_mat.shape
    assert K == K2 and m_tot % 4 == 0
    m4 = m_tot // 4
    assert m4 % mt == 0
    tm = m4 // mt
    assert tm % 8 == 0, (m4, mt)

    return pl.pallas_call(
        _conv_pool_kernel,
        out_shape=jax.ShapeDtypeStruct((m4, N), jnp.bfloat16),
        grid_spec=pltpu.PrefetchScalarGridSpec(
            num_scalar_prefetch=0,
            grid=(mt,),
            in_specs=[
                pl.BlockSpec((4 * tm, K), lambda i: (i, 0)),   # tap-major patches
                pl.BlockSpec((K, N), lambda i: (0, 0)),        # BN-folded weight
                pl.BlockSpec((1, N), lambda i: (0, 0)),        # BN-folded bias
                pl.BlockSpec((1, N), lambda i: (0, 0)),        # BN shift
            ],
            out_specs=pl.BlockSpec((tm, N), lambda i: (i, 0)),
        ),
        compiler_params=pltpu.CompilerParams(dimension_semantics=("parallel",)),
    )(patches, w_mat, b, shift)


# ---------------------------------------------------------------------------
# Fused tail kernel: conv4 block + AdaptiveAvgPool2d((1,1)) + fc1(+ReLU+BN)
#   + fc2(+ReLU+BN) + fc3.  All weights VMEM-resident (bf16); logits are
#   lane-padded to 128 columns.  Dropout = identity at inference.
# ---------------------------------------------------------------------------
def _tail_kernel(x_ref, gap_ref, w4_ref, b4_ref, s4_ref,
                 w1_ref, b1_ref, s1_ref, w2_ref, b2_ref, s2_ref,
                 w3_ref, b3_ref, o_ref):
    sb = gap_ref.shape[1]                       # pooled rows = batch * 2 * 2
    z = jnp.dot(x_ref[...], w4_ref[...], preferred_element_type=jnp.float32)
    z = jnp.maximum(jnp.maximum(z[0 * sb:1 * sb], z[1 * sb:2 * sb]),
                    jnp.maximum(z[2 * sb:3 * sb], z[3 * sb:4 * sb]))
    pooled = jnp.maximum(z + b4_ref[...], 0.0) + s4_ref[...]          # (sb, 512) f32
    # Global average pool as a tiny matmul with a constant averaging matrix.
    g = jnp.dot(gap_ref[...], pooled, preferred_element_type=jnp.float32)  # (B, 512)
    # fc1 -> ReLU -> BN1d (folded); Dropout = identity.
    h = jnp.dot(g.astype(jnp.bfloat16), w1_ref[...],
                preferred_element_type=jnp.float32)
    h = jnp.maximum(h + b1_ref[...], 0.0) + s1_ref[...]
    # fc2 -> ReLU -> BN1d (folded); Dropout = identity.
    h = jnp.dot(h.astype(jnp.bfloat16), w2_ref[...],
                preferred_element_type=jnp.float32)
    h = jnp.maximum(h + b2_ref[...], 0.0) + s2_ref[...]
    # fc3 (lane-padded to 128 output columns).
    h = jnp.dot(h.astype(jnp.bfloat16), w3_ref[...],
                preferred_element_type=jnp.float32)
    o_ref[...] = h + b3_ref[...]


def conv4_gap_classifier(patches4, gap, conv4, fcs):
    w4, b4, s4 = conv4
    (w1, b1, s1), (w2, b2, s2), (w3, b3, _) = fcs
    B = gap.shape[0]
    n_pad = w3.shape[1]
    return pl.pallas_call(
        _tail_kernel,
        out_shape=jax.ShapeDtypeStruct((B, n_pad), jnp.float32),
    )(patches4, gap, w4, b4, s4, w1, b1, s1, w2, b2, s2, w3, b3)


# ---------------------------------------------------------------------------
# Wrapper-side im2col (3x3 / stride 1 / pad 1), rows grouped by 2x2-pool tap,
# built directly from the once-padded activation (single fused slicing pass).
# ---------------------------------------------------------------------------
def _patches_tap_major(x, *, mt=1, k_pad=None):
    """x: (n,h,w,c) NHWC bf16 -> (4*n*h2*w2, k) bf16.

    Rows: each of the `mt` consecutive blocks of 4*(n//mt)*h2*w2 rows (one per
    kernel M-tile) is laid out [tap0 | tap1 | tap2 | tap3], each tap holding
    that tile's rows in (image, y, x) order.  Columns are ordered (dy, dx,
    c_in), matching w.reshape(9*c_in, c_out).  mt must be 1 or n.
    """
    n, h, w, c = x.shape
    assert mt in (1, n)
    h2, w2 = h // 2, w // 2
    xp = jnp.pad(x, ((0, 0), (1, 1), (1, 1), (0, 0)))
    taps = []
    for ry in range(2):
        for rx in range(2):
            offs = [xp[:, ry + dy::2, rx + dx::2, :][:, :h2, :w2, :]
                    for dy in range(3) for dx in range(3)]
            taps.append(jnp.concatenate(offs, axis=-1))        # (n, h2, w2, 9c)
    p = jnp.stack(taps, axis=1 if mt > 1 else 0)               # tile-/tap-major
    p = p.reshape(4 * n * h2 * w2, 9 * c)
    if k_pad is not None and k_pad > 9 * c:
        p = jnp.pad(p, ((0, 0), (0, k_pad - 9 * c)))
    return p


# ---------------------------------------------------------------------------
# Parameters: raw (PyTorch-like, unfolded, f32) + BN-folded kernel params.
# ---------------------------------------------------------------------------
def init_raw_params(key, num_classes):
    ks = jax.random.split(key, 7)

    def bn_stats(k, n):
        k0, k1, k2, k3 = jax.random.split(k, 4)
        return dict(gamma=jax.random.uniform(k0, (n,), jnp.float32, 0.5, 1.5),
                    beta=jax.random.normal(k1, (n,), jnp.float32) * 0.1,
                    mean=jax.random.normal(k2, (n,), jnp.float32) * 0.1,
                    var=jax.random.uniform(k3, (n,), jnp.float32, 0.5, 1.5))

    def conv_layer(k, cin, cout):
        kw, kb, kbn = jax.random.split(k, 3)
        w = jax.random.normal(kw, (3, 3, cin, cout), jnp.float32) / jnp.sqrt(9.0 * cin)
        b = jax.random.normal(kb, (cout,), jnp.float32) * 0.05
        return dict(w=w, b=b, bn=bn_stats(kbn, cout))

    def fc_layer(k, cin, cout, has_bn):
        kw, kb, kbn = jax.random.split(k, 3)
        w = jax.random.normal(kw, (cin, cout), jnp.float32) / jnp.sqrt(1.0 * cin)
        b = jax.random.normal(kb, (cout,), jnp.float32) * 0.05
        return dict(w=w, b=b, bn=bn_stats(kbn, cout) if has_bn else None)

    convs = [conv_layer(ks[i], cin, cout)
             for i, (cin, cout) in enumerate([(3, 64), (64, 128), (128, 256), (256, 512)])]
    fcs = [fc_layer(ks[4], 512, 1024, True),
           fc_layer(ks[5], 1024, 512, True),
           fc_layer(ks[6], 512, num_classes, False)]
    return dict(convs=convs, fcs=fcs)


def fold_params(raw):
    """Fold BN running stats into (W bf16, b f32, shift f32) so each layer is
    relu(x @ W + b) + shift (or x @ W + b for the final Linear).  Folding the
    BN scale through ReLU requires scale = gamma/sqrt(var+eps) > 0 (true for
    the synthetic params).  TODO(synk): fall back to an unfolded epilogue for
    checkpoints with non-positive gamma."""
    def fold(w2d, b, bn, k_pad=None, n_pad=None):
        if bn is not None:
            scale = bn["gamma"] / jnp.sqrt(bn["var"] + _BN_EPS)
            shift = bn["beta"] - bn["mean"] * scale
            w2d = w2d * scale[None, :]
            b = b * scale
        else:
            shift = jnp.zeros_like(b)
        if k_pad is not None and k_pad > w2d.shape[0]:
            w2d = jnp.pad(w2d, ((0, k_pad - w2d.shape[0]), (0, 0)))
        if n_pad is not None and n_pad > w2d.shape[1]:
            pad = n_pad - w2d.shape[1]
            w2d = jnp.pad(w2d, ((0, 0), (0, pad)))
            b = jnp.pad(b, ((0, pad),))
            shift = jnp.pad(shift, ((0, pad),))
        return (w2d.astype(jnp.bfloat16),
                b[None, :].astype(jnp.float32),
                shift[None, :].astype(jnp.float32))

    convs = []
    for i, layer in enumerate(raw["convs"]):
        w2d = layer["w"].reshape(-1, layer["w"].shape[-1])     # (9*cin, cout)
        convs.append(fold(w2d, layer["b"], layer["bn"],
                          k_pad=32 if i == 0 else None))       # pad conv1 K 27->32
    fcs = [fold(layer["w"], layer["b"], layer["bn"],
                n_pad=128 if j == 2 else None)                 # lane-pad logits
           for j, layer in enumerate(raw["fcs"])]
    return dict(convs=tuple(convs), fcs=tuple(fcs))


# ---------------------------------------------------------------------------
# Full forward pass (input in NCHW, like the PyTorch module)
# ---------------------------------------------------------------------------
def _num_parallel_cores():
    # Best-effort detection: on multi-TensorCore chips (v7x) we split the conv
    # grids along M (by batch element) for core parallelism; single-TC chips
    # (v5e/v6e) run 1-step grids with full-width tiles.
    try:
        kind = jax.devices()[0].device_kind.lower()
    except Exception:
        return 1
    return 2 if "v7" in kind else 1


@functools.partial(jax.jit, static_argnames=("num_classes", "cores"))
def my_model_forward(x_nchw, params, *, num_classes, cores=1):
    x = jnp.transpose(x_nchw, (0, 2, 3, 1)).astype(jnp.bfloat16)   # NCHW -> NHWC
    convs = params["convs"]
    # Conv blocks 1-3: one fused pallas_call each.
    for blk in range(3):
        w_mat, b, shift = convs[blk]
        n, h, w, _ = x.shape
        h2, w2 = h // 2, w // 2
        mt = n if (cores > 1 and n > 1 and (h2 * w2) % 8 == 0) else 1
        patches = _patches_tap_major(x, mt=mt, k_pad=w_mat.shape[0])
        y = conv_relu_bn_pool(patches, w_mat, b, shift, mt=mt)
        x = y.reshape(n, h2, w2, w_mat.shape[1])
    # Conv block 4 + AdaptiveAvgPool2d((1,1)) + classifier, fused in one call.
    w4 = convs[3][0]
    n, h, w, _ = x.shape
    h2, w2 = h // 2, w // 2
    patches4 = _patches_tap_major(x, mt=1, k_pad=w4.shape[0])
    s = h2 * w2
    gap = jnp.repeat(jnp.eye(n, dtype=jnp.float32), s, axis=1) * (1.0 / s)  # (n, n*s)
    logits = conv4_gap_classifier(patches4, gap, convs[3], params["fcs"])
    return logits[:, :num_classes]


# ---------------------------------------------------------------------------
# Pure-JAX float32 reference (unfolded params) — PyTorch module in eval mode.
# ---------------------------------------------------------------------------
@jax.jit
def reference_forward(x_nchw, raw):
    def bn(v, p):
        return (v - p["mean"]) / jnp.sqrt(p["var"] + _BN_EPS) * p["gamma"] + p["beta"]

    x = jnp.transpose(x_nchw, (0, 2, 3, 1)).astype(jnp.float32)
    for layer in raw["convs"]:
        y = jax.lax.conv_general_dilated(
            x, layer["w"], window_strides=(1, 1), padding="SAME",
            dimension_numbers=("NHWC", "HWIO", "NHWC"))
        y = jnp.maximum(y + layer["b"], 0.0)
        y = bn(y, layer["bn"])
        x = jax.lax.reduce_window(y, -jnp.inf, jax.lax.max,
                                  (1, 2, 2, 1), (1, 2, 2, 1), "VALID")
    g = jnp.mean(x, axis=(1, 2))
    for layer in raw["fcs"]:
        g = g @ layer["w"] + layer["b"]
        if layer["bn"] is not None:
            g = bn(jnp.maximum(g, 0.0), layer["bn"])   # Dropout = identity (eval)
    return g


if __name__ == "__main__":
    num_classes = 16
    key = jax.random.PRNGKey(0)
    k_params, k_x = jax.random.split(key)
    raw = init_raw_params(k_params, num_classes)
    params = fold_params(raw)

    # batch=2, 3 channels, 32x32: four 2x2 max-pools leave a 2x2 grid ahead of
    # the global average pool.
    x = jax.random.normal(k_x, (2, 3, 32, 32), jnp.float32)

    cores = _num_parallel_cores()
    out = my_model_forward(x, params, num_classes=num_classes, cores=cores)
    out = jax.block_until_ready(out)
    assert out.shape == (2, num_classes)
    assert bool(jnp.all(jnp.isfinite(out)))

    # Tolerance check vs the float32 reference (kernel uses bf16 operands with
    # f32 accumulation, so allow a few percent of drift).
    ref = reference_forward(x, raw)
    assert bool(jnp.allclose(out, ref, rtol=0.1, atol=0.15)), (
        "max abs err %f" % float(jnp.max(jnp.abs(out - ref))))
    print("KERNEL_OK")
</pallas_src>

<mosaic_0001>
module attributes {stable_mosaic.version = 11 : i64} {
  func.func @_conv_pool_kernel(%arg0: i32, %arg1: memref<2048x32xbf16, #tpu.memory_space<vmem>>, %arg2: memref<32x64xbf16, #tpu.memory_space<vmem>>, %arg3: memref<1x64xf32, #tpu.memory_space<vmem>>, %arg4: memref<1x64xf32, #tpu.memory_space<vmem>>, %arg5: memref<512x64xbf16, #tpu.memory_space<vmem>>) attributes {dimension_semantics = [#tpu.dimension_semantics<parallel>], iteration_bounds = array<i64: 1>, scalar_prefetch = 0 : i64, scratch_operands = 0 : i64, tpu.core_type = #tpu.core_type<tc>, window_params = [{transform_indices = @transform_0, window_bounds = array<i64: 2048, 32>}, {pipeline_mode = #tpu.pipeline_mode<synchronous>, transform_indices = @transform_1, window_bounds = array<i64: 32, 64>}, {pipeline_mode = #tpu.pipeline_mode<synchronous>, transform_indices = @transform_2, window_bounds = array<i64: 1, 64>}, {pipeline_mode = #tpu.pipeline_mode<synchronous>, transform_indices = @transform_3, window_bounds = array<i64: 1, 64>}, {transform_indices = @transform_4, window_bounds = array<i64: 512, 64>}]} {
    %c0 = arith.constant 0 : index
    %c0_0 = arith.constant 0 : index
    %0 = vector.load %arg1[%c0, %c0_0] : memref<2048x32xbf16, #tpu.memory_space<vmem>>, vector<2048x32xbf16>
    %c0_1 = arith.constant 0 : index
    %c0_2 = arith.constant 0 : index
    %1 = vector.load %arg2[%c0_1, %c0_2] : memref<32x64xbf16, #tpu.memory_space<vmem>>, vector<32x64xbf16>
    %cst = arith.constant dense<0.000000e+00> : vector<2048x64xf32>
    %2 = tpu.matmul %0, %1, %cst {dimension_numbers = #tpu.dot_dimension_numbers<[1], [0], [0], [1], [0, 0, 1, 1], [], []>} : vector<2048x32xbf16>, vector<32x64xbf16>, vector<2048x64xf32> -> vector<2048x64xf32>
    %3 = vector.extract_strided_slice %2 {offsets = [0, 0], sizes = [512, 64], strides = [1, 1]} : vector<2048x64xf32> to vector<512x64xf32>
    %4 = vector.extract_strided_slice %2 {offsets = [512, 0], sizes = [512, 64], strides = [1, 1]} : vector<2048x64xf32> to vector<512x64xf32>
    %5 = arith.maximumf %3, %4 : vector<512x64xf32>
    %6 = vector.extract_strided_slice %2 {offsets = [1024, 0], sizes = [512, 64], strides = [1, 1]} : vector<2048x64xf32> to vector<512x64xf32>
    %7 = vector.extract_strided_slice %2 {offsets = [1536, 0], sizes = [512, 64], strides = [1, 1]} : vector<2048x64xf32> to vector<512x64xf32>
    %8 = arith.maximumf %6, %7 : vector<512x64xf32>
    %9 = arith.maximumf %5, %8 : vector<512x64xf32>
    %c0_3 = arith.constant 0 : index
    %c0_4 = arith.constant 0 : index
    %10 = vector.load %arg3[%c0_3, %c0_4] : memref<1x64xf32, #tpu.memory_space<vmem>>, vector<1x64xf32>
    %11 = vector.broadcast %10 : vector<1x64xf32> to vector<512x64xf32>
    %12 = arith.addf %9, %11 : vector<512x64xf32>
    %cst_5 = arith.constant 0.000000e+00 : f32
    %13 = vector.broadcast %cst_5 : f32 to vector<512x64xf32>
    %14 = arith.maximumf %12, %13 : vector<512x64xf32>
    %c0_6 = arith.constant 0 : index
    %c0_7 = arith.constant 0 : index
    %15 = vector.load %arg4[%c0_6, %c0_7] : memref<1x64xf32, #tpu.memory_space<vmem>>, vector<1x64xf32>
    %16 = vector.broadcast %15 : vector<1x64xf32> to vector<512x64xf32>
    %17 = arith.addf %14, %16 : vector<512x64xf32>
    %18 = arith.truncf %17 : vector<512x64xf32> to vector<512x64xbf16>
    %c0_8 = arith.constant 0 : index
    %c0_9 = arith.constant 0 : index
    %19 = vector.load %arg5[%c0_8, %c0_9] : memref<512x64xbf16, #tpu.memory_space<vmem>>, vector<512x64xbf16>
    tpu.vector_store %arg5[%c0_8, %c0_9], %18 {strides = array<i32>} : memref<512x64xbf16, #tpu.memory_space<vmem>>, vector<512x64xbf16>,
    return
  }
  func.func @transform_0(%arg0: i32) -> (i32, i32) {
    %c0_i32 = arith.constant 0 : i32
    %c0_i32_0 = arith.constant 0 : i32
    return %arg0, %c0_i32 : i32, i32
  }
  func.func @transform_1(%arg0: i32) -> (i32, i32) {
    %c0_i32 = arith.constant 0 : i32
    %c0_i32_0 = arith.constant 0 : i32
    %c0_i32_1 = arith.constant 0 : i32
    return %c0_i32, %c0_i32_0 : i32, i32
  }
  func.func @transform_2(%arg0: i32) -> (i32, i32) {
    %c0_i32 = arith.constant 0 : i32
    %c0_i32_0 = arith.constant 0 : i32
    %c0_i32_1 = arith.constant 0 : i32
    return %c0_i32, %c0_i32_0 : i32, i32
  }
  func.func @transform_3(%arg0: i32) -> (i32, i32) {
    %c0_i32 = arith.constant 0 : i32
    %c0_i32_0 = arith.constant 0 : i32
    %c0_i32_1 = arith.constant 0 : i32
    return %c0_i32, %c0_i32_0 : i32, i32
  }
  func.func @transform_4(%arg0: i32) -> (i32, i32) {
    %c0_i32 = arith.constant 0 : i32
    %c0_i32_0 = arith.constant 0 : i32
    return %arg0, %c0_i32 : i32, i32
  }
}

module attributes {stable_mosaic.version = 11 : i64} {
  func.func @_conv_pool_kernel(%arg0: i32, %arg1: memref<512x576xbf16, #tpu.memory_space<vmem>>, %arg2: memref<576x128xbf16, #tpu.memory_space<vmem>>, %arg3: memref<1x128xf32, #tpu.memory_space<vmem>>, %arg4: memref<1x128xf32, #tpu.memory_space<vmem>>, %arg5: memref<128x128xbf16, #tpu.memory_space<vmem>>) attributes {dimension_semantics = [#tpu.dimension_semantics<parallel>], iteration_bounds = array<i64: 1>, scalar_prefetch = 0 : i64, scratch_operands = 0 : i64, tpu.core_type = #tpu.core_type<tc>, window_params = [{transform_indices = @transform_0, window_bounds = array<i64: 512, 576>}, {pipeline_mode = #tpu.pipeline_mode<synchronous>, transform_indices = @transform_1, window_bounds = array<i64: 576, 128>}, {pipeline_mode = #tpu.pipeline_mode<synchronous>, transform_indices = @transform_2, window_bounds = array<i64: 1, 128>}, {pipeline_mode = #tpu.pipeline_mode<synchronous>, transform_indices = @transform_3, window_bounds = array<i64: 1, 128>}, {transform_indices = @transform_4, window_bounds = array<i64: 128, 128>}]} {
    %c0 = arith.constant 0 : index
    %c0_0 = arith.constant 0 : index
    %0 = vector.load %arg1[%c0, %c0_0] : memref<512x576xbf16, #tpu.memory_space<vmem>>, vector<512x576xbf16>
    %c0_1 = arith.constant 0 : index
    %c0_2 = arith.constant 0 : index
    %1 = vector.load %arg2[%c0_1, %c0_2] : memref<576x128xbf16, #tpu.memory_space<vmem>>, vector<576x128xbf16>
    %cst = arith.constant dense<0.000000e+00> : vector<512x128xf32>
    %2 = tpu.matmul %0, %1, %cst {dimension_numbers = #tpu.dot_dimension_numbers<[1], [0], [0], [1], [0, 0, 1, 1], [], []>} : vector<512x576xbf16>, vector<576x128xbf16>, vector<512x128xf32> -> vector<512x128xf32>
    %3 = vector.extract_strided_slice %2 {offsets = [0, 0], sizes = [128, 128], strides = [1, 1]} : vector<512x128xf32> to vector<128x128xf32>
    %4 = vector.extract_strided_slice %2 {offsets = [128, 0], sizes = [128, 128], strides = [1, 1]} : vector<512x128xf32> to vector<128x128xf32>
    %5 = arith.maximumf %3, %4 : vector<128x128xf32>
    %6 = vector.extract_strided_slice %2 {offsets = [256, 0], sizes = [128, 128], strides = [1, 1]} : vector<512x128xf32> to vector<128x128xf32>
    %7 = vector.extract_strided_slice %2 {offsets = [384, 0], sizes = [128, 128], strides = [1, 1]} : vector<512x128xf32> to vector<128x128xf32>
    %8 = arith.maximumf %6, %7 : vector<128x128xf32>
    %9 = arith.maximumf %5, %8 : vector<128x128xf32>
    %c0_3 = arith.constant 0 : index
    %c0_4 = arith.constant 0 : index
    %10 = vector.load %arg3[%c0_3, %c0_4] : memref<1x128xf32, #tpu.memory_space<vmem>>, vector<1x128xf32>
    %11 = vector.broadcast %10 : vector<1x128xf32> to vector<128x128xf32>
    %12 = arith.addf %9, %11 : vector<128x128xf32>
    %cst_5 = arith.constant 0.000000e+00 : f32
    %13 = vector.broadcast %cst_5 : f32 to vector<128x128xf32>
    %14 = arith.maximumf %12, %13 : vector<128x128xf32>
    %c0_6 = arith.constant 0 : index
    %c0_7 = arith.constant 0 : index
    %15 = vector.load %arg4[%c0_6, %c0_7] : memref<1x128xf32, #tpu.memory_space<vmem>>, vector<1x128xf32>
    %16 = vector.broadcast %15 : vector<1x128xf32> to vector<128x128xf32>
    %17 = arith.addf %14, %16 : vector<128x128xf32>
    %18 = arith.truncf %17 : vector<128x128xf32> to vector<128x128xbf16>
    %c0_8 = arith.constant 0 : index
    %c0_9 = arith.constant 0 : index
    %19 = vector.load %arg5[%c0_8, %c0_9] : memref<128x128xbf16, #tpu.memory_space<vmem>>, vector<128x128xbf16>
    tpu.vector_store %arg5[%c0_8, %c0_9], %18 {strides = array<i32>} : memref<128x128xbf16, #tpu.memory_space<vmem>>, vector<128x128xbf16>,
    return
  }
  func.func @transform_0(%arg0: i32) -> (i32, i32) {
    %c0_i32 = arith.constant 0 : i32
    %c0_i32_0 = arith.constant 0 : i32
    return %arg0, %c0_i32 : i32, i32
  }
  func.func @transform_1(%arg0: i32) -> (i32, i32) {
    %c0_i32 = arith.constant 0 : i32
    %c0_i32_0 = arith.constant 0 : i32
    %c0_i32_1 = arith.constant 0 : i32
    return %c0_i32, %c0_i32_0 : i32, i32
  }
  func.func @transform_2(%arg0: i32) -> (i32, i32) {
    %c0_i32 = arith.constant 0 : i32
    %c0_i32_0 = arith.constant 0 : i32
    %c0_i32_1 = arith.constant 0 : i32
    return %c0_i32, %c0_i32_0 : i32, i32
  }
  func.func @transform_3(%arg0: i32) -> (i32, i32) {
    %c0_i32 = arith.constant 0 : i32
    %c0_i32_0 = arith.constant 0 : i32
    %c0_i32_1 = arith.constant 0 : i32
    return %c0_i32, %c0_i32_0 : i32, i32
  }
  func.func @transform_4(%arg0: i32) -> (i32, i32) {
    %c0_i32 = arith.constant 0 : i32
    %c0_i32_0 = arith.constant 0 : i32
    return %arg0, %c0_i32 : i32, i32
  }
}

module attributes {stable_mosaic.version = 11 : i64} {
  func.func @_conv_pool_kernel(%arg0: i32, %arg1: memref<128x1152xbf16, #tpu.memory_space<vmem>>, %arg2: memref<1152x256xbf16, #tpu.memory_space<vmem>>, %arg3: memref<1x256xf32, #tpu.memory_space<vmem>>, %arg4: memref<1x256xf32, #tpu.memory_space<vmem>>, %arg5: memref<32x256xbf16, #tpu.memory_space<vmem>>) attributes {dimension_semantics = [#tpu.dimension_semantics<parallel>], iteration_bounds = array<i64: 1>, scalar_prefetch = 0 : i64, scratch_operands = 0 : i64, tpu.core_type = #tpu.core_type<tc>, window_params = [{transform_indices = @transform_0, window_bounds = array<i64: 128, 1152>}, {pipeline_mode = #tpu.pipeline_mode<synchronous>, transform_indices = @transform_1, window_bounds = array<i64: 1152, 256>}, {pipeline_mode = #tpu.pipeline_mode<synchronous>, transform_indices = @transform_2, window_bounds = array<i64: 1, 256>}, {pipeline_mode = #tpu.pipeline_mode<synchronous>, transform_indices = @transform_3, window_bounds = array<i64: 1, 256>}, {transform_indices = @transform_4, window_bounds = array<i64: 32, 256>}]} {
    %c0 = arith.constant 0 : index
    %c0_0 = arith.constant 0 : index
    %0 = vector.load %arg1[%c0, %c0_0] : memref<128x1152xbf16, #tpu.memory_space<vmem>>, vector<128x1152xbf16>
    %c0_1 = arith.constant 0 : index
    %c0_2 = arith.constant 0 : index
    %1 = vector.load %arg2[%c0_1, %c0_2] : memref<1152x256xbf16, #tpu.memory_space<vmem>>, vector<1152x256xbf16>
    %cst = arith.constant dense<0.000000e+00> : vector<128x256xf32>
    %2 = tpu.matmul %0, %1, %cst {dimension_numbers = #tpu.dot_dimension_numbers<[1], [0], [0], [1], [0, 0, 1, 1], [], []>} : vector<128x1152xbf16>, vector<1152x256xbf16>, vector<128x256xf32> -> vector<128x256xf32>
    %3 = vector.extract_strided_slice %2 {offsets = [0, 0], sizes = [32, 256], strides = [1, 1]} : vector<128x256xf32> to vector<32x256xf32>
    %4 = vector.extract_strided_slice %2 {offsets = [32, 0], sizes = [32, 256], strides = [1, 1]} : vector<128x256xf32> to vector<32x256xf32>
    %5 = arith.maximumf %3, %4 : vector<32x256xf32>
    %6 = vector.extract_strided_slice %2 {offsets = [64, 0], sizes = [32, 256], strides = [1, 1]} : vector<128x256xf32> to vector<32x256xf32>
    %7 = vector.extract_strided_slice %2 {offsets = [96, 0], sizes = [32, 256], strides = [1, 1]} : vector<128x256xf32> to vector<32x256xf32>
    %8 = arith.maximumf %6, %7 : vector<32x256xf32>
    %9 = arith.maximumf %5, %8 : vector<32x256xf32>
    %c0_3 = arith.constant 0 : index
    %c0_4 = arith.constant 0 : index
    %10 = vector.load %arg3[%c0_3, %c0_4] : memref<1x256xf32, #tpu.memory_space<vmem>>, vector<1x256xf32>
    %11 = vector.broadcast %10 : vector<1x256xf32> to vector<32x256xf32>
    %12 = arith.addf %9, %11 : vector<32x256xf32>
    %cst_5 = arith.constant 0.000000e+00 : f32
    %13 = vector.broadcast %cst_5 : f32 to vector<32x256xf32>
    %14 = arith.maximumf %12, %13 : vector<32x256xf32>
    %c0_6 = arith.constant 0 : index
    %c0_7 = arith.constant 0 : index
    %15 = vector.load %arg4[%c0_6, %c0_7] : memref<1x256xf32, #tpu.memory_space<vmem>>, vector<1x256xf32>
    %16 = vector.broadcast %15 : vector<1x256xf32> to vector<32x256xf32>
    %17 = arith.addf %14, %16 : vector<32x256xf32>
    %18 = arith.truncf %17 : vector<32x256xf32> to vector<32x256xbf16>
    %c0_8 = arith.constant 0 : index
    %c0_9 = arith.constant 0 : index
    %19 = vector.load %arg5[%c0_8, %c0_9] : memref<32x256xbf16, #tpu.memory_space<vmem>>, vector<32x256xbf16>
    tpu.vector_store %arg5[%c0_8, %c0_9], %18 {strides = array<i32>} : memref<32x256xbf16, #tpu.memory_space<vmem>>, vector<32x256xbf16>,
    return
  }
  func.func @transform_0(%arg0: i32) -> (i32, i32) {
    %c0_i32 = arith.constant 0 : i32
    %c0_i32_0 = arith.constant 0 : i32
    return %arg0, %c0_i32 : i32, i32
  }
  func.func @transform_1(%arg0: i32) -> (i32, i32) {
    %c0_i32 = arith.constant 0 : i32
    %c0_i32_0 = arith.constant 0 : i32
    %c0_i32_1 = arith.constant 0 : i32
    return %c0_i32, %c0_i32_0 : i32, i32
  }
  func.func @transform_2(%arg0: i32) -> (i32, i32) {
    %c0_i32 = arith.constant 0 : i32
    %c0_i32_0 = arith.constant 0 : i32
    %c0_i32_1 = arith.constant 0 : i32
    return %c0_i32, %c0_i32_0 : i32, i32
  }
  func.func @transform_3(%arg0: i32) -> (i32, i32) {
    %c0_i32 = arith.constant 0 : i32
    %c0_i32_0 = arith.constant 0 : i32
    %c0_i32_1 = arith.constant 0 : i32
    return %c0_i32, %c0_i32_0 : i32, i32
  }
  func.func @transform_4(%arg0: i32) -> (i32, i32) {
    %c0_i32 = arith.constant 0 : i32
    %c0_i32_0 = arith.constant 0 : i32
    return %arg0, %c0_i32 : i32, i32
  }
}

module attributes {stable_mosaic.version = 11 : i64} {
  func.func @_tail_kernel(%arg0: memref<32x2304xbf16, #tpu.memory_space<vmem>>, %arg1: memref<2x8xf32, #tpu.memory_space<vmem>>, %arg2: memref<2304x512xbf16, #tpu.memory_space<vmem>>, %arg3: memref<1x512xf32, #tpu.memory_space<vmem>>, %arg4: memref<1x512xf32, #tpu.memory_space<vmem>>, %arg5: memref<512x1024xbf16, #tpu.memory_space<vmem>>, %arg6: memref<1x1024xf32, #tpu.memory_space<vmem>>, %arg7: memref<1x1024xf32, #tpu.memory_space<vmem>>, %arg8: memref<1024x512xbf16, #tpu.memory_space<vmem>>, %arg9: memref<1x512xf32, #tpu.memory_space<vmem>>, %arg10: memref<1x512xf32, #tpu.memory_space<vmem>>, %arg11: memref<512x128xbf16, #tpu.memory_space<vmem>>, %arg12: memref<1x128xf32, #tpu.memory_space<vmem>>, %arg13: memref<2x128xf32, #tpu.memory_space<vmem>>) attributes {dimension_semantics = [], scalar_prefetch = 0 : i64, scratch_operands = 0 : i64, tpu.core_type = #tpu.core_type<tc>} {
    %c0 = arith.constant 0 : index
    %c0_0 = arith.constant 0 : index
    %0 = vector.load %arg0[%c0, %c0_0] : memref<32x2304xbf16, #tpu.memory_space<vmem>>, vector<32x2304xbf16>
    %c0_1 = arith.constant 0 : index
    %c0_2 = arith.constant 0 : index
    %1 = vector.load %arg2[%c0_1, %c0_2] : memref<2304x512xbf16, #tpu.memory_space<vmem>>, vector<2304x512xbf16>
    %cst = arith.constant dense<0.000000e+00> : vector<32x512xf32>
    %2 = tpu.matmul %0, %1, %cst {dimension_numbers = #tpu.dot_dimension_numbers<[1], [0], [0], [1], [0, 0, 1, 1], [], []>} : vector<32x2304xbf16>, vector<2304x512xbf16>, vector<32x512xf32> -> vector<32x512xf32>
    %3 = vector.extract_strided_slice %2 {offsets = [0, 0], sizes = [8, 512], strides = [1, 1]} : vector<32x512xf32> to vector<8x512xf32>
    %4 = vector.extract_strided_slice %2 {offsets = [8, 0], sizes = [8, 512], strides = [1, 1]} : vector<32x512xf32> to vector<8x512xf32>
    %5 = arith.maximumf %3, %4 : vector<8x512xf32>
    %6 = vector.extract_strided_slice %2 {offsets = [16, 0], sizes = [8, 512], strides = [1, 1]} : vector<32x512xf32> to vector<8x512xf32>
    %7 = vector.extract_strided_slice %2 {offsets = [24, 0], sizes = [8, 512], strides = [1, 1]} : vector<32x512xf32> to vector<8x512xf32>
    %8 = arith.maximumf %6, %7 : vector<8x512xf32>
    %9 = arith.maximumf %5, %8 : vector<8x512xf32>
    %c0_3 = arith.constant 0 : index
    %c0_4 = arith.constant 0 : index
    %10 = vector.load %arg3[%c0_3, %c0_4] : memref<1x512xf32, #tpu.memory_space<vmem>>, vector<1x512xf32>
    %11 = vector.broadcast %10 : vector<1x512xf32> to vector<8x512xf32>
    %12 = arith.addf %9, %11 : vector<8x512xf32>
    %cst_5 = arith.constant 0.000000e+00 : f32
    %13 = vector.broadcast %cst_5 : f32 to vector<8x512xf32>
    %14 = arith.maximumf %12, %13 : vector<8x512xf32>
    %c0_6 = arith.constant 0 : index
    %c0_7 = arith.constant 0 : index
    %15 = vector.load %arg4[%c0_6, %c0_7] : memref<1x512xf32, #tpu.memory_space<vmem>>, vector<1x512xf32>
    %16 = vector.broadcast %15 : vector<1x512xf32> to vector<8x512xf32>
    %17 = arith.addf %14, %16 : vector<8x512xf32>
    %c0_8 = arith.constant 0 : index
    %c0_9 = arith.constant 0 : index
    %18 = vector.load %arg1[%c0_8, %c0_9] : memref<2x8xf32, #tpu.memory_space<vmem>>, vector<2x8xf32>
    %cst_10 = arith.constant dense<0.000000e+00> : vector<2x512xf32>
    %19 = tpu.matmul %18, %17, %cst_10 {dimension_numbers = #tpu.dot_dimension_numbers<[1], [0], [0], [1], [0, 0, 1, 1], [], []>} : vector<2x8xf32>, vector<8x512xf32>, vector<2x512xf32> -> vector<2x512xf32>
    %20 = arith.truncf %19 : vector<2x512xf32> to vector<2x512xbf16>
    %c0_11 = arith.constant 0 : index
    %c0_12 = arith.constant 0 : index
    %21 = vector.load %arg5[%c0_11, %c0_12] : memref<512x1024xbf16, #tpu.memory_space<vmem>>, vector<512x1024xbf16>
    %cst_13 = arith.constant dense<0.000000e+00> : vector<2x1024xf32>
    %22 = tpu.matmul %20, %21, %cst_13 {dimension_numbers = #tpu.dot_dimension_numbers<[1], [0], [0], [1], [0, 0, 1, 1], [], []>} : vector<2x512xbf16>, vector<512x1024xbf16>, vector<2x1024xf32> -> vector<2x1024xf32>
    %c0_14 = arith.constant 0 : index
    %c0_15 = arith.constant 0 : index
    %23 = vector.load %arg6[%c0_14, %c0_15] : memref<1x1024xf32, #tpu.memory_space<vmem>>, vector<1x1024xf32>
    %24 = vector.broadcast %23 : vector<1x1024xf32> to vector<2x1024xf32>
    %25 = arith.addf %22, %24 : vector<2x1024xf32>
    %cst_16 = arith.constant 0.000000e+00 : f32
    %26 = vector.broadcast %cst_16 : f32 to vector<2x1024xf32>
    %27 = arith.maximumf %25, %26 : vector<2x1024xf32>
    %c0_17 = arith.constant 0 : index
    %c0_18 = arith.constant 0 : index
    %28 = vector.load %arg7[%c0_17, %c0_18] : memref<1x1024xf32, #tpu.memory_space<vmem>>, vector<1x1024xf32>
    %29 = vector.broadcast %28 : vector<1x1024xf32> to vector<2x1024xf32>
    %30 = arith.addf %27, %29 : vector<2x1024xf32>
    %31 = arith.truncf %30 : vector<2x1024xf32> to vector<2x1024xbf16>
    %c0_19 = arith.constant 0 : index
    %c0_20 = arith.constant 0 : index
    %32 = vector.load %arg8[%c0_19, %c0_20] : memref<1024x512xbf16, #tpu.memory_space<vmem>>, vector<1024x512xbf16>
    %cst_21 = arith.constant dense<0.000000e+00> : vector<2x512xf32>
    %33 = tpu.matmul %31, %32, %cst_21 {dimension_numbers = #tpu.dot_dimension_numbers<[1], [0], [0], [1], [0, 0, 1, 1], [], []>} : vector<2x1024xbf16>, vector<1024x512xbf16>, vector<2x512xf32> -> vector<2x512xf32>
    %c0_22 = arith.constant 0 : index
    %c0_23 = arith.constant 0 : index
    %34 = vector.load %arg9[%c0_22, %c0_23] : memref<1x512xf32, #tpu.memory_space<vmem>>, vector<1x512xf32>
    %35 = vector.broadcast %34 : vector<1x512xf32> to vector<2x512xf32>
    %36 = arith.addf %33, %35 : vector<2x512xf32>
    %cst_24 = arith.constant 0.000000e+00 : f32
    %37 = vector.broadcast %cst_24 : f32 to vector<2x512xf32>
    %38 = arith.maximumf %36, %37 : vector<2x512xf32>
    %c0_25 = arith.constant 0 : index
    %c0_26 = arith.constant 0 : index
    %39 = vector.load %arg10[%c0_25, %c0_26] : memref<1x512xf32, #tpu.memory_space<vmem>>, vector<1x512xf32>
    %40 = vector.broadcast %39 : vector<1x512xf32> to vector<2x512xf32>
    %41 = arith.addf %38, %40 : vector<2x512xf32>
    %42 = arith.truncf %41 : vector<2x512xf32> to vector<2x512xbf16>
    %c0_27 = arith.constant 0 : index
    %c0_28 = arith.constant 0 : index
    %43 = vector.load %arg11[%c0_27, %c0_28] : memref<512x128xbf16, #tpu.memory_space<vmem>>, vector<512x128xbf16>
    %cst_29 = arith.constant dense<0.000000e+00> : vector<2x128xf32>
    %44 = tpu.matmul %42, %43, %cst_29 {dimension_numbers = #tpu.dot_dimension_numbers<[1], [0], [0], [1], [0, 0, 1, 1], [], []>} : vector<2x512xbf16>, vector<512x128xbf16>, vector<2x128xf32> -> vector<2x128xf32>
    %c0_30 = arith.constant 0 : index
    %c0_31 = arith.constant 0 : index
    %45 = vector.load %arg12[%c0_30, %c0_31] : memref<1x128xf32, #tpu.memory_space<vmem>>, vector<1x128xf32>
    %46 = vector.broadcast %45 : vector<1x128xf32> to vector<2x128xf32>
    %47 = arith.addf %44, %46 : vector<2x128xf32>
    %c0_32 = arith.constant 0 : index
    %c0_33 = arith.constant 0 : index
    %48 = vector.load %arg13[%c0_32, %c0_33] : memref<2x128xf32, #tpu.memory_space<vmem>>, vector<2x128xf32>
    tpu.vector_store %arg13[%c0_32, %c0_33], %47 {strides = array<i32>} : memref<2x128xf32, #tpu.memory_space<vmem>>, vector<2x128xf32>,
    return
  }
}

</mosaic_0001>

<bundles_post_ra>
// kernel: my_model_forward.4
= control target key start
LH: loop header
LB: loop body
LE: loop exit
PB: predicated region body
PF: predicated region fallthrough
CT: control target
= control target key end

     0   :  { %vm930_vm0 = vcmask 261120   ;;  %vm3026_vm1 = vcmask 519168   ;;  %s5340_s1 = inlined_call_operand.vmem [shape: bf16[32,64], index: 1, kind: input, shape index: {}]   ;;  %s5341_s0 = inlined_call_operand.vmem [shape: bf16[2048,32], index: 0, kind: input, shape index: {}]   ;;  %s5342_s2 = inlined_call_operand.vmem [shape: f32[1,64], index: 2, kind: input, shape index: {}]   ;;  %s5343_s3 = inlined_call_operand.vmem [shape: f32[1,64], index: 3, kind: input, shape index: {}]   ;;  %s5344_s4 = inlined_call_operand.vmem [shape: bf16[512,64], index: 4, kind: output, shape index: {}]  }
   0x1   :  { %v3877_v0 = vld [vmem:[%s5340_s1] sm:$0xff]   ;;  %v3878_v1 = vld [vmem:[%s5340_s1 + $0x8] sm:$0xff]   ;;  %v3883_v6 = vld [vmem:[%s5341_s0 + $0x10] sm:$0xff]  }
   0x2   :  { %3613 = vmatprep.subr.bf16.mxu0 %v3877_v0  ;;  %3873 = vmatprep.subr.bf16.mxu1 %v3877_v0  ;;  %v3879_v2 = vld [vmem:[%s5341_s0] sm:$0xff]   ;;  %v3881_v4 = vld [vmem:[%s5341_s0 + $0x8] sm:$0xff]   ;;  %v3884_v7 = vld [vmem:[%s5341_s0 + $0x210] sm:$0xff]  }
   0x3   :  { %3614 = vmatpush3.bf16.msra.mxu0 %v3877_v0  ;;  %3875 = vmatpush3.bf16.msra.mxu1 %v3877_v0  ;;  %v3880_v3 = vld [vmem:[%s5341_s0 + $0x200] sm:$0xff]   ;;  %v3882_v5 = vld [vmem:[%s5341_s0 + $0x208] sm:$0xff]   ;;  %v3885_v8 = vld [vmem:[%s5341_s0 + $0x18] sm:$0xff]  }
   0x4   :  { %3615 = vmatprep.subr.bf16.mxu0 %v3878_v1  ;;  %3874 = vmatprep.subr.bf16.mxu1 %v3878_v1  ;;  %v3886_v9 = vld [vmem:[%s5341_s0 + $0x218] sm:$0xff]   ;;  %v3887_v10 = vld [vmem:[%s5341_s0 + $0x20] sm:$0xff]   ;;  %v3889_v12 = vld [vmem:[%s5341_s0 + $0x28] sm:$0xff]  }
   0x5   :  { %3617 = vmatprep.mubr.msk.bf16.mxu0 %vm930_vm0, %v3879_v2  ;;  %3745 = vmatprep.mubr.msk.bf16.mxu1 %vm930_vm0, %v3880_v3  ;;  %v3888_v11 = vld [vmem:[%s5341_s0 + $0x220] sm:$0xff]   ;;  %v3890_v13 = vld [vmem:[%s5341_s0 + $0x228] sm:$0xff]   ;;  %v3891_v14 = vld [vmem:[%s5341_s0 + $0x30] sm:$0xff]  }
   0x6   :  { %v3892_v15 = vld [vmem:[%s5341_s0 + $0x230] sm:$0xff]   ;;  %v3893_v16 = vld [vmem:[%s5341_s0 + $0x38] sm:$0xff]   ;;  %v3895_v18 = vld [vmem:[%s5341_s0 + $0x40] sm:$0xff]  }
   0x7   :  { %3616 = vmatpush3.bf16.msra.mxu0 %v3878_v1  ;;  %3876 = vmatpush3.bf16.msra.mxu1 %v3878_v1  ;;  %v3894_v17 = vld [vmem:[%s5341_s0 + $0x238] sm:$0xff]   ;;  %v3896_v19 = vld [vmem:[%s5341_s0 + $0x240] sm:$0xff]   ;;  %v3897_v20 = vld [vmem:[%s5341_s0 + $0x48] sm:$0xff]  }
   0x8   :  { %v3898_v21 = vld [vmem:[%s5341_s0 + $0x248] sm:$0xff]   ;;  %v3899_v22 = vld [vmem:[%s5341_s0 + $0x50] sm:$0xff]   ;;  %v3901_v24 = vld [vmem:[%s5341_s0 + $0x58] sm:$0xff]  }
   0x9   :  { %v3900_v23 = vld [vmem:[%s5341_s0 + $0x250] sm:$0xff]   ;;  %v3902_v25 = vld [vmem:[%s5341_s0 + $0x258] sm:$0xff]   ;;  %v3903_v26 = vld [vmem:[%s5341_s0 + $0x60] sm:$0xff]  }
   0xa   :  { %3618 = vmatmul.mubr.msk.bf16.vlgmr.msra.gmra.mrb[0].mxu0 %vm930_vm0, %v3881_v4  ;;  %3746 = vmatmul.mubr.msk.bf16.vlgmr.msra.gmra.mrb[0].mxu1 %vm930_vm0, %v3882_v5  ;;  %v3904_v27 = vld [vmem:[%s5341_s0 + $0x260] sm:$0xff]   ;;  %v3905_v28 = vld [vmem:[%s5341_s0 + $0x68] sm:$0xff]   ;;  %v3907_v30 = vld [vmem:[%s5341_s0 + $0x70] sm:$0xff]  }
   0xb   :  { %3621 = vmatprep.mubr.msk.bf16.mxu0 %vm930_vm0, %v3883_v6  ;;  %3749 = vmatprep.mubr.msk.bf16.mxu1 %vm930_vm0, %v3884_v7  ;;  %v3906_v29 = vld [vmem:[%s5341_s0 + $0x268] sm:$0xff]   ;;  %v3908_v31 = vld [vmem:[%s5341_s0 + $0x270] sm:$0xff]   ;;  %v3909_v32 = vld [vmem:[%s5341_s0 + $0x78] sm:$0xff]  }
   0xc   :  { %v3910_v33 = vld [vmem:[%s5341_s0 + $0x278] sm:$0xff]   ;;  %v3911_v34 = vld [vmem:[%s5341_s0 + $0x80] sm:$0xff]   ;;  %v3913_v36 = vld [vmem:[%s5341_s0 + $0x88] sm:$0xff]  }
   0xd   :  { %v3912_v35 = vld [vmem:[%s5341_s0 + $0x280] sm:$0xff]   ;;  %v3914_v37 = vld [vmem:[%s5341_s0 + $0x288] sm:$0xff]   ;;  %v3915_v38 = vld [vmem:[%s5341_s0 + $0x90] sm:$0xff]  }
   0xe   :  { %v3916_v39 = vld [vmem:[%s5341_s0 + $0x290] sm:$0xff]   ;;  %v3917_v40 = vld [vmem:[%s5341_s0 + $0x98] sm:$0xff]   ;;  %v3919_v42 = vld [vmem:[%s5341_s0 + $0xa0] sm:$0xff]  }
   0xf   :  { %v3918_v41 = vld [vmem:[%s5341_s0 + $0x298] sm:$0xff]   ;;  %v3920_v43 = vld [vmem:[%s5341_s0 + $0x2a0] sm:$0xff]   ;;  %v3921_v44 = vld [vmem:[%s5341_s0 + $0xa8] sm:$0xff]  }
  0x10   :  { %v3922_v45 = vld [vmem:[%s5341_s0 + $0x2a8] sm:$0xff]   ;;  %v3923_v46 = vld [vmem:[%s5341_s0 + $0xb0] sm:$0xff]   ;;  %v3925_v48 = vld [vmem:[%s5341_s0 + $0xb8] sm:$0xff]  }
  0x11   :  { %v3924_v47 = vld [vmem:[%s5341_s0 + $0x2b0] sm:$0xff]   ;;  %v3926_v49 = vld [vmem:[%s5341_s0 + $0x2b8] sm:$0xff]   ;;  %v3927_v50 = vld [vmem:[%s5341_s0 + $0xc0] sm:$0xff]  }
  0x12   :  { %3622 = vmatmul.mubr.msk.bf16.gmra.mrb[4].mxu0 %vm930_vm0, %v3885_v8  ;;  %3750 = vmatmul.mubr.msk.bf16.gmra.mrb[4].mxu1 %vm930_vm0, %v3886_v9  ;;  %v3928_v51 = vld [vmem:[%s5341_s0 + $0x2c0] sm:$0xff]   ;;  %v3929_v52 = vld [vmem:[%s5341_s0 + $0xc8] sm:$0xff]   ;;  %v3931_v54 = vld [vmem:[%s5341_s0 + $0xd0] sm:$0xff]  }
  0x13   :  { %3625 = vmatprep.mubr.msk.bf16.mxu0 %vm930_vm0, %v3887_v10  ;;  %3753 = vmatprep.mubr.msk.bf16.mxu1 %vm930_vm0, %v3888_v11  ;;  %v3930_v53 = vld [vmem:[%s5341_s0 + $0x2c8] sm:$0xff]   ;;  %v3932_v55 = vld [vmem:[%s5341_s0 + $0x2d0] sm:$0xff]   ;;  %v3933_v56 = vld [vmem:[%s5341_s0 + $0xd8] sm:$0xff]  }
  0x14   :  { %v3934_v57 = vld [vmem:[%s5341_s0 + $0x2d8] sm:$0xff]   ;;  %v3935_v58 = vld [vmem:[%s5341_s0 + $0xe0] sm:$0xff]   ;;  %v3937_v60 = vld [vmem:[%s5341_s0 + $0xe8] sm:$0xff]  }
  0x15   :  { %v3936_v59 = vld [vmem:[%s5341_s0 + $0x2e0] sm:$0xff]   ;;  %v3938_v61 = vld [vmem:[%s5341_s0 + $0x2e8] sm:$0xff]   ;;  %v3939_v62 = vld [vmem:[%s5341_s0 + $0xf0] sm:$0xff]  }
  0x16   :  { %v3940_v63 = vld [vmem:[%s5341_s0 + $0x2f0] sm:$0xff]   ;;  %v3941_v0 = vld [vmem:[%s5341_s0 + $0xf8] sm:$0xff]   ;;  %v3943_v2 = vld [vmem:[%s5341_s0 + $0x100] sm:$0xff]  }
  0x17   :  { %v3942_v1 = vld [vmem:[%s5341_s0 + $0x2f8] sm:$0xff]   ;;  %v3944_v3 = vld [vmem:[%s5341_s0 + $0x300] sm:$0xff]   ;;  %v3945_v4 = vld [vmem:[%s5341_s0 + $0x108] sm:$0xff]  }
  0x18   :  { %v3946_v5 = vld [vmem:[%s5341_s0 + $0x308] sm:$0xff]   ;;  %v3947_v6 = vld [vmem:[%s5341_s0 + $0x110] sm:$0xff]   ;;  %v3949_v8 = vld [vmem:[%s5341_s0 + $0x118] sm:$0xff]  }
  0x19   :  { %v3948_v7 = vld [vmem:[%s5341_s0 + $0x310] sm:$0xff]   ;;  %v3950_v9 = vld [vmem:[%s5341_s0 + $0x318] sm:$0xff]   ;;  %v3951_v10 = vld [vmem:[%s5341_s0 + $0x120] sm:$0xff]  }
  0x1a   :  { %3626 = vmatmul.mubr.msk.bf16.gmra.mrb[8].mxu0 %vm930_vm0, %v3889_v12  ;;  %3754 = vmatmul.mubr.msk.bf16.gmra.mrb[8].mxu1 %vm930_vm0, %v3890_v13  ;;  %v3952_v11 = vld [vmem:[%s5341_s0 + $0x320] sm:$0xff]   ;;  %v3953_v12 = vld [vmem:[%s5341_s0 + $0x128] sm:$0xff]  }
  0x1b   :  { %3629 = vmatprep.mubr.msk.bf16.mxu0 %vm930_vm0, %v3891_v14  ;;  %3757 = vmatprep.mubr.msk.bf16.mxu1 %vm930_vm0, %v3892_v15  ;;  %v3954_v13 = vld [vmem:[%s5341_s0 + $0x328] sm:$0xff]   ;;  %v3955_v14 = vld [vmem:[%s5341_s0 + $0x130] sm:$0xff]  }
  0x1c   :  { %v3956_v15 = vld [vmem:[%s5341_s0 + $0x330] sm:$0xff]  }
  0x22   :  { %3630 = vmatmul.mubr.msk.bf16.gmra.mrb[12].mxu0 %vm930_vm0, %v3893_v16  ;;  %3758 = vmatmul.mubr.msk.bf16.gmra.mrb[12].mxu1 %vm930_vm0, %v3894_v17  ;;  %v3957_v16 = vld [vmem:[%s5341_s0 + $0x138] sm:$0xff]  }
  0x23   :  { %3633 = vmatprep.mubr.msk.bf16.mxu0 %vm930_vm0, %v3895_v18  ;;  %3761 = vmatprep.mubr.msk.bf16.mxu1 %vm930_vm0, %v3896_v19  ;;  %v3958_v17 = vld [vmem:[%s5341_s0 + $0x338] sm:$0xff]   ;;  %v3959_v18 = vld [vmem:[%s5341_s0 + $0x140] sm:$0xff]  }
  0x24   :  { %v3960_v19 = vld [vmem:[%s5341_s0 + $0x340] sm:$0xff]  }
  0x2a   :  { %3634 = vmatmul.mubr.msk.bf16.gmra.mrb[16].mxu0 %vm930_vm0, %v3897_v20  ;;  %3762 = vmatmul.mubr.msk.bf16.gmra.mrb[16].mxu1 %vm930_vm0, %v3898_v21  ;;  %v3961_v20 = vld [vmem:[%s5341_s0 + $0x148] sm:$0xff]  }
  0x2b   :  { %3637 = vmatprep.mubr.msk.bf16.mxu0 %vm930_vm0, %v3899_v22  ;;  %3765 = vmatprep.mubr.msk.bf16.mxu1 %vm930_vm0, %v3900_v23  ;;  %v3962_v21 = vld [vmem:[%s5341_s0 + $0x348] sm:$0xff]   ;;  %v3963_v22 = vld [vmem:[%s5341_s0 + $0x150] sm:$0xff]  }
  0x2c   :  { %v3964_v23 = vld [vmem:[%s5341_s0 + $0x350] sm:$0xff]  }
  0x32   :  { %3638 = vmatmul.mubr.msk.bf16.gmra.mrb[20].mxu0 %vm930_vm0, %v3901_v24  ;;  %3766 = vmatmul.mubr.msk.bf16.gmra.mrb[20].mxu1 %vm930_vm0, %v3902_v25  ;;  %v3965_v24 = vld [vmem:[%s5341_s0 + $0x158] sm:$0xff]  }
  0x33   :  { %3641 = vmatprep.mubr.msk.bf16.mxu0 %vm930_vm0, %v3903_v26  ;;  %3769 = vmatprep.mubr.msk.bf16.mxu1 %vm930_vm0, %v3904_v27  ;;  %v3966_v25 = vld [vmem:[%s5341_s0 + $0x358] sm:$0xff]   ;;  %v3967_v26 = vld [vmem:[%s5341_s0 + $0x160] sm:$0xff]  }
  0x34   :  { %v3968_v27 = vld [vmem:[%s5341_s0 + $0x360] sm:$0xff]  }
  0x3a   :  { %3642 = vmatmul.mubr.msk.bf16.gmra.mrb[24].mxu0 %vm930_vm0, %v3905_v28  ;;  %3770 = vmatmul.mubr.msk.bf16.gmra.mrb[24].mxu1 %vm930_vm0, %v3906_v29  ;;  %v3969_v28 = vld [vmem:[%s5341_s0 + $0x168] sm:$0xff]  }
  0x3b   :  { %3645 = vmatprep.mubr.msk.bf16.mxu0 %vm930_vm0, %v3907_v30  ;;  %3773 = vmatprep.mubr.msk.bf16.mxu1 %vm930_vm0, %v3908_v31  ;;  %v3970_v29 = vld [vmem:[%s5341_s0 + $0x368] sm:$0xff]   ;;  %v3971_v30 = vld [vmem:[%s5341_s0 + $0x170] sm:$0xff]  }
  0x3c   :  { %v3972_v31 = vld [vmem:[%s5341_s0 + $0x370] sm:$0xff]  }
  0x42   :  { %3646 = vmatmul.mubr.msk.bf16.gmra.mrb[28].mxu0 %vm930_vm0, %v3909_v32  ;;  %3774 = vmatmul.mubr.msk.bf16.gmra.mrb[28].mxu1 %vm930_vm0, %v3910_v33  ;;  %v3973_v32 = vld [vmem:[%s5341_s0 + $0x178] sm:$0xff]  }
  0x43   :  { %3649 = vmatprep.mubr.msk.bf16.mxu0 %vm930_vm0, %v3911_v34  ;;  %3777 = vmatprep.mubr.msk.bf16.mxu1 %vm930_vm0, %v3912_v35  ;;  %v3974_v33 = vld [vmem:[%s5341_s0 + $0x378] sm:$0xff]   ;;  %v3975_v34 = vld [vmem:[%s5341_s0 + $0x180] sm:$0xff]  }
  0x44   :  { %v3976_v35 = vld [vmem:[%s5341_s0 + $0x380] sm:$0xff]  }
  0x4a   :  { %3650 = vmatmul.mubr.msk.bf16.gmra.mrb[32].mxu0 %vm930_vm0, %v3913_v36  ;;  %3778 = vmatmul.mubr.msk.bf16.gmra.mrb[32].mxu1 %vm930_vm0, %v3914_v37  ;;  %v3977_v36 = vld [vmem:[%s5341_s0 + $0x188] sm:$0xff]  }
  0x4b   :  { %3653 = vmatprep.mubr.msk.bf16.mxu0 %vm930_vm0, %v3915_v38  ;;  %3781 = vmatprep.mubr.msk.bf16.mxu1 %vm930_vm0, %v3916_v39  ;;  %v3978_v37 = vld [vmem:[%s5341_s0 + $0x388] sm:$0xff]   ;;  %v3979_v38 = vld [vmem:[%s5341_s0 + $0x190] sm:$0xff]  }
  0x4c   :  { %v3980_v39 = vld [vmem:[%s5341_s0 + $0x390] sm:$0xff]  }
  0x52   :  { %3654 = vmatmul.mubr.msk.bf16.gmra.mrb[36].mxu0 %vm930_vm0, %v3917_v40  ;;  %3782 = vmatmul.mubr.msk.bf16.gmra.mrb[36].mxu1 %vm930_vm0, %v3918_v41  ;;  %v3981_v40 = vld [vmem:[%s5341_s0 + $0x198] sm:$0xff]  }
  0x53   :  { %3657 = vmatprep.mubr.msk.bf16.mxu0 %vm930_vm0, %v3919_v42  ;;  %3785 = vmatprep.mubr.msk.bf16.mxu1 %vm930_vm0, %v3920_v43  ;;  %v3982_v41 = vld [vmem:[%s5341_s0 + $0x398] sm:$0xff]   ;;  %v3983_v42 = vld [vmem:[%s5341_s0 + $0x1a0] sm:$0xff]  }
  0x54   :  { %v3984_v43 = vld [vmem:[%s5341_s0 + $0x3a0] sm:$0xff]  }
  0x5a   :  { %3658 = vmatmul.mubr.msk.bf16.gmra.mrb[40].mxu0 %vm930_vm0, %v3921_v44  ;;  %3786 = vmatmul.mubr.msk.bf16.gmra.mrb[40].mxu1 %vm930_vm0, %v3922_v45  ;;  %v3985_v44 = vld [vmem:[%s5341_s0 + $0x1a8] sm:$0xff]  }
  0x5b   :  { %3661 = vmatprep.mubr.msk.bf16.mxu0 %vm930_vm0, %v3923_v46  ;;  %3789 = vmatprep.mubr.msk.bf16.mxu1 %vm930_vm0, %v3924_v47  ;;  %v3986_v45 = vld [vmem:[%s5341_s0 + $0x3a8] sm:$0xff]   ;;  %v3987_v46 = vld [vmem:[%s5341_s0 + $0x1b0] sm:$0xff]  }
  0x5c   :  { %v3988_v47 = vld [vmem:[%s5341_s0 + $0x3b0] sm:$0xff]  }
  0x62   :  { %3662 = vmatmul.mubr.msk.bf16.gmra.mrb[44].mxu0 %vm930_vm0, %v3925_v48  ;;  %3790 = vmatmul.mubr.msk.bf16.gmra.mrb[44].mxu1 %vm930_vm0, %v3926_v49 }
  0x63   :  { %3665 = vmatprep.mubr.msk.bf16.mxu0 %vm930_vm0, %v3927_v50  ;;  %3793 = vmatprep.mubr.msk.bf16.mxu1 %vm930_vm0, %v3928_v51 }
  0x6a   :  { %3666 = vmatmul.mubr.msk.bf16.gmra.mrb[48].mxu0 %vm930_vm0, %v3929_v52  ;;  %3794 = vmatmul.mubr.msk.bf16.gmra.mrb[48].mxu1 %vm930_vm0, %v3930_v53  ;;  %v3989_v52 = vld [vmem:[%s5341_s0 + $0x1b8] sm:$0xff]  }
  0x6b   :  { %3669 = vmatprep.mubr.msk.bf16.mxu0 %vm930_vm0, %v3931_v54  ;;  %3797 = vmatprep.mubr.msk.bf16.mxu1 %vm930_vm0, %v3932_v55  ;;  %v3990_v53 = vld [vmem:[%s5341_s0 + $0x3b8] sm:$0xff]  }
  0x72   :  { %3670 = vmatmul.mubr.msk.bf16.gmra.mrb[52].mxu0 %vm930_vm0, %v3933_v56  ;;  %3798 = vmatmul.mubr.msk.bf16.gmra.mrb[52].mxu1 %vm930_vm0, %v3934_v57  ;;  %v3991_v56 = vld [vmem:[%s5341_s0 + $0x1c0] sm:$0xff]  }
  0x73   :  { %3673 = vmatprep.mubr.msk.bf16.mxu0 %vm930_vm0, %v3935_v58  ;;  %3801 = vmatprep.mubr.msk.bf16.mxu1 %vm930_vm0, %v3936_v59  ;;  %v3992_v57 = vld [vmem:[%s5341_s0 + $0x3c0] sm:$0xff]  }
  0x7a   :  { %3674 = vmatmul.mubr.msk.bf16.gmra.mrb[56].mxu0 %vm930_vm0, %v3937_v60  ;;  %3802 = vmatmul.mubr.msk.bf16.gmra.mrb[56].mxu1 %vm930_vm0, %v3938_v61 }
  0x7b   :  { %3677 = vmatprep.mubr.msk.bf16.mxu0 %vm930_vm0, %v3939_v62  ;;  %3805 = vmatprep.mubr.msk.bf16.mxu1 %vm930_vm0, %v3940_v63 }
  0x82   :  { %3678 = vmatmul.mubr.msk.bf16.gmra.mrb[60].mxu0 %vm930_vm0, %v3941_v0  ;;  %3806 = vmatmul.mubr.msk.bf16.gmra.mrb[60].mxu1 %vm930_vm0, %v3942_v1  ;;  %v3993_v0 = vld [vmem:[%s5341_s0 + $0x1c8] sm:$0xff]  }
  0x83   :  { %3681 = vmatprep.mubr.msk.bf16.mxu0 %vm930_vm0, %v3943_v2  ;;  %3809 = vmatprep.mubr.msk.bf16.mxu1 %vm930_vm0, %v3944_v3  ;;  %v3994_v1 = vld [vmem:[%s5341_s0 + $0x3c8] sm:$0xff]  }
  0x8a   :  { %3682 = vmatmul.mubr.msk.bf16.gmra.mrb[64].mxu0 %vm930_vm0, %v3945_v4  ;;  %3810 = vmatmul.mubr.msk.bf16.gmra.mrb[64].mxu1 %vm930_vm0, %v3946_v5  ;;  %v3995_v4 = vld [vmem:[%s5341_s0 + $0x1d0] sm:$0xff]  }
  0x8b   :  { %3685 = vmatprep.mubr.msk.bf16.mxu0 %vm930_vm0, %v3947_v6  ;;  %3813 = vmatprep.mubr.msk.bf16.mxu1 %vm930_vm0, %v3948_v7  ;;  %v3996_v5 = vld [vmem:[%s5341_s0 + $0x3d0] sm:$0xff]  }
  0x92   :  { %3686 = vmatmul.mubr.msk.bf16.gmra.mrb[68].mxu0 %vm930_vm0, %v3949_v8  ;;  %3814 = vmatmul.mubr.msk.bf16.gmra.mrb[68].mxu1 %vm930_vm0, %v3950_v9 }
  0x93   :  { %3689 = vmatprep.mubr.msk.bf16.mxu0 %vm930_vm0, %v3951_v10  ;;  %3817 = vmatprep.mubr.msk.bf16.mxu1 %vm930_vm0, %v3952_v11 }
  0x9a   :  { %3690 = vmatmul.mubr.msk.bf16.gmra.mrb[72].mxu0 %vm930_vm0, %v3953_v12  ;;  %3818 = vmatmul.mubr.msk.bf16.gmra.mrb[72].mxu1 %vm930_vm0, %v3954_v13  ;;  %v3997_v12 = vld [vmem:[%s5341_s0 + $0x1d8] sm:$0xff]  }
  0x9b   :  { %3693 = vmatprep.mubr.msk.bf16.mxu0 %vm930_vm0, %v3955_v14  ;;  %3821 = vmatprep.mubr.msk.bf16.mxu1 %vm930_vm0, %v3956_v15  ;;  %v3998_v13 = vld [vmem:[%s5341_s0 + $0x3d8] sm:$0xff]  }
  0xa2   :  { %3694 = vmatmul.mubr.msk.bf16.gmra.mrb[76].mxu0 %vm930_vm0, %v3957_v16  ;;  %3822 = vmatmul.mubr.msk.bf16.gmra.mrb[76].mxu1 %vm930_vm0, %v3958_v17  ;;  %v3999_v16 = vld [vmem:[%s5341_s0 + $0x1e0] sm:$0xff]  }
  0xa3   :  { %3697 = vmatprep.mubr.msk.bf16.mxu0 %vm930_vm0, %v3959_v18  ;;  %3825 = vmatprep.mubr.msk.bf16.mxu1 %vm930_vm0, %v3960_v19  ;;  %v4000_v17 = vld [vmem:[%s5341_s0 + $0x3e0] sm:$0xff]  }
  0xaa   :  { %3698 = vmatmul.mubr.msk.bf16.gmra.mrb[80].mxu0 %vm930_vm0, %v3961_v20  ;;  %3826 = vmatmul.mubr.msk.bf16.gmra.mrb[80].mxu1 %vm930_vm0, %v3962_v21 }
  0xab   :  { %3701 = vmatprep.mubr.msk.bf16.mxu0 %vm930_vm0, %v3963_v22  ;;  %3829 = vmatprep.mubr.msk.bf16.mxu1 %vm930_vm0, %v3964_v23 }
  0xb2   :  { %3702 = vmatmul.mubr.msk.bf16.gmra.mrb[84].mxu0 %vm930_vm0, %v3965_v24  ;;  %3830 = vmatmul.mubr.msk.bf16.gmra.mrb[84].mxu1 %vm930_vm0, %v3966_v25  ;;  %v4001_v24 = vld [vmem:[%s5341_s0 + $0x1e8] sm:$0xff]  }
  0xb3   :  { %3705 = vmatprep.mubr.msk.bf16.mxu0 %vm930_vm0, %v3967_v26  ;;  %3833 = vmatprep.mubr.msk.bf16.mxu1 %vm930_vm0, %v3968_v27  ;;  %v4002_v25 = vld [vmem:[%s5341_s0 + $0x3e8] sm:$0xff]  }
  0xba   :  { %3706 = vmatmul.mubr.msk.bf16.gmra.mrb[88].mxu0 %vm930_vm0, %v3969_v28  ;;  %3834 = vmatmul.mubr.msk.bf16.gmra.mrb[88].mxu1 %vm930_vm0, %v3970_v29  ;;  %v4003_v28 = vld [vmem:[%s5341_s0 + $0x1f0] sm:$0xff]  }
  0xbb   :  { %3709 = vmatprep.mubr.msk.bf16.mxu0 %vm930_vm0, %v3971_v30  ;;  %3837 = vmatprep.mubr.msk.bf16.mxu1 %vm930_vm0, %v3972_v31  ;;  %v4004_v29 = vld [vmem:[%s5341_s0 + $0x3f0] sm:$0xff]  }
  0xc2   :  { %3710 = vmatmul.mubr.msk.bf16.gmra.mrb[92].mxu0 %vm930_vm0, %v3973_v32  ;;  %3838 = vmatmul.mubr.msk.bf16.gmra.mrb[92].mxu1 %vm930_vm0, %v3974_v33 }
  0xc3   :  { %3713 = vmatprep.mubr.msk.bf16.mxu0 %vm930_vm0, %v3975_v34  ;;  %3841 = vmatprep.mubr.msk.bf16.mxu1 %vm930_vm0, %v3976_v35 }
  0xca   :  { %3714 = vmatmul.mubr.msk.bf16.gmra.mrb[96].mxu0 %vm930_vm0, %v3977_v36  ;;  %3842 = vmatmul.mubr.msk.bf16.gmra.mrb[96].mxu1 %vm930_vm0, %v3978_v37  ;;  %v4005_v36 = vld [vmem:[%s5341_s0 + $0x1f8] sm:$0xff]  }
  0xcb   :  { %3717 = vmatprep.mubr.msk.bf16.mxu0 %vm930_vm0, %v3979_v38  ;;  %3845 = vmatprep.mubr.msk.bf16.mxu1 %vm930_vm0, %v3980_v39  ;;  %v4006_v37 = vld [vmem:[%s5341_s0 + $0x3f8] sm:$0xff]  }
  0xd2   :  { %3718 = vmatmul.mubr.msk.bf16.gmra.mrb[100].mxu0 %vm930_vm0, %v3981_v40  ;;  %3846 = vmatmul.mubr.msk.bf16.gmra.mrb[100].mxu1 %vm930_vm0, %v3982_v41 }
  0xd3   :  { %3721 = vmatprep.mubr.msk.bf16.mxu0 %vm930_vm0, %v3983_v42  ;;  %3849 = vmatprep.mubr.msk.bf16.mxu1 %vm930_vm0, %v3984_v43 }
  0xda   :  { %3722 = vmatmul.mubr.msk.bf16.gmra.mrb[104].mxu0 %vm930_vm0, %v3985_v44  ;;  %3850 = vmatmul.mubr.msk.bf16.gmra.mrb[104].mxu1 %vm930_vm0, %v3986_v45 }
  0xdb   :  { %3725 = vmatprep.mubr.msk.bf16.mxu0 %vm930_vm0, %v3987_v46  ;;  %3853 = vmatprep.mubr.msk.bf16.mxu1 %vm930_vm0, %v3988_v47 }
  0xdd   :  { %v4480_v48 = vpop.f32.mrb[0].mxu0  ;;  %v4482_v49 = vpop.f32.mrb[0].mxu1 }
  0xde   :  { %v4484_v50 = vpop.f32.mrb[1].mxu0  ;;  %v4486_v51 = vpop.f32.mrb[1].mxu1 }
  0xdf   :  { %v4494_v54 = vpop.f32.mrb[2].mxu0  ;;  %v4496_v55 = vpop.f32.mrb[2].mxu1 }
  0xe0   :  { %v4504_v58 = vpop.f32.mrb[3].mxu0  ;;  %v4506_v59 = vpop.f32.mrb[3].mxu1 }
  0xe2   :  { %3726 = vmatmul.mubr.msk.bf16.gmra.mrb[108].mxu0 %vm930_vm0, %v3989_v52  ;;  %3854 = vmatmul.mubr.msk.bf16.gmra.mrb[108].mxu1 %vm930_vm0, %v3990_v53 }
  0xe3   :  { %3729 = vmatprep.mubr.msk.bf16.mxu0 %vm930_vm0, %v3991_v56  ;;  %3857 = vmatprep.mubr.msk.bf16.mxu1 %vm930_vm0, %v3992_v57 }
  0xe5   :  { %v4512_v60 = vpop.f32.mrb[4].mxu0  ;;  %v4514_v61 = vpop.f32.mrb[4].mxu1 }
  0xe6   :  { %v4516_v62 = vpop.f32.mrb[5].mxu0  ;;  %v4518_v63 = vpop.f32.mrb[5].mxu1 }
  0xe7   :  { %v4526_v2 = vpop.f32.mrb[6].mxu0  ;;  %v4528_v3 = vpop.f32.mrb[6].mxu1 }
  0xe8   :  { %v4536_v6 = vpop.f32.mrb[7].mxu0  ;;  %v4538_v7 = vpop.f32.mrb[7].mxu1 }
  0xea   :  { %3730 = vmatmul.mubr.msk.bf16.gmra.mrb[112].mxu0 %vm930_vm0, %v3993_v0  ;;  %3858 = vmatmul.mubr.msk.bf16.gmra.mrb[112].mxu1 %vm930_vm0, %v3994_v1 }
  0xeb   :  { %3733 = vmatprep.mubr.msk.bf16.mxu0 %vm930_vm0, %v3995_v4  ;;  %3861 = vmatprep.mubr.msk.bf16.mxu1 %vm930_vm0, %v3996_v5 }
  0xed   :  { %v4544_v8 = vpop.f32.mrb[8].mxu0  ;;  %v4546_v9 = vpop.f32.mrb[8].mxu1 }
  0xee   :  { %v4548_v10 = vpop.f32.mrb[9].mxu0  ;;  %v4550_v11 = vpop.f32.mrb[9].mxu1 }
  0xef   :  { %v4558_v14 = vpop.f32.mrb[10].mxu0  ;;  %v4560_v15 = vpop.f32.mrb[10].mxu1 }
  0xf0   :  { %v4568_v18 = vpop.f32.mrb[11].mxu0  ;;  %v4570_v19 = vpop.f32.mrb[11].mxu1 }
  0xf2   :  { %3734 = vmatmul.mubr.msk.bf16.gmra.mrb[116].mxu0 %vm930_vm0, %v3997_v12  ;;  %3862 = vmatmul.mubr.msk.bf16.gmra.mrb[116].mxu1 %vm930_vm0, %v3998_v13 }
  0xf3   :  { %3737 = vmatprep.mubr.msk.bf16.mxu0 %vm930_vm0, %v3999_v16  ;;  %3865 = vmatprep.mubr.msk.bf16.mxu1 %vm930_vm0, %v4000_v17 }
  0xf5   :  { %v4576_v20 = vpop.f32.mrb[12].mxu0  ;;  %v4578_v21 = vpop.f32.mrb[12].mxu1 }
  0xf6   :  { %v4580_v22 = vpop.f32.mrb[13].mxu0  ;;  %v4582_v23 = vpop.f32.mrb[13].mxu1 }
  0xf7   :  { %v4590_v26 = vpop.f32.mrb[14].mxu0  ;;  %v4592_v27 = vpop.f32.mrb[14].mxu1 }
  0xf8   :  { %v4600_v30 = vpop.f32.mrb[15].mxu0  ;;  %v4602_v31 = vpop.f32.mrb[15].mxu1 }
  0xfa   :  { %3738 = vmatmul.mubr.msk.bf16.gmra.mrb[120].mxu0 %vm930_vm0, %v4001_v24  ;;  %3866 = vmatmul.mubr.msk.bf16.gmra.mrb[120].mxu1 %vm930_vm0, %v4002_v25 }
  0xfb   :  { %3741 = vmatprep.mubr.msk.bf16.mxu0 %vm930_vm0, %v4003_v28  ;;  %3869 = vmatprep.mubr.msk.bf16.mxu1 %vm930_vm0, %v4004_v29 }
  0xfd   :  { %v4608_v32 = vpop.f32.mrb[16].mxu0  ;;  %v4610_v33 = vpop.f32.mrb[16].mxu1 }
  0xfe   :  { %v4612_v34 = vpop.f32.mrb[17].mxu0  ;;  %v4614_v35 = vpop.f32.mrb[17].mxu1 }
  0xff   :  { %v4622_v38 = vpop.f32.mrb[18].mxu0  ;;  %v4624_v39 = vpop.f32.mrb[18].mxu1 }
 0x100   :  { %v4626_v40 = vpop.f32.mrb[19].mxu0  ;;  %v4628_v41 = vpop.f32.mrb[19].mxu1 }
 0x102   :  { %3742 = vmatmul.mubr.msk.bf16.gmra.mrb[124].mxu0 %vm930_vm0, %v4005_v36  ;;  %3870 = vmatmul.mubr.msk.bf16.gmra.mrb[124].mxu1 %vm930_vm0, %v4006_v37 }
 0x105   :  { %v4632_v42 = vpop.f32.mrb[20].mxu0  ;;  %v4634_v43 = vpop.f32.mrb[20].mxu1 }
 0x106   :  { %v4636_v44 = vpop.f32.mrb[21].mxu0  ;;  %v4638_v45 = vpop.f32.mrb[21].mxu1 }
 0x107   :  { %v4640_v46 = vpop.f32.mrb[22].mxu0  ;;  %v4642_v47 = vpop.f32.mrb[22].mxu1 }
 0x108   :  { %v4644_v52 = vpop.f32.mrb[23].mxu0  ;;  %v4646_v53 = vpop.f32.mrb[23].mxu1 }
 0x109   :  { %5345 = vst [vmem:[#allocation2_spill] sm:$0xff] %v4646_v53 }
 0x10d   :  { %v4648_v56 = vpop.f32.mrb[24].mxu0  ;;  %v4650_v57 = vpop.f32.mrb[24].mxu1 }
 0x10e   :  { %5346 = vst [vmem:[#allocation3_spill] sm:$0xff] %v4648_v56  ;;  %5347 = vst [vmem:[#allocation4_spill] sm:$0xff] %v4650_v57  ;;  %v4652_v0 = vpop.f32.mrb[25].mxu0  ;;  %v4654_v1 = vpop.f32.mrb[25].mxu1 }
 0x10f   :  { %5348 = vst [vmem:[#allocation5_spill] sm:$0xff] %v4652_v0  ;;  %5349 = vst [vmem:[#allocation6_spill] sm:$0xff] %v4654_v1  ;;  %v4656_v4 = vpop.f32.mrb[26].mxu0  ;;  %v4658_v5 = vpop.f32.mrb[26].mxu1 }
 0x110   :  { %5350 = vst [vmem:[#allocation7_spill] sm:$0xff] %v4656_v4  ;;  %5351 = vst [vmem:[#allocation8_spill] sm:$0xff] %v4658_v5  ;;  %v4660_v12 = vpop.f32.mrb[27].mxu0  ;;  %v4662_v13 = vpop.f32.mrb[27].mxu1 }
 0x111   :  { %5352 = vst [vmem:[#allocation9_spill] sm:$0xff] %v4660_v12  ;;  %5353 = vst [vmem:[#allocation10_spill] sm:$0xff] %v4662_v13 }
 0x115   :  { %v4664_v16 = vpop.f32.mrb[28].mxu0  ;;  %v4666_v17 = vpop.f32.mrb[28].mxu1 }
 0x116   :  { %5354 = vst [vmem:[#allocation11_spill] sm:$0xff] %v4664_v16  ;;  %5355 = vst [vmem:[#allocation12_spill] sm:$0xff] %v4666_v17  ;;  %v4668_v24 = vpop.f32.mrb[29].mxu0  ;;  %v4670_v25 = vpop.f32.mrb[29].mxu1 }
 0x117   :  { %5356 = vst [vmem:[#allocation13_spill] sm:$0xff] %v4668_v24  ;;  %5357 = vst [vmem:[#allocation14_spill] sm:$0xff] %v4670_v25  ;;  %v4672_v28 = vpop.f32.mrb[30].mxu0  ;;  %v4674_v29 = vpop.f32.mrb[30].mxu1 }
 0x118   :  { %5358 = vst [vmem:[#allocation15_spill] sm:$0xff] %v4672_v28  ;;  %5359 = vst [vmem:[#allocation16_spill] sm:$0xff] %v4674_v29  ;;  %v4676_v36 = vpop.f32.mrb[31].mxu0  ;;  %v4678_v37 = vpop.f32.mrb[31].mxu1 }
 0x119   :  { %5360 = vst [vmem:[#allocation17_spill] sm:$0xff] %v4676_v36  ;;  %5361 = vst [vmem:[#allocation18_spill] sm:$0xff] %v4678_v37 }
 0x11d   :  { %v4680_v5 = vpop.f32.mrb[32].mxu0  ;;  %v4682_v12 = vpop.f32.mrb[32].mxu1 }
 0x11e   :  { %5362 = vst [vmem:[#allocation19_spill] sm:$0xff] %v4680_v5  ;;  %5363 = vst [vmem:[#allocation20_spill] sm:$0xff] %v4682_v12  ;;  %v4684_v13 = vpop.f32.mrb[33].mxu0  ;;  %v4686_v16 = vpop.f32.mrb[33].mxu1 }
 0x11f   :  { %5364 = vst [vmem:[#allocation21_spill] sm:$0xff] %v4684_v13  ;;  %5365 = vst [vmem:[#allocation22_spill] sm:$0xff] %v4686_v16  ;;  %v4688_v17 = vpop.f32.mrb[34].mxu0  ;;  %v4690_v24 = vpop.f32.mrb[34].mxu1 }
 0x120   :  { %5366 = vst [vmem:[#allocation23_spill] sm:$0xff] %v4688_v17  ;;  %5367 = vst [vmem:[#allocation24_spill] sm:$0xff] %v4690_v24  ;;  %v4692_v25 = vpop.f32.mrb[35].mxu0  ;;  %v4694_v28 = vpop.f32.mrb[35].mxu1 }
 0x121   :  { %5368 = vst [vmem:[#allocation25_spill] sm:$0xff] %v4692_v25  ;;  %5369 = vst [vmem:[#allocation26_spill] sm:$0xff] %v4694_v28 }
 0x125   :  { %v4696_v29 = vpop.f32.mrb[36].mxu0  ;;  %v4698_v36 = vpop.f32.mrb[36].mxu1 }
 0x126   :  { %5370 = vst [vmem:[#allocation27_spill] sm:$0xff] %v4696_v29  ;;  %5371 = vst [vmem:[#allocation28_spill] sm:$0xff] %v4698_v36  ;;  %v4700_v37 = vpop.f32.mrb[37].mxu0  ;;  %v4702_v5 = vpop.f32.mrb[37].mxu1 }
 0x127   :  { %5372 = vst [vmem:[#allocation29_spill] sm:$0xff] %v4700_v37  ;;  %5373 = vst [vmem:[#allocation30_spill] sm:$0xff] %v4702_v5  ;;  %v4704_v12 = vpop.f32.mrb[38].mxu0  ;;  %v4706_v13 = vpop.f32.mrb[38].mxu1 }
 0x128   :  { %5374 = vst [vmem:[#allocation31_spill] sm:$0xff] %v4704_v12  ;;  %5375 = vst [vmem:[#allocation32_spill] sm:$0xff] %v4706_v13  ;;  %v4708_v16 = vpop.f32.mrb[39].mxu0  ;;  %v4710_v17 = vpop.f32.mrb[39].mxu1 }
 0x129   :  { %5376 = vst [vmem:[#allocation33_spill] sm:$0xff] %v4708_v16  ;;  %5377 = vst [vmem:[#allocation34_spill] sm:$0xff] %v4710_v17 }
 0x12d   :  { %v4712_v24 = vpop.f32.mrb[40].mxu0  ;;  %v4714_v25 = vpop.f32.mrb[40].mxu1 }
 0x12e   :  { %5378 = vst [vmem:[#allocation35_spill] sm:$0xff] %v4712_v24  ;;  %5379 = vst [vmem:[#allocation36_spill] sm:$0xff] %v4714_v25  ;;  %v4716_v28 = vpop.f32.mrb[41].mxu0  ;;  %v4718_v29 = vpop.f32.mrb[41].mxu1 }
 0x12f   :  { %5380 = vst [vmem:[#allocation37_spill] sm:$0xff] %v4716_v28  ;;  %5381 = vst [vmem:[#allocation38_spill] sm:$0xff] %v4718_v29  ;;  %v4720_v36 = vpop.f32.mrb[42].mxu0  ;;  %v4722_v37 = vpop.f32.mrb[42].mxu1 }
 0x130   :  { %5382 = vst [vmem:[#allocation39_spill] sm:$0xff] %v4720_v36  ;;  %5383 = vst [vmem:[#allocation40_spill] sm:$0xff] %v4722_v37  ;;  %v4724_v5 = vpop.f32.mrb[43].mxu0  ;;  %v4726_v12 = vpop.f32.mrb[43].mxu1 }
 0x131   :  { %5384 = vst [vmem:[#allocation41_spill] sm:$0xff] %v4724_v5  ;;  %5385 = vst [vmem:[#allocation42_spill] sm:$0xff] %v4726_v12 }
 0x135   :  { %v4728_v13 = vpop.f32.mrb[44].mxu0  ;;  %v4730_v16 = vpop.f32.mrb[44].mxu1 }
 0x136   :  { %5386 = vst [vmem:[#allocation43_spill] sm:$0xff] %v4728_v13  ;;  %5387 = vst [vmem:[#allocation44_spill] sm:$0xff] %v4730_v16  ;;  %v4732_v17 = vpop.f32.mrb[45].mxu0  ;;  %v4734_v24 = vpop.f32.mrb[45].mxu1 }
 0x137   :  { %5388 = vst [vmem:[#allocation45_spill] sm:$0xff] %v4732_v17  ;;  %5389 = vst [vmem:[#allocation46_spill] sm:$0xff] %v4734_v24  ;;  %v4736_v25 = vpop.f32.mrb[46].mxu0  ;;  %v4738_v28 = vpop.f32.mrb[46].mxu1 }
 0x138   :  { %5390 = vst [vmem:[#allocation47_spill] sm:$0xff] %v4736_v25  ;;  %5391 = vst [vmem:[#allocation48_spill] sm:$0xff] %v4738_v28  ;;  %v4740_v29 = vpop.f32.mrb[47].mxu0  ;;  %v4742_v36 = vpop.f32.mrb[47].mxu1 }
 0x139   :  { %5392 = vst [vmem:[#allocation49_spill] sm:$0xff] %v4740_v29  ;;  %5393 = vst [vmem:[#allocation50_spill] sm:$0xff] %v4742_v36 }
 0x13d   :  { %v4744_v37 = vpop.f32.mrb[48].mxu0  ;;  %v4746_v5 = vpop.f32.mrb[48].mxu1 }
 0x13e   :  { %5394 = vst [vmem:[#allocation51_spill] sm:$0xff] %v4744_v37  ;;  %5395 = vst [vmem:[#allocation52_spill] sm:$0xff] %v4746_v5  ;;  %v4748_v12 = vpop.f32.mrb[49].mxu0  ;;  %v4750_v13 = vpop.f32.mrb[49].mxu1 }
 0x13f   :  { %5396 = vst [vmem:[#allocation53_spill] sm:$0xff] %v4748_v12  ;;  %5397 = vst [vmem:[#allocation54_spill] sm:$0xff] %v4750_v13  ;;  %v4752_v16 = vpop.f32.mrb[50].mxu0  ;;  %v4754_v17 = vpop.f32.mrb[50].mxu1 }
 0x140   :  { %5398 = vst [vmem:[#allocation55_spill] sm:$0xff] %v4752_v16  ;;  %5399 = vst [vmem:[#allocation56_spill] sm:$0xff] %v4754_v17  ;;  %v4756_v24 = vpop.f32.mrb[51].mxu0  ;;  %v4758_v25 = vpop.f32.mrb[51].mxu1 }
 0x141   :  { %5400 = vst [vmem:[#allocation57_spill] sm:$0xff] %v4756_v24  ;;  %5401 = vst [vmem:[#allocation58_spill] sm:$0xff] %v4758_v25 }
 0x145   :  { %v4760_v28 = vpop.f32.mrb[52].mxu0  ;;  %v4762_v29 = vpop.f32.mrb[52].mxu1 }
 0x146   :  { %5402 = vst [vmem:[#allocation59_spill] sm:$0xff] %v4760_v28  ;;  %5403 = vst [vmem:[#allocation60_spill] sm:$0xff] %v4762_v29  ;;  %v4764_v36 = vpop.f32.mrb[53].mxu0  ;;  %v4766_v37 = vpop.f32.mrb[53].mxu1 }
 0x147   :  { %5404 = vst [vmem:[#allocation61_spill] sm:$0xff] %v4764_v36  ;;  %5405 = vst [vmem:[#allocation62_spill] sm:$0xff] %v4766_v37  ;;  %v4768_v5 = vpop.f32.mrb[54].mxu0  ;;  %v4770_v12 = vpop.f32.mrb[54].mxu1 }
 0x148   :  { %5406 = vst [vmem:[#allocation63_spill] sm:$0xff] %v4768_v5  ;;  %5407 = vst [vmem:[#allocation64_spill] sm:$0xff] %v4770_v12  ;;  %v4772_v13 = vpop.f32.mrb[55].mxu0  ;;  %v4774_v16 = vpop.f32.mrb[55].mxu1 }
 0x149   :  { %5408 = vst [vmem:[#allocation65_spill] sm:$0xff] %v4772_v13  ;;  %5409 = vst [vmem:[#allocation66_spill] sm:$0xff] %v4774_v16 }
 0x14d   :  { %v4776_v17 = vpop.f32.mrb[56].mxu0  ;;  %v4778_v24 = vpop.f32.mrb[56].mxu1 }
 0x14e   :  { %5410 = vst [vmem:[#allocation67_spill] sm:$0xff] %v4776_v17  ;;  %5411 = vst [vmem:[#allocation68_spill] sm:$0xff] %v4778_v24  ;;  %v4780_v25 = vpop.f32.mrb[57].mxu0  ;;  %v4782_v28 = vpop.f32.mrb[57].mxu1 }
 0x14f   :  { %5412 = vst [vmem:[#allocation69_spill] sm:$0xff] %v4780_v25  ;;  %5413 = vst [vmem:[#allocation70_spill] sm:$0xff] %v4782_v28  ;;  %v4784_v29 = vpop.f32.mrb[58].mxu0  ;;  %v4786_v36 = vpop.f32.mrb[58].mxu1 }
 0x150   :  { %5414 = vst [vmem:[#allocation71_spill] sm:$0xff] %v4784_v29  ;;  %5415 = vst [vmem:[#allocation72_spill] sm:$0xff] %v4786_v36  ;;  %v4788_v37 = vpop.f32.mrb[59].mxu0  ;;  %v4790_v5 = vpop.f32.mrb[59].mxu1 }
 0x151   :  { %5416 = vst [vmem:[#allocation73_spill] sm:$0xff] %v4788_v37  ;;  %5417 = vst [vmem:[#allocation74_spill] sm:$0xff] %v4790_v5 }
 0x155   :  { %v4792_v12 = vpop.f32.mrb[60].mxu0  ;;  %v4794_v13 = vpop.f32.mrb[60].mxu1 }
 0x156   :  { %5418 = vst [vmem:[#allocation75_spill] sm:$0xff] %v4792_v12  ;;  %5419 = vst [vmem:[#allocation76_spill] sm:$0xff] %v4794_v13  ;;  %v4796_v16 = vpop.f32.mrb[61].mxu0  ;;  %v4798_v17 = vpop.f32.mrb[61].mxu1 }
 0x157   :  { %5420 = vst [vmem:[#allocation77_spill] sm:$0xff] %v4796_v16  ;;  %5421 = vst [vmem:[#allocation78_spill] sm:$0xff] %v4798_v17  ;;  %v4800_v24 = vpop.f32.mrb[62].mxu0  ;;  %v4802_v25 = vpop.f32.mrb[62].mxu1  ;;  %v4813_v17 = vld [vmem:[%s5342_s2] ss:$0 sm:$0xff] }
 0x158   :  { %5422 = vst [vmem:[#allocation79_spill] sm:$0xff] %v4800_v24  ;;  %5423 = vst [vmem:[#allocation80_spill] sm:$0xff] %v4802_v25  ;;  %v4804_v28 = vpop.f32.mrb[63].mxu0  ;;  %v4806_v29 = vpop.f32.mrb[63].mxu1 }
 0x159   :  { %5424 = vst [vmem:[#allocation81_spill] sm:$0xff] %v4804_v28  ;;  %5425 = vst [vmem:[#allocation82_spill] sm:$0xff] %v4806_v29 }
 0x15d   :  { %v3683_v36 = vpop.f32.mrb[64].mxu0  ;;  %v3811_v37 = vpop.f32.mrb[64].mxu1 }
 0x15e   :  { %v2374_v5 = vmax.f32 %v4480_v48, %v3683_v36  ;;  %v2438_v12 = vmax.f32 %v4482_v49, %v3811_v37  ;;  %v1605_v4 = vpop.f32.mrb[65].mxu0  ;;  %v2117_v13 = vpop.f32.mrb[65].mxu1 }
 0x15f   :  { %v2372_v24 = vmax.f32 %v4484_v50, %v1605_v4  ;;  %v2436_v25 = vmax.f32 %v4486_v51, %v2117_v13  ;;  %v3684_v28 = vpop.f32.mrb[66].mxu0  ;;  %v3812_v16 = vpop.f32.mrb[66].mxu1  ;;  %v4825_v50 = vld [vmem:[%s5343_s3] ss:$0 sm:$0xff] }
 0x160   :  { %v2502_v29 = vmax.f32 %v2374_v5, %v2438_v12  ;;  %v2375_v1 = vmax.f32 %v4494_v54, %v3684_v28  ;;  %v2439_v48 = vmax.f32 %v4496_v55, %v3812_v16  ;;  %v1608_v36 = vpop.f32.mrb[67].mxu0  ;;  %v2120_v49 = vpop.f32.mrb[67].mxu1 }
 0x161   :  { %v2500_v37 = vmax.f32 %v2372_v24, %v2436_v25  ;;  %v2373_v0 = vmax.f32 %v4504_v58, %v1608_v36  ;;  %v2437_v57 = vmax.f32 %v4506_v59, %v2120_v49 }
 0x162   :  { %v2573_v56 = vadd.f32 %v4813_v17, %v2502_v29  ;;  %v2503_v53 = vmax.f32 %v2375_v1, %v2439_v48 }
 0x163   :  { %v2571_v51 = vadd.f32 %v4813_v17, %v2500_v37  ;;  %v2501_v54 = vmax.f32 %v2373_v0, %v2437_v57 }
 0x164   :  { %v2637_v4 = vmax.f32 %v2573_v56, 0.0  ;;  %v2574_v55 = vadd.f32 %v4813_v17, %v2503_v53 }
 0x165   :  { %v2635_v5 = vmax.f32 %v2571_v51, 0.0  ;;  %v2572_v58 = vadd.f32 %v4813_v17, %v2501_v54  ;;  %v3687_v12 = vpop.f32.mrb[68].mxu0  ;;  %v3815_v59 = vpop.f32.mrb[68].mxu1 }
 0x166   :  { %v2708_v13 = vadd.f32 %v4825_v50, %v2637_v4  ;;  %v2638_v1 = vmax.f32 %v2574_v55, 0.0  ;;  %v2378_v16 = vmax.f32 %v4512_v60, %v3687_v12  ;;  %v2442_v24 = vmax.f32 %v4514_v61, %v3815_v59  ;;  %v1621_v25 = vpop.f32.mrb[69].mxu0  ;;  %v2133_v28 = vpop.f32.mrb[69].mxu1 }
 0x167   :  { %v2706_v57 = vadd.f32 %v4825_v50, %v2635_v5  ;;  %v2636_v56 = vmax.f32 %v2572_v58, 0.0  ;;  %v2376_v53 = vmax.f32 %v4516_v62, %v1621_v25  ;;  %v2440_v0 = vmax.f32 %v4518_v63, %v2133_v28  ;;  %v3688_v29 = vpop.f32.mrb[70].mxu0  ;;  %v3816_v48 = vpop.f32.mrb[70].mxu1 }
 0x168   :  { %v3421_v36 = vpack.c.bf16 %v2708_v13, %v2708_v13  ;;  %v2709_v49 = vadd.f32 %v4825_v50, %v2638_v1  ;;  %v2506_v37 = vmax.f32 %v2378_v16, %v2442_v24  ;;  %v2379_v51 = vmax.f32 %v4526_v2, %v3688_v29  ;;  %v1624_v60 = vpop.f32.mrb[71].mxu0  ;;  %v2136_v54 = vpop.f32.mrb[71].mxu1 }
 0x169   :  { %v3419_v61 = vpack.c.bf16 %v2706_v57, %v2706_v57  ;;  %v2707_v4 = vadd.f32 %v4825_v50, %v2636_v56  ;;  %v2504_v55 = vmax.f32 %v2376_v53, %v2440_v0  ;;  %v2443_v5 = vmax.f32 %v4528_v3, %v3816_v48 }
 0x16a   :  { %3029 = vst.msk [vmem:[%s5344_s4 + $0x8] sm:$0xf] %vm3026_vm1, %v3421_v36  ;;  %v3422_v62 = vpack.c.bf16 %v2709_v49, %v2709_v49  ;;  %v2577_v63 = vadd.f32 %v4813_v17, %v2506_v37  ;;  %v2377_v58 = vmax.f32 %v4536_v6, %v1624_v60  ;;  %v2441_v2 = vmax.f32 %v4538_v7, %v2136_v54 }
 0x16b   :  { %3027 = vst.msk [vmem:[%s5344_s4] sm:$0xf] %vm3026_vm1, %v3419_v61  ;;  %v3420_v12 = vpack.c.bf16 %v2707_v4, %v2707_v4  ;;  %v2575_v3 = vadd.f32 %v4813_v17, %v2504_v55  ;;  %v2507_v59 = vmax.f32 %v2379_v51, %v2443_v5 }
 0x16c   :  { %3030 = vst.msk [vmem:[%s5344_s4 + $0xc] sm:$0xf] %vm3026_vm1, %v3422_v62  ;;  %v2641_v13 = vmax.f32 %v2577_v63, 0.0  ;;  %v2505_v1 = vmax.f32 %v2377_v58, %v2441_v2 }
 0x16d   :  { %3028 = vst.msk [vmem:[%s5344_s4 + $0x4] sm:$0xf] %vm3026_vm1, %v3420_v12  ;;  %v2639_v6 = vmax.f32 %v2575_v3, 0.0  ;;  %v2578_v7 = vadd.f32 %v4813_v17, %v2507_v59  ;;  %v3691_v16 = vpop.f32.mrb[72].mxu0  ;;  %v3819_v24 = vpop.f32.mrb[72].mxu1 }
 0x16e   :  { %v2712_v25 = vadd.f32 %v4825_v50, %v2641_v13  ;;  %v2576_v28 = vadd.f32 %v4813_v17, %v2505_v1  ;;  %v2382_v57 = vmax.f32 %v4544_v8, %v3691_v16  ;;  %v2446_v56 = vmax.f32 %v4546_v9, %v3819_v24  ;;  %v1637_v53 = vpop.f32.mrb[73].mxu0  ;;  %v2149_v0 = vpop.f32.mrb[73].mxu1 }
 0x16f   :  { %v2710_v29 = vadd.f32 %v4825_v50, %v2639_v6  ;;  %v2642_v48 = vmax.f32 %v2578_v7, 0.0  ;;  %v2380_v36 = vmax.f32 %v4548_v10, %v1637_v53  ;;  %v2444_v49 = vmax.f32 %v4550_v11, %v2149_v0  ;;  %v3692_v37 = vpop.f32.mrb[74].mxu0  ;;  %v3820_v51 = vpop.f32.mrb[74].mxu1 }
 0x170   :  { %v3425_v60 = vpack.c.bf16 %v2712_v25, %v2712_v25  ;;  %v2640_v54 = vmax.f32 %v2576_v28, 0.0  ;;  %v2510_v61 = vmax.f32 %v2382_v57, %v2446_v56  ;;  %v2383_v4 = vmax.f32 %v4558_v14, %v3692_v37  ;;  %v1640_v55 = vpop.f32.mrb[75].mxu0  ;;  %v2152_v8 = vpop.f32.mrb[75].mxu1 }
 0x171   :  { %v3423_v5 = vpack.c.bf16 %v2710_v29, %v2710_v29  ;;  %v2713_v9 = vadd.f32 %v4825_v50, %v2642_v48  ;;  %v2508_v62 = vmax.f32 %v2380_v36, %v2444_v49  ;;  %v2447_v63 = vmax.f32 %v4560_v15, %v3820_v51 }
 0x172   :  { %3033 = vst.msk [vmem:[%s5344_s4 + $0x18] sm:$0xf] %vm3026_vm1, %v3425_v60  ;;  %v2711_v10 = vadd.f32 %v4825_v50, %v2640_v54  ;;  %v2581_v11 = vadd.f32 %v4813_v17, %v2510_v61  ;;  %v2381_v58 = vmax.f32 %v4568_v18, %v1640_v55  ;;  %v2445_v14 = vmax.f32 %v4570_v19, %v2152_v8 }
 0x173   :  { %3031 = vst.msk [vmem:[%s5344_s4 + $0x10] sm:$0xf] %vm3026_vm1, %v3423_v5  ;;  %v3426_v2 = vpack.c.bf16 %v2713_v9, %v2713_v9  ;;  %v2579_v15 = vadd.f32 %v4813_v17, %v2508_v62  ;;  %v2511_v12 = vmax.f32 %v2383_v4, %v2447_v63 }
 0x174   :  { %v3424_v3 = vpack.c.bf16 %v2711_v10, %v2711_v10  ;;  %v2645_v59 = vmax.f32 %v2581_v11, 0.0  ;;  %v2509_v13 = vmax.f32 %v2381_v58, %v2445_v14 }
 0x175   :  { %3034 = vst.msk [vmem:[%s5344_s4 + $0x1c] sm:$0xf] %vm3026_vm1, %v3426_v2  ;;  %v2643_v18 = vmax.f32 %v2579_v15, 0.0  ;;  %v2582_v19 = vadd.f32 %v4813_v17, %v2511_v12  ;;  %v3695_v1 = vpop.f32.mrb[76].mxu0  ;;  %v3823_v6 = vpop.f32.mrb[76].mxu1 }
 0x176   :  { %3032 = vst.msk [vmem:[%s5344_s4 + $0x14] sm:$0xf] %vm3026_vm1, %v3424_v3  ;;  %v2716_v7 = vadd.f32 %v4825_v50, %v2645_v59  ;;  %v2580_v16 = vadd.f32 %v4813_v17, %v2509_v13  ;;  %v2386_v24 = vmax.f32 %v4576_v20, %v3695_v1  ;;  %v2450_v25 = vmax.f32 %v4578_v21, %v3823_v6  ;;  %v1653_v28 = vpop.f32.mrb[77].mxu0  ;;  %v2165_v57 = vpop.f32.mrb[77].mxu1 }
 0x177   :  { %v2714_v56 = vadd.f32 %v4825_v50, %v2643_v18  ;;  %v2646_v53 = vmax.f32 %v2582_v19, 0.0  ;;  %v2384_v0 = vmax.f32 %v4580_v22, %v1653_v28  ;;  %v2448_v29 = vmax.f32 %v4582_v23, %v2165_v57  ;;  %v3696_v48 = vpop.f32.mrb[78].mxu0  ;;  %v3824_v36 = vpop.f32.mrb[78].mxu1 }
 0x178   :  { %v3429_v49 = vpack.c.bf16 %v2716_v7, %v2716_v7  ;;  %v2644_v37 = vmax.f32 %v2580_v16, 0.0  ;;  %v2514_v51 = vmax.f32 %v2386_v24, %v2450_v25  ;;  %v2387_v60 = vmax.f32 %v4590_v26, %v3696_v48  ;;  %v1656_v54 = vpop.f32.mrb[79].mxu0  ;;  %v2168_v20 = vpop.f32.mrb[79].mxu1 }
 0x179   :  { %v3427_v61 = vpack.c.bf16 %v2714_v56, %v2714_v56  ;;  %v2717_v21 = vadd.f32 %v4825_v50, %v2646_v53  ;;  %v2512_v4 = vmax.f32 %v2384_v0, %v2448_v29  ;;  %v2451_v55 = vmax.f32 %v4592_v27, %v3824_v36 }
 0x17a   :  { %3037 = vst.msk [vmem:[%s5344_s4 + $0x28] sm:$0xf] %vm3026_vm1, %v3429_v49  ;;  %v2715_v22 = vadd.f32 %v4825_v50, %v2644_v37  ;;  %v2585_v23 = vadd.f32 %v4813_v17, %v2514_v51  ;;  %v2385_v8 = vmax.f32 %v4600_v30, %v1656_v54  ;;  %v2449_v26 = vmax.f32 %v4602_v31, %v2168_v20 }
 0x17b   :  { %3035 = vst.msk [vmem:[%s5344_s4 + $0x20] sm:$0xf] %vm3026_vm1, %v3427_v61  ;;  %v3430_v5 = vpack.c.bf16 %v2717_v21, %v2717_v21  ;;  %v2583_v27 = vadd.f32 %v4813_v17, %v2512_v4  ;;  %v2515_v9 = vmax.f32 %v2387_v60, %v2451_v55 }
 0x17c   :  { %v3428_v62 = vpack.c.bf16 %v2715_v22, %v2715_v22  ;;  %v2649_v63 = vmax.f32 %v2585_v23, 0.0  ;;  %v2513_v10 = vmax.f32 %v2385_v8, %v2449_v26 }
 0x17d   :  { %3038 = vst.msk [vmem:[%s5344_s4 + $0x2c] sm:$0xf] %vm3026_vm1, %v3430_v5  ;;  %v2647_v30 = vmax.f32 %v2583_v27, 0.0  ;;  %v2586_v31 = vadd.f32 %v4813_v17, %v2515_v9  ;;  %v3699_v11 = vpop.f32.mrb[80].mxu0  ;;  %v3827_v58 = vpop.f32.mrb[80].mxu1 }
 0x17e   :  { %3036 = vst.msk [vmem:[%s5344_s4 + $0x24] sm:$0xf] %vm3026_vm1, %v3428_v62  ;;  %v2720_v14 = vadd.f32 %v4825_v50, %v2649_v63  ;;  %v2584_v2 = vadd.f32 %v4813_v17, %v2513_v10  ;;  %v2390_v15 = vmax.f32 %v4608_v32, %v3699_v11  ;;  %v2454_v12 = vmax.f32 %v4610_v33, %v3827_v58  ;;  %v1669_v3 = vpop.f32.mrb[81].mxu0  ;;  %v2181_v59 = vpop.f32.mrb[81].mxu1 }
 0x17f   :  { %v2718_v13 = vadd.f32 %v4825_v50, %v2647_v30  ;;  %v2650_v18 = vmax.f32 %v2586_v31, 0.0  ;;  %v2388_v19 = vmax.f32 %v4612_v34, %v1669_v3  ;;  %v2452_v1 = vmax.f32 %v4614_v35, %v2181_v59  ;;  %v3700_v6 = vpop.f32.mrb[82].mxu0  ;;  %v3828_v7 = vpop.f32.mrb[82].mxu1 }
 0x180   :  { %v3433_v16 = vpack.c.bf16 %v2720_v14, %v2720_v14  ;;  %v2648_v24 = vmax.f32 %v2584_v2, 0.0  ;;  %v2518_v25 = vmax.f32 %v2390_v15, %v2454_v12  ;;  %v2391_v28 = vmax.f32 %v4622_v38, %v3700_v6  ;;  %v1672_v57 = vpop.f32.mrb[83].mxu0  ;;  %v2184_v32 = vpop.f32.mrb[83].mxu1 }
 0x181   :  { %v3431_v56 = vpack.c.bf16 %v2718_v13, %v2718_v13  ;;  %v2721_v33 = vadd.f32 %v4825_v50, %v2650_v18  ;;  %v2516_v53 = vmax.f32 %v2388_v19, %v2452_v1  ;;  %v2455_v0 = vmax.f32 %v4624_v39, %v3828_v7 }
 0x182   :  { %3041 = vst.msk [vmem:[%s5344_s4 + $0x38] sm:$0xf] %vm3026_vm1, %v3433_v16  ;;  %v2719_v34 = vadd.f32 %v4825_v50, %v2648_v24  ;;  %v2589_v35 = vadd.f32 %v4813_v17, %v2518_v25  ;;  %v2389_v29 = vmax.f32 %v4626_v40, %v1672_v57  ;;  %v2453_v38 = vmax.f32 %v4628_v41, %v2184_v32  ;;  %v5427_v24 = vld [vmem:[#allocation3_spill] sm:$0xff] }
 0x183   :  { %3039 = vst.msk [vmem:[%s5344_s4 + $0x30] sm:$0xf] %vm3026_vm1, %v3431_v56  ;;  %v3434_v48 = vpack.c.bf16 %v2721_v33, %v2721_v33  ;;  %v2587_v39 = vadd.f32 %v4813_v17, %v2516_v53  ;;  %v2519_v36 = vmax.f32 %v2391_v28, %v2455_v0  ;;  %v5428_v28 = vld [vmem:[#allocation4_spill] sm:$0xff]  ;;  %v5429_v0 = vld [vmem:[#allocation5_spill] sm:$0xff] }
 0x184   :  { %v3432_v49 = vpack.c.bf16 %v2719_v34, %v2719_v34  ;;  %v2653_v37 = vmax.f32 %v2589_v35, 0.0  ;;  %v2517_v51 = vmax.f32 %v2389_v29, %v2453_v38  ;;  %v5430_v35 = vld [vmem:[#allocation6_spill] sm:$0xff] }
 0x185   :  { %3042 = vst.msk [vmem:[%s5344_s4 + $0x3c] sm:$0xf] %vm3026_vm1, %v3434_v48  ;;  %v2651_v40 = vmax.f32 %v2587_v39, 0.0  ;;  %v2590_v41 = vadd.f32 %v4813_v17, %v2519_v36  ;;  %v3703_v60 = vpop.f32.mrb[84].mxu0  ;;  %v3831_v54 = vpop.f32.mrb[84].mxu1 }
 0x186   :  { %3040 = vst.msk [vmem:[%s5344_s4 + $0x34] sm:$0xf] %vm3026_vm1, %v3432_v49  ;;  %v2724_v20 = vadd.f32 %v4825_v50, %v2653_v37  ;;  %v2588_v61 = vadd.f32 %v4813_v17, %v2517_v51  ;;  %v2394_v21 = vmax.f32 %v4632_v42, %v3703_v60  ;;  %v2458_v4 = vmax.f32 %v4634_v43, %v3831_v54  ;;  %v1685_v55 = vpop.f32.mrb[85].mxu0  ;;  %v2197_v22 = vpop.f32.mrb[85].mxu1  ;;  %v5431_v37 = vld [vmem:[#allocation7_spill] sm:$0xff] }
 0x187   :  { %v2722_v23 = vadd.f32 %v4825_v50, %v2651_v40  ;;  %v2654_v8 = vmax.f32 %v2590_v41, 0.0  ;;  %v2392_v26 = vmax.f32 %v4636_v44, %v1685_v55  ;;  %v2456_v5 = vmax.f32 %v4638_v45, %v2197_v22  ;;  %v3704_v27 = vpop.f32.mrb[86].mxu0  ;;  %v3832_v9 = vpop.f32.mrb[86].mxu1  ;;  %v5433_v22 = vld [vmem:[#allocation9_spill] sm:$0xff] }
 0x188   :  { %v3437_v62 = vpack.c.bf16 %v2724_v20, %v2724_v20  ;;  %v2652_v63 = vmax.f32 %v2588_v61, 0.0  ;;  %v2522_v10 = vmax.f32 %v2394_v21, %v2458_v4  ;;  %v2395_v30 = vmax.f32 %v4640_v46, %v3704_v27  ;;  %v1688_v31 = vpop.f32.mrb[87].mxu0  ;;  %v2200_v42 = vpop.f32.mrb[87].mxu1  ;;  %v5426_v46 = vld [vmem:[#allocation2_spill] sm:$0xff]  ;;  %v5432_v61 = vld [vmem:[#allocation8_spill] sm:$0xff] }
 0x189   :  { %v3435_v11 = vpack.c.bf16 %v2722_v23, %v2722_v23  ;;  %v2725_v43 = vadd.f32 %v4825_v50, %v2654_v8  ;;  %v2520_v58 = vmax.f32 %v2392_v26, %v2456_v5  ;;  %v2459_v14 = vmax.f32 %v4642_v47, %v3832_v9  ;;  %v5434_v8 = vld [vmem:[#allocation10_spill] sm:$0xff] }
 0x18a   :  { %3045 = vst.msk [vmem:[%s5344_s4 + $0x48] sm:$0xf] %vm3026_vm1, %v3437_v62  ;;  %v2723_v44 = vadd.f32 %v4825_v50, %v2652_v63  ;;  %v2593_v45 = vadd.f32 %v4813_v17, %v2522_v10  ;;  %v2393_v2 = vmax.f32 %v4644_v52, %v1688_v31  ;;  %v2457_v15 = vmax.f32 %v5426_v46, %v2200_v42 }
 0x18b   :  { %3043 = vst.msk [vmem:[%s5344_s4 + $0x40] sm:$0xf] %vm3026_vm1, %v3435_v11  ;;  %v3438_v12 = vpack.c.bf16 %v2725_v43, %v2725_v43  ;;  %v2591_v47 = vadd.f32 %v4813_v17, %v2520_v58  ;;  %v2523_v3 = vmax.f32 %v2395_v30, %v2459_v14  ;;  %v5435_v14 = vld [vmem:[#allocation11_spill] sm:$0xff] }
 0x18c   :  { %v3436_v59 = vpack.c.bf16 %v2723_v44, %v2723_v44  ;;  %v2657_v13 = vmax.f32 %v2593_v45, 0.0  ;;  %v2521_v18 = vmax.f32 %v2393_v2, %v2457_v15  ;;  %v5436_v45 = vld [vmem:[#allocation12_spill] sm:$0xff] }
 0x18d   :  { %3046 = vst.msk [vmem:[%s5344_s4 + $0x4c] sm:$0xf] %vm3026_vm1, %v3438_v12  ;;  %v2655_v52 = vmax.f32 %v2591_v47, 0.0  ;;  %v2594_v19 = vadd.f32 %v4813_v17, %v2523_v3  ;;  %v3707_v1 = vpop.f32.mrb[88].mxu0  ;;  %v3835_v6 = vpop.f32.mrb[88].mxu1  ;;  %v5437_v3 = vld [vmem:[#allocation13_spill] sm:$0xff] }
 0x18e   :  { %3044 = vst.msk [vmem:[%s5344_s4 + $0x44] sm:$0xf] %vm3026_vm1, %v3436_v59  ;;  %v2728_v7 = vadd.f32 %v4825_v50, %v2657_v13  ;;  %v2592_v16 = vadd.f32 %v4813_v17, %v2521_v18  ;;  %v2398_v25 = vmax.f32 %v5427_v24, %v3707_v1  ;;  %v2462_v57 = vmax.f32 %v5428_v28, %v3835_v6  ;;  %v1701_v32 = vpop.f32.mrb[89].mxu0  ;;  %v2213_v56 = vpop.f32.mrb[89].mxu1  ;;  %v5438_v13 = vld [vmem:[#allocation14_spill] sm:$0xff] }
 0x18f   :  { %v2726_v33 = vadd.f32 %v4825_v50, %v2655_v52  ;;  %v2658_v53 = vmax.f32 %v2594_v19, 0.0  ;;  %v2396_v34 = vmax.f32 %v5429_v0, %v1701_v32  ;;  %v2460_v29 = vmax.f32 %v5430_v35, %v2213_v56  ;;  %v3708_v38 = vpop.f32.mrb[90].mxu0  ;;  %v3836_v48 = vpop.f32.mrb[90].mxu1  ;;  %v5441_v35 = vld [vmem:[#allocation17_spill] sm:$0xff] }
 0x190   :  { %v3441_v39 = vpack.c.bf16 %v2728_v7, %v2728_v7  ;;  %v2656_v36 = vmax.f32 %v2592_v16, 0.0  ;;  %v2526_v49 = vmax.f32 %v2398_v25, %v2462_v57  ;;  %v2399_v51 = vmax.f32 %v5431_v37, %v3708_v38  ;;  %v1704_v40 = vpop.f32.mrb[91].mxu0  ;;  %v2216_v41 = vpop.f32.mrb[91].mxu1  ;;  %v5439_v16 = vld [vmem:[#allocation15_spill] sm:$0xff]  ;;  %v5442_v38 = vld [vmem:[#allocation18_spill] sm:$0xff] }
 0x191   :  { %v3439_v60 = vpack.c.bf16 %v2726_v33, %v2726_v33  ;;  %v2729_v54 = vadd.f32 %v4825_v50, %v2658_v53  ;;  %v2524_v20 = vmax.f32 %v2396_v34, %v2460_v29  ;;  %v2463_v21 = vmax.f32 %v5432_v61, %v3836_v48  ;;  %v5440_v33 = vld [vmem:[#allocation16_spill] sm:$0xff] }
 0x192   :  { %3049 = vst.msk [vmem:[%s5344_s4 + $0x58] sm:$0xf] %vm3026_vm1, %v3441_v39  ;;  %v2727_v4 = vadd.f32 %v4825_v50, %v2656_v36  ;;  %v2597_v55 = vadd.f32 %v4813_v17, %v2526_v49  ;;  %v2397_v23 = vmax.f32 %v5433_v22, %v1704_v40  ;;  %v2461_v26 = vmax.f32 %v5434_v8, %v2216_v41  ;;  %v5444_v22 = vld [vmem:[#allocation20_spill] sm:$0xff] }
 0x193   :  { %3047 = vst.msk [vmem:[%s5344_s4 + $0x50] sm:$0xf] %vm3026_vm1, %v3439_v60  ;;  %v3442_v5 = vpack.c.bf16 %v2729_v54, %v2729_v54  ;;  %v2595_v27 = vadd.f32 %v4813_v17, %v2524_v20  ;;  %v2527_v9 = vmax.f32 %v2399_v51, %v2463_v21 }
 0x194   :  { %v3440_v62 = vpack.c.bf16 %v2727_v4, %v2727_v4  ;;  %v2661_v63 = vmax.f32 %v2597_v55, 0.0  ;;  %v2525_v10 = vmax.f32 %v2397_v23, %v2461_v26  ;;  %v5443_v4 = vld [vmem:[#allocation19_spill] sm:$0xff] }
 0x195   :  { %3050 = vst.msk [vmem:[%s5344_s4 + $0x5c] sm:$0xf] %vm3026_vm1, %v3442_v5  ;;  %v2659_v30 = vmax.f32 %v2595_v27, 0.0  ;;  %v2598_v31 = vadd.f32 %v4813_v17, %v2527_v9  ;;  %v3711_v42 = vpop.f32.mrb[92].mxu0  ;;  %v3839_v11 = vpop.f32.mrb[92].mxu1  ;;  %v5445_v9 = vld [vmem:[#allocation21_spill] sm:$0xff] }
 0x196   :  { %3048 = vst.msk [vmem:[%s5344_s4 + $0x54] sm:$0xf] %vm3026_vm1, %v3440_v62  ;;  %v2732_v43 = vadd.f32 %v4825_v50, %v2661_v63  ;;  %v2596_v58 = vadd.f32 %v4813_v17, %v2525_v10  ;;  %v2402_v44 = vmax.f32 %v5435_v14, %v3711_v42  ;;  %v2466_v2 = vmax.f32 %v5436_v45, %v3839_v11  ;;  %v1717_v46 = vpop.f32.mrb[93].mxu0  ;;  %v2229_v15 = vpop.f32.mrb[93].mxu1  ;;  %v5446_v63 = vld [vmem:[#allocation22_spill] sm:$0xff] }
 0x197   :  { %v2730_v12 = vadd.f32 %v4825_v50, %v2659_v30  ;;  %v2662_v47 = vmax.f32 %v2598_v31, 0.0  ;;  %v2400_v59 = vmax.f32 %v5437_v3, %v1717_v46  ;;  %v2464_v18 = vmax.f32 %v5438_v13, %v2229_v15  ;;  %v3712_v52 = vpop.f32.mrb[94].mxu0  ;;  %v3840_v19 = vpop.f32.mrb[94].mxu1  ;;  %v5449_v13 = vld [vmem:[#allocation25_spill] sm:$0xff] }
 0x198   :  { %v3445_v1 = vpack.c.bf16 %v2732_v43, %v2732_v43  ;;  %v2660_v6 = vmax.f32 %v2596_v58, 0.0  ;;  %v2530_v7 = vmax.f32 %v2402_v44, %v2466_v2  ;;  %v2403_v24 = vmax.f32 %v5439_v16, %v3712_v52  ;;  %v1720_v25 = vpop.f32.mrb[95].mxu0  ;;  %v2232_v28 = vpop.f32.mrb[95].mxu1  ;;  %v5447_v58 = vld [vmem:[#allocation23_spill] sm:$0xff]  ;;  %v5450_v52 = vld [vmem:[#allocation26_spill] sm:$0xff] }
 0x199   :  { %v3443_v57 = vpack.c.bf16 %v2730_v12, %v2730_v12  ;;  %v2733_v32 = vadd.f32 %v4825_v50, %v2662_v47  ;;  %v2528_v56 = vmax.f32 %v2400_v59, %v2464_v18  ;;  %v2467_v53 = vmax.f32 %v5440_v33, %v3840_v19  ;;  %v5448_v12 = vld [vmem:[#allocation24_spill] sm:$0xff] }
 0x19a   :  { %3053 = vst.msk [vmem:[%s5344_s4 + $0x68] sm:$0xf] %vm3026_vm1, %v3445_v1  ;;  %v2731_v0 = vadd.f32 %v4825_v50, %v2660_v6  ;;  %v2601_v34 = vadd.f32 %v4813_v17, %v2530_v7  ;;  %v2401_v29 = vmax.f32 %v5441_v35, %v1720_v25  ;;  %v2465_v48 = vmax.f32 %v5442_v38, %v2232_v28  ;;  %v5452_v35 = vld [vmem:[#allocation28_spill] sm:$0xff] }
 0x19b   :  { %3051 = vst.msk [vmem:[%s5344_s4 + $0x60] sm:$0xf] %vm3026_vm1, %v3443_v57  ;;  %v3446_v39 = vpack.c.bf16 %v2733_v32, %v2733_v32  ;;  %v2599_v36 = vadd.f32 %v4813_v17, %v2528_v56  ;;  %v2531_v49 = vmax.f32 %v2403_v24, %v2467_v53 }
 0x19c   :  { %v3444_v37 = vpack.c.bf16 %v2731_v0, %v2731_v0  ;;  %v2665_v51 = vmax.f32 %v2601_v34, 0.0  ;;  %v2529_v40 = vmax.f32 %v2401_v29, %v2465_v48  ;;  %v5451_v0 = vld [vmem:[#allocation27_spill] sm:$0xff] }
 0x19d   :  { %3054 = vst.msk [vmem:[%s5344_s4 + $0x6c] sm:$0xf] %vm3026_vm1, %v3446_v39  ;;  %v2663_v41 = vmax.f32 %v2599_v36, 0.0  ;;  %v2602_v60 = vadd.f32 %v4813_v17, %v2531_v49  ;;  %v3715_v54 = vpop.f32.mrb[96].mxu0  ;;  %v3843_v20 = vpop.f32.mrb[96].mxu1  ;;  %v5453_v49 = vld [vmem:[#allocation29_spill] sm:$0xff] }
 0x19e   :  { %3052 = vst.msk [vmem:[%s5344_s4 + $0x64] sm:$0xf] %vm3026_vm1, %v3444_v37  ;;  %v2736_v61 = vadd.f32 %v4825_v50, %v2665_v51  ;;  %v2600_v21 = vadd.f32 %v4813_v17, %v2529_v40  ;;  %v2406_v55 = vmax.f32 %v5443_v4, %v3715_v54  ;;  %v2470_v23 = vmax.f32 %v5444_v22, %v3843_v20  ;;  %v1733_v8 = vpop.f32.mrb[97].mxu0  ;;  %v2245_v26 = vpop.f32.mrb[97].mxu1  ;;  %v5454_v51 = vld [vmem:[#allocation30_spill] sm:$0xff] }
 0x19f   :  { %v2734_v5 = vadd.f32 %v4825_v50, %v2663_v41  ;;  %v2666_v27 = vmax.f32 %v2602_v60, 0.0  ;;  %v2404_v62 = vmax.f32 %v5445_v9, %v1733_v8  ;;  %v2468_v10 = vmax.f32 %v5446_v63, %v2245_v26  ;;  %v3716_v30 = vpop.f32.mrb[98].mxu0  ;;  %v3844_v31 = vpop.f32.mrb[98].mxu1  ;;  %v5457_v63 = vld [vmem:[#allocation33_spill] sm:$0xff] }
 0x1a0   :  { %v3449_v42 = vpack.c.bf16 %v2736_v61, %v2736_v61  ;;  %v2664_v11 = vmax.f32 %v2600_v21, 0.0  ;;  %v2534_v43 = vmax.f32 %v2406_v55, %v2470_v23  ;;  %v2407_v14 = vmax.f32 %v5447_v58, %v3716_v30  ;;  %v1736_v44 = vpop.f32.mrb[99].mxu0  ;;  %v2248_v45 = vpop.f32.mrb[99].mxu1  ;;  %v5455_v21 = vld [vmem:[#allocation31_spill] sm:$0xff]  ;;  %v5458_v30 = vld [vmem:[#allocation34_spill] sm:$0xff] }
 0x1a1   :  { %v3447_v2 = vpack.c.bf16 %v2734_v5, %v2734_v5  ;;  %v2737_v46 = vadd.f32 %v4825_v50, %v2666_v27  ;;  %v2532_v15 = vmax.f32 %v2404_v62, %v2468_v10  ;;  %v2471_v47 = vmax.f32 %v5448_v12, %v3844_v31  ;;  %v5456_v5 = vld [vmem:[#allocation32_spill] sm:$0xff] }
 0x1a2   :  { %3057 = vst.msk [vmem:[%s5344_s4 + $0x78] sm:$0xf] %vm3026_vm1, %v3449_v42  ;;  %v2735_v3 = vadd.f32 %v4825_v50, %v2664_v11  ;;  %v2605_v59 = vadd.f32 %v4813_v17, %v2534_v43  ;;  %v2405_v18 = vmax.f32 %v5449_v13, %v1736_v44  ;;  %v2469_v19 = vmax.f32 %v5450_v52, %v2248_v45  ;;  %v5460_v13 = vld [vmem:[#allocation36_spill] sm:$0xff] }
 0x1a3   :  { %3055 = vst.msk [vmem:[%s5344_s4 + $0x70] sm:$0xf] %vm3026_vm1, %v3447_v2  ;;  %v3450_v1 = vpack.c.bf16 %v2737_v46, %v2737_v46  ;;  %v2603_v6 = vadd.f32 %v4813_v17, %v2532_v15  ;;  %v2535_v7 = vmax.f32 %v2407_v14, %v2471_v47 }
 0x1a4   :  { %v3448_v16 = vpack.c.bf16 %v2735_v3, %v2735_v3  ;;  %v2669_v24 = vmax.f32 %v2605_v59, 0.0  ;;  %v2533_v25 = vmax.f32 %v2405_v18, %v2469_v19  ;;  %v5459_v3 = vld [vmem:[#allocation35_spill] sm:$0xff] }
 0x1a5   :  { %3058 = vst.msk [vmem:[%s5344_s4 + $0x7c] sm:$0xf] %vm3026_vm1, %v3450_v1  ;;  %v2667_v28 = vmax.f32 %v2603_v6, 0.0  ;;  %v2606_v57 = vadd.f32 %v4813_v17, %v2535_v7  ;;  %v3719_v32 = vpop.f32.mrb[100].mxu0  ;;  %v3847_v56 = vpop.f32.mrb[100].mxu1  ;;  %v5461_v7 = vld [vmem:[#allocation37_spill] sm:$0xff] }
 0x1a6   :  { %3056 = vst.msk [vmem:[%s5344_s4 + $0x74] sm:$0xf] %vm3026_vm1, %v3448_v16  ;;  %v2740_v33 = vadd.f32 %v4825_v50, %v2669_v24  ;;  %v2604_v53 = vadd.f32 %v4813_v17, %v2533_v25  ;;  %v2410_v34 = vmax.f32 %v5451_v0, %v3719_v32  ;;  %v2474_v29 = vmax.f32 %v5452_v35, %v3847_v56  ;;  %v1749_v38 = vpop.f32.mrb[101].mxu0  ;;  %v2261_v48 = vpop.f32.mrb[101].mxu1  ;;  %v5462_v24 = vld [vmem:[#allocation38_spill] sm:$0xff] }
 0x1a7   :  { %v2738_v39 = vadd.f32 %v4825_v50, %v2667_v28  ;;  %v2670_v36 = vmax.f32 %v2606_v57, 0.0  ;;  %v2408_v37 = vmax.f32 %v5453_v49, %v1749_v38  ;;  %v2472_v40 = vmax.f32 %v5454_v51, %v2261_v48  ;;  %v3720_v41 = vpop.f32.mrb[102].mxu0  ;;  %v3848_v60 = vpop.f32.mrb[102].mxu1  ;;  %v5465_v51 = vld [vmem:[#allocation41_spill] sm:$0xff] }
 0x1a8   :  { %v3453_v54 = vpack.c.bf16 %v2740_v33, %v2740_v33  ;;  %v2668_v20 = vmax.f32 %v2604_v53, 0.0  ;;  %v2538_v61 = vmax.f32 %v2410_v34, %v2474_v29  ;;  %v2411_v4 = vmax.f32 %v5455_v21, %v3720_v41  ;;  %v1752_v55 = vpop.f32.mrb[103].mxu0  ;;  %v2264_v22 = vpop.f32.mrb[103].mxu1  ;;  %v5463_v53 = vld [vmem:[#allocation39_spill] sm:$0xff]  ;;  %v5466_v41 = vld [vmem:[#allocation42_spill] sm:$0xff] }
 0x1a9   :  { %v3451_v23 = vpack.c.bf16 %v2738_v39, %v2738_v39  ;;  %v2741_v8 = vadd.f32 %v4825_v50, %v2670_v36  ;;  %v2536_v26 = vmax.f32 %v2408_v37, %v2472_v40  ;;  %v2475_v27 = vmax.f32 %v5456_v5, %v3848_v60  ;;  %v5464_v39 = vld [vmem:[#allocation40_spill] sm:$0xff] }
 0x1aa   :  { %3061 = vst.msk [vmem:[%s5344_s4 + $0x88] sm:$0xf] %vm3026_vm1, %v3453_v54  ;;  %v2739_v9 = vadd.f32 %v4825_v50, %v2668_v20  ;;  %v2609_v62 = vadd.f32 %v4813_v17, %v2538_v61  ;;  %v2409_v10 = vmax.f32 %v5457_v63, %v1752_v55  ;;  %v2473_v31 = vmax.f32 %v5458_v30, %v2264_v22  ;;  %v5468_v63 = vld [vmem:[#allocation44_spill] sm:$0xff] }
 0x1ab   :  { %3059 = vst.msk [vmem:[%s5344_s4 + $0x80] sm:$0xf] %vm3026_vm1, %v3451_v23  ;;  %v3454_v42 = vpack.c.bf16 %v2741_v8, %v2741_v8  ;;  %v2607_v11 = vadd.f32 %v4813_v17, %v2536_v26  ;;  %v2539_v43 = vmax.f32 %v2411_v4, %v2475_v27 }
 0x1ac   :  { %v3452_v58 = vpack.c.bf16 %v2739_v9, %v2739_v9  ;;  %v2673_v14 = vmax.f32 %v2609_v62, 0.0  ;;  %v2537_v44 = vmax.f32 %v2409_v10, %v2473_v31  ;;  %v5467_v9 = vld [vmem:[#allocation43_spill] sm:$0xff] }
 0x1ad   :  { %3062 = vst.msk [vmem:[%s5344_s4 + $0x8c] sm:$0xf] %vm3026_vm1, %v3454_v42  ;;  %v2671_v45 = vmax.f32 %v2607_v11, 0.0  ;;  %v2610_v2 = vadd.f32 %v4813_v17, %v2539_v43  ;;  %v3723_v46 = vpop.f32.mrb[104].mxu0  ;;  %v3851_v15 = vpop.f32.mrb[104].mxu1  ;;  %v5469_v43 = vld [vmem:[#allocation45_spill] sm:$0xff] }
 0x1ae   :  { %3060 = vst.msk [vmem:[%s5344_s4 + $0x84] sm:$0xf] %vm3026_vm1, %v3452_v58  ;;  %v2744_v12 = vadd.f32 %v4825_v50, %v2673_v14  ;;  %v2608_v47 = vadd.f32 %v4813_v17, %v2537_v44  ;;  %v2414_v59 = vmax.f32 %v5459_v3, %v3723_v46  ;;  %v2478_v18 = vmax.f32 %v5460_v13, %v3851_v15  ;;  %v1765_v52 = vpop.f32.mrb[105].mxu0  ;;  %v2277_v19 = vpop.f32.mrb[105].mxu1  ;;  %v5470_v14 = vld [vmem:[#allocation46_spill] sm:$0xff] }
 0x1af   :  { %v2742_v1 = vadd.f32 %v4825_v50, %v2671_v45  ;;  %v2674_v6 = vmax.f32 %v2610_v2, 0.0  ;;  %v2412_v16 = vmax.f32 %v5461_v7, %v1765_v52  ;;  %v2476_v25 = vmax.f32 %v5462_v24, %v2277_v19  ;;  %v3724_v28 = vpop.f32.mrb[106].mxu0  ;;  %v3852_v57 = vpop.f32.mrb[106].mxu1  ;;  %v5473_v24 = vld [vmem:[#allocation49_spill] sm:$0xff] }
 0x1b0   :  { %v3457_v32 = vpack.c.bf16 %v2744_v12, %v2744_v12  ;;  %v2672_v56 = vmax.f32 %v2608_v47, 0.0  ;;  %v2542_v33 = vmax.f32 %v2414_v59, %v2478_v18  ;;  %v2415_v0 = vmax.f32 %v5463_v53, %v3724_v28  ;;  %v1768_v34 = vpop.f32.mrb[107].mxu0  ;;  %v2280_v35 = vpop.f32.mrb[107].mxu1  ;;  %v5471_v47 = vld [vmem:[#allocation47_spill] sm:$0xff]  ;;  %v5474_v28 = vld [vmem:[#allocation50_spill] sm:$0xff] }
 0x1b1   :  { %v3455_v29 = vpack.c.bf16 %v2742_v1, %v2742_v1  ;;  %v2745_v38 = vadd.f32 %v4825_v50, %v2674_v6  ;;  %v2540_v48 = vmax.f32 %v2412_v16, %v2476_v25  ;;  %v2479_v36 = vmax.f32 %v5464_v39, %v3852_v57  ;;  %v5472_v1 = vld [vmem:[#allocation48_spill] sm:$0xff] }
 0x1b2   :  { %3065 = vst.msk [vmem:[%s5344_s4 + $0x98] sm:$0xf] %vm3026_vm1, %v3457_v32  ;;  %v2743_v49 = vadd.f32 %v4825_v50, %v2672_v56  ;;  %v2613_v37 = vadd.f32 %v4813_v17, %v2542_v33  ;;  %v2413_v40 = vmax.f32 %v5465_v51, %v1768_v34  ;;  %v2477_v60 = vmax.f32 %v5466_v41, %v2280_v35  ;;  %v5476_v51 = vld [vmem:[#allocation52_spill] sm:$0xff] }
 0x1b3   :  { %3063 = vst.msk [vmem:[%s5344_s4 + $0x90] sm:$0xf] %vm3026_vm1, %v3455_v29  ;;  %v3458_v54 = vpack.c.bf16 %v2745_v38, %v2745_v38  ;;  %v2611_v20 = vadd.f32 %v4813_v17, %v2540_v48  ;;  %v2543_v61 = vmax.f32 %v2415_v0, %v2479_v36 }
 0x1b4   :  { %v3456_v21 = vpack.c.bf16 %v2743_v49, %v2743_v49  ;;  %v2677_v4 = vmax.f32 %v2613_v37, 0.0  ;;  %v2541_v55 = vmax.f32 %v2413_v40, %v2477_v60  ;;  %v5475_v49 = vld [vmem:[#allocation51_spill] sm:$0xff] }
 0x1b5   :  { %3066 = vst.msk [vmem:[%s5344_s4 + $0x9c] sm:$0xf] %vm3026_vm1, %v3458_v54  ;;  %v2675_v22 = vmax.f32 %v2611_v20, 0.0  ;;  %v2614_v23 = vadd.f32 %v4813_v17, %v2543_v61  ;;  %v3727_v8 = vpop.f32.mrb[108].mxu0  ;;  %v3855_v26 = vpop.f32.mrb[108].mxu1  ;;  %v5477_v61 = vld [vmem:[#allocation53_spill] sm:$0xff] }
 0x1b6   :  { %3064 = vst.msk [vmem:[%s5344_s4 + $0x94] sm:$0xf] %vm3026_vm1, %v3456_v21  ;;  %v2748_v5 = vadd.f32 %v4825_v50, %v2677_v4  ;;  %v2612_v27 = vadd.f32 %v4813_v17, %v2541_v55  ;;  %v2418_v62 = vmax.f32 %v5467_v9, %v3727_v8  ;;  %v2482_v10 = vmax.f32 %v5468_v63, %v3855_v26  ;;  %v1781_v30 = vpop.f32.mrb[109].mxu0  ;;  %v2293_v31 = vpop.f32.mrb[109].mxu1  ;;  %v5478_v4 = vld [vmem:[#allocation54_spill] sm:$0xff] }
 0x1b7   :  { %v2746_v42 = vadd.f32 %v4825_v50, %v2675_v22  ;;  %v2678_v11 = vmax.f32 %v2614_v23, 0.0  ;;  %v2416_v58 = vmax.f32 %v5469_v43, %v1781_v30  ;;  %v2480_v44 = vmax.f32 %v5470_v14, %v2293_v31  ;;  %v3728_v45 = vpop.f32.mrb[110].mxu0  ;;  %v3856_v2 = vpop.f32.mrb[110].mxu1  ;;  %v5481_v14 = vld [vmem:[#allocation57_spill] sm:$0xff] }
 0x1b8   :  { %v3461_v46 = vpack.c.bf16 %v2748_v5, %v2748_v5  ;;  %v2676_v15 = vmax.f32 %v2612_v27, 0.0  ;;  %v2546_v12 = vmax.f32 %v2418_v62, %v2482_v10  ;;  %v2419_v3 = vmax.f32 %v5471_v47, %v3728_v45  ;;  %v1784_v59 = vpop.f32.mrb[111].mxu0  ;;  %v2296_v13 = vpop.f32.mrb[111].mxu1  ;;  %v5479_v27 = vld [vmem:[#allocation55_spill] sm:$0xff]  ;;  %v5482_v45 = vld [vmem:[#allocation58_spill] sm:$0xff] }
 0x1b9   :  { %v3459_v18 = vpack.c.bf16 %v2746_v42, %v2746_v42  ;;  %v2749_v52 = vadd.f32 %v4825_v50, %v2678_v11  ;;  %v2544_v19 = vmax.f32 %v2416_v58, %v2480_v44  ;;  %v2483_v6 = vmax.f32 %v5472_v1, %v3856_v2  ;;  %v5480_v42 = vld [vmem:[#allocation56_spill] sm:$0xff] }
 0x1ba   :  { %3069 = vst.msk [vmem:[%s5344_s4 + $0xa8] sm:$0xf] %vm3026_vm1, %v3461_v46  ;;  %v2747_v7 = vadd.f32 %v4825_v50, %v2676_v15  ;;  %v2617_v16 = vadd.f32 %v4813_v17, %v2546_v12  ;;  %v2417_v25 = vmax.f32 %v5473_v24, %v1784_v59  ;;  %v2481_v57 = vmax.f32 %v5474_v28, %v2296_v13  ;;  %v5484_v24 = vld [vmem:[#allocation60_spill] sm:$0xff] }
 0x1bb   :  { %3067 = vst.msk [vmem:[%s5344_s4 + $0xa0] sm:$0xf] %vm3026_vm1, %v3459_v18  ;;  %v3462_v32 = vpack.c.bf16 %v2749_v52, %v2749_v52  ;;  %v2615_v56 = vadd.f32 %v4813_v17, %v2544_v19  ;;  %v2547_v33 = vmax.f32 %v2419_v3, %v2483_v6 }
 0x1bc   :  { %v3460_v53 = vpack.c.bf16 %v2747_v7, %v2747_v7  ;;  %v2681_v0 = vmax.f32 %v2617_v16, 0.0  ;;  %v2545_v34 = vmax.f32 %v2417_v25, %v2481_v57  ;;  %v5483_v7 = vld [vmem:[#allocation59_spill] sm:$0xff] }
 0x1bd   :  { %3070 = vst.msk [vmem:[%s5344_s4 + $0xac] sm:$0xf] %vm3026_vm1, %v3462_v32  ;;  %v2679_v35 = vmax.f32 %v2615_v56, 0.0  ;;  %v2618_v29 = vadd.f32 %v4813_v17, %v2547_v33  ;;  %v3731_v38 = vpop.f32.mrb[112].mxu0  ;;  %v3859_v48 = vpop.f32.mrb[112].mxu1  ;;  %v5485_v33 = vld [vmem:[#allocation61_spill] sm:$0xff] }
 0x1be   :  { %3068 = vst.msk [vmem:[%s5344_s4 + $0xa4] sm:$0xf] %vm3026_vm1, %v3460_v53  ;;  %v2752_v39 = vadd.f32 %v4825_v50, %v2681_v0  ;;  %v2616_v36 = vadd.f32 %v4813_v17, %v2545_v34  ;;  %v2422_v37 = vmax.f32 %v5475_v49, %v3731_v38  ;;  %v2486_v40 = vmax.f32 %v5476_v51, %v3859_v48  ;;  %v1797_v41 = vpop.f32.mrb[113].mxu0  ;;  %v2309_v60 = vpop.f32.mrb[113].mxu1  ;;  %v5486_v0 = vld [vmem:[#allocation62_spill] sm:$0xff] }
 0x1bf   :  { %v2750_v54 = vadd.f32 %v4825_v50, %v2679_v35  ;;  %v2682_v20 = vmax.f32 %v2618_v29, 0.0  ;;  %v2420_v21 = vmax.f32 %v5477_v61, %v1797_v41  ;;  %v2484_v55 = vmax.f32 %v5478_v4, %v2309_v60  ;;  %v3732_v22 = vpop.f32.mrb[114].mxu0  ;;  %v3860_v23 = vpop.f32.mrb[114].mxu1  ;;  %v5488_v60 = vld [vmem:[#allocation64_spill] sm:$0xff]  ;;  %v5489_v4 = vld [vmem:[#allocation65_spill] sm:$0xff] }
 0x1c0   :  { %v3465_v8 = vpack.c.bf16 %v2752_v39, %v2752_v39  ;;  %v2680_v26 = vmax.f32 %v2616_v36, 0.0  ;;  %v2550_v5 = vmax.f32 %v2422_v37, %v2486_v40  ;;  %v2423_v9 = vmax.f32 %v5479_v27, %v3732_v22  ;;  %v1800_v62 = vpop.f32.mrb[115].mxu0  ;;  %v2312_v63 = vpop.f32.mrb[115].mxu1  ;;  %v5487_v36 = vld [vmem:[#allocation63_spill] sm:$0xff]  ;;  %v5490_v22 = vld [vmem:[#allocation66_spill] sm:$0xff] }
 0x1c1   :  { %v3463_v10 = vpack.c.bf16 %v2750_v54, %v2750_v54  ;;  %v2753_v30 = vadd.f32 %v4825_v50, %v2682_v20  ;;  %v2548_v31 = vmax.f32 %v2420_v21, %v2484_v55  ;;  %v2487_v11 = vmax.f32 %v5480_v42, %v3860_v23  ;;  %v5230_v20 = vld [vmem:[%s5343_s3] ss:$0 sm:$0xff] }
 0x1c2   :  { %3073 = vst.msk [vmem:[%s5344_s4 + $0xb8] sm:$0xf] %vm3026_vm1, %v3465_v8  ;;  %v2751_v43 = vadd.f32 %v4825_v50, %v2680_v26  ;;  %v2621_v58 = vadd.f32 %v4813_v17, %v2550_v5  ;;  %v2421_v44 = vmax.f32 %v5481_v14, %v1800_v62  ;;  %v2485_v2 = vmax.f32 %v5482_v45, %v2312_v63  ;;  %v5236_v21 = vld [vmem:[%s5342_s2] ss:$0 sm:$0xff]  ;;  %v5492_v14 = vld [vmem:[#allocation68_spill] sm:$0xff] }
 0x1c3   :  { %3071 = vst.msk [vmem:[%s5344_s4 + $0xb0] sm:$0xf] %vm3026_vm1, %v3463_v10  ;;  %v3466_v46 = vpack.c.bf16 %v2753_v30, %v2753_v30  ;;  %v2619_v15 = vadd.f32 %v4813_v17, %v2548_v31  ;;  %v2551_v12 = vmax.f32 %v2423_v9, %v2487_v11 }
 0x1c4   :  { %v3464_v47 = vpack.c.bf16 %v2751_v43, %v2751_v43  ;;  %v2685_v3 = vmax.f32 %v2621_v58, 0.0  ;;  %v2549_v59 = vmax.f32 %v2421_v44, %v2485_v2  ;;  %v5491_v43 = vld [vmem:[#allocation67_spill] sm:$0xff] }
 0x1c5   :  { %3074 = vst.msk [vmem:[%s5344_s4 + $0xbc] sm:$0xf] %vm3026_vm1, %v3466_v46  ;;  %v2683_v13 = vmax.f32 %v2619_v15, 0.0  ;;  %v2622_v18 = vadd.f32 %v4813_v17, %v2551_v12  ;;  %v3735_v52 = vpop.f32.mrb[116].mxu0  ;;  %v3863_v19 = vpop.f32.mrb[116].mxu1  ;;  %v5493_v12 = vld [vmem:[#allocation69_spill] sm:$0xff] }
 0x1c6   :  { %3072 = vst.msk [vmem:[%s5344_s4 + $0xb4] sm:$0xf] %vm3026_vm1, %v3464_v47  ;;  %v2756_v1 = vadd.f32 %v4825_v50, %v2685_v3  ;;  %v2620_v6 = vadd.f32 %v4813_v17, %v2549_v59  ;;  %v2426_v16 = vmax.f32 %v5483_v7, %v3735_v52  ;;  %v2490_v25 = vmax.f32 %v5484_v24, %v3863_v19  ;;  %v1813_v28 = vpop.f32.mrb[117].mxu0  ;;  %v2325_v57 = vpop.f32.mrb[117].mxu1  ;;  %v5494_v3 = vld [vmem:[#allocation70_spill] sm:$0xff] }
 0x1c7   :  { %v2754_v32 = vadd.f32 %v4825_v50, %v2683_v13  ;;  %v2686_v56 = vmax.f32 %v2622_v18, 0.0  ;;  %v2424_v53 = vmax.f32 %v5485_v33, %v1813_v28  ;;  %v2488_v34 = vmax.f32 %v5486_v0, %v2325_v57  ;;  %v3736_v35 = vpop.f32.mrb[118].mxu0  ;;  %v3864_v29 = vpop.f32.mrb[118].mxu1  ;;  %v5497_v0 = vld [vmem:[#allocation73_spill] sm:$0xff] }
 0x1c8   :  { %v3469_v38 = vpack.c.bf16 %v2756_v1, %v2756_v1  ;;  %v2684_v48 = vmax.f32 %v2620_v6, 0.0  ;;  %v2554_v39 = vmax.f32 %v2426_v16, %v2490_v25  ;;  %v2427_v17 = vmax.f32 %v5487_v36, %v3736_v35  ;;  %v1816_v49 = vpop.f32.mrb[119].mxu0  ;;  %v2328_v37 = vpop.f32.mrb[119].mxu1  ;;  %v5495_v6 = vld [vmem:[#allocation71_spill] sm:$0xff]  ;;  %v5498_v35 = vld [vmem:[#allocation74_spill] sm:$0xff] }
 0x1c9   :  { %v3467_v51 = vpack.c.bf16 %v2754_v32, %v2754_v32  ;;  %v2757_v40 = vadd.f32 %v4825_v50, %v2686_v56  ;;  %v2552_v41 = vmax.f32 %v2424_v53, %v2488_v34  ;;  %v2491_v54 = vmax.f32 %v5488_v60, %v3864_v29  ;;  %v5496_v32 = vld [vmem:[#allocation72_spill] sm:$0xff] }
 0x1ca   :  { %3077 = vst.msk [vmem:[%s5344_s4 + $0xc8] sm:$0xf] %vm3026_vm1, %v3469_v38  ;;  %v2755_v61 = vadd.f32 %v5230_v20, %v2684_v48  ;;  %v2625_v50 = vadd.f32 %v5236_v21, %v2554_v39  ;;  %v2425_v55 = vmax.f32 %v5489_v4, %v1816_v49  ;;  %v2489_v23 = vmax.f32 %v5490_v22, %v2328_v37  ;;  %v5500_v4 = vld [vmem:[#allocation76_spill] sm:$0xff] }
 0x1cb   :  { %3075 = vst.msk [vmem:[%s5344_s4 + $0xc0] sm:$0xf] %vm3026_vm1, %v3467_v51  ;;  %v3470_v8 = vpack.c.bf16 %v2757_v40, %v2757_v40  ;;  %v2623_v26 = vadd.f32 %v5236_v21, %v2552_v41  ;;  %v2555_v5 = vmax.f32 %v2427_v17, %v2491_v54 }
 0x1cc   :  { %v3468_v27 = vpack.c.bf16 %v2755_v61, %v2755_v61  ;;  %v2689_v9 = vmax.f32 %v2625_v50, 0.0  ;;  %v2553_v62 = vmax.f32 %v2425_v55, %v2489_v23  ;;  %v5499_v61 = vld [vmem:[#allocation75_spill] sm:$0xff] }
 0x1cd   :  { %3078 = vst.msk [vmem:[%s5344_s4 + $0xcc] sm:$0xf] %vm3026_vm1, %v3470_v8  ;;  %v2687_v63 = vmax.f32 %v2623_v26, 0.0  ;;  %v2626_v10 = vadd.f32 %v5236_v21, %v2555_v5  ;;  %v3739_v30 = vpop.f32.mrb[120].mxu0  ;;  %v3867_v31 = vpop.f32.mrb[120].mxu1  ;;  %v5501_v5 = vld [vmem:[#allocation77_spill] sm:$0xff] }
 0x1ce   :  { %3076 = vst.msk [vmem:[%s5344_s4 + $0xc4] sm:$0xf] %vm3026_vm1, %v3468_v27  ;;  %v2760_v42 = vadd.f32 %v5230_v20, %v2689_v9  ;;  %v2624_v11 = vadd.f32 %v5236_v21, %v2553_v62  ;;  %v2430_v58 = vmax.f32 %v5491_v43, %v3739_v30  ;;  %v2494_v44 = vmax.f32 %v5492_v14, %v3867_v31  ;;  %v1829_v45 = vpop.f32.mrb[121].mxu0  ;;  %v2341_v2 = vpop.f32.mrb[121].mxu1  ;;  %v5502_v9 = vld [vmem:[#allocation78_spill] sm:$0xff] }
 0x1cf   :  { %v2758_v46 = vadd.f32 %v5230_v20, %v2687_v63  ;;  %v2690_v15 = vmax.f32 %v2626_v10, 0.0  ;;  %v2428_v47 = vmax.f32 %v5493_v12, %v1829_v45  ;;  %v2492_v59 = vmax.f32 %v5494_v3, %v2341_v2  ;;  %v3740_v13 = vpop.f32.mrb[122].mxu0  ;;  %v3868_v18 = vpop.f32.mrb[122].mxu1  ;;  %v5505_v3 = vld [vmem:[#allocation81_spill] sm:$0xff] }
 0x1d0   :  { %v3473_v52 = vpack.c.bf16 %v2760_v42, %v2760_v42  ;;  %v2688_v19 = vmax.f32 %v2624_v11, 0.0  ;;  %v2558_v1 = vmax.f32 %v2430_v58, %v2494_v44  ;;  %v2431_v7 = vmax.f32 %v5495_v6, %v3740_v13  ;;  %v1832_v16 = vpop.f32.mrb[123].mxu0  ;;  %v2344_v24 = vpop.f32.mrb[123].mxu1  ;;  %v5503_v11 = vld [vmem:[#allocation79_spill] sm:$0xff]  ;;  %v5506_v13 = vld [vmem:[#allocation82_spill] sm:$0xff] }
 0x1d1   :  { %v3471_v25 = vpack.c.bf16 %v2758_v46, %v2758_v46  ;;  %v2761_v28 = vadd.f32 %v5230_v20, %v2690_v15  ;;  %v2556_v57 = vmax.f32 %v2428_v47, %v2492_v59  ;;  %v2495_v56 = vmax.f32 %v5496_v32, %v3868_v18  ;;  %v5504_v46 = vld [vmem:[#allocation80_spill] sm:$0xff] }
 0x1d2   :  { %3081 = vst.msk [vmem:[%s5344_s4 + $0xd8] sm:$0xf] %vm3026_vm1, %v3473_v52  ;;  %v2759_v33 = vadd.f32 %v5230_v20, %v2688_v19  ;;  %v2629_v53 = vadd.f32 %v5236_v21, %v2558_v1  ;;  %v2429_v34 = vmax.f32 %v5497_v0, %v1832_v16  ;;  %v2493_v29 = vmax.f32 %v5498_v35, %v2344_v24 }
 0x1d3   :  { %3079 = vst.msk [vmem:[%s5344_s4 + $0xd0] sm:$0xf] %vm3026_vm1, %v3471_v25  ;;  %v3474_v38 = vpack.c.bf16 %v2761_v28, %v2761_v28  ;;  %v2627_v48 = vadd.f32 %v5236_v21, %v2556_v57  ;;  %v2559_v39 = vmax.f32 %v2431_v7, %v2495_v56 }
 0x1d4   :  { %v3472_v36 = vpack.c.bf16 %v2759_v33, %v2759_v33  ;;  %v2693_v17 = vmax.f32 %v2629_v53, 0.0  ;;  %v2557_v49 = vmax.f32 %v2429_v34, %v2493_v29 }
 0x1d5   :  { %3082 = vst.msk [vmem:[%s5344_s4 + $0xdc] sm:$0xf] %vm3026_vm1, %v3474_v38  ;;  %v2691_v37 = vmax.f32 %v2627_v48, 0.0  ;;  %v2630_v51 = vadd.f32 %v5236_v21, %v2559_v39  ;;  %v3743_v40 = vpop.f32.mrb[124].mxu0  ;;  %v3871_v41 = vpop.f32.mrb[124].mxu1 }
 0x1d6   :  { %3080 = vst.msk [vmem:[%s5344_s4 + $0xd4] sm:$0xf] %vm3026_vm1, %v3472_v36  ;;  %v2764_v60 = vadd.f32 %v5230_v20, %v2693_v17  ;;  %v2628_v54 = vadd.f32 %v5236_v21, %v2557_v49  ;;  %v2434_v50 = vmax.f32 %v5499_v61, %v3743_v40  ;;  %v2498_v55 = vmax.f32 %v5500_v4, %v3871_v41  ;;  %v1845_v22 = vpop.f32.mrb[125].mxu0  ;;  %v2357_v23 = vpop.f32.mrb[125].mxu1 }
 0x1d7   :  { %v2762_v8 = vadd.f32 %v5230_v20, %v2691_v37  ;;  %v2694_v26 = vmax.f32 %v2630_v51, 0.0  ;;  %v2432_v27 = vmax.f32 %v5501_v5, %v1845_v22  ;;  %v2496_v62 = vmax.f32 %v5502_v9, %v2357_v23  ;;  %v3744_v63 = vpop.f32.mrb[126].mxu0  ;;  %v3872_v10 = vpop.f32.mrb[126].mxu1 }
 0x1d8   :  { %v3477_v30 = vpack.c.bf16 %v2764_v60, %v2764_v60  ;;  %v2692_v31 = vmax.f32 %v2628_v54, 0.0  ;;  %v2562_v42 = vmax.f32 %v2434_v50, %v2498_v55  ;;  %v2435_v43 = vmax.f32 %v5503_v11, %v3744_v63  ;;  %v1848_v58 = vpop.f32.mrb[127].mxu0  ;;  %v2360_v14 = vpop.f32.mrb[127].mxu1 }
 0x1d9   :  { %v3475_v44 = vpack.c.bf16 %v2762_v8, %v2762_v8  ;;  %v2765_v45 = vadd.f32 %v5230_v20, %v2694_v26  ;;  %v2560_v2 = vmax.f32 %v2432_v27, %v2496_v62  ;;  %v2499_v15 = vmax.f32 %v5504_v46, %v3872_v10 }
 0x1da   :  { %3085 = vst.msk [vmem:[%s5344_s4 + $0xe8] sm:$0xf] %vm3026_vm1, %v3477_v30  ;;  %v2763_v12 = vadd.f32 %v5230_v20, %v2692_v31  ;;  %v2633_v47 = vadd.f32 %v5236_v21, %v2562_v42  ;;  %v2433_v59 = vmax.f32 %v5505_v3, %v1848_v58  ;;  %v2497_v18 = vmax.f32 %v5506_v13, %v2360_v14 }
 0x1db   :  { %3083 = vst.msk [vmem:[%s5344_s4 + $0xe0] sm:$0xf] %vm3026_vm1, %v3475_v44  ;;  %v3478_v52 = vpack.c.bf16 %v2765_v45, %v2765_v45  ;;  %v2631_v19 = vadd.f32 %v5236_v21, %v2560_v2  ;;  %v2563_v1 = vmax.f32 %v2435_v43, %v2499_v15 }
 0x1dc   :  { %v3476_v6 = vpack.c.bf16 %v2763_v12, %v2763_v12  ;;  %v2697_v7 = vmax.f32 %v2633_v47, 0.0  ;;  %v2561_v16 = vmax.f32 %v2433_v59, %v2497_v18 }
 0x1dd   :  { %3086 = vst.msk [vmem:[%s5344_s4 + $0xec] sm:$0xf] %vm3026_vm1, %v3478_v52  ;;  %v2695_v24 = vmax.f32 %v2631_v19, 0.0  ;;  %v2634_v25 = vadd.f32 %v5236_v21, %v2563_v1 }
 0x1de   :  { %3084 = vst.msk [vmem:[%s5344_s4 + $0xe4] sm:$0xf] %vm3026_vm1, %v3476_v6  ;;  %v2768_v28 = vadd.f32 %v5230_v20, %v2697_v7  ;;  %v2632_v57 = vadd.f32 %v5236_v21, %v2561_v16 }
 0x1df   :  { %v2766_v32 = vadd.f32 %v5230_v20, %v2695_v24  ;;  %v2698_v56 = vmax.f32 %v2634_v25, 0.0 }
 0x1e0   :  { %v3481_v33 = vpack.c.bf16 %v2768_v28, %v2768_v28  ;;  %v2696_v53 = vmax.f32 %v2632_v57, 0.0 }
 0x1e1   :  { %v3479_v0 = vpack.c.bf16 %v2766_v32, %v2766_v32  ;;  %v2769_v34 = vadd.f32 %v5230_v20, %v2698_v56 }
 0x1e2   :  { %3089 = vst.msk [vmem:[%s5344_s4 + $0xf8] sm:$0xf] %vm3026_vm1, %v3481_v33  ;;  %v2767_v35 = vadd.f32 %v5230_v20, %v2696_v53 }
 0x1e3   :  { %3087 = vst.msk [vmem:[%s5344_s4 + $0xf0] sm:$0xf] %vm3026_vm1, %v3479_v0  ;;  %v3482_v21 = vpack.c.bf16 %v2769_v34, %v2769_v34 }
 0x1e4   :  { %v3480_v29 = vpack.c.bf16 %v2767_v35, %v2767_v35 }
 0x1e5   :  { %3090 = vst.msk [vmem:[%s5344_s4 + $0xfc] sm:$0xf] %vm3026_vm1, %v3482_v21 }
 0x1e6   :  { %3088 = vst.msk [vmem:[%s5344_s4 + $0xf4] sm:$0xf] %vm3026_vm1, %v3480_v29 }

// kernel: my_model_forward.5
= control target key start
LH: loop header
LB: loop body
LE: loop exit
PB: predicated region body
PF: predicated region fallthrough
CT: control target
= control target key end

     0   :  { %v3246_v0 = vmov 0   ;;  %vm1298_vm0 = vcmask 523264   ;;  %s4495_s1 = inlined_call_operand.vmem [shape: bf16[576,128], index: 1, kind: input, shape index: {}]   ;;  %s4496_s0 = inlined_call_operand.vmem [shape: bf16[512,576], index: 0, kind: input, shape index: {}]   ;;  %s4497_s2 = inlined_call_operand.vmem [shape: f32[1,128], index: 2, kind: input, shape index: {}]   ;;  %s4498_s3 = inlined_call_operand.vmem [shape: f32[1,128], index: 3, kind: input, shape index: {}]   ;;  %s4499_s4 = inlined_call_operand.vmem [shape: bf16[128,128], index: 4, kind: output, shape index: {}]  }
   0x1   :  { %1395 = vmatprep.subr.bf16.mxu0 %v3246_v0  ;;  %2873 = vmatprep.subr.bf16.mxu1 %v3246_v0  ;;  %v2986_v1 = vld [vmem:[%s4495_s1] sm:$0xff]   ;;  %v2987_v2 = vld [vmem:[%s4495_s1 + $0x8] sm:$0xff]   ;;  %v2988_v3 = vld [vmem:[%s4495_s1 + $0x10] sm:$0xff]  }
   0x2   :  { %1396 = vmatpush1.bf16.msra.mxu0 %v2986_v1  ;;  %2889 = vmatpush1.bf16.msra.mxu1 %v2986_v1  ;;  %v2989_v4 = vld [vmem:[%s4495_s1 + $0x18] sm:$0xff]   ;;  %v2990_v5 = vld [vmem:[%s4495_s1 + $0x20] sm:$0xff]   ;;  %v2991_v7 = vld [vmem:[%s4495_s1 + $0x28] sm:$0xff]  }
   0x3   :  { %1397 = vmatprep.subr.bf16.mxu0 %v3246_v0  ;;  %2874 = vmatprep.subr.bf16.mxu1 %v3246_v0  ;;  %v3004_v6 = vld [vmem:[%s4496_s0 + $0x4] ss:$20 sps:$4 sm:$0xff]   ;;  %v2992_v9 = vld [vmem:[%s4495_s1 + $0x30] sm:$0xff]   ;;  %v2995_v12 = vld [vmem:[%s4495_s1 + $0x48] sm:$0xff]  }
   0x4   :  { %v3007_v8 = vld [vmem:[%s4496_s0 + $0x144] ss:$20 sps:$4 sm:$0xff]   ;;  %1427 = vmatprep.mubr.bf16.mxu0 %v3004_v6  ;;  %v2996_v13 = vld [vmem:[%s4495_s1 + $0x50] sm:$0xff]   ;;  %v2999_v16 = vld [vmem:[%s4495_s1 + $0x68] sm:$0xff]  }
   0x5   :  { %1491 = vmatprep.mubr.bf16.mxu1 %v3007_v8  ;;  %v2993_v10 = vld [vmem:[%s4495_s1 + $0x38] sm:$0xff]   ;;  %v2994_v11 = vld [vmem:[%s4495_s1 + $0x40] sm:$0xff]   ;;  %v3000_v17 = vld [vmem:[%s4495_s1 + $0x70] sm:$0xff]  }
   0x6   :  { %1398 = vmatpush1.bf16.msra.mxu0 %v2987_v2  ;;  %2890 = vmatpush1.bf16.msra.mxu1 %v2987_v2  ;;  %v2997_v14 = vld [vmem:[%s4495_s1 + $0x58] sm:$0xff]   ;;  %v2998_v15 = vld [vmem:[%s4495_s1 + $0x60] sm:$0xff]   ;;  %v3058_v25 = vld [vmem:[%s4495_s1 + $0x108] sm:$0xff]  }
   0x7   :  { %1399 = vmatprep.subr.bf16.mxu0 %v3246_v0  ;;  %2875 = vmatprep.subr.bf16.mxu1 %v3246_v0  ;;  %v3001_v18 = vld [vmem:[%s4495_s1 + $0x78] sm:$0xff]   ;;  %v3009_v19 = vld [vmem:[%s4495_s1 + $0x100] sm:$0xff]   ;;  %v3010_v26 = vld [vmem:[%s4495_s1 + $0x88] sm:$0xff]  }
   0x8   :  { %v3002_v20 = vld [vmem:[%s4496_s0] ss:$20 sps:$4 sm:$0xff]   ;;  %v3015_v27 = vld [vmem:[%s4496_s0 + $0x28] ss:$20 sps:$4 sm:$0xff]   ;;  %v3023_v34 = vld [vmem:[%s4496_s0 + $0x50] ss:$20 sps:$4 sm:$0xff]  }
   0x9   :  { %v3005_v21 = vld [vmem:[%s4496_s0 + $0x140] ss:$20 sps:$4 sm:$0xff]   ;;  %v3016_v28 = vld [vmem:[%s4496_s0 + $0x168] ss:$20 sps:$4 sm:$0xff]   ;;  %v3024_v35 = vld [vmem:[%s4496_s0 + $0x190] ss:$20 sps:$4 sm:$0xff]  }
   0xa   :  { %1400 = vmatpush1.bf16.msra.mxu0 %v2988_v3  ;;  %2891 = vmatpush1.bf16.msra.mxu1 %v2988_v3  ;;  %v3008_v22 = vld [vmem:[%s4495_s1 + $0x80] sm:$0xff]   ;;  %v3017_v29 = vld [vmem:[%s4495_s1 + $0x90] sm:$0xff]   ;;  %v3018_v33 = vld [vmem:[%s4495_s1 + $0x98] sm:$0xff]  }
   0xb   :  { %1401 = vmatprep.subr.bf16.mxu0 %v3246_v0  ;;  %2876 = vmatprep.subr.bf16.mxu1 %v3246_v0  ;;  %v3011_v23 = vld [vmem:[%s4496_s0 + $0x2c] ss:$20 sps:$4 sm:$0xff]   ;;  %v3098_v30 = vld [vmem:[%s4495_s1 + $0x110] sm:$0xff]   ;;  %v3035_v43 = vld [vmem:[%s4496_s0 + $0xa4] ss:$20 sps:$4 sm:$0xff]  }
   0xc   :  { %v3013_v24 = vld [vmem:[%s4496_s0 + $0x16c] ss:$20 sps:$4 sm:$0xff]   ;;  %v3019_v31 = vld [vmem:[%s4496_s0 + $0x54] ss:$20 sps:$4 sm:$0xff]   ;;  %v3027_v37 = vld [vmem:[%s4496_s0 + $0x7c] ss:$20 sps:$4 sm:$0xff]  }
   0xd   :  { %v3021_v32 = vld [vmem:[%s4496_s0 + $0x194] ss:$20 sps:$4 sm:$0xff]   ;;  %v3025_v36 = vld [vmem:[%s4495_s1 + $0xa0] sm:$0xff]   ;;  %v3029_v38 = vld [vmem:[%s4496_s0 + $0x1bc] ss:$20 sps:$4 sm:$0xff]  }
   0xe   :  { %1402 = vmatpush1.bf16.msra.mxu0 %v2989_v4  ;;  %2892 = vmatpush1.bf16.msra.mxu1 %v2989_v4  ;;  %v3026_v39 = vld [vmem:[%s4495_s1 + $0xa8] sm:$0xff]   ;;  %v3033_v42 = vld [vmem:[%s4495_s1 + $0xb0] sm:$0xff]   ;;  %v3135_v44 = vld [vmem:[%s4495_s1 + $0x118] sm:$0xff]  }
   0xf   :  { %1403 = vmatprep.subr.bf16.mxu0 %v3246_v0  ;;  %2877 = vmatprep.subr.bf16.mxu1 %v3246_v0  ;;  %v3031_v40 = vld [vmem:[%s4496_s0 + $0x78] ss:$20 sps:$4 sm:$0xff]   ;;  %v3039_v47 = vld [vmem:[%s4496_s0 + $0xa0] ss:$20 sps:$4 sm:$0xff]   ;;  %v3047_v53 = vld [vmem:[%s4496_s0 + $0xc8] ss:$20 sps:$4 sm:$0xff]  }
  0x10   :  { %v3032_v41 = vld [vmem:[%s4496_s0 + $0x1b8] ss:$20 sps:$4 sm:$0xff]   ;;  %v3040_v48 = vld [vmem:[%s4496_s0 + $0x1e0] ss:$20 sps:$4 sm:$0xff]   ;;  %v3048_v54 = vld [vmem:[%s4496_s0 + $0x208] ss:$20 sps:$4 sm:$0xff]  }
  0x11   :  { %v3037_v45 = vld [vmem:[%s4496_s0 + $0x1e4] ss:$20 sps:$4 sm:$0xff]   ;;  %v3043_v50 = vld [vmem:[%s4496_s0 + $0xcc] ss:$20 sps:$4 sm:$0xff]   ;;  %v3049_v55 = vld [vmem:[%s4495_s1 + $0xd0] sm:$0xff]  }
  0x12   :  { %1404 = vmatpush1.bf16.msra.mxu0 %v2990_v5  ;;  %2893 = vmatpush1.bf16.msra.mxu1 %v2990_v5  ;;  %v3034_v46 = vld [vmem:[%s4495_s1 + $0xb8] sm:$0xff]   ;;  %v3041_v49 = vld [vmem:[%s4495_s1 + $0xc0] sm:$0xff]   ;;  %v3042_v52 = vld [vmem:[%s4495_s1 + $0xc8] sm:$0xff]  }
  0x13   :  { %1405 = vmatprep.subr.bf16.mxu0 %v3246_v0  ;;  %2878 = vmatprep.subr.bf16.mxu1 %v3246_v0  ;;  %v3045_v51 = vld [vmem:[%s4496_s0 + $0x20c] ss:$20 sps:$4 sm:$0xff]   ;;  %v3051_v56 = vld [vmem:[%s4496_s0 + $0xf4] ss:$20 sps:$4 sm:$0xff]   ;;  %v3050_v58 = vld [vmem:[%s4495_s1 + $0xd8] sm:$0xff]  }
  0x14   :  { %v3053_v57 = vld [vmem:[%s4496_s0 + $0x234] ss:$20 sps:$4 sm:$0xff]   ;;  %v3055_v59 = vld [vmem:[%s4496_s0 + $0xf0] ss:$20 sps:$4 sm:$0xff]   ;;  %v3064_v2 = vld [vmem:[%s4496_s0 + $0x118] ss:$20 sps:$4 sm:$0xff]  }
  0x15   :  { %v3056_v60 = vld [vmem:[%s4496_s0 + $0x230] ss:$20 sps:$4 sm:$0xff]   ;;  %v3059_v1 = vld [vmem:[%s4495_s1 + $0xe8] sm:$0xff]  }
  0x16   :  { %1406 = vmatpush1.bf16.msra.mxu0 %v2991_v7  ;;  %2894 = vmatpush1.bf16.msra.mxu1 %v2991_v7  ;;  %v3057_v61 = vld [vmem:[%s4495_s1 + $0xe0] sm:$0xff]   ;;  %v3060_v62 = vld [vmem:[%s4496_s0 + $0x11c] ss:$20 sps:$4 sm:$0xff]   ;;  %v3065_v3 = vld [vmem:[%s4496_s0 + $0x258] ss:$20 sps:$4 sm:$0xff]  }
  0x17   :  { %1407 = vmatprep.subr.bf16.mxu0 %v3246_v0  ;;  %2879 = vmatprep.subr.bf16.mxu1 %v3246_v0  ;;  %v3062_v63 = vld [vmem:[%s4496_s0 + $0x25c] ss:$20 sps:$4 sm:$0xff]   ;;  %v3068_v5 = vld [vmem:[%s4496_s0 + $0x284] ss:$20 sps:$4 sm:$0xff]   ;;  %v3072_v6 = vld [vmem:[%s4496_s0 + $0xc] ss:$20 sps:$4 sm:$0xff]  }
  0x18   :  { %v3066_v4 = vld [vmem:[%s4495_s1 + $0xf0] sm:$0xff]   ;;  %v3067_v7 = vld [vmem:[%s4495_s1 + $0xf8] sm:$0xff]  }
  0x19   :  { %v3070_v8 = vld [vmem:[%s4496_s0 + $0x8] ss:$20 sps:$4 sm:$0xff]  }
  0x1a   :  { %1408 = vmatpush1.bf16.msra.mxu0 %v2992_v9  ;;  %2895 = vmatpush1.bf16.msra.mxu1 %v2992_v9  ;;  %v3073_v9 = vld [vmem:[%s4496_s0 + $0x280] ss:$20 sps:$4 sm:$0xff]  }
  0x1b   :  { %1409 = vmatprep.subr.bf16.mxu0 %v3246_v0  ;;  %2880 = vmatprep.subr.bf16.mxu1 %v3246_v0 }
  0x1e   :  { %1410 = vmatpush1.bf16.msra.mxu0 %v2993_v10  ;;  %2896 = vmatpush1.bf16.msra.mxu1 %v2993_v10  ;;  %v3074_v10 = vld [vmem:[%s4496_s0 + $0x2ac] ss:$20 sps:$4 sm:$0xff]  }
  0x1f   :  { %1411 = vmatprep.subr.bf16.mxu0 %v3246_v0  ;;  %2881 = vmatprep.subr.bf16.mxu1 %v3246_v0 }
  0x22   :  { %1412 = vmatpush1.bf16.msra.mxu0 %v2994_v11  ;;  %2897 = vmatpush1.bf16.msra.mxu1 %v2994_v11  ;;  %v3076_v11 = vld [vmem:[%s4496_s0 + $0x34] ss:$20 sps:$4 sm:$0xff]  }
  0x23   :  { %1413 = vmatprep.subr.bf16.mxu0 %v3246_v0  ;;  %2882 = vmatprep.subr.bf16.mxu1 %v3246_v0 }
  0x26   :  { %1414 = vmatpush1.bf16.msra.mxu0 %v2995_v12  ;;  %2898 = vmatpush1.bf16.msra.mxu1 %v2995_v12  ;;  %v3079_v12 = vld [vmem:[%s4496_s0 + $0x30] ss:$20 sps:$4 sm:$0xff]  }
  0x27   :  { %1415 = vmatprep.subr.bf16.mxu0 %v3246_v0  ;;  %2883 = vmatprep.subr.bf16.mxu1 %v3246_v0 }
  0x2a   :  { %1416 = vmatpush1.bf16.msra.mxu0 %v2996_v13  ;;  %2899 = vmatpush1.bf16.msra.mxu1 %v2996_v13  ;;  %v3080_v13 = vld [vmem:[%s4496_s0 + $0x2d4] ss:$20 sps:$4 sm:$0xff]  }
  0x2b   :  { %1417 = vmatprep.subr.bf16.mxu0 %v3246_v0  ;;  %2884 = vmatprep.subr.bf16.mxu1 %v3246_v0 }
  0x2e   :  { %1418 = vmatpush1.bf16.msra.mxu0 %v2997_v14  ;;  %2900 = vmatpush1.bf16.msra.mxu1 %v2997_v14  ;;  %v3082_v14 = vld [vmem:[%s4496_s0 + $0x5c] ss:$20 sps:$4 sm:$0xff]  }
  0x2f   :  { %1419 = vmatprep.subr.bf16.mxu0 %v3246_v0  ;;  %2885 = vmatprep.subr.bf16.mxu1 %v3246_v0 }
  0x32   :  { %1420 = vmatpush1.bf16.msra.mxu0 %v2998_v15  ;;  %2901 = vmatpush1.bf16.msra.mxu1 %v2998_v15  ;;  %v3084_v15 = vld [vmem:[%s4496_s0 + $0x2d0] ss:$20 sps:$4 sm:$0xff]  }
  0x33   :  { %1421 = vmatprep.subr.bf16.mxu0 %v3246_v0  ;;  %2886 = vmatprep.subr.bf16.mxu1 %v3246_v0 }
  0x36   :  { %1422 = vmatpush1.bf16.msra.mxu0 %v2999_v16  ;;  %2902 = vmatpush1.bf16.msra.mxu1 %v2999_v16  ;;  %v3085_v16 = vld [vmem:[%s4496_s0 + $0x58] ss:$20 sps:$4 sm:$0xff]  }
  0x37   :  { %1423 = vmatprep.subr.bf16.mxu0 %v3246_v0  ;;  %2887 = vmatprep.subr.bf16.mxu1 %v3246_v0 }
  0x3a   :  { %1424 = vmatpush1.bf16.msra.mxu0 %v3000_v17  ;;  %2903 = vmatpush1.bf16.msra.mxu1 %v3000_v17  ;;  %v3086_v17 = vld [vmem:[%s4496_s0 + $0x2fc] ss:$20 sps:$4 sm:$0xff]  }
  0x3b   :  { %1425 = vmatprep.subr.bf16.mxu0 %v3246_v0  ;;  %2888 = vmatprep.subr.bf16.mxu1 %v3246_v0 }
  0x3e   :  { %1426 = vmatpush1.bf16.msra.mxu0 %v3001_v18  ;;  %2904 = vmatpush1.bf16.msra.mxu1 %v3001_v18  ;;  %v3088_v18 = vld [vmem:[%s4496_s0 + $0x84] ss:$20 sps:$4 sm:$0xff]  }
  0x3f   :  { %1684 = vmatprep.subr.bf16.mxu0 %v3246_v0  ;;  %2801 = vmatprep.subr.bf16.mxu1 %v3009_v19 }
  0x41   :  { %1428 = vmatmul.mubr.bf16.vlgmr.msra.gmra.mrb[0].mxu0 %v3002_v20  ;;  %1492 = vmatmul.mubr.bf16.vlgmr.msra.gmra.mrb[0].mxu1 %v3005_v21  ;;  %v3091_v20 = vld [vmem:[%s4496_s0 + $0x80] ss:$20 sps:$4 sm:$0xff]   ;;  %v3092_v21 = vld [vmem:[%s4496_s0 + $0x324] ss:$20 sps:$4 sm:$0xff]  }
  0x42   :  { %1685 = vmatpush1.bf16.msra.mxu0 %v3008_v22  ;;  %2802 = vmatpush3.bf16.msra.mxu1 %v3009_v19  ;;  %v3090_v19 = vld [vmem:[%s4496_s0 + $0x2f8] ss:$20 sps:$4 sm:$0xff]  }
  0x43   :  { %1686 = vmatprep.subr.bf16.mxu0 %v3246_v0  ;;  %1435 = vmatprep.mubr.bf16.mxu0 %v3011_v23  ;;  %v3094_v22 = vld [vmem:[%s4496_s0 + $0xac] ss:$20 sps:$4 sm:$0xff]  }
  0x44   :  { %1499 = vmatprep.mubr.bf16.mxu1 %v3013_v24  ;;  %2803 = vmatprep.subr.bf16.mxu1 %v3058_v25  ;;  %v3096_v23 = vld [vmem:[%s4496_s0 + $0x320] ss:$20 sps:$4 sm:$0xff]   ;;  %v3097_v24 = vld [vmem:[%s4496_s0 + $0xa8] ss:$20 sps:$4 sm:$0xff]  }
  0x46   :  { %1687 = vmatpush1.bf16.msra.mxu0 %v3010_v26  ;;  %2804 = vmatpush3.bf16.msra.mxu1 %v3058_v25  ;;  %v3099_v25 = vld [vmem:[%s4496_s0 + $0x34c] ss:$20 sps:$4 sm:$0xff]   ;;  %v3101_v26 = vld [vmem:[%s4496_s0 + $0xd4] ss:$20 sps:$4 sm:$0xff]  }
  0x47   :  { %1688 = vmatprep.subr.bf16.mxu0 %v3246_v0  ;;  %2805 = vmatprep.subr.bf16.mxu1 %v3098_v30 }
  0x49   :  { %1436 = vmatmul.mubr.bf16.gmra.mrb[4].mxu0 %v3015_v27  ;;  %1500 = vmatmul.mubr.bf16.gmra.mrb[4].mxu1 %v3016_v28  ;;  %v3103_v27 = vld [vmem:[%s4496_s0 + $0x348] ss:$20 sps:$4 sm:$0xff]   ;;  %v3104_v28 = vld [vmem:[%s4496_s0 + $0xd0] ss:$20 sps:$4 sm:$0xff]  }
  0x4a   :  { %1689 = vmatpush1.bf16.msra.mxu0 %v3017_v29  ;;  %1443 = vmatprep.mubr.bf16.mxu0 %v3019_v31  ;;  %v3105_v29 = vld [vmem:[%s4496_s0 + $0x374] ss:$20 sps:$4 sm:$0xff]   ;;  %v3109_v31 = vld [vmem:[%s4496_s0 + $0x370] ss:$20 sps:$4 sm:$0xff]  }
  0x4b   :  { %1690 = vmatprep.subr.bf16.mxu0 %v3246_v0  ;;  %1507 = vmatprep.mubr.bf16.mxu1 %v3021_v32  ;;  %v3110_v32 = vld [vmem:[%s4496_s0 + $0xf8] ss:$20 sps:$4 sm:$0xff]  }
  0x4c   :  { %2806 = vmatpush3.bf16.msra.mxu1 %v3098_v30  ;;  %v3107_v30 = vld [vmem:[%s4496_s0 + $0xfc] ss:$20 sps:$4 sm:$0xff]  }
  0x4d   :  { %2807 = vmatprep.subr.bf16.mxu1 %v3135_v44 }
  0x4e   :  { %1691 = vmatpush1.bf16.msra.mxu0 %v3018_v33  ;;  %v3111_v33 = vld [vmem:[%s4496_s0 + $0x39c] ss:$20 sps:$4 sm:$0xff]  }
  0x4f   :  { %1692 = vmatprep.subr.bf16.mxu0 %v3246_v0 }
  0x50   :  { %2808 = vmatpush3.bf16.msra.mxu1 %v3135_v44  ;;  %v3128_v44 = vld [vmem:[%s4496_s0 + $0x170] ss:$20 sps:$4 sm:$0xff]  }
  0x51   :  { %1444 = vmatmul.mubr.bf16.gmra.mrb[8].mxu0 %v3023_v34  ;;  %1508 = vmatmul.mubr.bf16.gmra.mrb[8].mxu1 %v3024_v35  ;;  %v3113_v34 = vld [vmem:[%s4496_s0 + $0x124] ss:$20 sps:$4 sm:$0xff]  }
  0x52   :  { %1693 = vmatpush1.bf16.msra.mxu0 %v3025_v36  ;;  %1451 = vmatprep.mubr.bf16.mxu0 %v3027_v37  ;;  %v3115_v35 = vld [vmem:[%s4496_s0 + $0x398] ss:$20 sps:$4 sm:$0xff]   ;;  %v3116_v36 = vld [vmem:[%s4496_s0 + $0x120] ss:$20 sps:$4 sm:$0xff]  }
  0x53   :  { %1694 = vmatprep.subr.bf16.mxu0 %v3246_v0  ;;  %1515 = vmatprep.mubr.bf16.mxu1 %v3029_v38  ;;  %v3117_v37 = vld [vmem:[%s4496_s0 + $0x3c4] ss:$20 sps:$4 sm:$0xff]   ;;  %v3119_v38 = vld [vmem:[%s4496_s0 + $0x14c] ss:$20 sps:$4 sm:$0xff]  }
  0x56   :  { %1695 = vmatpush1.bf16.msra.mxu0 %v3026_v39  ;;  %v3121_v39 = vld [vmem:[%s4496_s0 + $0x3c0] ss:$20 sps:$4 sm:$0xff]  }
  0x57   :  { %1696 = vmatprep.subr.bf16.mxu0 %v3246_v0 }
  0x59   :  { %1452 = vmatmul.mubr.bf16.gmra.mrb[12].mxu0 %v3031_v40  ;;  %1516 = vmatmul.mubr.bf16.gmra.mrb[12].mxu1 %v3032_v41  ;;  %v3122_v40 = vld [vmem:[%s4496_s0 + $0x148] ss:$20 sps:$4 sm:$0xff]   ;;  %v3123_v41 = vld [vmem:[%s4496_s0 + $0x3ec] ss:$20 sps:$4 sm:$0xff]  }
  0x5a   :  { %1697 = vmatpush1.bf16.msra.mxu0 %v3033_v42  ;;  %1459 = vmatprep.mubr.bf16.mxu0 %v3035_v43  ;;  %v3125_v42 = vld [vmem:[%s4496_s0 + $0x174] ss:$20 sps:$4 sm:$0xff]  }
  0x5b   :  { %1698 = vmatprep.subr.bf16.mxu0 %v3246_v0  ;;  %1523 = vmatprep.mubr.bf16.mxu1 %v3037_v45  ;;  %v3127_v43 = vld [vmem:[%s4496_s0 + $0x3e8] ss:$20 sps:$4 sm:$0xff]  }
  0x5c   :  { %v3129_v45 = vld [vmem:[%s4496_s0 + $0x414] ss:$20 sps:$4 sm:$0xff]  }
  0x5e   :  { %1699 = vmatpush1.bf16.msra.mxu0 %v3034_v46  ;;  %v3131_v46 = vld [vmem:[%s4496_s0 + $0x19c] ss:$20 sps:$4 sm:$0xff]  }
  0x5f   :  { %1700 = vmatprep.subr.bf16.mxu0 %v3246_v0 }
  0x61   :  { %1460 = vmatmul.mubr.bf16.gmra.mrb[16].mxu0 %v3039_v47  ;;  %1524 = vmatmul.mubr.bf16.gmra.mrb[16].mxu1 %v3040_v48  ;;  %v3133_v47 = vld [vmem:[%s4496_s0 + $0x410] ss:$20 sps:$4 sm:$0xff]   ;;  %v3134_v48 = vld [vmem:[%s4496_s0 + $0x198] ss:$20 sps:$4 sm:$0xff]  }
  0x62   :  { %1701 = vmatpush1.bf16.msra.mxu0 %v3041_v49  ;;  %1467 = vmatprep.mubr.bf16.mxu0 %v3043_v50  ;;  %v3136_v49 = vld [vmem:[%s4496_s0 + $0x43c] ss:$20 sps:$4 sm:$0xff]   ;;  %v3138_v50 = vld [vmem:[%s4496_s0 + $0x1c4] ss:$20 sps:$4 sm:$0xff]  }
  0x63   :  { %1702 = vmatprep.subr.bf16.mxu0 %v3246_v0  ;;  %1531 = vmatprep.mubr.bf16.mxu1 %v3045_v51  ;;  %v3140_v51 = vld [vmem:[%s4496_s0 + $0x438] ss:$20 sps:$4 sm:$0xff]  }
  0x66   :  { %1703 = vmatpush1.bf16.msra.mxu0 %v3042_v52  ;;  %v3141_v52 = vld [vmem:[%s4496_s0 + $0x1c0] ss:$20 sps:$4 sm:$0xff]  }
  0x67   :  { %1704 = vmatprep.subr.bf16.mxu0 %v3246_v0 }
  0x69   :  { %1468 = vmatmul.mubr.bf16.gmra.mrb[20].mxu0 %v3047_v53  ;;  %1532 = vmatmul.mubr.bf16.gmra.mrb[20].mxu1 %v3048_v54  ;;  %v3142_v53 = vld [vmem:[%s4496_s0 + $0x464] ss:$20 sps:$4 sm:$0xff]   ;;  %v3144_v54 = vld [vmem:[%s4496_s0 + $0x1ec] ss:$20 sps:$4 sm:$0xff]  }
  0x6a   :  { %1705 = vmatpush1.bf16.msra.mxu0 %v3049_v55  ;;  %1475 = vmatprep.mubr.bf16.mxu0 %v3051_v56  ;;  %v3146_v55 = vld [vmem:[%s4496_s0 + $0x460] ss:$20 sps:$4 sm:$0xff]   ;;  %v3147_v56 = vld [vmem:[%s4496_s0 + $0x1e8] ss:$20 sps:$4 sm:$0xff]  }
  0x6b   :  { %1706 = vmatprep.subr.bf16.mxu0 %v3246_v0  ;;  %1539 = vmatprep.mubr.bf16.mxu1 %v3053_v57  ;;  %v3148_v57 = vld [vmem:[%s4496_s0 + $0x48c] ss:$20 sps:$4 sm:$0xff]  }
  0x6e   :  { %1707 = vmatpush1.bf16.msra.mxu0 %v3050_v58  ;;  %v3150_v58 = vld [vmem:[%s4496_s0 + $0x214] ss:$20 sps:$4 sm:$0xff]  }
  0x6f   :  { %1708 = vmatprep.subr.bf16.mxu0 %v3246_v0 }
  0x71   :  { %1476 = vmatmul.mubr.bf16.gmra.mrb[24].mxu0 %v3055_v59  ;;  %1540 = vmatmul.mubr.bf16.gmra.mrb[24].mxu1 %v3056_v60  ;;  %v3152_v59 = vld [vmem:[%s4496_s0 + $0x488] ss:$20 sps:$4 sm:$0xff]   ;;  %v3153_v60 = vld [vmem:[%s4496_s0 + $0x210] ss:$20 sps:$4 sm:$0xff]  }
  0x72   :  { %1709 = vmatpush1.bf16.msra.mxu0 %v3057_v61  ;;  %1483 = vmatprep.mubr.bf16.mxu0 %v3060_v62  ;;  %v3154_v61 = vld [vmem:[%s4496_s0 + $0x4b4] ss:$20 sps:$4 sm:$0xff]   ;;  %v3156_v62 = vld [vmem:[%s4496_s0 + $0x23c] ss:$20 sps:$4 sm:$0xff]  }
  0x73   :  { %1710 = vmatprep.subr.bf16.mxu0 %v3246_v0  ;;  %1547 = vmatprep.mubr.bf16.mxu1 %v3062_v63  ;;  %v3158_v63 = vld [vmem:[%s4496_s0 + $0x4b0] ss:$20 sps:$4 sm:$0xff]  }
  0x76   :  { %1711 = vmatpush1.bf16.msra.mxu0 %v3059_v1  ;;  %v3159_v1 = vld [vmem:[%s4496_s0 + $0x238] ss:$20 sps:$4 sm:$0xff]  }
  0x77   :  { %1712 = vmatprep.subr.bf16.mxu0 %v3246_v0 }
  0x79   :  { %1484 = vmatmul.mubr.bf16.gmra.mrb[28].mxu0 %v3064_v2  ;;  %1548 = vmatmul.mubr.bf16.gmra.mrb[28].mxu1 %v3065_v3  ;;  %v3160_v2 = vld [vmem:[%s4496_s0 + $0x4dc] ss:$20 sps:$4 sm:$0xff]   ;;  %v3162_v3 = vld [vmem:[%s4496_s0 + $0x264] ss:$20 sps:$4 sm:$0xff]  }
  0x7a   :  { %1713 = vmatpush1.bf16.msra.mxu0 %v3066_v4  ;;  %1555 = vmatprep.mubr.bf16.mxu1 %v3068_v5  ;;  %v3164_v4 = vld [vmem:[%s4496_s0 + $0x4d8] ss:$20 sps:$4 sm:$0xff]   ;;  %v3165_v5 = vld [vmem:[%s4496_s0 + $0x260] ss:$20 sps:$4 sm:$0xff]  }
  0x7b   :  { %1714 = vmatprep.subr.bf16.mxu0 %v3246_v0  ;;  %1716 = vmatprep.mubr.bf16.mxu0 %v3072_v6  ;;  %v3078_v0 = vld [vmem:[%s4496_s0 + $0x2a8] ss:$20 sps:$4 sm:$0xff]   ;;  %v3166_v6 = vld [vmem:[%s4496_s0 + $0x28c] ss:$20 sps:$4 sm:$0xff]  }
  0x7e   :  { %1715 = vmatpush1.bf16.msra.mxu0 %v3067_v7  ;;  %v3168_v7 = vld [vmem:[%s4496_s0 + $0x10] ss:$20 sps:$4 sm:$0xff]  }
  0x81   :  { %1556 = vmatmul.mubr.bf16.gmra.mrb[32].mxu1 %v3073_v9  ;;  %1717 = vmatmul.mubr.bf16.vlgmr.msra.gmra.mrb[0].mxu0 %v3070_v8  ;;  %v3169_v8 = vld [vmem:[%s4496_s0 + $0x288] ss:$20 sps:$4 sm:$0xff]   ;;  %v3170_v9 = vld [vmem:[%s4496_s0 + $0x38] ss:$20 sps:$4 sm:$0xff]  }
  0x82   :  { %1563 = vmatprep.mubr.bf16.mxu1 %v3074_v10  ;;  %1724 = vmatprep.mubr.bf16.mxu0 %v3076_v11  ;;  %v3171_v10 = vld [vmem:[%s4496_s0 + $0x2b4] ss:$20 sps:$4 sm:$0xff]  }
  0x83   :  { %v3173_v11 = vld [vmem:[%s4496_s0 + $0x60] ss:$20 sps:$4 sm:$0xff]  }
  0x89   :  { %1564 = vmatmul.mubr.bf16.gmra.mrb[36].mxu1 %v3078_v0  ;;  %1725 = vmatmul.mubr.bf16.gmra.mrb[4].mxu0 %v3079_v12  ;;  %v3174_v0 = vld [vmem:[%s4496_s0 + $0x2b0] ss:$20 sps:$4 sm:$0xff]   ;;  %v3175_v12 = vld [vmem:[%s4496_s0 + $0x88] ss:$20 sps:$4 sm:$0xff]  }
  0x8a   :  { %1571 = vmatprep.mubr.bf16.mxu1 %v3080_v13  ;;  %1732 = vmatprep.mubr.bf16.mxu0 %v3082_v14  ;;  %v3176_v13 = vld [vmem:[%s4496_s0 + $0x2dc] ss:$20 sps:$4 sm:$0xff]  }
  0x8b   :  { %v3178_v14 = vld [vmem:[%s4496_s0 + $0xb0] ss:$20 sps:$4 sm:$0xff]  }
  0x91   :  { %1572 = vmatmul.mubr.bf16.gmra.mrb[40].mxu1 %v3084_v15  ;;  %1733 = vmatmul.mubr.bf16.gmra.mrb[8].mxu0 %v3085_v16  ;;  %v3179_v15 = vld [vmem:[%s4496_s0 + $0x2d8] ss:$20 sps:$4 sm:$0xff]  }
  0x92   :  { %1579 = vmatprep.mubr.bf16.mxu1 %v3086_v17  ;;  %1740 = vmatprep.mubr.bf16.mxu0 %v3088_v18  ;;  %v3180_v16 = vld [vmem:[%s4496_s0 + $0xd8] ss:$20 sps:$4 sm:$0xff]   ;;  %v3183_v18 = vld [vmem:[%s4496_s0 + $0x100] ss:$20 sps:$4 sm:$0xff]  }
  0x93   :  { %v3181_v17 = vld [vmem:[%s4496_s0 + $0x304] ss:$20 sps:$4 sm:$0xff]  }
  0x99   :  { %1580 = vmatmul.mubr.bf16.gmra.mrb[44].mxu1 %v3090_v19  ;;  %1741 = vmatmul.mubr.bf16.gmra.mrb[12].mxu0 %v3091_v20 }
  0x9a   :  { %1587 = vmatprep.mubr.bf16.mxu1 %v3092_v21  ;;  %1748 = vmatprep.mubr.bf16.mxu0 %v3094_v22  ;;  %v3184_v21 = vld [vmem:[%s4496_s0 + $0x300] ss:$20 sps:$4 sm:$0xff]   ;;  %v3185_v22 = vld [vmem:[%s4496_s0 + $0x128] ss:$20 sps:$4 sm:$0xff]  }
  0xa1   :  { %1588 = vmatmul.mubr.bf16.gmra.mrb[48].mxu1 %v3096_v23  ;;  %1749 = vmatmul.mubr.bf16.gmra.mrb[16].mxu0 %v3097_v24  ;;  %v3186_v24 = vld [vmem:[%s4496_s0 + $0x32c] ss:$20 sps:$4 sm:$0xff]  }
  0xa2   :  { %1595 = vmatprep.mubr.bf16.mxu1 %v3099_v25  ;;  %1756 = vmatprep.mubr.bf16.mxu0 %v3101_v26  ;;  %v3188_v25 = vld [vmem:[%s4496_s0 + $0x150] ss:$20 sps:$4 sm:$0xff]  }
  0xa9   :  { %1596 = vmatmul.mubr.bf16.gmra.mrb[52].mxu1 %v3103_v27  ;;  %1757 = vmatmul.mubr.bf16.gmra.mrb[20].mxu0 %v3104_v28 }
  0xaa   :  { %1603 = vmatprep.mubr.bf16.mxu1 %v3105_v29  ;;  %1764 = vmatprep.mubr.bf16.mxu0 %v3107_v30  ;;  %v3189_v29 = vld [vmem:[%s4496_s0 + $0x328] ss:$20 sps:$4 sm:$0xff]   ;;  %v3190_v30 = vld [vmem:[%s4496_s0 + $0x178] ss:$20 sps:$4 sm:$0xff]  }
  0xb1   :  { %1604 = vmatmul.mubr.bf16.gmra.mrb[56].mxu1 %v3109_v31  ;;  %1765 = vmatmul.mubr.bf16.gmra.mrb[24].mxu0 %v3110_v32  ;;  %v3191_v32 = vld [vmem:[%s4496_s0 + $0x354] ss:$20 sps:$4 sm:$0xff]  }
  0xb2   :  { %1611 = vmatprep.mubr.bf16.mxu1 %v3111_v33  ;;  %1772 = vmatprep.mubr.bf16.mxu0 %v3113_v34  ;;  %v3193_v33 = vld [vmem:[%s4496_s0 + $0x1a0] ss:$20 sps:$4 sm:$0xff]  }
  0xb9   :  { %1612 = vmatmul.mubr.bf16.gmra.mrb[60].mxu1 %v3115_v35  ;;  %1773 = vmatmul.mubr.bf16.gmra.mrb[28].mxu0 %v3116_v36 }
  0xba   :  { %1619 = vmatprep.mubr.bf16.mxu1 %v3117_v37  ;;  %1780 = vmatprep.mubr.bf16.mxu0 %v3119_v38  ;;  %v3194_v37 = vld [vmem:[%s4496_s0 + $0x350] ss:$20 sps:$4 sm:$0xff]   ;;  %v3195_v38 = vld [vmem:[%s4496_s0 + $0x1c8] ss:$20 sps:$4 sm:$0xff]  }
  0xc1   :  { %1620 = vmatmul.mubr.bf16.gmra.mrb[64].mxu1 %v3121_v39  ;;  %1781 = vmatmul.mubr.bf16.gmra.mrb[32].mxu0 %v3122_v40  ;;  %v3196_v40 = vld [vmem:[%s4496_s0 + $0x37c] ss:$20 sps:$4 sm:$0xff]  }
  0xc2   :  { %1627 = vmatprep.mubr.bf16.mxu1 %v3123_v41  ;;  %1788 = vmatprep.mubr.bf16.mxu0 %v3125_v42  ;;  %v3198_v41 = vld [vmem:[%s4496_s0 + $0x1f0] ss:$20 sps:$4 sm:$0xff]  }
  0xc9   :  { %1628 = vmatmul.mubr.bf16.gmra.mrb[68].mxu1 %v3127_v43  ;;  %1789 = vmatmul.mubr.bf16.gmra.mrb[36].mxu0 %v3128_v44 }
  0xca   :  { %1635 = vmatprep.mubr.bf16.mxu1 %v3129_v45  ;;  %1796 = vmatprep.mubr.bf16.mxu0 %v3131_v46  ;;  %v3199_v45 = vld [vmem:[%s4496_s0 + $0x378] ss:$20 sps:$4 sm:$0xff]  }
  0xcb   :  { %v3200_v46 = vld [vmem:[%s4496_s0 + $0x218] ss:$20 sps:$4 sm:$0xff]  }
  0xd1   :  { %1636 = vmatmul.mubr.bf16.gmra.mrb[72].mxu1 %v3133_v47  ;;  %1797 = vmatmul.mubr.bf16.gmra.mrb[40].mxu0 %v3134_v48  ;;  %v3201_v48 = vld [vmem:[%s4496_s0 + $0x3a4] ss:$20 sps:$4 sm:$0xff]  }
  0xd2   :  { %1643 = vmatprep.mubr.bf16.mxu1 %v3136_v49  ;;  %1804 = vmatprep.mubr.bf16.mxu0 %v3138_v50  ;;  %v3203_v49 = vld [vmem:[%s4496_s0 + $0x240] ss:$20 sps:$4 sm:$0xff]  }
  0xd9   :  { %1644 = vmatmul.mubr.bf16.gmra.mrb[76].mxu1 %v3140_v51  ;;  %1805 = vmatmul.mubr.bf16.gmra.mrb[44].mxu0 %v3141_v52 }
  0xda   :  { %1651 = vmatprep.mubr.bf16.mxu1 %v3142_v53  ;;  %1812 = vmatprep.mubr.bf16.mxu0 %v3144_v54  ;;  %v3204_v53 = vld [vmem:[%s4496_s0 + $0x3a0] ss:$20 sps:$4 sm:$0xff]   ;;  %v3205_v54 = vld [vmem:[%s4496_s0 + $0x268] ss:$20 sps:$4 sm:$0xff]  }
  0xe1   :  { %1652 = vmatmul.mubr.bf16.gmra.mrb[80].mxu1 %v3146_v55  ;;  %1813 = vmatmul.mubr.bf16.gmra.mrb[48].mxu0 %v3147_v56  ;;  %v3206_v56 = vld [vmem:[%s4496_s0 + $0x3cc] ss:$20 sps:$4 sm:$0xff]  }
  0xe2   :  { %1659 = vmatprep.mubr.bf16.mxu1 %v3148_v57  ;;  %1820 = vmatprep.mubr.bf16.mxu0 %v3150_v58  ;;  %v3208_v57 = vld [vmem:[%s4496_s0 + $0x290] ss:$20 sps:$4 sm:$0xff]  }
  0xe9   :  { %1660 = vmatmul.mubr.bf16.gmra.mrb[84].mxu1 %v3152_v59  ;;  %1821 = vmatmul.mubr.bf16.gmra.mrb[52].mxu0 %v3153_v60 }
  0xea   :  { %1667 = vmatprep.mubr.bf16.mxu1 %v3154_v61  ;;  %1828 = vmatprep.mubr.bf16.mxu0 %v3156_v62  ;;  %v3209_v61 = vld [vmem:[%s4496_s0 + $0x3c8] ss:$20 sps:$4 sm:$0xff]   ;;  %v3210_v62 = vld [vmem:[%s4496_s0 + $0x2b8] ss:$20 sps:$4 sm:$0xff]  }
  0xf1   :  { %1668 = vmatmul.mubr.bf16.gmra.mrb[88].mxu1 %v3158_v63  ;;  %1829 = vmatmul.mubr.bf16.gmra.mrb[56].mxu0 %v3159_v1  ;;  %v3211_v1 = vld [vmem:[%s4496_s0 + $0x3f4] ss:$20 sps:$4 sm:$0xff]  }
  0xf2   :  { %1675 = vmatprep.mubr.bf16.mxu1 %v3160_v2  ;;  %1836 = vmatprep.mubr.bf16.mxu0 %v3162_v3  ;;  %v3213_v2 = vld [vmem:[%s4496_s0 + $0x2e0] ss:$20 sps:$4 sm:$0xff]  }
  0xf9   :  { %1676 = vmatmul.mubr.bf16.gmra.mrb[92].mxu1 %v3164_v4  ;;  %1837 = vmatmul.mubr.bf16.gmra.mrb[60].mxu0 %v3165_v5 }
  0xfa   :  { %1844 = vmatprep.mubr.bf16.mxu0 %v3166_v6  ;;  %2809 = vmatprep.mubr.msk.bf16.mxu1 %vm1298_vm0, %v3168_v7  ;;  %v3214_v6 = vld [vmem:[%s4496_s0 + $0x3f0] ss:$20 sps:$4 sm:$0xff]   ;;  %v3215_v7 = vld [vmem:[%s4496_s0 + $0x308] ss:$20 sps:$4 sm:$0xff]  }
 0x101   :  { %1845 = vmatmul.mubr.bf16.gmra.mrb[64].mxu0 %v3169_v8  ;;  %2810 = vmatmul.mubr.msk.bf16.vlgmr.msra.gmra.mrb[96].mxu1 %vm1298_vm0, %v3170_v9  ;;  %v3216_v9 = vld [vmem:[%s4496_s0 + $0x41c] ss:$20 sps:$4 sm:$0xff]  }
 0x102   :  { %1852 = vmatprep.mubr.bf16.mxu0 %v3171_v10  ;;  %2813 = vmatprep.mubr.msk.bf16.mxu1 %vm1298_vm0, %v3173_v11  ;;  %v3218_v10 = vld [vmem:[%s4496_s0 + $0x330] ss:$20 sps:$4 sm:$0xff]  }
 0x109   :  { %1853 = vmatmul.mubr.bf16.gmra.mrb[68].mxu0 %v3174_v0  ;;  %2814 = vmatmul.mubr.msk.bf16.gmra.mrb[100].mxu1 %vm1298_vm0, %v3175_v12 }
 0x10a   :  { %1860 = vmatprep.mubr.bf16.mxu0 %v3176_v13  ;;  %2817 = vmatprep.mubr.msk.bf16.mxu1 %vm1298_vm0, %v3178_v14  ;;  %v3219_v13 = vld [vmem:[%s4496_s0 + $0x418] ss:$20 sps:$4 sm:$0xff]  }
 0x10b   :  { %v3220_v14 = vld [vmem:[%s4496_s0 + $0x358] ss:$20 sps:$4 sm:$0xff]  }
 0x111   :  { %1861 = vmatmul.mubr.bf16.gmra.mrb[72].mxu0 %v3179_v15  ;;  %2818 = vmatmul.mubr.msk.bf16.gmra.mrb[104].mxu1 %vm1298_vm0, %v3180_v16  ;;  %v3221_v16 = vld [vmem:[%s4496_s0 + $0x444] ss:$20 sps:$4 sm:$0xff]  }
 0x112   :  { %1868 = vmatprep.mubr.bf16.mxu0 %v3181_v17  ;;  %2821 = vmatprep.mubr.msk.bf16.mxu1 %vm1298_vm0, %v3183_v18  ;;  %v3223_v17 = vld [vmem:[%s4496_s0 + $0x380] ss:$20 sps:$4 sm:$0xff]  }
 0x114   :  { %v3765_v19 = vpop.f32.mrb[0].mxu1 }
 0x115   :  { %v1495_v20 = vpop.f32.mrb[1].mxu1 }
 0x116   :  { %v3773_v23 = vpop.f32.mrb[2].mxu1 }
 0x117   :  { %v1498_v26 = vpop.f32.mrb[3].mxu1 }
 0x118   :  { %v3225_v26 = vld [vmem:[%s4496_s0 + $0x3a8] ss:$20 sps:$4 sm:$0xff]  }
 0x119   :  { %1869 = vmatmul.mubr.bf16.gmra.mrb[76].mxu0 %v3184_v21  ;;  %2822 = vmatmul.mubr.msk.bf16.gmra.mrb[108].mxu1 %vm1298_vm0, %v3185_v22 }
 0x11a   :  { %1876 = vmatprep.mubr.bf16.mxu0 %v3186_v24  ;;  %2825 = vmatprep.mubr.msk.bf16.mxu1 %vm1298_vm0, %v3188_v25  ;;  %v3224_v25 = vld [vmem:[%s4496_s0 + $0x440] ss:$20 sps:$4 sm:$0xff]  }
 0x11c   :  { %v3783_v27 = vpop.f32.mrb[4].mxu1 }
 0x11d   :  { %v1503_v28 = vpop.f32.mrb[5].mxu1 }
 0x11e   :  { %v3791_v31 = vpop.f32.mrb[6].mxu1 }
 0x11f   :  { %v1506_v34 = vpop.f32.mrb[7].mxu1 }
 0x121   :  { %1877 = vmatmul.mubr.bf16.gmra.mrb[80].mxu0 %v3189_v29  ;;  %2826 = vmatmul.mubr.msk.bf16.gmra.mrb[112].mxu1 %vm1298_vm0, %v3190_v30  ;;  %v3226_v30 = vld [vmem:[%s4496_s0 + $0x46c] ss:$20 sps:$4 sm:$0xff]  }
 0x122   :  { %1884 = vmatprep.mubr.bf16.mxu0 %v3191_v32  ;;  %2829 = vmatprep.mubr.msk.bf16.mxu1 %vm1298_vm0, %v3193_v33  ;;  %v3228_v32 = vld [vmem:[%s4496_s0 + $0x3d0] ss:$20 sps:$4 sm:$0xff]  }
 0x124   :  { %v3801_v35 = vpop.f32.mrb[8].mxu1 }
 0x125   :  { %v1511_v36 = vpop.f32.mrb[9].mxu1 }
 0x126   :  { %v3809_v39 = vpop.f32.mrb[10].mxu1 }
 0x127   :  { %v1514_v42 = vpop.f32.mrb[11].mxu1 }
 0x128   :  { %v3230_v42 = vld [vmem:[%s4496_s0 + $0x3f8] ss:$20 sps:$4 sm:$0xff]  }
 0x129   :  { %1885 = vmatmul.mubr.bf16.gmra.mrb[84].mxu0 %v3194_v37  ;;  %2830 = vmatmul.mubr.msk.bf16.gmra.mrb[116].mxu1 %vm1298_vm0, %v3195_v38 }
 0x12a   :  { %1892 = vmatprep.mubr.bf16.mxu0 %v3196_v40  ;;  %2833 = vmatprep.mubr.msk.bf16.mxu1 %vm1298_vm0, %v3198_v41  ;;  %v3229_v41 = vld [vmem:[%s4496_s0 + $0x468] ss:$20 sps:$4 sm:$0xff]  }
 0x12c   :  { %v3819_v43 = vpop.f32.mrb[12].mxu1 }
 0x12d   :  { %v1519_v44 = vpop.f32.mrb[13].mxu1 }
 0x12e   :  { %v3827_v47 = vpop.f32.mrb[14].mxu1 }
 0x12f   :  { %v1522_v50 = vpop.f32.mrb[15].mxu1 }
 0x131   :  { %1893 = vmatmul.mubr.bf16.gmra.mrb[88].mxu0 %v3199_v45  ;;  %2834 = vmatmul.mubr.msk.bf16.gmra.mrb[120].mxu1 %vm1298_vm0, %v3200_v46  ;;  %v3231_v46 = vld [vmem:[%s4496_s0 + $0x494] ss:$20 sps:$4 sm:$0xff]  }
 0x132   :  { %1900 = vmatprep.mubr.bf16.mxu0 %v3201_v48  ;;  %2837 = vmatprep.mubr.msk.bf16.mxu1 %vm1298_vm0, %v3203_v49  ;;  %v3233_v48 = vld [vmem:[%s4496_s0 + $0x420] ss:$20 sps:$4 sm:$0xff]  }
 0x134   :  { %v3837_v51 = vpop.f32.mrb[16].mxu1 }
 0x135   :  { %v1527_v52 = vpop.f32.mrb[17].mxu1 }
 0x136   :  { %v3845_v55 = vpop.f32.mrb[18].mxu1 }
 0x137   :  { %v1530_v58 = vpop.f32.mrb[19].mxu1 }
 0x138   :  { %v3235_v58 = vld [vmem:[%s4496_s0 + $0x448] ss:$20 sps:$4 sm:$0xff]  }
 0x139   :  { %1901 = vmatmul.mubr.bf16.gmra.mrb[92].mxu0 %v3204_v53  ;;  %2838 = vmatmul.mubr.msk.bf16.gmra.mrb[124].mxu1 %vm1298_vm0, %v3205_v54 }
 0x13a   :  { %1908 = vmatprep.mubr.bf16.mxu0 %v3206_v56  ;;  %2841 = vmatprep.mubr.msk.bf16.mxu1 %vm1298_vm0, %v3208_v57  ;;  %v3234_v57 = vld [vmem:[%s4496_s0 + $0x490] ss:$20 sps:$4 sm:$0xff]  }
 0x13c   :  { %v3855_v59 = vpop.f32.mrb[20].mxu1 }
 0x13d   :  { %v1535_v60 = vpop.f32.mrb[21].mxu1 }
 0x13e   :  { %v3863_v63 = vpop.f32.mrb[22].mxu1 }
 0x13f   :  { %v1538_v3 = vpop.f32.mrb[23].mxu1 }
 0x141   :  { %1909 = vmatmul.mubr.bf16.gmra.mrb[96].mxu0 %v3209_v61  ;;  %2842 = vmatmul.mubr.msk.bf16.gmra.mrb[128].mxu1 %vm1298_vm0, %v3210_v62  ;;  %v3236_v62 = vld [vmem:[%s4496_s0 + $0x4bc] ss:$20 sps:$4 sm:$0xff]  }
 0x142   :  { %1916 = vmatprep.mubr.bf16.mxu0 %v3211_v1  ;;  %2845 = vmatprep.mubr.msk.bf16.mxu1 %vm1298_vm0, %v3213_v2  ;;  %v3238_v1 = vld [vmem:[%s4496_s0 + $0x470] ss:$20 sps:$4 sm:$0xff]  }
 0x144   :  { %v3873_v4 = vpop.f32.mrb[24].mxu1 }
 0x145   :  { %v1543_v5 = vpop.f32.mrb[25].mxu1 }
 0x146   :  { %v3881_v8 = vpop.f32.mrb[26].mxu1 }
 0x147   :  { %v1546_v11 = vpop.f32.mrb[27].mxu1 }
 0x148   :  { %v3240_v11 = vld [vmem:[%s4496_s0 + $0x498] ss:$20 sps:$4 sm:$0xff]  }
 0x149   :  { %1917 = vmatmul.mubr.bf16.gmra.mrb[100].mxu0 %v3214_v6  ;;  %2846 = vmatmul.mubr.msk.bf16.gmra.mrb[132].mxu1 %vm1298_vm0, %v3215_v7 }
 0x14a   :  { %1924 = vmatprep.mubr.bf16.mxu0 %v3216_v9  ;;  %2849 = vmatprep.mubr.msk.bf16.mxu1 %vm1298_vm0, %v3218_v10  ;;  %v3239_v10 = vld [vmem:[%s4496_s0 + $0x4b8] ss:$20 sps:$4 sm:$0xff]  }
 0x14c   :  { %v3891_v0 = vpop.f32.mrb[28].mxu1 }
 0x14d   :  { %v1551_v12 = vpop.f32.mrb[29].mxu1 }
 0x14e   :  { %v3899_v15 = vpop.f32.mrb[30].mxu1 }
 0x14f   :  { %v1554_v18 = vpop.f32.mrb[31].mxu1 }
 0x151   :  { %1925 = vmatmul.mubr.bf16.gmra.mrb[104].mxu0 %v3219_v13  ;;  %2850 = vmatmul.mubr.msk.bf16.gmra.mrb[136].mxu1 %vm1298_vm0, %v3220_v14  ;;  %v3241_v14 = vld [vmem:[%s4496_s0 + $0x4e4] ss:$20 sps:$4 sm:$0xff]  }
 0x152   :  { %1932 = vmatprep.mubr.bf16.mxu0 %v3221_v16  ;;  %2853 = vmatprep.mubr.msk.bf16.mxu1 %vm1298_vm0, %v3223_v17  ;;  %v3243_v16 = vld [vmem:[%s4496_s0 + $0x4c0] ss:$20 sps:$4 sm:$0xff]  }
 0x154   :  { %v3909_v20 = vpop.f32.mrb[32].mxu1  ;;  %v3911_v21 = vpop.f32.mrb[0].mxu0 }
 0x155   :  { %v1559_v22 = vpop.f32.mrb[33].mxu1  ;;  %v1720_v24 = vpop.f32.mrb[1].mxu0 }
 0x156   :  { %v3919_v28 = vpop.f32.mrb[34].mxu1  ;;  %v3921_v29 = vpop.f32.mrb[2].mxu0 }
 0x157   :  { %v1562_v33 = vpop.f32.mrb[35].mxu1  ;;  %v1723_v34 = vpop.f32.mrb[3].mxu0 }
 0x159   :  { %1933 = vmatmul.mubr.bf16.gmra.mrb[108].mxu0 %v3224_v25  ;;  %2854 = vmatmul.mubr.msk.bf16.gmra.mrb[140].mxu1 %vm1298_vm0, %v3225_v26 }
 0x15a   :  { %1940 = vmatprep.mubr.bf16.mxu0 %v3226_v30  ;;  %2857 = vmatprep.mubr.msk.bf16.mxu1 %vm1298_vm0, %v3228_v32  ;;  %v3244_v30 = vld [vmem:[%s4496_s0 + $0x4e0] ss:$20 sps:$4 sm:$0xff]   ;;  %v3245_v32 = vld [vmem:[%s4496_s0 + $0x4e8] ss:$20 sps:$4 sm:$0xff]  }
 0x15c   :  { %v3931_v36 = vpop.f32.mrb[36].mxu1  ;;  %v3933_v37 = vpop.f32.mrb[4].mxu0 }
 0x15d   :  { %v1567_v38 = vpop.f32.mrb[37].mxu1  ;;  %v1728_v40 = vpop.f32.mrb[5].mxu0 }
 0x15e   :  { %v3941_v44 = vpop.f32.mrb[38].mxu1  ;;  %v3943_v45 = vpop.f32.mrb[6].mxu0 }
 0x15f   :  { %v1570_v49 = vpop.f32.mrb[39].mxu1  ;;  %v1731_v50 = vpop.f32.mrb[7].mxu0 }
 0x161   :  { %1941 = vmatmul.mubr.bf16.gmra.mrb[112].mxu0 %v3229_v41  ;;  %2858 = vmatmul.mubr.msk.bf16.gmra.mrb[144].mxu1 %vm1298_vm0, %v3230_v42 }
 0x162   :  { %1948 = vmatprep.mubr.bf16.mxu0 %v3231_v46  ;;  %2861 = vmatprep.mubr.msk.bf16.mxu1 %vm1298_vm0, %v3233_v48 }
 0x164   :  { %v3953_v52 = vpop.f32.mrb[40].mxu1  ;;  %v3955_v53 = vpop.f32.mrb[8].mxu0 }
 0x165   :  { %v1575_v54 = vpop.f32.mrb[41].mxu1  ;;  %v1736_v56 = vpop.f32.mrb[9].mxu0 }
 0x166   :  { %v3963_v60 = vpop.f32.mrb[42].mxu1  ;;  %v3965_v61 = vpop.f32.mrb[10].mxu0 }
 0x167   :  { %v1578_v2 = vpop.f32.mrb[43].mxu1  ;;  %v1739_v3 = vpop.f32.mrb[11].mxu0 }
 0x169   :  { %1949 = vmatmul.mubr.bf16.gmra.mrb[116].mxu0 %v3234_v57  ;;  %2862 = vmatmul.mubr.msk.bf16.gmra.mrb[148].mxu1 %vm1298_vm0, %v3235_v58 }
 0x16a   :  { %1956 = vmatprep.mubr.bf16.mxu0 %v3236_v62  ;;  %2865 = vmatprep.mubr.msk.bf16.mxu1 %vm1298_vm0, %v3238_v1 }
 0x16c   :  { %v3975_v5 = vpop.f32.mrb[44].mxu1  ;;  %v3977_v6 = vpop.f32.mrb[12].mxu0 }
 0x16d   :  { %v1583_v7 = vpop.f32.mrb[45].mxu1  ;;  %v1744_v9 = vpop.f32.mrb[13].mxu0 }
 0x16e   :  { %v3985_v12 = vpop.f32.mrb[46].mxu1  ;;  %v3987_v13 = vpop.f32.mrb[14].mxu0 }
 0x16f   :  { %v1586_v17 = vpop.f32.mrb[47].mxu1  ;;  %v1747_v18 = vpop.f32.mrb[15].mxu0 }
 0x171   :  { %1957 = vmatmul.mubr.bf16.gmra.mrb[120].mxu0 %v3239_v10  ;;  %2866 = vmatmul.mubr.msk.bf16.gmra.mrb[152].mxu1 %vm1298_vm0, %v3240_v11 }
 0x172   :  { %1964 = vmatprep.mubr.bf16.mxu0 %v3241_v14  ;;  %2869 = vmatprep.mubr.msk.bf16.mxu1 %vm1298_vm0, %v3243_v16 }
 0x174   :  { %v3997_v22 = vpop.f32.mrb[48].mxu1  ;;  %v3999_v24 = vpop.f32.mrb[16].mxu0 }
 0x175   :  { %v1591_v25 = vpop.f32.mrb[49].mxu1  ;;  %v1752_v26 = vpop.f32.mrb[17].mxu0 }
 0x176   :  { %v4007_v33 = vpop.f32.mrb[50].mxu1  ;;  %v4009_v34 = vpop.f32.mrb[18].mxu0 }
 0x177   :  { %v1594_v38 = vpop.f32.mrb[51].mxu1  ;;  %v1755_v40 = vpop.f32.mrb[19].mxu0 }
 0x179   :  { %1965 = vmatmul.mubr.bf16.gmra.mrb[124].mxu0 %v3244_v30  ;;  %2870 = vmatmul.mubr.msk.bf16.gmra.mrb[156].mxu1 %vm1298_vm0, %v3245_v32 }
 0x17c   :  { %v4012_v41 = vpop.f32.mrb[52].mxu1  ;;  %v4014_v42 = vpop.f32.mrb[20].mxu0 }
 0x17d   :  { %v1599_v46 = vpop.f32.mrb[53].mxu1  ;;  %v1760_v48 = vpop.f32.mrb[21].mxu0 }
 0x17e   :  { %v4016_v49 = vpop.f32.mrb[54].mxu1  ;;  %v4018_v50 = vpop.f32.mrb[22].mxu0 }
 0x17f   :  { %v1602_v54 = vpop.f32.mrb[55].mxu1  ;;  %v1763_v56 = vpop.f32.mrb[23].mxu0 }
 0x184   :  { %v4020_v57 = vpop.f32.mrb[56].mxu1  ;;  %v4022_v58 = vpop.f32.mrb[24].mxu0 }
 0x185   :  { %v1607_v62 = vpop.f32.mrb[57].mxu1  ;;  %v1768_v1 = vpop.f32.mrb[25].mxu0 }
 0x186   :  { %v4024_v2 = vpop.f32.mrb[58].mxu1  ;;  %v4026_v3 = vpop.f32.mrb[26].mxu0 }
 0x187   :  { %v1610_v7 = vpop.f32.mrb[59].mxu1  ;;  %v1771_v9 = vpop.f32.mrb[27].mxu0 }
 0x18c   :  { %v4028_v10 = vpop.f32.mrb[60].mxu1  ;;  %v4030_v11 = vpop.f32.mrb[28].mxu0 }
 0x18d   :  { %v1615_v14 = vpop.f32.mrb[61].mxu1  ;;  %v1776_v16 = vpop.f32.mrb[29].mxu0 }
 0x18e   :  { %v4032_v17 = vpop.f32.mrb[62].mxu1  ;;  %v4034_v18 = vpop.f32.mrb[30].mxu0 }
 0x18f   :  { %v1618_v25 = vpop.f32.mrb[63].mxu1  ;;  %v1779_v26 = vpop.f32.mrb[31].mxu0 }
 0x194   :  { %v4036_v30 = vpop.f32.mrb[64].mxu1  ;;  %v1782_v32 = vpop.f32.mrb[32].mxu0 }
 0x195   :  { %v4039_v38 = vadd.f32 %v1782_v32, %v3765_v19  ;;  %v1623_v40 = vpop.f32.mrb[65].mxu1  ;;  %v1784_v46 = vpop.f32.mrb[33].mxu0 }
 0x196   :  { %v4041_v48 = vpop.f32.mrb[66].mxu1  ;;  %v1785_v54 = vpop.f32.mrb[34].mxu0 }
 0x197   :  { %v4044_v56 = vadd.f32 %v1785_v54, %v3773_v23  ;;  %v1626_v62 = vpop.f32.mrb[67].mxu1  ;;  %v1787_v1 = vpop.f32.mrb[35].mxu0 }
 0x19c   :  { %v4046_v7 = vpop.f32.mrb[68].mxu1  ;;  %v1790_v9 = vpop.f32.mrb[36].mxu0 }
 0x19d   :  { %4508 = vst [vmem:[#allocation2_spill] sm:$0xff] %v4046_v7  ;;  %v4049_v14 = vadd.f32 %v1790_v9, %v3783_v27  ;;  %v1631_v16 = vpop.f32.mrb[69].mxu1  ;;  %v1792_v25 = vpop.f32.mrb[37].mxu0 }
 0x19e   :  { %v4051_v19 = vpop.f32.mrb[70].mxu1  ;;  %v1793_v26 = vpop.f32.mrb[38].mxu0 }
 0x19f   :  { %4509 = vst [vmem:[#allocation3_spill] sm:$0xff] %v4051_v19  ;;  %v4054_v32 = vadd.f32 %v1793_v26, %v3791_v31  ;;  %v1634_v40 = vpop.f32.mrb[71].mxu1  ;;  %v1795_v46 = vpop.f32.mrb[39].mxu0 }
 0x1a4   :  { %v4056_v23 = vpop.f32.mrb[72].mxu1  ;;  %v1798_v54 = vpop.f32.mrb[40].mxu0 }
 0x1a5   :  { %4510 = vst [vmem:[#allocation4_spill] sm:$0xff] %v4056_v23  ;;  %v4059_v62 = vadd.f32 %v1798_v54, %v3801_v35  ;;  %v1639_v1 = vpop.f32.mrb[73].mxu1  ;;  %v1800_v7 = vpop.f32.mrb[41].mxu0 }
 0x1a6   :  { %v4061_v27 = vpop.f32.mrb[74].mxu1  ;;  %v1801_v9 = vpop.f32.mrb[42].mxu0 }
 0x1a7   :  { %4511 = vst [vmem:[#allocation5_spill] sm:$0xff] %v4061_v27  ;;  %v4064_v16 = vadd.f32 %v1801_v9, %v3809_v39  ;;  %v1642_v25 = vpop.f32.mrb[75].mxu1  ;;  %v1803_v19 = vpop.f32.mrb[43].mxu0 }
 0x1ac   :  { %v4066_v31 = vpop.f32.mrb[76].mxu1  ;;  %v1806_v26 = vpop.f32.mrb[44].mxu0 }
 0x1ad   :  { %4512 = vst [vmem:[#allocation6_spill] sm:$0xff] %v4066_v31  ;;  %v4069_v40 = vadd.f32 %v1806_v26, %v3819_v43  ;;  %v1647_v46 = vpop.f32.mrb[77].mxu1  ;;  %v1808_v23 = vpop.f32.mrb[45].mxu0 }
 0x1ae   :  { %v4071_v35 = vpop.f32.mrb[78].mxu1  ;;  %v1809_v54 = vpop.f32.mrb[46].mxu0 }
 0x1af   :  { %4513 = vst [vmem:[#allocation7_spill] sm:$0xff] %v4071_v35  ;;  %v4074_v7 = vadd.f32 %v1809_v54, %v3827_v47  ;;  %v1650_v1 = vpop.f32.mrb[79].mxu1  ;;  %v1811_v27 = vpop.f32.mrb[47].mxu0 }
 0x1b4   :  { %v4076_v39 = vpop.f32.mrb[80].mxu1  ;;  %v1814_v9 = vpop.f32.mrb[48].mxu0 }
 0x1b5   :  { %4514 = vst [vmem:[#allocation8_spill] sm:$0xff] %v4076_v39  ;;  %v4079_v19 = vadd.f32 %v1814_v9, %v3837_v51  ;;  %v1655_v25 = vpop.f32.mrb[81].mxu1  ;;  %v1816_v31 = vpop.f32.mrb[49].mxu0 }
 0x1b6   :  { %v4081_v43 = vpop.f32.mrb[82].mxu1  ;;  %v1817_v26 = vpop.f32.mrb[50].mxu0 }
 0x1b7   :  { %4515 = vst [vmem:[#allocation9_spill] sm:$0xff] %v4081_v43  ;;  %v4084_v23 = vadd.f32 %v1817_v26, %v3845_v55  ;;  %v1658_v46 = vpop.f32.mrb[83].mxu1  ;;  %v1819_v35 = vpop.f32.mrb[51].mxu0 }
 0x1bc   :  { %v4086_v47 = vpop.f32.mrb[84].mxu1  ;;  %v1822_v54 = vpop.f32.mrb[52].mxu0 }
 0x1bd   :  { %4516 = vst [vmem:[#allocation10_spill] sm:$0xff] %v4086_v47  ;;  %v4089_v27 = vadd.f32 %v1822_v54, %v3855_v59  ;;  %v1663_v1 = vpop.f32.mrb[85].mxu1  ;;  %v1824_v39 = vpop.f32.mrb[53].mxu0 }
 0x1be   :  { %v4091_v51 = vpop.f32.mrb[86].mxu1  ;;  %v1825_v9 = vpop.f32.mrb[54].mxu0 }
 0x1bf   :  { %4517 = vst [vmem:[#allocation11_spill] sm:$0xff] %v4091_v51  ;;  %v4094_v31 = vadd.f32 %v1825_v9, %v3863_v63  ;;  %v1666_v25 = vpop.f32.mrb[87].mxu1  ;;  %v1827_v43 = vpop.f32.mrb[55].mxu0 }
 0x1c4   :  { %v4096_v55 = vpop.f32.mrb[88].mxu1  ;;  %v1830_v26 = vpop.f32.mrb[56].mxu0 }
 0x1c5   :  { %4518 = vst [vmem:[#allocation12_spill] sm:$0xff] %v4096_v55  ;;  %v4099_v35 = vadd.f32 %v1830_v26, %v3873_v4  ;;  %v1671_v46 = vpop.f32.mrb[89].mxu1  ;;  %v1832_v47 = vpop.f32.mrb[57].mxu0 }
 0x1c6   :  { %v4101_v59 = vpop.f32.mrb[90].mxu1  ;;  %v1833_v54 = vpop.f32.mrb[58].mxu0 }
 0x1c7   :  { %4519 = vst [vmem:[#allocation13_spill] sm:$0xff] %v4101_v59  ;;  %v4104_v39 = vadd.f32 %v1833_v54, %v3881_v8  ;;  %v1674_v1 = vpop.f32.mrb[91].mxu1  ;;  %v1835_v51 = vpop.f32.mrb[59].mxu0 }
 0x1cc   :  { %v4106_v63 = vpop.f32.mrb[92].mxu1  ;;  %v1838_v9 = vpop.f32.mrb[60].mxu0 }
 0x1cd   :  { %v4109_v43 = vadd.f32 %v1838_v9, %v3891_v0  ;;  %v1679_v25 = vpop.f32.mrb[93].mxu1  ;;  %v1840_v55 = vpop.f32.mrb[61].mxu0 }
 0x1ce   :  { %v4111_v4 = vpop.f32.mrb[94].mxu1  ;;  %v1841_v26 = vpop.f32.mrb[62].mxu0 }
 0x1cf   :  { %4520 = vst [vmem:[#allocation14_spill] sm:$0xff] %v4111_v4  ;;  %v4114_v47 = vadd.f32 %v1841_v26, %v3899_v15  ;;  %v1682_v46 = vpop.f32.mrb[95].mxu1  ;;  %v1843_v59 = vpop.f32.mrb[63].mxu0 }
 0x1d4   :  { %v1846_v8 = vpop.f32.mrb[64].mxu0  ;;  %v2811_v54 = vpop.f32.mrb[96].mxu1 }
 0x1d5   :  { %v4117_v51 = vadd.f32 %v1846_v8, %v3909_v20  ;;  %v4120_v1 = vadd.f32 %v2811_v54, %v3933_v37  ;;  %v1848_v0 = vpop.f32.mrb[65].mxu0  ;;  %v2007_v9 = vpop.f32.mrb[97].mxu1 }
 0x1d6   :  { %v4123_v55 = vadd.f32 %v2007_v9, %v3911_v21  ;;  %v1849_v25 = vpop.f32.mrb[66].mxu0  ;;  %v2812_v4 = vpop.f32.mrb[98].mxu1 }
 0x1d7   :  { %v4126_v15 = vadd.f32 %v1849_v25, %v3919_v28  ;;  %v4129_v59 = vadd.f32 %v2812_v4, %v3943_v45  ;;  %v1851_v26 = vpop.f32.mrb[67].mxu0  ;;  %v2010_v46 = vpop.f32.mrb[99].mxu1 }
 0x1d8   :  { %v4132_v20 = vadd.f32 %v2010_v46, %v3921_v29 }
 0x1dc   :  { %v1854_v37 = vpop.f32.mrb[68].mxu0  ;;  %v2815_v8 = vpop.f32.mrb[100].mxu1 }
 0x1dd   :  { %v4135_v54 = vadd.f32 %v1854_v37, %v3931_v36  ;;  %v4138_v21 = vadd.f32 %v2815_v8, %v3977_v6  ;;  %v1856_v0 = vpop.f32.mrb[69].mxu0  ;;  %v2023_v9 = vpop.f32.mrb[101].mxu1 }
 0x1de   :  { %v4141_v28 = vadd.f32 %v2023_v9, %v3955_v53  ;;  %v1857_v45 = vpop.f32.mrb[70].mxu0  ;;  %v2816_v4 = vpop.f32.mrb[102].mxu1 }
 0x1df   :  { %v4144_v25 = vadd.f32 %v1857_v45, %v3941_v44  ;;  %v4147_v29 = vadd.f32 %v2816_v4, %v3987_v13  ;;  %v1859_v26 = vpop.f32.mrb[71].mxu0  ;;  %v2026_v46 = vpop.f32.mrb[103].mxu1 }
 0x1e0   :  { %v4150_v36 = vadd.f32 %v2026_v46, %v3965_v61 }
 0x1e4   :  { %v1862_v6 = vpop.f32.mrb[72].mxu0  ;;  %v2819_v37 = vpop.f32.mrb[104].mxu1 }
 0x1e5   :  { %v4153_v8 = vadd.f32 %v1862_v6, %v3953_v52  ;;  %v4156_v53 = vadd.f32 %v2819_v37, %v4014_v42  ;;  %v1864_v0 = vpop.f32.mrb[73].mxu0  ;;  %v2039_v9 = vpop.f32.mrb[105].mxu1 }
 0x1e6   :  { %v4159_v44 = vadd.f32 %v2039_v9, %v3999_v24  ;;  %v1865_v13 = vpop.f32.mrb[74].mxu0  ;;  %v2820_v45 = vpop.f32.mrb[106].mxu1 }
 0x1e7   :  { %v4162_v4 = vadd.f32 %v1865_v13, %v3963_v60  ;;  %v4165_v61 = vadd.f32 %v2820_v45, %v4018_v50  ;;  %v1867_v26 = vpop.f32.mrb[75].mxu0  ;;  %v2042_v46 = vpop.f32.mrb[107].mxu1 }
 0x1e8   :  { %v4168_v52 = vadd.f32 %v2042_v46, %v4009_v34 }
 0x1ec   :  { %v1870_v42 = vpop.f32.mrb[76].mxu0  ;;  %v2823_v6 = vpop.f32.mrb[108].mxu1 }
 0x1ed   :  { %v4171_v37 = vadd.f32 %v1870_v42, %v3975_v5  ;;  %v4174_v24 = vadd.f32 %v2823_v6, %v4030_v11  ;;  %v1872_v0 = vpop.f32.mrb[77].mxu0  ;;  %v2055_v9 = vpop.f32.mrb[109].mxu1 }
 0x1ee   :  { %v4177_v60 = vadd.f32 %v2055_v9, %v4022_v58  ;;  %v1873_v50 = vpop.f32.mrb[78].mxu0  ;;  %v2824_v13 = vpop.f32.mrb[110].mxu1 }
 0x1ef   :  { %4521 = vst [vmem:[#allocation15_spill] sm:$0xff] %v4174_v24  ;;  %v4180_v45 = vadd.f32 %v1873_v50, %v3985_v12  ;;  %v4183_v34 = vadd.f32 %v2824_v13, %v4034_v18  ;;  %v1875_v26 = vpop.f32.mrb[79].mxu0  ;;  %v2058_v46 = vpop.f32.mrb[111].mxu1 }
 0x1f0   :  { %4522 = vst [vmem:[#allocation16_spill] sm:$0xff] %v4177_v60  ;;  %v4186_v5 = vadd.f32 %v2058_v46, %v4026_v3 }
 0x1f1   :  { %4523 = vst [vmem:[#allocation17_spill] sm:$0xff] %v4183_v34 }
 0x1f2   :  { %4524 = vst [vmem:[#allocation18_spill] sm:$0xff] %v4186_v5 }
 0x1f4   :  { %v1878_v11 = vpop.f32.mrb[80].mxu0  ;;  %v2827_v42 = vpop.f32.mrb[112].mxu1 }
 0x1f5   :  { %v4189_v6 = vadd.f32 %v1878_v11, %v3997_v22  ;;  %v4192_v58 = vadd.f32 %v2827_v42, %v4049_v14  ;;  %v1880_v0 = vpop.f32.mrb[81].mxu0  ;;  %v2071_v9 = vpop.f32.mrb[113].mxu1 }
 0x1f6   :  { %v4195_v12 = vadd.f32 %v2071_v9, %v4039_v38  ;;  %v1881_v18 = vpop.f32.mrb[82].mxu0  ;;  %v2828_v50 = vpop.f32.mrb[114].mxu1 }
 0x1f7   :  { %v4200_v3 = vadd.f32 %v1881_v18, %v4007_v33  ;;  %v4203_v26 = vadd.f32 %v2828_v50, %v4054_v32  ;;  %v1883_v22 = vpop.f32.mrb[83].mxu0  ;;  %v2074_v46 = vpop.f32.mrb[115].mxu1 }
 0x1f8   :  { %v4208_v11 = vadd.f32 %v2074_v46, %v4044_v56 }
 0x1fc   :  { %v1886_v0 = vpop.f32.mrb[84].mxu0  ;;  %v2831_v33 = vpop.f32.mrb[116].mxu1 }
 0x1fd   :  { %v4215_v9 = vadd.f32 %v1886_v0, %v4012_v41  ;;  %v4218_v32 = vadd.f32 %v2831_v33, %v4069_v40  ;;  %v1888_v18 = vpop.f32.mrb[85].mxu0  ;;  %v2087_v50 = vpop.f32.mrb[117].mxu1 }
 0x1fe   :  { %v4221_v22 = vadd.f32 %v2087_v50, %v4059_v62  ;;  %v1889_v56 = vpop.f32.mrb[86].mxu0  ;;  %v2832_v46 = vpop.f32.mrb[118].mxu1 }
 0x1ff   :  { %v4226_v42 = vadd.f32 %v1889_v56, %v4016_v49  ;;  %v4229_v14 = vadd.f32 %v2832_v46, %v4074_v7  ;;  %v1891_v41 = vpop.f32.mrb[87].mxu0  ;;  %v2090_v0 = vpop.f32.mrb[119].mxu1 }
 0x200   :  { %v4234_v33 = vadd.f32 %v2090_v0, %v4064_v16 }
 0x204   :  { %v1894_v50 = vpop.f32.mrb[88].mxu0  ;;  %v2835_v49 = vpop.f32.mrb[120].mxu1 }
 0x205   :  { %v4241_v56 = vadd.f32 %v1894_v50, %v4020_v57  ;;  %v4244_v7 = vadd.f32 %v2835_v49, %v4089_v27  ;;  %v1896_v46 = vpop.f32.mrb[89].mxu0  ;;  %v2103_v41 = vpop.f32.mrb[121].mxu1 }
 0x206   :  { %v4247_v40 = vadd.f32 %v2103_v41, %v4079_v19  ;;  %v1897_v16 = vpop.f32.mrb[90].mxu0  ;;  %v2836_v0 = vpop.f32.mrb[122].mxu1 }
 0x207   :  { %v4252_v18 = vadd.f32 %v1897_v16, %v4024_v2  ;;  %v4255_v38 = vadd.f32 %v2836_v0, %v4094_v31  ;;  %v1899_v57 = vpop.f32.mrb[91].mxu0  ;;  %v2106_v50 = vpop.f32.mrb[123].mxu1 }
 0x208   :  { %v4260_v49 = vadd.f32 %v2106_v50, %v4084_v23 }
 0x20c   :  { %v1902_v41 = vpop.f32.mrb[92].mxu0  ;;  %v2839_v2 = vpop.f32.mrb[124].mxu1 }
 0x20d   :  { %v1903_v16 = vadd.f32 %v1902_v41, %v4028_v10  ;;  %v4268_v31 = vadd.f32 %v2839_v2, %v4109_v43  ;;  %v1904_v0 = vpop.f32.mrb[93].mxu0  ;;  %v2119_v57 = vpop.f32.mrb[125].mxu1 }
 0x20e   :  { %v4271_v27 = vadd.f32 %v2119_v57, %v4099_v35  ;;  %v1905_v23 = vpop.f32.mrb[94].mxu0  ;;  %v2840_v50 = vpop.f32.mrb[126].mxu1 }
 0x20f   :  { %4525 = vst [vmem:[#allocation19_spill] sm:$0xff] %v4268_v31  ;;  %v1906_v62 = vadd.f32 %v1905_v23, %v4032_v17  ;;  %v4277_v46 = vadd.f32 %v2840_v50, %v4114_v47  ;;  %v1907_v13 = vpop.f32.mrb[95].mxu0  ;;  %v2122_v10 = vpop.f32.mrb[127].mxu1 }
 0x210   :  { %4526 = vst [vmem:[#allocation20_spill] sm:$0xff] %v4271_v27  ;;  %v4282_v41 = vadd.f32 %v2122_v10, %v4104_v39 }
 0x211   :  { %4527 = vst [vmem:[#allocation21_spill] sm:$0xff] %v4277_v46 }
 0x212   :  { %4528 = vst [vmem:[#allocation22_spill] sm:$0xff] %v4282_v41 }
 0x214   :  { %v1910_v0 = vpop.f32.mrb[96].mxu0  ;;  %v2843_v57 = vpop.f32.mrb[128].mxu1 }
 0x215   :  { %v1911_v17 = vadd.f32 %v1910_v0, %v4036_v30  ;;  %v4290_v47 = vadd.f32 %v2843_v57, %v4135_v54  ;;  %v1912_v13 = vpop.f32.mrb[97].mxu0  ;;  %v2135_v23 = vpop.f32.mrb[129].mxu1  ;;  %v4529_v57 = vld [vmem:[#allocation2_spill] sm:$0xff] }
 0x216   :  { %v4293_v50 = vadd.f32 %v2135_v23, %v4117_v51  ;;  %v1913_v39 = vpop.f32.mrb[98].mxu0  ;;  %v2844_v10 = vpop.f32.mrb[130].mxu1 }
 0x217   :  { %v4296_v19 = vadd.f32 %v1913_v39, %v4041_v48  ;;  %v4299_v35 = vadd.f32 %v2844_v10, %v4144_v25  ;;  %v1915_v2 = vpop.f32.mrb[99].mxu0  ;;  %v2138_v43 = vpop.f32.mrb[131].mxu1  ;;  %v4530_v10 = vld [vmem:[#allocation3_spill] sm:$0xff] }
 0x218   :  { %v4302_v30 = vadd.f32 %v2138_v43, %v4126_v15 }
 0x21c   :  { %v1918_v54 = vpop.f32.mrb[100].mxu0  ;;  %v2847_v0 = vpop.f32.mrb[132].mxu1 }
 0x21d   :  { %v1919_v13 = vadd.f32 %v1918_v54, %v4529_v57  ;;  %v4306_v51 = vadd.f32 %v2847_v0, %v4171_v37  ;;  %v1920_v23 = vpop.f32.mrb[101].mxu0  ;;  %v2151_v46 = vpop.f32.mrb[133].mxu1  ;;  %v4531_v0 = vld [vmem:[#allocation4_spill] sm:$0xff] }
 0x21e   :  { %v4309_v48 = vadd.f32 %v2151_v46, %v4153_v8  ;;  %v1921_v39 = vpop.f32.mrb[102].mxu0  ;;  %v2848_v25 = vpop.f32.mrb[134].mxu1 }
 0x21f   :  { %v1922_v2 = vadd.f32 %v1921_v39, %v4530_v10  ;;  %v4313_v34 = vadd.f32 %v2848_v25, %v4180_v45  ;;  %v1923_v15 = vpop.f32.mrb[103].mxu0  ;;  %v2154_v43 = vpop.f32.mrb[135].mxu1  ;;  %v4532_v10 = vld [vmem:[#allocation5_spill] sm:$0xff] }
 0x220   :  { %v4316_v41 = vadd.f32 %v2154_v43, %v4162_v4 }
 0x224   :  { %v1926_v54 = vpop.f32.mrb[104].mxu0  ;;  %v2851_v37 = vpop.f32.mrb[136].mxu1 }
 0x225   :  { %v4319_v57 = vadd.f32 %v1926_v54, %v4531_v0  ;;  %v4322_v8 = vadd.f32 %v2851_v37, %v4215_v9  ;;  %v1928_v46 = vpop.f32.mrb[105].mxu0  ;;  %v2167_v23 = vpop.f32.mrb[137].mxu1  ;;  %v4533_v0 = vld [vmem:[#allocation6_spill] sm:$0xff] }
 0x226   :  { %v4325_v39 = vadd.f32 %v2167_v23, %v4189_v6  ;;  %v1929_v45 = vpop.f32.mrb[106].mxu0  ;;  %v2852_v25 = vpop.f32.mrb[138].mxu1 }
 0x227   :  { %v4328_v15 = vadd.f32 %v1929_v45, %v4532_v10  ;;  %v4331_v4 = vadd.f32 %v2852_v25, %v4226_v42  ;;  %v1931_v43 = vpop.f32.mrb[107].mxu0  ;;  %v2170_v5 = vpop.f32.mrb[139].mxu1  ;;  %v4536_v42 = vld [vmem:[#allocation7_spill] sm:$0xff] }
 0x228   :  { %v4334_v54 = vadd.f32 %v2170_v5, %v4200_v3 }
 0x22c   :  { %v1934_v9 = vpop.f32.mrb[108].mxu0  ;;  %v2855_v37 = vpop.f32.mrb[140].mxu1 }
 0x22d   :  { %v1935_v46 = vadd.f32 %v1934_v9, %v4533_v0  ;;  %v4337_v31 = vadd.f32 %v2855_v37, %v1903_v16  ;;  %v1936_v6 = vpop.f32.mrb[109].mxu0  ;;  %v2183_v23 = vpop.f32.mrb[141].mxu1  ;;  %v4537_v16 = vld [vmem:[#allocation8_spill] sm:$0xff] }
 0x22e   :  { %v4340_v24 = vadd.f32 %v2183_v23, %v4241_v56  ;;  %v1937_v45 = vpop.f32.mrb[110].mxu0  ;;  %v2856_v10 = vpop.f32.mrb[142].mxu1 }
 0x22f   :  { %4534 = vst [vmem:[#allocation2_spill] sm:$0xff] %v4337_v31  ;;  %v1938_v25 = vadd.f32 %v1937_v45, %v4536_v42  ;;  %v4343_v43 = vadd.f32 %v2856_v10, %v1906_v62  ;;  %v1939_v27 = vpop.f32.mrb[111].mxu0  ;;  %v2186_v5 = vpop.f32.mrb[143].mxu1  ;;  %v4538_v62 = vld [vmem:[#allocation9_spill] sm:$0xff] }
 0x230   :  { %4535 = vst [vmem:[#allocation3_spill] sm:$0xff] %v4340_v24  ;;  %v4346_v3 = vadd.f32 %v2186_v5, %v4252_v18  ;;  %v4358_v5 = vld [vmem:[%s4497_s2] ss:$0 sm:$0xff] }
 0x234   :  { %v1942_v60 = vpop.f32.mrb[112].mxu0  ;;  %v2859_v9 = vpop.f32.mrb[144].mxu1 }
 0x235   :  { %v4349_v37 = vadd.f32 %v1942_v60, %v4537_v16  ;;  %v2208_v0 = vadd.f32 %v2859_v9, %v1919_v13  ;;  %v1944_v6 = vpop.f32.mrb[113].mxu0  ;;  %v2199_v56 = vpop.f32.mrb[145].mxu1 }
 0x236   :  { %v2200_v23 = vadd.f32 %v2199_v56, %v1911_v17  ;;  %v1945_v31 = vpop.f32.mrb[114].mxu0  ;;  %v2860_v24 = vpop.f32.mrb[146].mxu1  ;;  %v4539_v17 = vmax.f32 %v4120_v1, %v4192_v58  ;;  %v4542_v1 = vmax.f32 %v4132_v20, %v4208_v11 }
 0x237   :  { %v2280_v45 = vmax.f32 %v4290_v47, %v2208_v0  ;;  %v4353_v10 = vadd.f32 %v1945_v31, %v4538_v62  ;;  %v2211_v27 = vadd.f32 %v2860_v24, %v1922_v2  ;;  %v1947_v42 = vpop.f32.mrb[115].mxu0  ;;  %v2202_v18 = vpop.f32.mrb[147].mxu1  ;;  %v4540_v24 = vmax.f32 %v4123_v55, %v4195_v12  ;;  %v4543_v12 = vld [vmem:[#allocation10_spill] sm:$0xff] }
 0x238   :  { %v2278_v60 = vmax.f32 %v4293_v50, %v2200_v23  ;;  %v2203_v13 = vadd.f32 %v2202_v18, %v4296_v19  ;;  %v4541_v0 = vmax.f32 %v4129_v59, %v4203_v26  ;;  %v4383_v59 = vld [vmem:[%s4498_s3] ss:$0 sm:$0xff] }
 0x239   :  { %v2296_v9 = vmax.f32 %v4539_v17, %v2280_v45  ;;  %v2281_v47 = vmax.f32 %v4299_v35, %v2211_v27 }
 0x23a   :  { %v2294_v31 = vmax.f32 %v4540_v24, %v2278_v60  ;;  %v2279_v2 = vmax.f32 %v4302_v30, %v2203_v13  ;;  %v4544_v13 = vld [vmem:[#allocation11_spill] sm:$0xff] }
 0x23b   :  { %v2319_v16 = vadd.f32 %v4358_v5, %v2296_v9  ;;  %v2297_v50 = vmax.f32 %v4541_v0, %v2281_v47 }
 0x23c   :  { %v2317_v19 = vadd.f32 %v4358_v5, %v2294_v31  ;;  %v2295_v58 = vmax.f32 %v4542_v1, %v2279_v2  ;;  %v1950_v6 = vpop.f32.mrb[116].mxu0  ;;  %v2863_v35 = vpop.f32.mrb[148].mxu1  ;;  %v4546_v1 = vmax.f32 %v4141_v28, %v4221_v22  ;;  %v4548_v28 = vmax.f32 %v4150_v36, %v4234_v33  ;;  %v4549_v22 = vld [vmem:[#allocation12_spill] sm:$0xff] }
 0x23d   :  { %v2335_v56 = vmax.f32 %v2319_v16, 0.0  ;;  %v2320_v55 = vadd.f32 %v4358_v5, %v2297_v50  ;;  %v1951_v23 = vadd.f32 %v1950_v6, %v4543_v12  ;;  %v2224_v30 = vadd.f32 %v2863_v35, %v1935_v46  ;;  %v1952_v45 = vpop.f32.mrb[117].mxu0  ;;  %v2215_v62 = vpop.f32.mrb[149].mxu1 }
 0x23e   :  { %v2333_v26 = vmax.f32 %v2317_v19, 0.0  ;;  %v2318_v27 = vadd.f32 %v4358_v5, %v2295_v58  ;;  %v2216_v20 = vadd.f32 %v2215_v62, %v4319_v57  ;;  %v1953_v11 = vpop.f32.mrb[118].mxu0  ;;  %v2864_v42 = vpop.f32.mrb[150].mxu1  ;;  %v4545_v57 = vmax.f32 %v4138_v21, %v4218_v32 }
 0x23f   :  { %v2336_v18 = vmax.f32 %v2320_v55, 0.0  ;;  %v2284_v60 = vmax.f32 %v4306_v51, %v2224_v30  ;;  %v1954_v17 = vadd.f32 %v1953_v11, %v4544_v13  ;;  %v1955_v46 = vpop.f32.mrb[119].mxu0  ;;  %v2218_v9 = vpop.f32.mrb[151].mxu1  ;;  %v2227_v31 = vadd.f32 %v2864_v42, %v1938_v25  ;;  %v4550_v42 = vld [vmem:[#allocation13_spill] sm:$0xff] }
 0x240   :  { %v2334_v47 = vmax.f32 %v2318_v27, 0.0  ;;  %v2282_v24 = vmax.f32 %v4309_v48, %v2216_v20  ;;  %v2358_v2 = vadd.f32 %v4383_v59, %v2335_v56  ;;  %v2219_v50 = vadd.f32 %v2218_v9, %v4328_v15 }
 0x241   :  { %v2359_v16 = vadd.f32 %v4383_v59, %v2336_v18  ;;  %v2300_v0 = vmax.f32 %v4545_v57, %v2284_v60  ;;  %v2356_v51 = vadd.f32 %v4383_v59, %v2333_v26  ;;  %v2285_v48 = vmax.f32 %v4313_v34, %v2227_v31 }
 0x242   :  { %v2357_v19 = vadd.f32 %v4383_v59, %v2334_v47  ;;  %v2298_v58 = vmax.f32 %v4546_v1, %v2282_v24  ;;  %v2283_v35 = vmax.f32 %v4316_v41, %v2219_v50  ;;  %v4547_v32 = vmax.f32 %v4147_v29, %v4229_v14 }
 0x243   :  { %v2726_v25 = vpack.c.bf16 %v2359_v16, %v2358_v2  ;;  %v2323_v6 = vadd.f32 %v4358_v5, %v2300_v0  ;;  %v4551_v24 = vmax.f32 %v4156_v53, %v4244_v7 }
 0x244   :  { %v2721_v56 = vpack.c.bf16 %v2357_v19, %v2356_v51  ;;  %v2321_v21 = vadd.f32 %v4358_v5, %v2298_v58  ;;  %v2301_v15 = vmax.f32 %v4547_v32, %v2285_v48  ;;  %v1958_v55 = vpop.f32.mrb[120].mxu0  ;;  %v2867_v12 = vpop.f32.mrb[152].mxu1  ;;  %v2299_v34 = vmax.f32 %v4548_v28, %v2283_v35  ;;  %v4556_v28 = vld [vmem:[#allocation3_spill] sm:$0xff] }
 0x245   :  { %2758 = vst [vmem:[%s4499_s4 + $0x8] sm:$0xff] %v2726_v25   ;;  %v1959_v30 = vadd.f32 %v1958_v55, %v4549_v22  ;;  %v2240_v41 = vadd.f32 %v2867_v12, %v1951_v23  ;;  %v1960_v45 = vpop.f32.mrb[121].mxu0  ;;  %v2231_v62 = vpop.f32.mrb[153].mxu1  ;;  %v2339_v29 = vmax.f32 %v2323_v6, 0.0  ;;  %v4553_v51 = vmax.f32 %v4165_v61, %v4255_v38 }
 0x246   :  { %2722 = vst [vmem:[%s4499_s4] sm:$0xff] %v2721_v56   ;;  %v2324_v14 = vadd.f32 %v4358_v5, %v2301_v15  ;;  %v2232_v26 = vadd.f32 %v2231_v62, %v4349_v37  ;;  %v1961_v27 = vpop.f32.mrb[122].mxu0  ;;  %v2868_v20 = vpop.f32.mrb[154].mxu1  ;;  %v2337_v11 = vmax.f32 %v2321_v21, 0.0  ;;  %v2322_v36 = vadd.f32 %v4358_v5, %v2299_v34  ;;  %v4555_v21 = vld [vmem:[#allocation14_spill] sm:$0xff] }
 0x247   :  { %v2288_v33 = vmax.f32 %v4322_v8, %v2240_v41  ;;  %v1962_v23 = vadd.f32 %v1961_v27, %v4550_v42  ;;  %v1963_v18 = vpop.f32.mrb[123].mxu0  ;;  %v2234_v60 = vpop.f32.mrb[155].mxu1  ;;  %v2243_v9 = vadd.f32 %v2868_v20, %v1954_v17  ;;  %v2362_v2 = vadd.f32 %v4383_v59, %v2339_v29  ;;  %v4559_v27 = vld [vmem:[#allocation20_spill] sm:$0xff] }
 0x248   :  { %v2340_v13 = vmax.f32 %v2324_v14, 0.0  ;;  %v2286_v46 = vmax.f32 %v4325_v39, %v2232_v26  ;;  %v2338_v47 = vmax.f32 %v2322_v36, 0.0  ;;  %v2235_v31 = vadd.f32 %v2234_v60, %v4353_v10  ;;  %v4558_v26 = vld [vmem:[#allocation16_spill] sm:$0xff]  ;;  %v4561_v18 = vld [vmem:[#allocation15_spill] sm:$0xff] }
 0x249   :  { %v2304_v37 = vmax.f32 %v4551_v24, %v2288_v33  ;;  %v4552_v8 = vmax.f32 %v4159_v44, %v4247_v40  ;;  %v2289_v0 = vmax.f32 %v4331_v4, %v2243_v9  ;;  %v2360_v39 = vadd.f32 %v4383_v59, %v2337_v11  ;;  %v4564_v24 = vld [vmem:[#allocation18_spill] sm:$0xff] }
 0x24a   :  { %v2363_v16 = vadd.f32 %v4383_v59, %v2340_v13  ;;  %v2361_v17 = vadd.f32 %v4383_v59, %v2338_v47  ;;  %v2287_v53 = vmax.f32 %v4334_v54, %v2235_v31  ;;  %v4554_v4 = vmax.f32 %v4168_v52, %v4260_v49 }
 0x24b   :  { %v2302_v57 = vmax.f32 %v4552_v8, %v2286_v46  ;;  %v2327_v50 = vadd.f32 %v4358_v5, %v2304_v37  ;;  %v2305_v19 = vmax.f32 %v4553_v51, %v2289_v0  ;;  %v4560_v20 = vmax.f32 %v4558_v26, %v4559_v27  ;;  %v4565_v37 = vld [vmem:[#allocation22_spill] sm:$0xff]  ;;  %v4567_v8 = vld [vmem:[#allocation17_spill] sm:$0xff] }
 0x24c   :  { %v2736_v7 = vpack.c.bf16 %v2363_v16, %v2362_v2  ;;  %v1966_v1 = vpop.f32.mrb[124].mxu0  ;;  %v2871_v44 = vpop.f32.mrb[156].mxu1  ;;  %v2731_v40 = vpack.c.bf16 %v2361_v17, %v2360_v39  ;;  %v2303_v58 = vmax.f32 %v4554_v4, %v2287_v53  ;;  %v4566_v31 = vmax.f32 %v4564_v24, %v4565_v37 }
 0x24d   :  { %v2325_v10 = vadd.f32 %v4358_v5, %v2302_v57  ;;  %v1967_v48 = vadd.f32 %v1966_v1, %v4106_v63  ;;  %v1968_v25 = vpop.f32.mrb[125].mxu0  ;;  %v2247_v6 = vpop.f32.mrb[157].mxu1  ;;  %v2343_v54 = vmax.f32 %v2327_v50, 0.0  ;;  %v2328_v35 = vadd.f32 %v4358_v5, %v2305_v19  ;;  %v4568_v57 = vld [vmem:[#allocation21_spill] sm:$0xff] }
 0x24e   :  { %2760 = vst [vmem:[%s4499_s4 + $0x18] sm:$0xff] %v2736_v7   ;;  %v2248_v61 = vadd.f32 %v2247_v6, %v1959_v30  ;;  %v1969_v38 = vpop.f32.mrb[126].mxu0  ;;  %v2872_v56 = vpop.f32.mrb[158].mxu1  ;;  %2759 = vst [vmem:[%s4499_s4 + $0x10] sm:$0xff] %v2731_v40   ;;  %v2326_v49 = vadd.f32 %v4358_v5, %v2303_v58  ;;  %v4557_v30 = vld [vmem:[#allocation2_spill] sm:$0xff]  ;;  %v4569_v0 = vmax.f32 %v4567_v8, %v4568_v57 }
 0x24f   :  { %v2341_v52 = vmax.f32 %v2325_v10, 0.0  ;;  %v2256_v63 = vadd.f32 %v2871_v44, %v1967_v48  ;;  %v1970_v32 = vadd.f32 %v1969_v38, %v4555_v21  ;;  %v1971_v15 = vpop.f32.mrb[127].mxu0  ;;  %v2250_v55 = vpop.f32.mrb[159].mxu1  ;;  %v2344_v12 = vmax.f32 %v2328_v35, 0.0 }
 0x250   :  { %v2290_v34 = vmax.f32 %v4556_v28, %v2248_v61  ;;  %v2251_v22 = vadd.f32 %v2250_v55, %v1962_v23  ;;  %v2342_v41 = vmax.f32 %v2326_v49, 0.0  ;;  %v2366_v29 = vadd.f32 %v4383_v59, %v2343_v54  ;;  %v4562_v23 = vld [vmem:[#allocation19_spill] sm:$0xff] }
 0x251   :  { %v2292_v45 = vmax.f32 %v4557_v30, %v2256_v63  ;;  %v2259_v62 = vadd.f32 %v2872_v56, %v1970_v32  ;;  %v2367_v14 = vadd.f32 %v4383_v59, %v2344_v12  ;;  %v2364_v33 = vadd.f32 %v4383_v59, %v2341_v52 }
 0x252   :  { %v2306_v11 = vmax.f32 %v4560_v20, %v2290_v34  ;;  %v2291_v36 = vmax.f32 %v4346_v3, %v2251_v22  ;;  %v2365_v42 = vadd.f32 %v4383_v59, %v2342_v41  ;;  %v4563_v60 = vmax.f32 %v4561_v18, %v4562_v23 }
 0x253   :  { %v2293_v46 = vmax.f32 %v4343_v43, %v2259_v62  ;;  %v2746_v9 = vpack.c.bf16 %v2367_v14, %v2366_v29 }
 0x254   :  { %v2308_v13 = vmax.f32 %v4563_v60, %v2292_v45  ;;  %v2329_v47 = vadd.f32 %v4358_v5, %v2306_v11  ;;  %v2307_v2 = vmax.f32 %v4566_v31, %v2291_v36  ;;  %v2741_v16 = vpack.c.bf16 %v2365_v42, %v2364_v33 }
 0x255   :  { %v2309_v39 = vmax.f32 %v4569_v0, %v2293_v46  ;;  %2762 = vst [vmem:[%s4499_s4 + $0x28] sm:$0xff] %v2746_v9  }
 0x256   :  { %v2331_v3 = vadd.f32 %v4358_v5, %v2308_v13  ;;  %v2345_v17 = vmax.f32 %v2329_v47, 0.0  ;;  %v2330_v43 = vadd.f32 %v4358_v5, %v2307_v2  ;;  %2761 = vst [vmem:[%s4499_s4 + $0x20] sm:$0xff] %v2741_v16  }
 0x257   :  { %v2332_v53 = vadd.f32 %v4358_v5, %v2309_v39 }
 0x258   :  { %v2347_v50 = vmax.f32 %v2331_v3, 0.0  ;;  %v2346_v7 = vmax.f32 %v2330_v43, 0.0  ;;  %v2368_v51 = vadd.f32 %v4383_v59, %v2345_v17 }
 0x259   :  { %v2348_v10 = vmax.f32 %v2332_v53, 0.0 }
 0x25a   :  { %v2369_v19 = vadd.f32 %v4383_v59, %v2346_v7  ;;  %v2370_v1 = vadd.f32 %v4383_v59, %v2347_v50 }
 0x25b   :  { %v2371_v44 = vadd.f32 %v4383_v59, %v2348_v10 }
 0x25c   :  { %v2751_v40 = vpack.c.bf16 %v2369_v19, %v2368_v51 }
 0x25d   :  { %v2756_v4 = vpack.c.bf16 %v2371_v44, %v2370_v1 }
 0x25e   :  { %2763 = vst [vmem:[%s4499_s4 + $0x30] sm:$0xff] %v2751_v40  }
 0x25f   :  { %2764 = vst [vmem:[%s4499_s4 + $0x38] sm:$0xff] %v2756_v4  }

// kernel: my_model_forward.6
= control target key start
LH: loop header
LB: loop body
LE: loop exit
PB: predicated region body
PF: predicated region fallthrough
CT: control target
= control target key end

     0   :  { %s3688_s1 = inlined_call_operand.vmem [shape: bf16[1152,256], index: 1, kind: input, shape index: {}]   ;;  %s3689_s0 = inlined_call_operand.vmem [shape: bf16[128,1152], index: 0, kind: input, shape index: {}]   ;;  %s3690_s2 = inlined_call_operand.vmem [shape: f32[1,256], index: 2, kind: input, shape index: {}]   ;;  %s3691_s3 = inlined_call_operand.vmem [shape: f32[1,256], index: 3, kind: input, shape index: {}]   ;;  %s3692_s4 = inlined_call_operand.vmem [shape: bf16[32,256], index: 4, kind: output, shape index: {}]  }
   0x1   :  { %v2384_v0 = vld [vmem:[%s3688_s1 + $0x4] ss:$8 sps:$4 sm:$0xff]   ;;  %v2388_v2 = vld [vmem:[%s3688_s1] ss:$8 sps:$4 sm:$0xff]   ;;  %v2390_v4 = vld [vmem:[%s3688_s1 + $0x14] ss:$8 sps:$4 sm:$0xff]  }
   0x2   :  { %v2386_v1 = vld [vmem:[%s3688_s1 + $0x204] ss:$8 sps:$4 sm:$0xff]   ;;  %1330 = vmatprep.subr.bf16.mxu1 %v2384_v0  ;;  %v2389_v3 = vld [vmem:[%s3688_s1 + $0x200] ss:$8 sps:$4 sm:$0xff]   ;;  %v2392_v5 = vld [vmem:[%s3688_s1 + $0x214] ss:$8 sps:$4 sm:$0xff]  }
   0x3   :  { %1556 = vmatprep.subr.bf16.mxu0 %v2386_v1  ;;  %1331 = vmatpush1.bf16.msra.mxu1 %v2388_v2  ;;  %v2394_v6 = vld [vmem:[%s3688_s1 + $0x10] ss:$8 sps:$4 sm:$0xff]   ;;  %v2396_v8 = vld [vmem:[%s3688_s1 + $0x24] ss:$8 sps:$4 sm:$0xff]   ;;  %v2400_v10 = vld [vmem:[%s3688_s1 + $0x20] ss:$8 sps:$4 sm:$0xff]  }
   0x4   :  { %1557 = vmatpush1.bf16.msra.mxu0 %v2389_v3  ;;  %1332 = vmatprep.subr.bf16.mxu1 %v2390_v4  ;;  %v2395_v7 = vld [vmem:[%s3688_s1 + $0x210] ss:$8 sps:$4 sm:$0xff]   ;;  %v2398_v9 = vld [vmem:[%s3688_s1 + $0x224] ss:$8 sps:$4 sm:$0xff]   ;;  %v2401_v11 = vld [vmem:[%s3688_s1 + $0x220] ss:$8 sps:$4 sm:$0xff]  }
   0x5   :  { %1558 = vmatprep.subr.bf16.mxu0 %v2392_v5  ;;  %v2402_v12 = vld [vmem:[%s3688_s1 + $0x34] ss:$8 sps:$4 sm:$0xff]   ;;  %v2406_v14 = vld [vmem:[%s3688_s1 + $0x30] ss:$8 sps:$4 sm:$0xff]   ;;  %v2408_v16 = vld [vmem:[%s3688_s1 + $0x44] ss:$8 sps:$4 sm:$0xff]  }
   0x6   :  { %v2404_v13 = vld [vmem:[%s3688_s1 + $0x234] ss:$8 sps:$4 sm:$0xff]   ;;  %v2407_v15 = vld [vmem:[%s3688_s1 + $0x230] ss:$8 sps:$4 sm:$0xff]   ;;  %v2410_v17 = vld [vmem:[%s3688_s1 + $0x244] ss:$8 sps:$4 sm:$0xff]  }
   0x7   :  { %1333 = vmatpush1.bf16.msra.mxu1 %v2394_v6  ;;  %v2412_v18 = vld [vmem:[%s3688_s1 + $0x40] ss:$8 sps:$4 sm:$0xff]   ;;  %v2414_v20 = vld [vmem:[%s3688_s1 + $0x54] ss:$8 sps:$4 sm:$0xff]   ;;  %v2418_v22 = vld [vmem:[%s3688_s1 + $0x50] ss:$8 sps:$4 sm:$0xff]  }
   0x8   :  { %1559 = vmatpush1.bf16.msra.mxu0 %v2395_v7  ;;  %1334 = vmatprep.subr.bf16.mxu1 %v2396_v8  ;;  %v2413_v19 = vld [vmem:[%s3688_s1 + $0x240] ss:$8 sps:$4 sm:$0xff]   ;;  %v2416_v21 = vld [vmem:[%s3688_s1 + $0x254] ss:$8 sps:$4 sm:$0xff]   ;;  %v2419_v23 = vld [vmem:[%s3688_s1 + $0x250] ss:$8 sps:$4 sm:$0xff]  }
   0x9   :  { %1560 = vmatprep.subr.bf16.mxu0 %v2398_v9  ;;  %v2420_v24 = vld [vmem:[%s3688_s1 + $0x64] ss:$8 sps:$4 sm:$0xff]   ;;  %v2424_v26 = vld [vmem:[%s3688_s1 + $0x60] ss:$8 sps:$4 sm:$0xff]   ;;  %v2426_v28 = vld [vmem:[%s3688_s1 + $0x74] ss:$8 sps:$4 sm:$0xff]  }
   0xa   :  { %v2422_v25 = vld [vmem:[%s3688_s1 + $0x264] ss:$8 sps:$4 sm:$0xff]   ;;  %v2425_v27 = vld [vmem:[%s3688_s1 + $0x260] ss:$8 sps:$4 sm:$0xff]   ;;  %v2428_v29 = vld [vmem:[%s3688_s1 + $0x274] ss:$8 sps:$4 sm:$0xff]  }
   0xb   :  { %1335 = vmatpush1.bf16.msra.mxu1 %v2400_v10  ;;  %v2430_v30 = vld [vmem:[%s3688_s1 + $0x70] ss:$8 sps:$4 sm:$0xff]   ;;  %v2432_v32 = vld [vmem:[%s3688_s1 + $0x84] ss:$8 sps:$4 sm:$0xff]   ;;  %v2436_v34 = vld [vmem:[%s3688_s1 + $0x80] ss:$8 sps:$4 sm:$0xff]  }
   0xc   :  { %1561 = vmatpush1.bf16.msra.mxu0 %v2401_v11  ;;  %1336 = vmatprep.subr.bf16.mxu1 %v2402_v12  ;;  %v2431_v31 = vld [vmem:[%s3688_s1 + $0x270] ss:$8 sps:$4 sm:$0xff]   ;;  %v2434_v33 = vld [vmem:[%s3688_s1 + $0x284] ss:$8 sps:$4 sm:$0xff]   ;;  %v2437_v35 = vld [vmem:[%s3688_s1 + $0x280] ss:$8 sps:$4 sm:$0xff]  }
   0xd   :  { %1562 = vmatprep.subr.bf16.mxu0 %v2404_v13  ;;  %v2438_v36 = vld [vmem:[%s3688_s1 + $0x94] ss:$8 sps:$4 sm:$0xff]   ;;  %v2442_v38 = vld [vmem:[%s3688_s1 + $0x90] ss:$8 sps:$4 sm:$0xff]   ;;  %v2444_v40 = vld [vmem:[%s3688_s1 + $0xa4] ss:$8 sps:$4 sm:$0xff]  }
   0xe   :  { %v2440_v37 = vld [vmem:[%s3688_s1 + $0x294] ss:$8 sps:$4 sm:$0xff]   ;;  %v2443_v39 = vld [vmem:[%s3688_s1 + $0x290] ss:$8 sps:$4 sm:$0xff]   ;;  %v2446_v41 = vld [vmem:[%s3688_s1 + $0x2a4] ss:$8 sps:$4 sm:$0xff]  }
   0xf   :  { %1337 = vmatpush1.bf16.msra.mxu1 %v2406_v14  ;;  %v2448_v42 = vld [vmem:[%s3688_s1 + $0xa0] ss:$8 sps:$4 sm:$0xff]   ;;  %v2450_v44 = vld [vmem:[%s3688_s1 + $0xb4] ss:$8 sps:$4 sm:$0xff]   ;;  %v2454_v46 = vld [vmem:[%s3688_s1 + $0xb0] ss:$8 sps:$4 sm:$0xff]  }
  0x10   :  { %1563 = vmatpush1.bf16.msra.mxu0 %v2407_v15  ;;  %1338 = vmatprep.subr.bf16.mxu1 %v2408_v16  ;;  %v2449_v43 = vld [vmem:[%s3688_s1 + $0x2a0] ss:$8 sps:$4 sm:$0xff]   ;;  %v2452_v45 = vld [vmem:[%s3688_s1 + $0x2b4] ss:$8 sps:$4 sm:$0xff]   ;;  %v2455_v47 = vld [vmem:[%s3688_s1 + $0x2b0] ss:$8 sps:$4 sm:$0xff]  }
  0x11   :  { %1564 = vmatprep.subr.bf16.mxu0 %v2410_v17  ;;  %v2456_v48 = vld [vmem:[%s3688_s1 + $0xc4] ss:$8 sps:$4 sm:$0xff]   ;;  %v2485_v51 = vld [vmem:[%s3689_s0 + $0x14] ss:$36 sps:$4 sm:$0xff]   ;;  %v2460_v52 = vld [vmem:[%s3688_s1 + $0xc0] ss:$8 sps:$4 sm:$0xff]  }
  0x12   :  { %v2482_v49 = vld [vmem:[%s3689_s0 + $0x4] ss:$36 sps:$4 sm:$0xff]   ;;  %1588 = vmatprep.mubr.bf16.mxu0 %v2485_v51  ;;  %v2462_v54 = vld [vmem:[%s3688_s1 + $0xd4] ss:$8 sps:$4 sm:$0xff]   ;;  %v2466_v56 = vld [vmem:[%s3688_s1 + $0xd0] ss:$8 sps:$4 sm:$0xff]  }
  0x13   :  { %1339 = vmatpush1.bf16.msra.mxu1 %v2412_v18  ;;  %v2458_v50 = vld [vmem:[%s3688_s1 + $0x2c4] ss:$8 sps:$4 sm:$0xff]   ;;  %1362 = vmatprep.mubr.bf16.mxu1 %v2482_v49  ;;  %v2461_v53 = vld [vmem:[%s3688_s1 + $0x2c0] ss:$8 sps:$4 sm:$0xff]   ;;  %v2464_v55 = vld [vmem:[%s3688_s1 + $0x2d4] ss:$8 sps:$4 sm:$0xff]  }
  0x14   :  { %1565 = vmatpush1.bf16.msra.mxu0 %v2413_v19  ;;  %1340 = vmatprep.subr.bf16.mxu1 %v2414_v20  ;;  %v2467_v57 = vld [vmem:[%s3688_s1 + $0x2d0] ss:$8 sps:$4 sm:$0xff]   ;;  %v2468_v58 = vld [vmem:[%s3688_s1 + $0xe4] ss:$8 sps:$4 sm:$0xff]   ;;  %v2472_v60 = vld [vmem:[%s3688_s1 + $0xe0] ss:$8 sps:$4 sm:$0xff]  }
  0x15   :  { %1566 = vmatprep.subr.bf16.mxu0 %v2416_v21  ;;  %v2470_v59 = vld [vmem:[%s3688_s1 + $0x2e4] ss:$8 sps:$4 sm:$0xff]   ;;  %v2473_v61 = vld [vmem:[%s3688_s1 + $0x2e0] ss:$8 sps:$4 sm:$0xff]   ;;  %v2474_v62 = vld [vmem:[%s3688_s1 + $0xf4] ss:$8 sps:$4 sm:$0xff]  }
  0x16   :  { %v2476_v63 = vld [vmem:[%s3688_s1 + $0x2f4] ss:$8 sps:$4 sm:$0xff]   ;;  %v2478_v0 = vld [vmem:[%s3688_s1 + $0xf0] ss:$8 sps:$4 sm:$0xff]   ;;  %v2488_v2 = vld [vmem:[%s3688_s1 + $0x104] ss:$8 sps:$4 sm:$0xff]  }
  0x17   :  { %1341 = vmatpush1.bf16.msra.mxu1 %v2418_v22  ;;  %v2479_v1 = vld [vmem:[%s3688_s1 + $0x2f0] ss:$8 sps:$4 sm:$0xff]   ;;  %v2934_v3 = vld [vmem:[%s3688_s1 + $0x304] ss:$8 sps:$4 sm:$0xff]   ;;  %v2486_v6 = vld [vmem:[%s3688_s1 + $0x100] ss:$8 sps:$4 sm:$0xff]  }
  0x18   :  { %1567 = vmatpush1.bf16.msra.mxu0 %v2419_v23  ;;  %1342 = vmatprep.subr.bf16.mxu1 %v2420_v24  ;;  %v2480_v4 = vld [vmem:[%s3689_s0] ss:$36 sps:$4 sm:$0xff]   ;;  %v2483_v5 = vld [vmem:[%s3689_s0 + $0x10] ss:$36 sps:$4 sm:$0xff]   ;;  %v2502_v16 = vld [vmem:[%s3689_s0 + $0x48] ss:$36 sps:$4 sm:$0xff]  }
  0x19   :  { %1568 = vmatprep.subr.bf16.mxu0 %v2422_v25  ;;  %v2948_v7 = vld [vmem:[%s3688_s1 + $0x300] ss:$8 sps:$4 sm:$0xff]   ;;  %v2494_v8 = vld [vmem:[%s3688_s1 + $0x114] ss:$8 sps:$4 sm:$0xff]   ;;  %v2498_v10 = vld [vmem:[%s3689_s0 + $0x4c] ss:$36 sps:$4 sm:$0xff]  }
  0x1a   :  { %v2957_v9 = vld [vmem:[%s3688_s1 + $0x314] ss:$8 sps:$4 sm:$0xff]   ;;  %v2492_v12 = vld [vmem:[%s3688_s1 + $0x110] ss:$8 sps:$4 sm:$0xff]   ;;  %v2505_v14 = vld [vmem:[%s3688_s1 + $0x124] ss:$8 sps:$4 sm:$0xff]  }
  0x1b   :  { %1343 = vmatpush1.bf16.msra.mxu1 %v2424_v26  ;;  %v2500_v11 = vld [vmem:[%s3689_s0 + $0x5c] ss:$36 sps:$4 sm:$0xff]   ;;  %v2972_v13 = vld [vmem:[%s3688_s1 + $0x310] ss:$8 sps:$4 sm:$0xff]   ;;  %v2981_v15 = vld [vmem:[%s3688_s1 + $0x324] ss:$8 sps:$4 sm:$0xff]  }
  0x1c   :  { %1569 = vmatpush1.bf16.msra.mxu0 %v2425_v27  ;;  %1344 = vmatprep.subr.bf16.mxu1 %v2426_v28  ;;  %v2503_v17 = vld [vmem:[%s3688_s1 + $0x120] ss:$8 sps:$4 sm:$0xff]   ;;  %v2506_v18 = vld [vmem:[%s3689_s0 + $0x58] ss:$36 sps:$4 sm:$0xff]   ;;  %v2523_v26 = vld [vmem:[%s3688_s1 + $0x144] ss:$8 sps:$4 sm:$0xff]  }
  0x1d   :  { %1570 = vmatprep.subr.bf16.mxu0 %v2428_v29  ;;  %v2995_v19 = vld [vmem:[%s3688_s1 + $0x320] ss:$8 sps:$4 sm:$0xff]   ;;  %v2512_v20 = vld [vmem:[%s3688_s1 + $0x134] ss:$8 sps:$4 sm:$0xff]   ;;  %v2510_v24 = vld [vmem:[%s3688_s1 + $0x130] ss:$8 sps:$4 sm:$0xff]  }
  0x1e   :  { %v3005_v21 = vld [vmem:[%s3688_s1 + $0x334] ss:$8 sps:$4 sm:$0xff]   ;;  %v2518_v23 = vld [vmem:[%s3689_s0 + $0xa4] ss:$36 sps:$4 sm:$0xff]   ;;  %v3020_v25 = vld [vmem:[%s3688_s1 + $0x330] ss:$8 sps:$4 sm:$0xff]  }
  0x1f   :  { %1345 = vmatpush1.bf16.msra.mxu1 %v2430_v30  ;;  %v2516_v22 = vld [vmem:[%s3689_s0 + $0x94] ss:$36 sps:$4 sm:$0xff]   ;;  %v3029_v27 = vld [vmem:[%s3688_s1 + $0x344] ss:$8 sps:$4 sm:$0xff]   ;;  %v2521_v29 = vld [vmem:[%s3688_s1 + $0x140] ss:$8 sps:$4 sm:$0xff]  }
  0x20   :  { %1571 = vmatpush1.bf16.msra.mxu0 %v2431_v31  ;;  %1346 = vmatprep.subr.bf16.mxu1 %v2432_v32  ;;  %v2520_v28 = vld [vmem:[%s3689_s0 + $0x90] ss:$36 sps:$4 sm:$0xff]   ;;  %v2524_v30 = vld [vmem:[%s3689_s0 + $0xa0] ss:$36 sps:$4 sm:$0xff]  }
  0x21   :  { %1572 = vmatprep.subr.bf16.mxu0 %v2434_v33  ;;  %v3043_v31 = vld [vmem:[%s3688_s1 + $0x340] ss:$8 sps:$4 sm:$0xff]   ;;  %v2530_v32 = vld [vmem:[%s3688_s1 + $0x154] ss:$8 sps:$4 sm:$0xff]   ;;  %v3116_v49 = vld [vmem:[%s3688_s1 + $0x370] ss:$8 sps:$4 sm:$0xff]  }
  0x22   :  { %v3053_v33 = vld [vmem:[%s3688_s1 + $0x354] ss:$8 sps:$4 sm:$0xff]   ;;  %v3125_v51 = vld [vmem:[%s3688_s1 + $0x384] ss:$8 sps:$4 sm:$0xff]  }
  0x23   :  { %1347 = vmatpush1.bf16.msra.mxu1 %v2436_v34  ;;  %v2534_v34 = vld [vmem:[%s3689_s0 + $0xdc] ss:$36 sps:$4 sm:$0xff]  }
  0x24   :  { %1573 = vmatpush1.bf16.msra.mxu0 %v2437_v35  ;;  %1348 = vmatprep.subr.bf16.mxu1 %v2438_v36  ;;  %v2536_v35 = vld [vmem:[%s3689_s0 + $0xec] ss:$36 sps:$4 sm:$0xff]  }
  0x25   :  { %1574 = vmatprep.subr.bf16.mxu0 %v2440_v37  ;;  %v2528_v36 = vld [vmem:[%s3688_s1 + $0x150] ss:$8 sps:$4 sm:$0xff]  }
  0x26   :  { %v3068_v37 = vld [vmem:[%s3688_s1 + $0x350] ss:$8 sps:$4 sm:$0xff]  }
  0x27   :  { %1349 = vmatpush1.bf16.msra.mxu1 %v2442_v38  ;;  %v2541_v38 = vld [vmem:[%s3688_s1 + $0x164] ss:$8 sps:$4 sm:$0xff]  }
  0x28   :  { %1575 = vmatpush1.bf16.msra.mxu0 %v2443_v39  ;;  %1350 = vmatprep.subr.bf16.mxu1 %v2444_v40  ;;  %v3077_v39 = vld [vmem:[%s3688_s1 + $0x364] ss:$8 sps:$4 sm:$0xff]   ;;  %v2538_v40 = vld [vmem:[%s3689_s0 + $0xd8] ss:$36 sps:$4 sm:$0xff]  }
  0x29   :  { %1576 = vmatprep.subr.bf16.mxu0 %v2446_v41  ;;  %v2539_v41 = vld [vmem:[%s3688_s1 + $0x160] ss:$8 sps:$4 sm:$0xff]  }
  0x2b   :  { %1351 = vmatpush1.bf16.msra.mxu1 %v2448_v42  ;;  %v2542_v42 = vld [vmem:[%s3689_s0 + $0xe8] ss:$36 sps:$4 sm:$0xff]  }
  0x2c   :  { %1577 = vmatpush1.bf16.msra.mxu0 %v2449_v43  ;;  %1352 = vmatprep.subr.bf16.mxu1 %v2450_v44  ;;  %v3091_v43 = vld [vmem:[%s3688_s1 + $0x360] ss:$8 sps:$4 sm:$0xff]   ;;  %v2548_v44 = vld [vmem:[%s3688_s1 + $0x174] ss:$8 sps:$4 sm:$0xff]  }
  0x2d   :  { %1578 = vmatprep.subr.bf16.mxu0 %v2452_v45  ;;  %v3101_v45 = vld [vmem:[%s3688_s1 + $0x374] ss:$8 sps:$4 sm:$0xff]  }
  0x2f   :  { %1353 = vmatpush1.bf16.msra.mxu1 %v2454_v46  ;;  %v2552_v46 = vld [vmem:[%s3689_s0 + $0x124] ss:$36 sps:$4 sm:$0xff]  }
  0x30   :  { %1579 = vmatpush1.bf16.msra.mxu0 %v2455_v47  ;;  %1354 = vmatprep.subr.bf16.mxu1 %v2456_v48  ;;  %v2554_v47 = vld [vmem:[%s3689_s0 + $0x134] ss:$36 sps:$4 sm:$0xff]  }
  0x31   :  { %1580 = vmatprep.subr.bf16.mxu0 %v2458_v50  ;;  %v2546_v48 = vld [vmem:[%s3688_s1 + $0x170] ss:$8 sps:$4 sm:$0xff]   ;;  %v2559_v50 = vld [vmem:[%s3688_s1 + $0x184] ss:$8 sps:$4 sm:$0xff]  }
  0x33   :  { %1355 = vmatpush1.bf16.msra.mxu1 %v2460_v52  ;;  %v2556_v52 = vld [vmem:[%s3689_s0 + $0x120] ss:$36 sps:$4 sm:$0xff]  }
  0x34   :  { %1581 = vmatpush1.bf16.msra.mxu0 %v2461_v53  ;;  %1356 = vmatprep.subr.bf16.mxu1 %v2462_v54  ;;  %v2557_v53 = vld [vmem:[%s3688_s1 + $0x180] ss:$8 sps:$4 sm:$0xff]   ;;  %v2560_v54 = vld [vmem:[%s3689_s0 + $0x130] ss:$36 sps:$4 sm:$0xff]  }
  0x35   :  { %1582 = vmatprep.subr.bf16.mxu0 %v2464_v55  ;;  %v3139_v55 = vld [vmem:[%s3688_s1 + $0x380] ss:$8 sps:$4 sm:$0xff]  }
  0x37   :  { %1357 = vmatpush1.bf16.msra.mxu1 %v2466_v56  ;;  %v2566_v56 = vld [vmem:[%s3688_s1 + $0x194] ss:$8 sps:$4 sm:$0xff]  }
  0x38   :  { %1583 = vmatpush1.bf16.msra.mxu0 %v2467_v57  ;;  %1358 = vmatprep.subr.bf16.mxu1 %v2468_v58  ;;  %v3149_v57 = vld [vmem:[%s3688_s1 + $0x394] ss:$8 sps:$4 sm:$0xff]   ;;  %v2570_v58 = vld [vmem:[%s3689_s0 + $0x16c] ss:$36 sps:$4 sm:$0xff]  }
  0x39   :  { %1584 = vmatprep.subr.bf16.mxu0 %v2470_v59  ;;  %v2572_v59 = vld [vmem:[%s3689_s0 + $0x17c] ss:$36 sps:$4 sm:$0xff]  }
  0x3b   :  { %1359 = vmatpush1.bf16.msra.mxu1 %v2472_v60  ;;  %v2564_v60 = vld [vmem:[%s3688_s1 + $0x190] ss:$8 sps:$4 sm:$0xff]  }
  0x3c   :  { %1585 = vmatpush1.bf16.msra.mxu0 %v2473_v61  ;;  %1360 = vmatprep.subr.bf16.mxu1 %v2474_v62  ;;  %v3164_v61 = vld [vmem:[%s3688_s1 + $0x390] ss:$8 sps:$4 sm:$0xff]   ;;  %v2577_v62 = vld [vmem:[%s3688_s1 + $0x1a4] ss:$8 sps:$4 sm:$0xff]  }
  0x3d   :  { %1586 = vmatprep.subr.bf16.mxu0 %v2476_v63  ;;  %v3173_v63 = vld [vmem:[%s3688_s1 + $0x3a4] ss:$8 sps:$4 sm:$0xff]  }
  0x3f   :  { %1361 = vmatpush1.bf16.msra.mxu1 %v2478_v0  ;;  %v2574_v0 = vld [vmem:[%s3689_s0 + $0x168] ss:$36 sps:$4 sm:$0xff]  }
  0x40   :  { %1587 = vmatpush1.bf16.msra.mxu0 %v2479_v1  ;;  %1443 = vmatprep.subr.bf16.mxu1 %v2488_v2  ;;  %v2575_v1 = vld [vmem:[%s3688_s1 + $0x1a0] ss:$8 sps:$4 sm:$0xff]   ;;  %v2578_v2 = vld [vmem:[%s3689_s0 + $0x178] ss:$36 sps:$4 sm:$0xff]  }
  0x41   :  { %1669 = vmatprep.subr.bf16.mxu0 %v2934_v3 }
  0x42   :  { %1363 = vmatmul.mubr.bf16.vlgmr.msra.gmra.mrb[0].mxu1 %v2480_v4  ;;  %v3187_v4 = vld [vmem:[%s3688_s1 + $0x3a0] ss:$8 sps:$4 sm:$0xff]  }
  0x43   :  { %1589 = vmatmul.mubr.bf16.vlgmr.msra.gmra.mrb[0].mxu0 %v2483_v5  ;;  %1444 = vmatpush1.bf16.msra.mxu1 %v2486_v6  ;;  %v2584_v5 = vld [vmem:[%s3688_s1 + $0x1b4] ss:$8 sps:$4 sm:$0xff]  }
  0x44   :  { %1670 = vmatpush1.bf16.msra.mxu0 %v2948_v7  ;;  %1445 = vmatprep.subr.bf16.mxu1 %v2494_v8  ;;  %v3197_v6 = vld [vmem:[%s3688_s1 + $0x3b4] ss:$8 sps:$4 sm:$0xff]  }
  0x45   :  { %1671 = vmatprep.subr.bf16.mxu0 %v2957_v9  ;;  %1372 = vmatprep.mubr.bf16.mxu1 %v2498_v10  ;;  %v2588_v8 = vld [vmem:[%s3689_s0 + $0x1b4] ss:$36 sps:$4 sm:$0xff]   ;;  %v2590_v10 = vld [vmem:[%s3689_s0 + $0x1c4] ss:$36 sps:$4 sm:$0xff]  }
  0x46   :  { %1598 = vmatprep.mubr.bf16.mxu0 %v2500_v11  ;;  %v2582_v11 = vld [vmem:[%s3688_s1 + $0x1b0] ss:$8 sps:$4 sm:$0xff]  }
  0x47   :  { %1446 = vmatpush1.bf16.msra.mxu1 %v2492_v12  ;;  %v3211_v12 = vld [vmem:[%s3688_s1 + $0x3b0] ss:$8 sps:$4 sm:$0xff]  }
  0x48   :  { %1672 = vmatpush1.bf16.msra.mxu0 %v2972_v13  ;;  %1447 = vmatprep.subr.bf16.mxu1 %v2505_v14  ;;  %v2595_v14 = vld [vmem:[%s3688_s1 + $0x1c4] ss:$8 sps:$4 sm:$0xff]  }
  0x49   :  { %1673 = vmatprep.subr.bf16.mxu0 %v2981_v15 }
  0x4a   :  { %1373 = vmatmul.mubr.bf16.gmra.mrb[4].mxu1 %v2502_v16  ;;  %v3221_v16 = vld [vmem:[%s3688_s1 + $0x3c4] ss:$8 sps:$4 sm:$0xff]  }
  0x4b   :  { %1599 = vmatmul.mubr.bf16.gmra.mrb[4].mxu0 %v2506_v18  ;;  %1448 = vmatpush1.bf16.msra.mxu1 %v2503_v17  ;;  %v2592_v17 = vld [vmem:[%s3689_s0 + $0x1b0] ss:$36 sps:$4 sm:$0xff]   ;;  %v2593_v18 = vld [vmem:[%s3688_s1 + $0x1c0] ss:$8 sps:$4 sm:$0xff]  }
  0x4c   :  { %1674 = vmatpush1.bf16.msra.mxu0 %v2995_v19  ;;  %1449 = vmatprep.subr.bf16.mxu1 %v2512_v20  ;;  %v2596_v20 = vld [vmem:[%s3689_s0 + $0x1c0] ss:$36 sps:$4 sm:$0xff]  }
  0x4d   :  { %1675 = vmatprep.subr.bf16.mxu0 %v3005_v21  ;;  %1382 = vmatprep.mubr.bf16.mxu1 %v2516_v22  ;;  %v3235_v22 = vld [vmem:[%s3688_s1 + $0x3c0] ss:$8 sps:$4 sm:$0xff]  }
  0x4e   :  { %1608 = vmatprep.mubr.bf16.mxu0 %v2518_v23  ;;  %v2602_v23 = vld [vmem:[%s3688_s1 + $0x1d4] ss:$8 sps:$4 sm:$0xff]  }
  0x4f   :  { %1450 = vmatpush1.bf16.msra.mxu1 %v2510_v24  ;;  %v3245_v24 = vld [vmem:[%s3688_s1 + $0x3d4] ss:$8 sps:$4 sm:$0xff]  }
  0x50   :  { %1676 = vmatpush1.bf16.msra.mxu0 %v3020_v25  ;;  %1451 = vmatprep.subr.bf16.mxu1 %v2523_v26  ;;  %v2606_v26 = vld [vmem:[%s3689_s0 + $0x1fc] ss:$36 sps:$4 sm:$0xff]  }
  0x51   :  { %1677 = vmatprep.subr.bf16.mxu0 %v3029_v27 }
  0x52   :  { %1383 = vmatmul.mubr.bf16.gmra.mrb[8].mxu1 %v2520_v28  ;;  %v2608_v28 = vld [vmem:[%s3689_s0 + $0x20c] ss:$36 sps:$4 sm:$0xff]  }
  0x53   :  { %1609 = vmatmul.mubr.bf16.gmra.mrb[8].mxu0 %v2524_v30  ;;  %1452 = vmatpush1.bf16.msra.mxu1 %v2521_v29  ;;  %v2600_v29 = vld [vmem:[%s3688_s1 + $0x1d0] ss:$8 sps:$4 sm:$0xff]  }
  0x54   :  { %1678 = vmatpush1.bf16.msra.mxu0 %v3043_v31  ;;  %1453 = vmatprep.subr.bf16.mxu1 %v2530_v32  ;;  %v3259_v30 = vld [vmem:[%s3688_s1 + $0x3d0] ss:$8 sps:$4 sm:$0xff]   ;;  %v2613_v32 = vld [vmem:[%s3688_s1 + $0x1e4] ss:$8 sps:$4 sm:$0xff]  }
  0x55   :  { %1679 = vmatprep.subr.bf16.mxu0 %v3053_v33  ;;  %1392 = vmatprep.mubr.bf16.mxu1 %v2534_v34  ;;  %v3269_v34 = vld [vmem:[%s3688_s1 + $0x3e4] ss:$8 sps:$4 sm:$0xff]  }
  0x56   :  { %1618 = vmatprep.mubr.bf16.mxu0 %v2536_v35  ;;  %v2610_v35 = vld [vmem:[%s3689_s0 + $0x1f8] ss:$36 sps:$4 sm:$0xff]  }
  0x57   :  { %1454 = vmatpush1.bf16.msra.mxu1 %v2528_v36  ;;  %v2611_v36 = vld [vmem:[%s3688_s1 + $0x1e0] ss:$8 sps:$4 sm:$0xff]  }
  0x58   :  { %1680 = vmatpush1.bf16.msra.mxu0 %v3068_v37  ;;  %1455 = vmatprep.subr.bf16.mxu1 %v2541_v38  ;;  %v2614_v38 = vld [vmem:[%s3689_s0 + $0x208] ss:$36 sps:$4 sm:$0xff]  }
  0x59   :  { %1681 = vmatprep.subr.bf16.mxu0 %v3077_v39 }
  0x5a   :  { %1393 = vmatmul.mubr.bf16.gmra.mrb[12].mxu1 %v2538_v40  ;;  %v3283_v40 = vld [vmem:[%s3688_s1 + $0x3e0] ss:$8 sps:$4 sm:$0xff]  }
  0x5b   :  { %1619 = vmatmul.mubr.bf16.gmra.mrb[12].mxu0 %v2542_v42  ;;  %1456 = vmatpush1.bf16.msra.mxu1 %v2539_v41  ;;  %v2620_v41 = vld [vmem:[%s3688_s1 + $0x1f4] ss:$8 sps:$4 sm:$0xff]  }
  0x5c   :  { %1682 = vmatpush1.bf16.msra.mxu0 %v3091_v43  ;;  %1457 = vmatprep.subr.bf16.mxu1 %v2548_v44  ;;  %v3293_v42 = vld [vmem:[%s3688_s1 + $0x3f4] ss:$8 sps:$4 sm:$0xff]   ;;  %v2626_v44 = vld [vmem:[%s3689_s0 + $0xc] ss:$36 sps:$4 sm:$0xff]  }
  0x5d   :  { %1683 = vmatprep.subr.bf16.mxu0 %v3101_v45  ;;  %1402 = vmatprep.mubr.bf16.mxu1 %v2552_v46  ;;  %v2629_v46 = vld [vmem:[%s3689_s0 + $0x1c] ss:$36 sps:$4 sm:$0xff]  }
  0x5e   :  { %1628 = vmatprep.mubr.bf16.mxu0 %v2554_v47  ;;  %v2618_v47 = vld [vmem:[%s3688_s1 + $0x1f0] ss:$8 sps:$4 sm:$0xff]  }
  0x5f   :  { %1458 = vmatpush1.bf16.msra.mxu1 %v2546_v48  ;;  %v3308_v48 = vld [vmem:[%s3688_s1 + $0x3f0] ss:$8 sps:$4 sm:$0xff]  }
  0x60   :  { %1684 = vmatpush1.bf16.msra.mxu0 %v3116_v49  ;;  %1459 = vmatprep.subr.bf16.mxu1 %v2559_v50  ;;  %v2632_v50 = vld [vmem:[%s3688_s1 + $0x404] ss:$8 sps:$4 sm:$0xff]  }
  0x61   :  { %1685 = vmatprep.subr.bf16.mxu0 %v3125_v51 }
  0x62   :  { %1403 = vmatmul.mubr.bf16.gmra.mrb[16].mxu1 %v2556_v52  ;;  %v2624_v52 = vld [vmem:[%s3689_s0 + $0x8] ss:$36 sps:$4 sm:$0xff]  }
  0x63   :  { %1629 = vmatmul.mubr.bf16.gmra.mrb[16].mxu0 %v2560_v54  ;;  %1460 = vmatpush1.bf16.msra.mxu1 %v2557_v53  ;;  %v2627_v53 = vld [vmem:[%s3689_s0 + $0x18] ss:$36 sps:$4 sm:$0xff]   ;;  %v2630_v54 = vld [vmem:[%s3688_s1 + $0x400] ss:$8 sps:$4 sm:$0xff]  }
  0x64   :  { %1686 = vmatpush1.bf16.msra.mxu0 %v3139_v55  ;;  %1461 = vmatprep.subr.bf16.mxu1 %v2566_v56  ;;  %v2635_v56 = vld [vmem:[%s3688_s1 + $0x414] ss:$8 sps:$4 sm:$0xff]  }
  0x65   :  { %1687 = vmatprep.subr.bf16.mxu0 %v3149_v57  ;;  %1412 = vmatprep.mubr.bf16.mxu1 %v2570_v58  ;;  %v2636_v58 = vld [vmem:[%s3689_s0 + $0x54] ss:$36 sps:$4 sm:$0xff]  }
  0x66   :  { %1638 = vmatprep.mubr.bf16.mxu0 %v2572_v59  ;;  %v2638_v59 = vld [vmem:[%s3689_s0 + $0x64] ss:$36 sps:$4 sm:$0xff]  }
  0x67   :  { %1462 = vmatpush1.bf16.msra.mxu1 %v2564_v60  ;;  %v2633_v60 = vld [vmem:[%s3688_s1 + $0x410] ss:$8 sps:$4 sm:$0xff]  }
  0x68   :  { %1688 = vmatpush1.bf16.msra.mxu0 %v3164_v61  ;;  %1463 = vmatprep.subr.bf16.mxu1 %v2577_v62  ;;  %v2640_v62 = vld [vmem:[%s3689_s0 + $0x50] ss:$36 sps:$4 sm:$0xff]  }
  0x69   :  { %1689 = vmatprep.subr.bf16.mxu0 %v3173_v63 }
  0x6a   :  { %1413 = vmatmul.mubr.bf16.gmra.mrb[20].mxu1 %v2574_v0  ;;  %v2647_v0 = vld [vmem:[%s3688_s1 + $0x434] ss:$8 sps:$4 sm:$0xff]  }
  0x6b   :  { %1639 = vmatmul.mubr.bf16.gmra.mrb[20].mxu0 %v2578_v2  ;;  %1464 = vmatpush1.bf16.msra.mxu1 %v2575_v1  ;;  %v2648_v1 = vld [vmem:[%s3689_s0 + $0x9c] ss:$36 sps:$4 sm:$0xff]   ;;  %v2656_v2 = vld [vmem:[%s3688_s1 + $0x444] ss:$8 sps:$4 sm:$0xff]  }
  0x6c   :  { %1690 = vmatpush1.bf16.msra.mxu0 %v3187_v4  ;;  %1465 = vmatprep.subr.bf16.mxu1 %v2584_v5  ;;  %v2652_v5 = vld [vmem:[%s3689_s0 + $0x98] ss:$36 sps:$4 sm:$0xff]  }
  0x6d   :  { %1691 = vmatprep.subr.bf16.mxu0 %v3197_v6  ;;  %1422 = vmatprep.mubr.bf16.mxu1 %v2588_v8  ;;  %v2659_v8 = vld [vmem:[%s3688_s1 + $0x454] ss:$8 sps:$4 sm:$0xff]  }
  0x6e   :  { %1648 = vmatprep.mubr.bf16.mxu0 %v2590_v10  ;;  %v2660_v10 = vld [vmem:[%s3689_s0 + $0xe4] ss:$36 sps:$4 sm:$0xff]  }
  0x6f   :  { %1466 = vmatpush1.bf16.msra.mxu1 %v2582_v11  ;;  %v2668_v11 = vld [vmem:[%s3688_s1 + $0x464] ss:$8 sps:$4 sm:$0xff]  }
  0x70   :  { %1692 = vmatpush1.bf16.msra.mxu0 %v3211_v12  ;;  %1467 = vmatprep.subr.bf16.mxu1 %v2595_v14  ;;  %v2664_v14 = vld [vmem:[%s3689_s0 + $0xe0] ss:$36 sps:$4 sm:$0xff]  }
  0x71   :  { %1693 = vmatprep.subr.bf16.mxu0 %v3221_v16 }
  0x72   :  { %1423 = vmatmul.mubr.bf16.gmra.mrb[24].mxu1 %v2592_v17  ;;  %v2671_v17 = vld [vmem:[%s3688_s1 + $0x474] ss:$8 sps:$4 sm:$0xff]  }
  0x73   :  { %1649 = vmatmul.mubr.bf16.gmra.mrb[24].mxu0 %v2596_v20  ;;  %1468 = vmatpush1.bf16.msra.mxu1 %v2593_v18  ;;  %v2672_v18 = vld [vmem:[%s3689_s0 + $0x12c] ss:$36 sps:$4 sm:$0xff]  }
  0x74   :  { %1694 = vmatpush1.bf16.msra.mxu0 %v3235_v22  ;;  %1469 = vmatprep.subr.bf16.mxu1 %v2602_v23  ;;  %v2674_v20 = vld [vmem:[%s3689_s0 + $0x128] ss:$36 sps:$4 sm:$0xff]  }
  0x75   :  { %1695 = vmatprep.subr.bf16.mxu0 %v3245_v24  ;;  %1432 = vmatprep.mubr.bf16.mxu1 %v2606_v26  ;;  %v2679_v23 = vld [vmem:[%s3689_s0 + $0x68] ss:$36 sps:$4 sm:$0xff]  }
  0x76   :  { %1658 = vmatprep.mubr.bf16.mxu0 %v2608_v28  ;;  %v2695_v26 = vld [vmem:[%s3689_s0 + $0x188] ss:$36 sps:$4 sm:$0xff]  }
  0x77   :  { %1470 = vmatpush1.bf16.msra.mxu1 %v2600_v29  ;;  %v2696_v28 = vld [vmem:[%s3689_s0 + $0x1cc] ss:$36 sps:$4 sm:$0xff]  }
  0x78   :  { %1696 = vmatpush1.bf16.msra.mxu0 %v3259_v30  ;;  %1471 = vmatprep.subr.bf16.mxu1 %v2613_v32  ;;  %v2698_v29 = vld [vmem:[%s3689_s0 + $0x1c8] ss:$36 sps:$4 sm:$0xff]   ;;  %v2700_v32 = vld [vmem:[%s3689_s0 + $0x214] ss:$36 sps:$4 sm:$0xff]  }
  0x79   :  { %1697 = vmatprep.subr.bf16.mxu0 %v3269_v34 }
  0x7a   :  { %1433 = vmatmul.mubr.bf16.gmra.mrb[28].mxu1 %v2610_v35  ;;  %v2703_v35 = vld [vmem:[%s3689_s0 + $0x218] ss:$36 sps:$4 sm:$0xff]  }
  0x7b   :  { %1659 = vmatmul.mubr.bf16.gmra.mrb[28].mxu0 %v2614_v38  ;;  %1472 = vmatpush1.bf16.msra.mxu1 %v2611_v36 }
  0x7c   :  { %1698 = vmatpush1.bf16.msra.mxu0 %v3283_v40  ;;  %1473 = vmatprep.subr.bf16.mxu1 %v2620_v41 }
  0x7d   :  { %1699 = vmatprep.subr.bf16.mxu0 %v3293_v42  ;;  %1475 = vmatprep.mubr.bf16.mxu1 %v2626_v44 }
  0x7e   :  { %1701 = vmatprep.mubr.bf16.mxu0 %v2629_v46 }
  0x7f   :  { %1474 = vmatpush1.bf16.msra.mxu1 %v2618_v47 }
  0x80   :  { %1700 = vmatpush1.bf16.msra.mxu0 %v3308_v48  ;;  %2223 = vmatprep.subr.bf16.mxu1 %v2934_v3  ;;  %v2644_v3 = vld [vmem:[%s3688_s1 + $0x424] ss:$8 sps:$4 sm:$0xff]  }
  0x81   :  { %1782 = vmatprep.subr.bf16.mxu0 %v2632_v50 }
  0x82   :  { %1476 = vmatmul.mubr.bf16.vlgmr.msra.gmra.mrb[0].mxu1 %v2624_v52 }
  0x83   :  { %1702 = vmatmul.mubr.bf16.vlgmr.msra.gmra.mrb[0].mxu0 %v2627_v53  ;;  %2239 = vmatpush1.bf16.msra.mxu1 %v2948_v7  ;;  %v2641_v7 = vld [vmem:[%s3689_s0 + $0x60] ss:$36 sps:$4 sm:$0xff]  }
  0x84   :  { %1783 = vmatpush1.bf16.msra.mxu0 %v2630_v54  ;;  %2224 = vmatprep.subr.bf16.mxu1 %v2957_v9  ;;  %v2642_v9 = vld [vmem:[%s3688_s1 + $0x420] ss:$8 sps:$4 sm:$0xff]  }
  0x85   :  { %1784 = vmatprep.subr.bf16.mxu0 %v2635_v56  ;;  %1485 = vmatprep.mubr.bf16.mxu1 %v2636_v58 }
  0x86   :  { %1711 = vmatprep.mubr.bf16.mxu0 %v2638_v59 }
  0x87   :  { %2240 = vmatpush1.bf16.msra.mxu1 %v2972_v13  ;;  %v2650_v13 = vld [vmem:[%s3689_s0 + $0xac] ss:$36 sps:$4 sm:$0xff]  }
  0x88   :  { %1785 = vmatpush1.bf16.msra.mxu0 %v2633_v60  ;;  %2225 = vmatprep.subr.bf16.mxu1 %v2981_v15  ;;  %v2645_v15 = vld [vmem:[%s3688_s1 + $0x430] ss:$8 sps:$4 sm:$0xff]  }
  0x89   :  { %1786 = vmatprep.subr.bf16.mxu0 %v2644_v3 }
  0x8a   :  { %1486 = vmatmul.mubr.bf16.gmra.mrb[4].mxu1 %v2640_v62 }
  0x8b   :  { %1712 = vmatmul.mubr.bf16.gmra.mrb[4].mxu0 %v2641_v7  ;;  %2241 = vmatpush1.bf16.msra.mxu1 %v2995_v19  ;;  %v2653_v19 = vld [vmem:[%s3689_s0 + $0xa8] ss:$36 sps:$4 sm:$0xff]  }
  0x8c   :  { %1787 = vmatpush1.bf16.msra.mxu0 %v2642_v9  ;;  %2226 = vmatprep.subr.bf16.mxu1 %v3005_v21  ;;  %v2654_v21 = vld [vmem:[%s3688_s1 + $0x440] ss:$8 sps:$4 sm:$0xff]  }
  0x8d   :  { %1788 = vmatprep.subr.bf16.mxu0 %v2647_v0  ;;  %1495 = vmatprep.mubr.bf16.mxu1 %v2648_v1 }
  0x8e   :  { %1721 = vmatprep.mubr.bf16.mxu0 %v2650_v13 }
  0x8f   :  { %2242 = vmatpush1.bf16.msra.mxu1 %v3020_v25  ;;  %v2662_v25 = vld [vmem:[%s3689_s0 + $0xf4] ss:$36 sps:$4 sm:$0xff]  }
  0x90   :  { %1789 = vmatpush1.bf16.msra.mxu0 %v2645_v15  ;;  %2227 = vmatprep.subr.bf16.mxu1 %v3029_v27  ;;  %v2657_v27 = vld [vmem:[%s3688_s1 + $0x450] ss:$8 sps:$4 sm:$0xff]  }
  0x91   :  { %1790 = vmatprep.subr.bf16.mxu0 %v2656_v2 }
  0x92   :  { %1496 = vmatmul.mubr.bf16.gmra.mrb[8].mxu1 %v2652_v5 }
  0x93   :  { %1722 = vmatmul.mubr.bf16.gmra.mrb[8].mxu0 %v2653_v19  ;;  %2243 = vmatpush1.bf16.msra.mxu1 %v3043_v31  ;;  %v2665_v31 = vld [vmem:[%s3689_s0 + $0xf0] ss:$36 sps:$4 sm:$0xff]  }
  0x94   :  { %1791 = vmatpush1.bf16.msra.mxu0 %v2654_v21  ;;  %2228 = vmatprep.subr.bf16.mxu1 %v3053_v33  ;;  %v2666_v33 = vld [vmem:[%s3688_s1 + $0x460] ss:$8 sps:$4 sm:$0xff]  }
  0x95   :  { %1792 = vmatprep.subr.bf16.mxu0 %v2659_v8  ;;  %1505 = vmatprep.mubr.bf16.mxu1 %v2660_v10 }
  0x96   :  { %1731 = vmatprep.mubr.bf16.mxu0 %v2662_v25 }
  0x97   :  { %2244 = vmatpush1.bf16.msra.mxu1 %v3068_v37  ;;  %v2669_v37 = vld [vmem:[%s3688_s1 + $0x470] ss:$8 sps:$4 sm:$0xff]  }
  0x98   :  { %1793 = vmatpush1.bf16.msra.mxu0 %v2657_v27  ;;  %2229 = vmatprep.subr.bf16.mxu1 %v3077_v39  ;;  %v2704_v39 = vmov 0  }
  0x99   :  { %1794 = vmatprep.subr.bf16.mxu0 %v2668_v11 }
  0x9a   :  { %1506 = vmatmul.mubr.bf16.gmra.mrb[12].mxu1 %v2664_v14 }
  0x9b   :  { %1732 = vmatmul.mubr.bf16.gmra.mrb[12].mxu0 %v2665_v31  ;;  %2245 = vmatpush1.bf16.msra.mxu1 %v3091_v43  ;;  %v2675_v43 = vld [vmem:[%s3689_s0 + $0x20] ss:$36 sps:$4 sm:$0xff]  }
  0x9c   :  { %1795 = vmatpush1.bf16.msra.mxu0 %v2666_v33  ;;  %2230 = vmatprep.subr.bf16.mxu1 %v3101_v45  ;;  %v2676_v45 = vld [vmem:[%s3689_s0 + $0x174] ss:$36 sps:$4 sm:$0xff]  }
  0x9d   :  { %1796 = vmatprep.subr.bf16.mxu0 %v2671_v17  ;;  %1515 = vmatprep.mubr.bf16.mxu1 %v2672_v18 }
  0x9e   :  { %1814 = vmatprep.mubr.bf16.mxu0 %v2704_v39 }
  0x9f   :  { %2246 = vmatpush1.bf16.msra.mxu1 %v3116_v49  ;;  %v2678_v49 = vld [vmem:[%s3689_s0 + $0x170] ss:$36 sps:$4 sm:$0xff]  }
  0xa0   :  { %1797 = vmatpush1.bf16.msra.mxu0 %v2669_v37  ;;  %2231 = vmatprep.subr.bf16.mxu1 %v3125_v51  ;;  %v2680_v51 = vld [vmem:[%s3689_s0 + $0x1bc] ss:$36 sps:$4 sm:$0xff]  }
  0xa2   :  { %1516 = vmatmul.mubr.bf16.gmra.mrb[16].mxu1 %v2674_v20 }
  0xa3   :  { %1815 = vmatmul.mubr.bf16.vlgmr.msra.gmra.mrb[0].mxu0 %v2675_v43  ;;  %2247 = vmatpush1.bf16.msra.mxu1 %v3139_v55  ;;  %v2682_v55 = vld [vmem:[%s3689_s0 + $0x1b8] ss:$36 sps:$4 sm:$0xff]  }
  0xa4   :  { %1525 = vmatprep.mubr.bf16.mxu1 %v2676_v45  ;;  %2232 = vmatprep.subr.bf16.mxu1 %v3149_v57  ;;  %v2683_v57 = vld [vmem:[%s3689_s0 + $0xb0] ss:$36 sps:$4 sm:$0xff]  }
  0xa5   :  { %1824 = vmatprep.mubr.bf16.mxu0 %v2704_v39 }
  0xa7   :  { %2248 = vmatpush1.bf16.msra.mxu1 %v3164_v61  ;;  %v2684_v61 = vld [vmem:[%s3689_s0 + $0x204] ss:$36 sps:$4 sm:$0xff]  }
  0xa8   :  { %2233 = vmatprep.subr.bf16.mxu1 %v3173_v63  ;;  %v2686_v63 = vld [vmem:[%s3689_s0 + $0x200] ss:$36 sps:$4 sm:$0xff]  }
  0xaa   :  { %1526 = vmatmul.mubr.bf16.gmra.mrb[20].mxu1 %v2678_v49 }
  0xab   :  { %1825 = vmatmul.mubr.bf16.gmra.mrb[4].mxu0 %v2679_v23  ;;  %2249 = vmatpush1.bf16.msra.mxu1 %v3187_v4  ;;  %v2687_v4 = vld [vmem:[%s3689_s0 + $0xf8] ss:$36 sps:$4 sm:$0xff]  }
  0xac   :  { %1535 = vmatprep.mubr.bf16.mxu1 %v2680_v51  ;;  %2234 = vmatprep.subr.bf16.mxu1 %v3197_v6  ;;  %v2690_v6 = vld [vmem:[%s3689_s0 + $0x13c] ss:$36 sps:$4 sm:$0xff]  }
  0xad   :  { %1834 = vmatprep.mubr.bf16.mxu0 %v2704_v39 }
  0xaf   :  { %2250 = vmatpush1.bf16.msra.mxu1 %v3211_v12  ;;  %v2688_v12 = vld [vmem:[%s3689_s0 + $0x138] ss:$36 sps:$4 sm:$0xff]  }
  0xb0   :  { %2235 = vmatprep.subr.bf16.mxu1 %v3221_v16  ;;  %v2691_v16 = vld [vmem:[%s3689_s0 + $0x140] ss:$36 sps:$4 sm:$0xff]  }
  0xb2   :  { %1536 = vmatmul.mubr.bf16.gmra.mrb[24].mxu1 %v2682_v55 }
  0xb3   :  { %1835 = vmatmul.mubr.bf16.gmra.mrb[8].mxu0 %v2683_v57  ;;  %2251 = vmatpush1.bf16.msra.mxu1 %v3235_v22  ;;  %v2692_v22 = vld [vmem:[%s3689_s0 + $0x184] ss:$36 sps:$4 sm:$0xff]  }
  0xb4   :  { %1545 = vmatprep.mubr.bf16.mxu1 %v2684_v61  ;;  %2236 = vmatprep.subr.bf16.mxu1 %v3245_v24  ;;  %v2694_v24 = vld [vmem:[%s3689_s0 + $0x180] ss:$36 sps:$4 sm:$0xff]  }
  0xb5   :  { %1844 = vmatprep.mubr.bf16.mxu0 %v2704_v39 }
  0xb7   :  { %2252 = vmatpush1.bf16.msra.mxu1 %v3259_v30  ;;  %v2699_v30 = vld [vmem:[%s3689_s0 + $0x1d0] ss:$36 sps:$4 sm:$0xff]  }
  0xb8   :  { %2237 = vmatprep.subr.bf16.mxu1 %v3269_v34  ;;  %v2702_v34 = vld [vmem:[%s3689_s0 + $0x210] ss:$36 sps:$4 sm:$0xff]  }
  0xba   :  { %1546 = vmatmul.mubr.bf16.gmra.mrb[28].mxu1 %v2686_v63 }
  0xbb   :  { %1845 = vmatmul.mubr.bf16.gmra.mrb[12].mxu0 %v2687_v4  ;;  %2253 = vmatpush1.bf16.msra.mxu1 %v3283_v40 }
  0xbc   :  { %1741 = vmatprep.mubr.bf16.mxu1 %v2690_v6  ;;  %2238 = vmatprep.subr.bf16.mxu1 %v3293_v42 }
  0xbd   :  { %1854 = vmatprep.mubr.bf16.mxu0 %v2704_v39 }
  0xbf   :  { %2254 = vmatpush1.bf16.msra.mxu1 %v3308_v48 }
  0xc2   :  { %1742 = vmatmul.mubr.bf16.vlgmr.msra.gmra.mrb[32].mxu1 %v2688_v12 }
  0xc3   :  { %1855 = vmatmul.mubr.bf16.gmra.mrb[32].mxu0 %v2691_v16  ;;  %1751 = vmatprep.mubr.bf16.mxu1 %v2692_v22 }
  0xc4   :  { %1864 = vmatprep.mubr.bf16.mxu0 %v2704_v39 }
  0xca   :  { %1752 = vmatmul.mubr.bf16.gmra.mrb[36].mxu1 %v2694_v24 }
  0xcb   :  { %1865 = vmatmul.mubr.bf16.gmra.mrb[36].mxu0 %v2695_v26  ;;  %1761 = vmatprep.mubr.bf16.mxu1 %v2696_v28 }
  0xcc   :  { %1874 = vmatprep.mubr.bf16.mxu0 %v2704_v39 }
  0xd2   :  { %1762 = vmatmul.mubr.bf16.gmra.mrb[40].mxu1 %v2698_v29 }
  0xd3   :  { %1875 = vmatmul.mubr.bf16.gmra.mrb[40].mxu0 %v2699_v30  ;;  %1771 = vmatprep.mubr.bf16.mxu1 %v2700_v32 }
  0xd4   :  { %1884 = vmatprep.mubr.bf16.mxu0 %v2704_v39 }
  0xda   :  { %1772 = vmatmul.mubr.bf16.gmra.mrb[44].mxu1 %v2702_v34 }
  0xdb   :  { %1885 = vmatmul.mubr.bf16.gmra.mrb[44].mxu0 %v2703_v35 }
 0x136   :  { %v1630_v36 = vpop.f32.mrb[16].mxu0 }
 0x137   :  { %v1632_v38 = vpop.f32.mrb[17].mxu0 }
 0x138   :  { %v1634_v40 = vpop.f32.mrb[18].mxu0 }
 0x139   :  { %v1636_v41 = vpop.f32.mrb[19].mxu0 }
 0x13e   :  { %v1640_v42 = vpop.f32.mrb[20].mxu0 }
 0x13f   :  { %v1642_v44 = vpop.f32.mrb[21].mxu0 }
 0x140   :  { %v1644_v46 = vpop.f32.mrb[22].mxu0 }
 0x141   :  { %v1646_v47 = vpop.f32.mrb[23].mxu0 }
 0x146   :  { %v1650_v48 = vpop.f32.mrb[24].mxu0 }
 0x147   :  { %v1652_v50 = vpop.f32.mrb[25].mxu0 }
 0x148   :  { %v3514_v52 = vpop.f32.mrb[26].mxu0 }
 0x149   :  { %v3516_v53 = vpop.f32.mrb[27].mxu0 }
 0x14e   :  { %v3518_v54 = vpop.f32.mrb[28].mxu0 }
 0x14f   :  { %v3520_v56 = vpop.f32.mrb[29].mxu0 }
 0x150   :  { %v3522_v58 = vpop.f32.mrb[30].mxu0 }
 0x151   :  { %v3524_v59 = vpop.f32.mrb[31].mxu0 }
 0x155   :  { %v1477_v60 = vpop.f32.mrb[0].mxu1 }
 0x156   :  { %v1479_v3 = vpop.f32.mrb[1].mxu1 }
 0x157   :  { %v1481_v62 = vpop.f32.mrb[2].mxu1 }
 0x158   :  { %v1483_v7 = vpop.f32.mrb[3].mxu1 }
 0x15d   :  { %v1487_v9 = vpop.f32.mrb[4].mxu1 }
 0x15e   :  { %v1489_v0 = vpop.f32.mrb[5].mxu1 }
 0x15f   :  { %v1491_v1 = vpop.f32.mrb[6].mxu1 }
 0x160   :  { %v1493_v13 = vpop.f32.mrb[7].mxu1 }
 0x165   :  { %v1497_v15 = vpop.f32.mrb[8].mxu1 }
 0x166   :  { %v1499_v2 = vpop.f32.mrb[9].mxu1 }
 0x167   :  { %v1501_v5 = vpop.f32.mrb[10].mxu1 }
 0x168   :  { %v1503_v19 = vpop.f32.mrb[11].mxu1 }
 0x16d   :  { %v1507_v21 = vpop.f32.mrb[12].mxu1 }
 0x16e   :  { %v1509_v8 = vpop.f32.mrb[13].mxu1 }
 0x16f   :  { %v3526_v10 = vpop.f32.mrb[14].mxu1 }
 0x170   :  { %v3528_v25 = vpop.f32.mrb[15].mxu1 }
 0x175   :  { %v1517_v27 = vpop.f32.mrb[16].mxu1 }
 0x176   :  { %v1816_v11 = vpop.f32.mrb[0].mxu0  ;;  %v3530_v14 = vadd.f32 %v1630_v36, %v1517_v27  ;;  %v1519_v33 = vpop.f32.mrb[17].mxu1 }
 0x177   :  { %v3532_v31 = vadd.f32 %v1816_v11, %v1477_v60  ;;  %v1818_v17 = vpop.f32.mrb[1].mxu0  ;;  %v3534_v18 = vadd.f32 %v1632_v38, %v1519_v33  ;;  %v1521_v39 = vpop.f32.mrb[18].mxu1 }
 0x178   :  { %v3536_v37 = vadd.f32 %v1818_v17, %v1479_v3  ;;  %v1820_v20 = vpop.f32.mrb[2].mxu0  ;;  %v3538_v43 = vadd.f32 %v1634_v40, %v1521_v39  ;;  %v1523_v49 = vpop.f32.mrb[19].mxu1 }
 0x179   :  { %v3540_v45 = vadd.f32 %v1820_v20, %v1481_v62  ;;  %v1822_v23 = vpop.f32.mrb[3].mxu0  ;;  %v3542_v51 = vadd.f32 %v1636_v41, %v1523_v49 }
 0x17a   :  { %v3544_v55 = vadd.f32 %v1822_v23, %v1483_v7 }
 0x17d   :  { %v1527_v57 = vpop.f32.mrb[20].mxu1 }
 0x17e   :  { %v1826_v61 = vpop.f32.mrb[4].mxu0  ;;  %v3546_v63 = vadd.f32 %v1640_v42, %v1527_v57  ;;  %v1529_v6 = vpop.f32.mrb[21].mxu1 }
 0x17f   :  { %v3548_v4 = vadd.f32 %v1826_v61, %v1487_v9  ;;  %v1828_v12 = vpop.f32.mrb[5].mxu0  ;;  %v3550_v16 = vadd.f32 %v1642_v44, %v1529_v6  ;;  %v1531_v24 = vpop.f32.mrb[22].mxu1 }
 0x180   :  { %v3552_v22 = vadd.f32 %v1828_v12, %v1489_v0  ;;  %v1830_v26 = vpop.f32.mrb[6].mxu0  ;;  %v3554_v28 = vadd.f32 %v1644_v46, %v1531_v24  ;;  %v1533_v30 = vpop.f32.mrb[23].mxu1 }
 0x181   :  { %v3556_v29 = vadd.f32 %v1830_v26, %v1491_v1  ;;  %v1832_v32 = vpop.f32.mrb[7].mxu0  ;;  %v3558_v34 = vadd.f32 %v1646_v47, %v1533_v30 }
 0x182   :  { %v3560_v35 = vadd.f32 %v1832_v32, %v1493_v13 }
 0x185   :  { %v1537_v36 = vpop.f32.mrb[24].mxu1 }
 0x186   :  { %v1836_v38 = vpop.f32.mrb[8].mxu0  ;;  %v3562_v40 = vadd.f32 %v1650_v48, %v1537_v36  ;;  %v1539_v42 = vpop.f32.mrb[25].mxu1 }
 0x187   :  { %v3564_v41 = vadd.f32 %v1836_v38, %v1497_v15  ;;  %v1838_v44 = vpop.f32.mrb[9].mxu0  ;;  %v3566_v60 = vadd.f32 %v1652_v50, %v1539_v42  ;;  %v1541_v3 = vpop.f32.mrb[26].mxu1 }
 0x188   :  { %v3568_v46 = vadd.f32 %v1838_v44, %v1499_v2  ;;  %v1840_v62 = vpop.f32.mrb[10].mxu0  ;;  %v3573_v7 = vadd.f32 %v3514_v52, %v1541_v3  ;;  %v1543_v48 = vpop.f32.mrb[27].mxu1 }
 0x189   :  { %v1895_v47 = vmax.f32 %v3532_v31, %v3564_v41  ;;  %v3575_v9 = vadd.f32 %v1840_v62, %v1501_v5  ;;  %v1842_v0 = vpop.f32.mrb[11].mxu0  ;;  %v3580_v50 = vadd.f32 %v3516_v53, %v1543_v48 }
 0x18a   :  { %v1896_v1 = vmax.f32 %v3536_v37, %v3568_v46  ;;  %v3582_v13 = vadd.f32 %v1842_v0, %v1503_v19 }
 0x18b   :  { %v1897_v15 = vmax.f32 %v3540_v45, %v3575_v9 }
 0x18c   :  { %v1898_v2 = vmax.f32 %v3544_v55, %v3582_v13 }
 0x18d   :  { %v1547_v52 = vpop.f32.mrb[28].mxu1 }
 0x18e   :  { %v1846_v27 = vpop.f32.mrb[12].mxu0  ;;  %v3589_v5 = vadd.f32 %v3518_v54, %v1547_v52  ;;  %v1549_v33 = vpop.f32.mrb[29].mxu1 }
 0x18f   :  { %v3591_v11 = vadd.f32 %v1846_v27, %v1507_v21  ;;  %v1848_v17 = vpop.f32.mrb[13].mxu0  ;;  %v3594_v53 = vadd.f32 %v3520_v56, %v1549_v33  ;;  %v1551_v39 = vpop.f32.mrb[30].mxu1 }
 0x190   :  { %v3596_v19 = vadd.f32 %v1848_v17, %v1509_v8  ;;  %v1850_v20 = vpop.f32.mrb[14].mxu0  ;;  %v3601_v23 = vadd.f32 %v3522_v58, %v1551_v39  ;;  %v1553_v21 = vpop.f32.mrb[31].mxu1  ;;  %v1921_v39 = vlaneseq }
 0x191   :  { %v1899_v49 = vmax.f32 %v3548_v4, %v3591_v11  ;;  %v3604_v54 = vadd.f32 %v1850_v20, %v3526_v10  ;;  %v1852_v57 = vpop.f32.mrb[15].mxu0  ;;  %v3609_v56 = vadd.f32 %v3524_v59, %v1553_v21 }
 0x192   :  { %v1900_v61 = vmax.f32 %v3552_v22, %v3596_v19  ;;  %v3612_v8 = vadd.f32 %v1852_v57, %v3528_v25 }
 0x193   :  { %v1901_v6 = vmax.f32 %v3556_v29, %v3604_v54 }
 0x194   :  { %v1902_v58 = vmax.f32 %v3560_v35, %v3612_v8 }
 0x195   :  { %v1743_v12 = vpop.f32.mrb[32].mxu1 }
 0x196   :  { %v1856_v10 = vpop.f32.mrb[32].mxu0  ;;  %v2272_v24 = vadd.f32 %v3530_v14, %v1743_v12  ;;  %v1745_v26 = vpop.f32.mrb[33].mxu1 }
 0x197   :  { %v1858_v30 = vpop.f32.mrb[33].mxu0  ;;  %v2275_v32 = vadd.f32 %v3534_v18, %v1745_v26  ;;  %v1747_v36 = vpop.f32.mrb[34].mxu1 }
 0x198   :  { %v1860_v59 = vpop.f32.mrb[34].mxu0  ;;  %v2273_v38 = vadd.f32 %v2272_v24, %v1856_v10  ;;  %v2278_v25 = vadd.f32 %v3538_v43, %v1747_v36  ;;  %v1749_v42 = vpop.f32.mrb[35].mxu1 }
 0x199   :  { %v1862_v44 = vpop.f32.mrb[35].mxu0  ;;  %v2276_v3 = vadd.f32 %v2275_v32, %v1858_v30  ;;  %v2281_v62 = vadd.f32 %v3542_v51, %v1749_v42 }
 0x19a   :  { %v2279_v48 = vadd.f32 %v2278_v25, %v1860_v59 }
 0x19b   :  { %v2282_v0 = vadd.f32 %v2281_v62, %v1862_v44 }
 0x19d   :  { %v1753_v52 = vpop.f32.mrb[36].mxu1 }
 0x19e   :  { %v1866_v27 = vpop.f32.mrb[36].mxu0  ;;  %v2284_v14 = vadd.f32 %v3546_v63, %v1753_v52  ;;  %v1755_v33 = vpop.f32.mrb[37].mxu1  ;;  %v1922_v63 = vshrl.u32 %v1921_v39, 7 }
 0x19f   :  { %v1868_v17 = vpop.f32.mrb[37].mxu0  ;;  %v2287_v18 = vadd.f32 %v3550_v16, %v1755_v33  ;;  %v1757_v20 = vpop.f32.mrb[38].mxu1 }
 0x1a0   :  { %v1870_v21 = vpop.f32.mrb[38].mxu0  ;;  %v3624_v57 = vadd.f32 %v2284_v14, %v1866_v27  ;;  %v2290_v43 = vadd.f32 %v3554_v28, %v1757_v20  ;;  %v1759_v12 = vpop.f32.mrb[39].mxu1  ;;  %v1923_v59 = vsub.s32 0, %v1922_v63  ;;  %v1919_v28 = vld [vmem:[%s3690_s2] sm:$0x3]  ;;  %v1927_v62 = vsub.s32 1, %v1922_v63 }
 0x1a1   :  { %v1872_v10 = vpop.f32.mrb[39].mxu0  ;;  %v3627_v51 = vadd.f32 %v2287_v18, %v1868_v17  ;;  %v2293_v24 = vadd.f32 %v3558_v34, %v1759_v12 }
 0x1a2   :  { %v3630_v26 = vadd.f32 %v2290_v43, %v1870_v21  ;;  %v1924_v20 = vrot.slane %v1919_v28, %v1923_v59  ;;  %v1947_v43 = vld [vmem:[%s3691_s3] sm:$0x3] }
 0x1a3   :  { %v3632_v30 = vadd.f32 %v2293_v24, %v1872_v10  ;;  %v1956_v41 = vrot.slane %v1947_v43, %v1927_v62 }
 0x1a5   :  { %v1763_v32 = vpop.f32.mrb[40].mxu1 }
 0x1a6   :  { %v1876_v36 = vpop.f32.mrb[40].mxu0  ;;  %v2296_v16 = vadd.f32 %v3562_v40, %v1763_v32  ;;  %v1765_v25 = vpop.f32.mrb[41].mxu1 }
 0x1a7   :  { %v1878_v42 = vpop.f32.mrb[41].mxu0  ;;  %v2299_v44 = vadd.f32 %v3566_v60, %v1765_v25  ;;  %v1767_v34 = vpop.f32.mrb[42].mxu1  ;;  %v1928_v60 = vrot.slane %v1919_v28, %v1927_v62 }
 0x1a8   :  { %v1880_v52 = vpop.f32.mrb[42].mxu0  ;;  %v2297_v27 = vadd.f32 %v2296_v16, %v1876_v36  ;;  %v2302_v14 = vadd.f32 %v3573_v7, %v1767_v34  ;;  %v1769_v33 = vpop.f32.mrb[43].mxu1  ;;  %v1952_v16 = vrot.slane %v1947_v43, %v1923_v59 }
 0x1a9   :  { %v1882_v17 = vpop.f32.mrb[43].mxu0  ;;  %v2300_v39 = vadd.f32 %v2299_v44, %v1878_v42  ;;  %v2305_v40 = vadd.f32 %v3580_v50, %v1769_v33 }
 0x1aa   :  { %v1903_v18 = vmax.f32 %v2273_v38, %v2297_v27  ;;  %v2303_v21 = vadd.f32 %v2302_v14, %v1880_v52 }
 0x1ab   :  { %v1904_v12 = vmax.f32 %v2276_v3, %v2300_v39  ;;  %v2306_v10 = vadd.f32 %v2305_v40, %v1882_v17 }
 0x1ac   :  { %v1911_v24 = vmax.f32 %v1895_v47, %v1903_v18  ;;  %v1905_v7 = vmax.f32 %v2279_v48, %v2303_v21 }
 0x1ad   :  { %v1912_v63 = vmax.f32 %v1896_v1, %v1904_v12  ;;  %v1906_v50 = vmax.f32 %v2282_v0, %v2306_v10  ;;  %v1773_v38 = vpop.f32.mrb[44].mxu1 }
 0x1ae   :  { %v1886_v32 = vpop.f32.mrb[44].mxu0  ;;  %v1931_v36 = vadd.f32 %v1924_v20, %v1911_v24  ;;  %v1913_v3 = vmax.f32 %v1897_v15, %v1905_v7  ;;  %v2308_v25 = vadd.f32 %v3589_v5, %v1773_v38  ;;  %v1775_v42 = vpop.f32.mrb[45].mxu1 }
 0x1af   :  { %v1888_v28 = vpop.f32.mrb[45].mxu0  ;;  %v1932_v31 = vadd.f32 %v1928_v60, %v1912_v63  ;;  %v1914_v37 = vmax.f32 %v1898_v2, %v1906_v50  ;;  %v2311_v46 = vadd.f32 %v3594_v53, %v1775_v42  ;;  %v1777_v47 = vpop.f32.mrb[46].mxu1 }
 0x1b0   :  { %v1890_v1 = vpop.f32.mrb[46].mxu0  ;;  %v1939_v48 = vmax.f32 %v1931_v36, 0.0  ;;  %v1933_v0 = vadd.f32 %v1924_v20, %v1913_v3  ;;  %v2309_v59 = vadd.f32 %v2308_v25, %v1886_v32  ;;  %v2314_v45 = vadd.f32 %v3601_v23, %v1777_v47  ;;  %v1779_v9 = vpop.f32.mrb[47].mxu1 }
 0x1b1   :  { %v1892_v15 = vpop.f32.mrb[47].mxu0  ;;  %v1940_v5 = vmax.f32 %v1932_v31, 0.0  ;;  %v1934_v44 = vadd.f32 %v1928_v60, %v1914_v37  ;;  %v2312_v34 = vadd.f32 %v2311_v46, %v1888_v28  ;;  %v2317_v62 = vadd.f32 %v3609_v56, %v1779_v9 }
 0x1b2   :  { %v1959_v52 = vadd.f32 %v1952_v16, %v1939_v48  ;;  %v1941_v27 = vmax.f32 %v1933_v0, 0.0  ;;  %v1907_v55 = vmax.f32 %v3624_v57, %v2309_v59  ;;  %v2315_v13 = vadd.f32 %v2314_v45, %v1890_v1 }
 0x1b3   :  { %v1960_v2 = vadd.f32 %v1956_v41, %v1940_v5  ;;  %v1942_v53 = vmax.f32 %v1934_v44, 0.0  ;;  %v1908_v14 = vmax.f32 %v3627_v51, %v2312_v34  ;;  %v2318_v33 = vadd.f32 %v2317_v62, %v1892_v15 }
 0x1b4   :  { %v1961_v17 = vadd.f32 %v1952_v16, %v1941_v27  ;;  %v1915_v23 = vmax.f32 %v1899_v49, %v1907_v55  ;;  %v1909_v39 = vmax.f32 %v3630_v26, %v2315_v13 }
 0x1b5   :  { %v2219_v40 = vpack.c.bf16 %v1960_v2, %v1959_v52  ;;  %v1962_v18 = vadd.f32 %v1956_v41, %v1942_v53  ;;  %v1916_v56 = vmax.f32 %v1900_v61, %v1908_v14  ;;  %v1910_v57 = vmax.f32 %v3632_v30, %v2318_v33 }
 0x1b6   :  { %v1935_v21 = vadd.f32 %v1924_v20, %v1915_v23  ;;  %v1917_v51 = vmax.f32 %v1901_v6, %v1909_v39 }
 0x1b7   :  { %1991 = vst [vmem:[%s3692_s4] sm:$0xff] %v2219_v40  ;;  %v2220_v4 = vpack.c.bf16 %v1962_v18, %v1961_v17  ;;  %v1936_v11 = vadd.f32 %v1928_v60, %v1916_v56  ;;  %v1918_v49 = vmax.f32 %v1902_v58, %v1910_v57 }
 0x1b8   :  { %v1943_v26 = vmax.f32 %v1935_v21, 0.0  ;;  %v1937_v22 = vadd.f32 %v1924_v20, %v1917_v51 }
 0x1b9   :  { %1992 = vst [vmem:[%s3692_s4 + $0x8] sm:$0xff] %v2220_v4  ;;  %v1944_v19 = vmax.f32 %v1936_v11, 0.0  ;;  %v1938_v61 = vadd.f32 %v1928_v60, %v1918_v49 }
 0x1ba   :  { %v1963_v29 = vadd.f32 %v1952_v16, %v1943_v26  ;;  %v1945_v54 = vmax.f32 %v1937_v22, 0.0 }
 0x1bb   :  { %v1964_v6 = vadd.f32 %v1956_v41, %v1944_v19  ;;  %v1946_v30 = vmax.f32 %v1938_v61, 0.0 }
 0x1bc   :  { %v1965_v43 = vadd.f32 %v1952_v16, %v1945_v54 }
 0x1bd   :  { %v2221_v12 = vpack.c.bf16 %v1964_v6, %v1963_v29  ;;  %v1966_v10 = vadd.f32 %v1956_v41, %v1946_v30 }
 0x1bf   :  { %1993 = vst [vmem:[%s3692_s4 + $0x10] sm:$0xff] %v2221_v12  ;;  %v2222_v35 = vpack.c.bf16 %v1966_v10, %v1965_v43 }
 0x1c1   :  { %1994 = vst [vmem:[%s3692_s4 + $0x18] sm:$0xff] %v2222_v35 }

// kernel: my_model_forward.7
= control target key start
LH: loop header
LB: loop body
LE: loop exit
PB: predicated region body
PF: predicated region fallthrough
CT: control target
= control target key end

     0   :  { %s15558_s0 = inlined_call_operand.vmem [shape: bf16[32,2304], index: 0, kind: input, shape index: {}]   ;;  %s15559_s1 = inlined_call_operand.vmem [shape: f32[2,8], index: 1, kind: input, shape index: {}]   ;;  %s15560_s2 = inlined_call_operand.vmem [shape: bf16[2304,512], index: 2, kind: input, shape index: {}]   ;;  %s15561_s3 = inlined_call_operand.vmem [shape: f32[1,512], index: 3, kind: input, shape index: {}]   ;;  %s15562_s4 = inlined_call_operand.vmem [shape: f32[1,512], index: 4, kind: input, shape index: {}]   ;;  %s15563_s5 = inlined_call_operand.vmem [shape: bf16[512,1024], index: 5, kind: input, shape index: {}]   ;;  %s15564_s6 = inlined_call_operand.vmem [shape: f32[1,1024], index: 6, kind: input, shape index: {}]   ;;  %s15565_s7 = inlined_call_operand.vmem [shape: f32[1,1024], index: 7, kind: input, shape index: {}]   ;;  %s15566_s8 = inlined_call_operand.vmem [shape: bf16[1024,512], index: 8, kind: input, shape index: {}]   ;;  %s15567_s9 = inlined_call_operand.vmem [shape: f32[1,512], index: 9, kind: input, shape index: {}]   ;;  %s15568_s10 = inlined_call_operand.vmem [shape: f32[1,512], index: 10, kind: input, shape index: {}]   ;;  %s15569_s11 = inlined_call_operand.vmem [shape: bf16[512,128], index: 11, kind: input, shape index: {}]   ;;  %s15570_s12 = inlined_call_operand.vmem [shape: f32[1,128], index: 12, kind: input, shape index: {}]   ;;  %s15571_s13 = inlined_call_operand.hbm [shape: f32[2,128], index: 13, kind: output, shape index: {}]  }
   0x1   :  { %v10526_v0 = vld [vmem:[%s15560_s2 + $0x4] ss:$16 sps:$4 sm:$0xff]   ;;  %v10528_v1 = vld [vmem:[%s15560_s2 + $0xc] ss:$16 sps:$4 sm:$0xff]   ;;  %v10530_v2 = vld [vmem:[%s15560_s2] ss:$16 sps:$4 sm:$0xff]  }
   0x2   :  { %3718 = vmatprep.subr.bf16.mxu0 %v10526_v0  ;;  %v10531_v3 = vld [vmem:[%s15560_s2 + $0x8] ss:$16 sps:$4 sm:$0xff]   ;;  %4195 = vmatprep.subr.bf16.mxu1 %v10528_v1  ;;  %v10532_v4 = vld [vmem:[%s15560_s2 + $0x24] ss:$16 sps:$4 sm:$0xff]   ;;  %v10534_v5 = vld [vmem:[%s15560_s2 + $0x2c] ss:$16 sps:$4 sm:$0xff]  }
   0x3   :  { %3719 = vmatpush1.bf16.msra.mxu0 %v10530_v2  ;;  %4196 = vmatpush1.bf16.msra.mxu1 %v10531_v3  ;;  %v10536_v6 = vld [vmem:[%s15560_s2 + $0x20] ss:$16 sps:$4 sm:$0xff]   ;;  %v10537_v7 = vld [vmem:[%s15560_s2 + $0x28] ss:$16 sps:$4 sm:$0xff]   ;;  %v10538_v8 = vld [vmem:[%s15560_s2 + $0x44] ss:$16 sps:$4 sm:$0xff]  }
   0x4   :  { %3720 = vmatprep.subr.bf16.mxu0 %v10532_v4  ;;  %4197 = vmatprep.subr.bf16.mxu1 %v10534_v5  ;;  %v10540_v9 = vld [vmem:[%s15560_s2 + $0x4c] ss:$16 sps:$4 sm:$0xff]   ;;  %v10542_v10 = vld [vmem:[%s15560_s2 + $0x40] ss:$16 sps:$4 sm:$0xff]   ;;  %v10543_v11 = vld [vmem:[%s15560_s2 + $0x48] ss:$16 sps:$4 sm:$0xff]  }
   0x5   :  { %v10544_v12 = vld [vmem:[%s15560_s2 + $0x64] ss:$16 sps:$4 sm:$0xff]   ;;  %v10546_v13 = vld [vmem:[%s15560_s2 + $0x6c] ss:$16 sps:$4 sm:$0xff]   ;;  %v10548_v14 = vld [vmem:[%s15560_s2 + $0x60] ss:$16 sps:$4 sm:$0xff]  }
   0x6   :  { %v10549_v15 = vld [vmem:[%s15560_s2 + $0x68] ss:$16 sps:$4 sm:$0xff]   ;;  %v10550_v16 = vld [vmem:[%s15560_s2 + $0x84] ss:$16 sps:$4 sm:$0xff]   ;;  %v10552_v17 = vld [vmem:[%s15560_s2 + $0x8c] ss:$16 sps:$4 sm:$0xff]  }
   0x7   :  { %3721 = vmatpush1.bf16.msra.mxu0 %v10536_v6  ;;  %4198 = vmatpush1.bf16.msra.mxu1 %v10537_v7  ;;  %v10554_v18 = vld [vmem:[%s15560_s2 + $0x80] ss:$16 sps:$4 sm:$0xff]   ;;  %v10555_v19 = vld [vmem:[%s15560_s2 + $0x88] ss:$16 sps:$4 sm:$0xff]   ;;  %v10556_v20 = vld [vmem:[%s15560_s2 + $0xa4] ss:$16 sps:$4 sm:$0xff]  }
   0x8   :  { %3722 = vmatprep.subr.bf16.mxu0 %v10538_v8  ;;  %4199 = vmatprep.subr.bf16.mxu1 %v10540_v9  ;;  %v10558_v21 = vld [vmem:[%s15560_s2 + $0xac] ss:$16 sps:$4 sm:$0xff]   ;;  %v10560_v22 = vld [vmem:[%s15560_s2 + $0xa0] ss:$16 sps:$4 sm:$0xff]   ;;  %v10561_v23 = vld [vmem:[%s15560_s2 + $0xa8] ss:$16 sps:$4 sm:$0xff]  }
   0x9   :  { %v10562_v24 = vld [vmem:[%s15560_s2 + $0xc4] ss:$16 sps:$4 sm:$0xff]   ;;  %v10564_v25 = vld [vmem:[%s15560_s2 + $0xcc] ss:$16 sps:$4 sm:$0xff]   ;;  %v10566_v26 = vld [vmem:[%s15560_s2 + $0xc0] ss:$16 sps:$4 sm:$0xff]  }
   0xa   :  { %v10567_v27 = vld [vmem:[%s15560_s2 + $0xc8] ss:$16 sps:$4 sm:$0xff]   ;;  %v10568_v28 = vld [vmem:[%s15560_s2 + $0xe4] ss:$16 sps:$4 sm:$0xff]   ;;  %v10570_v29 = vld [vmem:[%s15560_s2 + $0xec] ss:$16 sps:$4 sm:$0xff]  }
   0xb   :  { %3723 = vmatpush1.bf16.msra.mxu0 %v10542_v10  ;;  %4200 = vmatpush1.bf16.msra.mxu1 %v10543_v11  ;;  %v10572_v30 = vld [vmem:[%s15560_s2 + $0xe0] ss:$16 sps:$4 sm:$0xff]   ;;  %v10573_v31 = vld [vmem:[%s15560_s2 + $0xe8] ss:$16 sps:$4 sm:$0xff]   ;;  %v10574_v32 = vld [vmem:[%s15560_s2 + $0x104] ss:$16 sps:$4 sm:$0xff]  }
   0xc   :  { %3724 = vmatprep.subr.bf16.mxu0 %v10544_v12  ;;  %4201 = vmatprep.subr.bf16.mxu1 %v10546_v13  ;;  %v10576_v33 = vld [vmem:[%s15560_s2 + $0x10c] ss:$16 sps:$4 sm:$0xff]   ;;  %v10578_v34 = vld [vmem:[%s15560_s2 + $0x100] ss:$16 sps:$4 sm:$0xff]   ;;  %v10579_v35 = vld [vmem:[%s15560_s2 + $0x108] ss:$16 sps:$4 sm:$0xff]  }
   0xd   :  { %v10580_v36 = vld [vmem:[%s15560_s2 + $0x124] ss:$16 sps:$4 sm:$0xff]   ;;  %v10582_v37 = vld [vmem:[%s15560_s2 + $0x12c] ss:$16 sps:$4 sm:$0xff]   ;;  %v10584_v38 = vld [vmem:[%s15560_s2 + $0x120] ss:$16 sps:$4 sm:$0xff]  }
   0xe   :  { %v10585_v39 = vld [vmem:[%s15560_s2 + $0x128] ss:$16 sps:$4 sm:$0xff]   ;;  %v10586_v40 = vld [vmem:[%s15560_s2 + $0x144] ss:$16 sps:$4 sm:$0xff]   ;;  %v10588_v41 = vld [vmem:[%s15560_s2 + $0x14c] ss:$16 sps:$4 sm:$0xff]  }
   0xf   :  { %3725 = vmatpush1.bf16.msra.mxu0 %v10548_v14  ;;  %4202 = vmatpush1.bf16.msra.mxu1 %v10549_v15  ;;  %v10590_v42 = vld [vmem:[%s15560_s2 + $0x140] ss:$16 sps:$4 sm:$0xff]   ;;  %v10591_v43 = vld [vmem:[%s15560_s2 + $0x148] ss:$16 sps:$4 sm:$0xff]   ;;  %v10592_v44 = vld [vmem:[%s15560_s2 + $0x164] ss:$16 sps:$4 sm:$0xff]  }
  0x10   :  { %3726 = vmatprep.subr.bf16.mxu0 %v10550_v16  ;;  %4203 = vmatprep.subr.bf16.mxu1 %v10552_v17  ;;  %v10594_v45 = vld [vmem:[%s15560_s2 + $0x16c] ss:$16 sps:$4 sm:$0xff]   ;;  %v10596_v46 = vld [vmem:[%s15560_s2 + $0x160] ss:$16 sps:$4 sm:$0xff]   ;;  %v10597_v47 = vld [vmem:[%s15560_s2 + $0x168] ss:$16 sps:$4 sm:$0xff]  }
  0x11   :  { %v10624_v48 = vld [vmem:[%s15558_s0 + $0x4] ss:$72 sps:$4 sm:$0xff]   ;;  %v10602_v51 = vld [vmem:[%s15560_s2 + $0x180] ss:$16 sps:$4 sm:$0xff]   ;;  %v10603_v52 = vld [vmem:[%s15560_s2 + $0x188] ss:$16 sps:$4 sm:$0xff]  }
  0x12   :  { %v10598_v49 = vld [vmem:[%s15560_s2 + $0x184] ss:$16 sps:$4 sm:$0xff]   ;;  %v10600_v50 = vld [vmem:[%s15560_s2 + $0x18c] ss:$16 sps:$4 sm:$0xff]   ;;  %3750 = vmatprep.mubr.bf16.mxu0 %v10624_v48  ;;  %4227 = vmatprep.mubr.bf16.mxu1 %v10624_v48  ;;  %v10608_v55 = vld [vmem:[%s15560_s2 + $0x1a0] ss:$16 sps:$4 sm:$0xff]  }
  0x13   :  { %3727 = vmatpush1.bf16.msra.mxu0 %v10554_v18  ;;  %4204 = vmatpush1.bf16.msra.mxu1 %v10555_v19  ;;  %v10604_v53 = vld [vmem:[%s15560_s2 + $0x1a4] ss:$16 sps:$4 sm:$0xff]   ;;  %v10606_v54 = vld [vmem:[%s15560_s2 + $0x1ac] ss:$16 sps:$4 sm:$0xff]   ;;  %v10609_v56 = vld [vmem:[%s15560_s2 + $0x1a8] ss:$16 sps:$4 sm:$0xff]  }
  0x14   :  { %3728 = vmatprep.subr.bf16.mxu0 %v10556_v20  ;;  %4205 = vmatprep.subr.bf16.mxu1 %v10558_v21  ;;  %v10610_v57 = vld [vmem:[%s15560_s2 + $0x1c4] ss:$16 sps:$4 sm:$0xff]   ;;  %v10612_v58 = vld [vmem:[%s15560_s2 + $0x1cc] ss:$16 sps:$4 sm:$0xff]   ;;  %v10614_v59 = vld [vmem:[%s15560_s2 + $0x1c0] ss:$16 sps:$4 sm:$0xff]  }
  0x15   :  { %v10615_v60 = vld [vmem:[%s15560_s2 + $0x1c8] ss:$16 sps:$4 sm:$0xff]   ;;  %v10616_v61 = vld [vmem:[%s15560_s2 + $0x1e4] ss:$16 sps:$4 sm:$0xff]   ;;  %v10618_v62 = vld [vmem:[%s15560_s2 + $0x1ec] ss:$16 sps:$4 sm:$0xff]  }
  0x16   :  { %v10620_v63 = vld [vmem:[%s15560_s2 + $0x1e0] ss:$16 sps:$4 sm:$0xff]   ;;  %v10621_v0 = vld [vmem:[%s15560_s2 + $0x1e8] ss:$16 sps:$4 sm:$0xff]   ;;  %v10627_v1 = vld [vmem:[%s15560_s2 + $0x204] ss:$16 sps:$4 sm:$0xff]  }
  0x17   :  { %3729 = vmatpush1.bf16.msra.mxu0 %v10560_v22  ;;  %4206 = vmatpush1.bf16.msra.mxu1 %v10561_v23  ;;  %v10630_v2 = vld [vmem:[%s15560_s2 + $0x20c] ss:$16 sps:$4 sm:$0xff]   ;;  %v10622_v3 = vld [vmem:[%s15558_s0] ss:$72 sps:$4 sm:$0xff]   ;;  %v10633_v6 = vld [vmem:[%s15560_s2 + $0x224] ss:$16 sps:$4 sm:$0xff]  }
  0x18   :  { %3730 = vmatprep.subr.bf16.mxu0 %v10562_v24  ;;  %4207 = vmatprep.subr.bf16.mxu1 %v10564_v25  ;;  %v10625_v4 = vld [vmem:[%s15560_s2 + $0x200] ss:$16 sps:$4 sm:$0xff]   ;;  %v10628_v5 = vld [vmem:[%s15560_s2 + $0x208] ss:$16 sps:$4 sm:$0xff]   ;;  %v10636_v7 = vld [vmem:[%s15560_s2 + $0x22c] ss:$16 sps:$4 sm:$0xff]  }
  0x19   :  { %v10631_v8 = vld [vmem:[%s15560_s2 + $0x220] ss:$16 sps:$4 sm:$0xff]   ;;  %v10634_v9 = vld [vmem:[%s15560_s2 + $0x228] ss:$16 sps:$4 sm:$0xff]   ;;  %v10639_v10 = vld [vmem:[%s15560_s2 + $0x244] ss:$16 sps:$4 sm:$0xff]  }
  0x1a   :  { %v10642_v11 = vld [vmem:[%s15560_s2 + $0x24c] ss:$16 sps:$4 sm:$0xff]   ;;  %v10637_v12 = vld [vmem:[%s15560_s2 + $0x240] ss:$16 sps:$4 sm:$0xff]   ;;  %v10640_v13 = vld [vmem:[%s15560_s2 + $0x248] ss:$16 sps:$4 sm:$0xff]  }
  0x1b   :  { %3731 = vmatpush1.bf16.msra.mxu0 %v10566_v26  ;;  %4208 = vmatpush1.bf16.msra.mxu1 %v10567_v27  ;;  %v10645_v14 = vld [vmem:[%s15560_s2 + $0x264] ss:$16 sps:$4 sm:$0xff]   ;;  %v10648_v15 = vld [vmem:[%s15560_s2 + $0x26c] ss:$16 sps:$4 sm:$0xff]   ;;  %v10643_v16 = vld [vmem:[%s15560_s2 + $0x260] ss:$16 sps:$4 sm:$0xff]  }
  0x1c   :  { %3732 = vmatprep.subr.bf16.mxu0 %v10568_v28  ;;  %4209 = vmatprep.subr.bf16.mxu1 %v10570_v29  ;;  %v10646_v17 = vld [vmem:[%s15560_s2 + $0x268] ss:$16 sps:$4 sm:$0xff]   ;;  %v10651_v18 = vld [vmem:[%s15560_s2 + $0x284] ss:$16 sps:$4 sm:$0xff]   ;;  %v10654_v19 = vld [vmem:[%s15560_s2 + $0x28c] ss:$16 sps:$4 sm:$0xff]  }
  0x1d   :  { %v10649_v20 = vld [vmem:[%s15560_s2 + $0x280] ss:$16 sps:$4 sm:$0xff]   ;;  %v10652_v21 = vld [vmem:[%s15560_s2 + $0x288] ss:$16 sps:$4 sm:$0xff]   ;;  %v10657_v22 = vld [vmem:[%s15560_s2 + $0x2a4] ss:$16 sps:$4 sm:$0xff]  }
  0x1e   :  { %v10660_v23 = vld [vmem:[%s15560_s2 + $0x2ac] ss:$16 sps:$4 sm:$0xff]   ;;  %v10655_v25 = vld [vmem:[%s15560_s2 + $0x2a0] ss:$16 sps:$4 sm:$0xff]   ;;  %v10658_v26 = vld [vmem:[%s15560_s2 + $0x2a8] ss:$16 sps:$4 sm:$0xff]  }
  0x1f   :  { %3733 = vmatpush1.bf16.msra.mxu0 %v10572_v30  ;;  %4210 = vmatpush1.bf16.msra.mxu1 %v10573_v31  ;;  %v10709_v24 = vld [vmem:[%s15558_s0 + $0x94] ss:$72 sps:$4 sm:$0xff]   ;;  %v10717_v29 = vld [vmem:[%s15558_s0 + $0x90] ss:$72 sps:$4 sm:$0xff]  }
  0x20   :  { %3734 = vmatprep.subr.bf16.mxu0 %v10574_v32  ;;  %4211 = vmatprep.subr.bf16.mxu1 %v10576_v33  ;;  %v10663_v27 = vld [vmem:[%s15560_s2 + $0x2c4] ss:$16 sps:$4 sm:$0xff]   ;;  %v10666_v28 = vld [vmem:[%s15560_s2 + $0x2cc] ss:$16 sps:$4 sm:$0xff]   ;;  %v10661_v30 = vld [vmem:[%s15560_s2 + $0x2c0] ss:$16 sps:$4 sm:$0xff]  }
  0x21   :  { %v10664_v31 = vld [vmem:[%s15560_s2 + $0x2c8] ss:$16 sps:$4 sm:$0xff]   ;;  %v10669_v32 = vld [vmem:[%s15560_s2 + $0x2e4] ss:$16 sps:$4 sm:$0xff]   ;;  %v10672_v33 = vld [vmem:[%s15560_s2 + $0x2ec] ss:$16 sps:$4 sm:$0xff]  }
  0x22   :  { %v10688_v48 = vld [vmem:[%s15560_s2 + $0x348] ss:$16 sps:$4 sm:$0xff]  }
  0x23   :  { %3735 = vmatpush1.bf16.msra.mxu0 %v10578_v34  ;;  %4212 = vmatpush1.bf16.msra.mxu1 %v10579_v35  ;;  %v10726_v34 = vld [vmem:[%s15558_s0 + $0xc] ss:$72 sps:$4 sm:$0xff]   ;;  %v10667_v35 = vld [vmem:[%s15560_s2 + $0x2e0] ss:$16 sps:$4 sm:$0xff]  }
  0x24   :  { %3736 = vmatprep.subr.bf16.mxu0 %v10580_v36  ;;  %4213 = vmatprep.subr.bf16.mxu1 %v10582_v37  ;;  %v10670_v36 = vld [vmem:[%s15560_s2 + $0x2e8] ss:$16 sps:$4 sm:$0xff]   ;;  %v10675_v37 = vld [vmem:[%s15560_s2 + $0x304] ss:$16 sps:$4 sm:$0xff]  }
  0x27   :  { %3737 = vmatpush1.bf16.msra.mxu0 %v10584_v38  ;;  %4214 = vmatpush1.bf16.msra.mxu1 %v10585_v39  ;;  %v10678_v38 = vld [vmem:[%s15560_s2 + $0x30c] ss:$16 sps:$4 sm:$0xff]   ;;  %v10673_v39 = vld [vmem:[%s15560_s2 + $0x300] ss:$16 sps:$4 sm:$0xff]  }
  0x28   :  { %3738 = vmatprep.subr.bf16.mxu0 %v10586_v40  ;;  %4215 = vmatprep.subr.bf16.mxu1 %v10588_v41  ;;  %v10676_v40 = vld [vmem:[%s15560_s2 + $0x308] ss:$16 sps:$4 sm:$0xff]   ;;  %v10681_v41 = vld [vmem:[%s15560_s2 + $0x324] ss:$16 sps:$4 sm:$0xff]  }
  0x2b   :  { %3739 = vmatpush1.bf16.msra.mxu0 %v10590_v42  ;;  %4216 = vmatpush1.bf16.msra.mxu1 %v10591_v43  ;;  %v10684_v42 = vld [vmem:[%s15560_s2 + $0x32c] ss:$16 sps:$4 sm:$0xff]   ;;  %v10679_v43 = vld [vmem:[%s15560_s2 + $0x320] ss:$16 sps:$4 sm:$0xff]  }
  0x2c   :  { %3740 = vmatprep.subr.bf16.mxu0 %v10592_v44  ;;  %4217 = vmatprep.subr.bf16.mxu1 %v10594_v45  ;;  %v10682_v44 = vld [vmem:[%s15560_s2 + $0x328] ss:$16 sps:$4 sm:$0xff]   ;;  %v10687_v45 = vld [vmem:[%s15560_s2 + $0x344] ss:$16 sps:$4 sm:$0xff]  }
  0x2f   :  { %3741 = vmatpush1.bf16.msra.mxu0 %v10596_v46  ;;  %4218 = vmatpush1.bf16.msra.mxu1 %v10597_v47  ;;  %v10690_v46 = vld [vmem:[%s15560_s2 + $0x34c] ss:$16 sps:$4 sm:$0xff]   ;;  %v10685_v47 = vld [vmem:[%s15560_s2 + $0x340] ss:$16 sps:$4 sm:$0xff]  }
  0x30   :  { %3742 = vmatprep.subr.bf16.mxu0 %v10598_v49  ;;  %4219 = vmatprep.subr.bf16.mxu1 %v10600_v50  ;;  %v10693_v49 = vld [vmem:[%s15560_s2 + $0x364] ss:$16 sps:$4 sm:$0xff]   ;;  %v10696_v50 = vld [vmem:[%s15560_s2 + $0x36c] ss:$16 sps:$4 sm:$0xff]  }
  0x33   :  { %3743 = vmatpush1.bf16.msra.mxu0 %v10602_v51  ;;  %4220 = vmatpush1.bf16.msra.mxu1 %v10603_v52  ;;  %v10691_v51 = vld [vmem:[%s15560_s2 + $0x360] ss:$16 sps:$4 sm:$0xff]   ;;  %v10694_v52 = vld [vmem:[%s15560_s2 + $0x368] ss:$16 sps:$4 sm:$0xff]  }
  0x34   :  { %3744 = vmatprep.subr.bf16.mxu0 %v10604_v53  ;;  %4221 = vmatprep.subr.bf16.mxu1 %v10606_v54  ;;  %v10699_v53 = vld [vmem:[%s15560_s2 + $0x384] ss:$16 sps:$4 sm:$0xff]   ;;  %v10702_v54 = vld [vmem:[%s15560_s2 + $0x38c] ss:$16 sps:$4 sm:$0xff]  }
  0x37   :  { %3745 = vmatpush1.bf16.msra.mxu0 %v10608_v55  ;;  %4222 = vmatpush1.bf16.msra.mxu1 %v10609_v56  ;;  %v10697_v55 = vld [vmem:[%s15560_s2 + $0x380] ss:$16 sps:$4 sm:$0xff]   ;;  %v10700_v56 = vld [vmem:[%s15560_s2 + $0x388] ss:$16 sps:$4 sm:$0xff]  }
  0x38   :  { %3746 = vmatprep.subr.bf16.mxu0 %v10610_v57  ;;  %4223 = vmatprep.subr.bf16.mxu1 %v10612_v58  ;;  %v10705_v57 = vld [vmem:[%s15560_s2 + $0x3a4] ss:$16 sps:$4 sm:$0xff]   ;;  %v10708_v58 = vld [vmem:[%s15560_s2 + $0x3ac] ss:$16 sps:$4 sm:$0xff]  }
  0x3b   :  { %3747 = vmatpush1.bf16.msra.mxu0 %v10614_v59  ;;  %4224 = vmatpush1.bf16.msra.mxu1 %v10615_v60  ;;  %v10703_v59 = vld [vmem:[%s15560_s2 + $0x3a0] ss:$16 sps:$4 sm:$0xff]   ;;  %v10706_v60 = vld [vmem:[%s15560_s2 + $0x3a8] ss:$16 sps:$4 sm:$0xff]  }
  0x3c   :  { %3748 = vmatprep.subr.bf16.mxu0 %v10616_v61  ;;  %4225 = vmatprep.subr.bf16.mxu1 %v10618_v62  ;;  %v10713_v61 = vld [vmem:[%s15560_s2 + $0x3c4] ss:$16 sps:$4 sm:$0xff]   ;;  %v10716_v62 = vld [vmem:[%s15560_s2 + $0x3cc] ss:$16 sps:$4 sm:$0xff]  }
  0x3f   :  { %3749 = vmatpush1.bf16.msra.mxu0 %v10620_v63  ;;  %4226 = vmatpush1.bf16.msra.mxu1 %v10621_v0  ;;  %v10711_v63 = vld [vmem:[%s15560_s2 + $0x3c0] ss:$16 sps:$4 sm:$0xff]   ;;  %v10714_v0 = vld [vmem:[%s15560_s2 + $0x3c8] ss:$16 sps:$4 sm:$0xff]  }
  0x40   :  { %3771 = vmatprep.subr.bf16.mxu0 %v10627_v1  ;;  %4248 = vmatprep.subr.bf16.mxu1 %v10630_v2  ;;  %v10720_v1 = vld [vmem:[%s15560_s2 + $0x3e4] ss:$16 sps:$4 sm:$0xff]   ;;  %v10723_v2 = vld [vmem:[%s15560_s2 + $0x3ec] ss:$16 sps:$4 sm:$0xff]  }
  0x42   :  { %3751 = vmatmul.mubr.bf16.vlgmr.msra.gmra.mrb[0].mxu0 %v10622_v3  ;;  %4228 = vmatmul.mubr.bf16.vlgmr.msra.gmra.mrb[0].mxu1 %v10622_v3  ;;  %v10718_v3 = vld [vmem:[%s15560_s2 + $0x3e0] ss:$16 sps:$4 sm:$0xff]  }
  0x43   :  { %3772 = vmatpush1.bf16.msra.mxu0 %v10625_v4  ;;  %4249 = vmatpush1.bf16.msra.mxu1 %v10628_v5  ;;  %v10721_v4 = vld [vmem:[%s15560_s2 + $0x3e8] ss:$16 sps:$4 sm:$0xff]   ;;  %v10729_v5 = vld [vmem:[%s15560_s2 + $0x404] ss:$16 sps:$4 sm:$0xff]  }
  0x44   :  { %3773 = vmatprep.subr.bf16.mxu0 %v10633_v6  ;;  %4250 = vmatprep.subr.bf16.mxu1 %v10636_v7  ;;  %v10732_v6 = vld [vmem:[%s15560_s2 + $0x40c] ss:$16 sps:$4 sm:$0xff]   ;;  %v10724_v7 = vld [vmem:[%s15558_s0 + $0x8] ss:$72 sps:$4 sm:$0xff]  }
  0x45   :  { %3760 = vmatprep.mubr.bf16.mxu0 %v10709_v24  ;;  %4237 = vmatprep.mubr.bf16.mxu1 %v10709_v24  ;;  %v10748_v24 = vld [vmem:[%s15560_s2 + $0x468] ss:$16 sps:$4 sm:$0xff]  }
  0x47   :  { %3774 = vmatpush1.bf16.msra.mxu0 %v10631_v8  ;;  %4251 = vmatpush1.bf16.msra.mxu1 %v10634_v9  ;;  %v10727_v8 = vld [vmem:[%s15560_s2 + $0x400] ss:$16 sps:$4 sm:$0xff]   ;;  %v10730_v9 = vld [vmem:[%s15560_s2 + $0x408] ss:$16 sps:$4 sm:$0xff]  }
  0x48   :  { %3775 = vmatprep.subr.bf16.mxu0 %v10639_v10  ;;  %4252 = vmatprep.subr.bf16.mxu1 %v10642_v11  ;;  %v10735_v10 = vld [vmem:[%s15560_s2 + $0x424] ss:$16 sps:$4 sm:$0xff]   ;;  %v10738_v11 = vld [vmem:[%s15560_s2 + $0x42c] ss:$16 sps:$4 sm:$0xff]  }
  0x4a   :  { %3761 = vmatmul.mubr.bf16.gmra.mrb[4].mxu0 %v10717_v29  ;;  %4238 = vmatmul.mubr.bf16.gmra.mrb[4].mxu1 %v10717_v29  ;;  %v10759_v29 = vld [vmem:[%s15560_s2 + $0x4a4] ss:$16 sps:$4 sm:$0xff]  }
  0x4b   :  { %3776 = vmatpush1.bf16.msra.mxu0 %v10637_v12  ;;  %4253 = vmatpush1.bf16.msra.mxu1 %v10640_v13  ;;  %v10811_v12 = vld [vmem:[%s15558_s0 + $0x9c] ss:$72 sps:$4 sm:$0xff]   ;;  %v10733_v13 = vld [vmem:[%s15560_s2 + $0x420] ss:$16 sps:$4 sm:$0xff]  }
  0x4c   :  { %3777 = vmatprep.subr.bf16.mxu0 %v10645_v14  ;;  %4254 = vmatprep.subr.bf16.mxu1 %v10648_v15  ;;  %v10736_v14 = vld [vmem:[%s15560_s2 + $0x428] ss:$16 sps:$4 sm:$0xff]   ;;  %v10741_v15 = vld [vmem:[%s15560_s2 + $0x444] ss:$16 sps:$4 sm:$0xff]  }
  0x4d   :  { %3803 = vmatprep.mubr.bf16.mxu0 %v10726_v34  ;;  %4280 = vmatprep.mubr.bf16.mxu1 %v10726_v34  ;;  %v10768_v34 = vld [vmem:[%s15560_s2 + $0x4cc] ss:$16 sps:$4 sm:$0xff]  }
  0x4f   :  { %3778 = vmatpush1.bf16.msra.mxu0 %v10643_v16  ;;  %4255 = vmatpush1.bf16.msra.mxu1 %v10646_v17  ;;  %v10744_v16 = vld [vmem:[%s15560_s2 + $0x44c] ss:$16 sps:$4 sm:$0xff]   ;;  %v10739_v17 = vld [vmem:[%s15560_s2 + $0x440] ss:$16 sps:$4 sm:$0xff]  }
  0x50   :  { %3779 = vmatprep.subr.bf16.mxu0 %v10651_v18  ;;  %4256 = vmatprep.subr.bf16.mxu1 %v10654_v19  ;;  %v10742_v18 = vld [vmem:[%s15560_s2 + $0x448] ss:$16 sps:$4 sm:$0xff]  }
  0x51   :  { %v10819_v19 = vld [vmem:[%s15558_s0 + $0x98] ss:$72 sps:$4 sm:$0xff]  }
  0x53   :  { %3780 = vmatpush1.bf16.msra.mxu0 %v10649_v20  ;;  %4257 = vmatpush1.bf16.msra.mxu1 %v10652_v21  ;;  %v10747_v20 = vld [vmem:[%s15560_s2 + $0x464] ss:$16 sps:$4 sm:$0xff]   ;;  %v10750_v21 = vld [vmem:[%s15560_s2 + $0x46c] ss:$16 sps:$4 sm:$0xff]  }
  0x54   :  { %3781 = vmatprep.subr.bf16.mxu0 %v10657_v22  ;;  %4258 = vmatprep.subr.bf16.mxu1 %v10660_v23  ;;  %v10828_v22 = vld [vmem:[%s15558_s0 + $0x14] ss:$72 sps:$4 sm:$0xff]   ;;  %v10745_v23 = vld [vmem:[%s15560_s2 + $0x460] ss:$16 sps:$4 sm:$0xff]  }
  0x57   :  { %3782 = vmatpush1.bf16.msra.mxu0 %v10655_v25  ;;  %4259 = vmatpush1.bf16.msra.mxu1 %v10658_v26  ;;  %v10753_v25 = vld [vmem:[%s15560_s2 + $0x484] ss:$16 sps:$4 sm:$0xff]   ;;  %v10756_v26 = vld [vmem:[%s15560_s2 + $0x48c] ss:$16 sps:$4 sm:$0xff]  }
  0x58   :  { %3783 = vmatprep.subr.bf16.mxu0 %v10663_v27  ;;  %4260 = vmatprep.subr.bf16.mxu1 %v10666_v28  ;;  %v10751_v27 = vld [vmem:[%s15560_s2 + $0x480] ss:$16 sps:$4 sm:$0xff]   ;;  %v10754_v28 = vld [vmem:[%s15560_s2 + $0x488] ss:$16 sps:$4 sm:$0xff]  }
  0x5b   :  { %3784 = vmatpush1.bf16.msra.mxu0 %v10661_v30  ;;  %4261 = vmatpush1.bf16.msra.mxu1 %v10664_v31  ;;  %v10762_v30 = vld [vmem:[%s15560_s2 + $0x4ac] ss:$16 sps:$4 sm:$0xff]   ;;  %v10757_v31 = vld [vmem:[%s15560_s2 + $0x4a0] ss:$16 sps:$4 sm:$0xff]  }
  0x5c   :  { %3785 = vmatprep.subr.bf16.mxu0 %v10669_v32  ;;  %4262 = vmatprep.subr.bf16.mxu1 %v10672_v33  ;;  %v10760_v32 = vld [vmem:[%s15560_s2 + $0x4a8] ss:$16 sps:$4 sm:$0xff]   ;;  %v10765_v33 = vld [vmem:[%s15560_s2 + $0x4c4] ss:$16 sps:$4 sm:$0xff]  }
  0x5f   :  { %3786 = vmatpush1.bf16.msra.mxu0 %v10667_v35  ;;  %4263 = vmatpush1.bf16.msra.mxu1 %v10670_v36  ;;  %v10763_v35 = vld [vmem:[%s15560_s2 + $0x4c0] ss:$16 sps:$4 sm:$0xff]   ;;  %v10766_v36 = vld [vmem:[%s15560_s2 + $0x4c8] ss:$16 sps:$4 sm:$0xff]  }
  0x60   :  { %3787 = vmatprep.subr.bf16.mxu0 %v10675_v37  ;;  %4264 = vmatprep.subr.bf16.mxu1 %v10678_v38  ;;  %v10771_v37 = vld [vmem:[%s15560_s2 + $0x4e4] ss:$16 sps:$4 sm:$0xff]   ;;  %v10774_v38 = vld [vmem:[%s15560_s2 + $0x4ec] ss:$16 sps:$4 sm:$0xff]  }
  0x63   :  { %3788 = vmatpush1.bf16.msra.mxu0 %v10673_v39  ;;  %4265 = vmatpush1.bf16.msra.mxu1 %v10676_v40  ;;  %v10769_v39 = vld [vmem:[%s15560_s2 + $0x4e0] ss:$16 sps:$4 sm:$0xff]   ;;  %v10772_v40 = vld [vmem:[%s15560_s2 + $0x4e8] ss:$16 sps:$4 sm:$0xff]  }
  0x64   :  { %3789 = vmatprep.subr.bf16.mxu0 %v10681_v41  ;;  %4266 = vmatprep.subr.bf16.mxu1 %v10684_v42  ;;  %v10777_v41 = vld [vmem:[%s15560_s2 + $0x504] ss:$16 sps:$4 sm:$0xff]   ;;  %v10780_v42 = vld [vmem:[%s15560_s2 + $0x50c] ss:$16 sps:$4 sm:$0xff]  }
  0x67   :  { %3790 = vmatpush1.bf16.msra.mxu0 %v10679_v43  ;;  %4267 = vmatpush1.bf16.msra.mxu1 %v10682_v44  ;;  %v10775_v43 = vld [vmem:[%s15560_s2 + $0x500] ss:$16 sps:$4 sm:$0xff]   ;;  %v10778_v44 = vld [vmem:[%s15560_s2 + $0x508] ss:$16 sps:$4 sm:$0xff]  }
  0x68   :  { %3791 = vmatprep.subr.bf16.mxu0 %v10687_v45  ;;  %4268 = vmatprep.subr.bf16.mxu1 %v10690_v46  ;;  %v10783_v45 = vld [vmem:[%s15560_s2 + $0x524] ss:$16 sps:$4 sm:$0xff]   ;;  %v10786_v46 = vld [vmem:[%s15560_s2 + $0x52c] ss:$16 sps:$4 sm:$0xff]  }
  0x6b   :  { %3792 = vmatpush1.bf16.msra.mxu0 %v10685_v47  ;;  %4269 = vmatpush1.bf16.msra.mxu1 %v10688_v48  ;;  %v10781_v47 = vld [vmem:[%s15560_s2 + $0x520] ss:$16 sps:$4 sm:$0xff]   ;;  %v10784_v48 = vld [vmem:[%s15560_s2 + $0x528] ss:$16 sps:$4 sm:$0xff]  }
  0x6c   :  { %3793 = vmatprep.subr.bf16.mxu0 %v10693_v49  ;;  %4270 = vmatprep.subr.bf16.mxu1 %v10696_v50  ;;  %v10789_v49 = vld [vmem:[%s15560_s2 + $0x544] ss:$16 sps:$4 sm:$0xff]   ;;  %v10792_v50 = vld [vmem:[%s15560_s2 + $0x54c] ss:$16 sps:$4 sm:$0xff]  }
  0x6f   :  { %3794 = vmatpush1.bf16.msra.mxu0 %v10691_v51  ;;  %4271 = vmatpush1.bf16.msra.mxu1 %v10694_v52  ;;  %v10787_v51 = vld [vmem:[%s15560_s2 + $0x540] ss:$16 sps:$4 sm:$0xff]   ;;  %v10790_v52 = vld [vmem:[%s15560_s2 + $0x548] ss:$16 sps:$4 sm:$0xff]  }
  0x70   :  { %3795 = vmatprep.subr.bf16.mxu0 %v10699_v53  ;;  %4272 = vmatprep.subr.bf16.mxu1 %v10702_v54  ;;  %v10795_v53 = vld [vmem:[%s15560_s2 + $0x564] ss:$16 sps:$4 sm:$0xff]   ;;  %v10798_v54 = vld [vmem:[%s15560_s2 + $0x56c] ss:$16 sps:$4 sm:$0xff]  }
  0x73   :  { %3796 = vmatpush1.bf16.msra.mxu0 %v10697_v55  ;;  %4273 = vmatpush1.bf16.msra.mxu1 %v10700_v56  ;;  %v10793_v55 = vld [vmem:[%s15560_s2 + $0x560] ss:$16 sps:$4 sm:$0xff]   ;;  %v10796_v56 = vld [vmem:[%s15560_s2 + $0x568] ss:$16 sps:$4 sm:$0xff]  }
  0x74   :  { %3797 = vmatprep.subr.bf16.mxu0 %v10705_v57  ;;  %4274 = vmatprep.subr.bf16.mxu1 %v10708_v58  ;;  %v10801_v57 = vld [vmem:[%s15560_s2 + $0x584] ss:$16 sps:$4 sm:$0xff]   ;;  %v10804_v58 = vld [vmem:[%s15560_s2 + $0x58c] ss:$16 sps:$4 sm:$0xff]  }
  0x77   :  { %3798 = vmatpush1.bf16.msra.mxu0 %v10703_v59  ;;  %4275 = vmatpush1.bf16.msra.mxu1 %v10706_v60  ;;  %v10799_v59 = vld [vmem:[%s15560_s2 + $0x580] ss:$16 sps:$4 sm:$0xff]   ;;  %v10802_v60 = vld [vmem:[%s15560_s2 + $0x588] ss:$16 sps:$4 sm:$0xff]  }
  0x78   :  { %3799 = vmatprep.subr.bf16.mxu0 %v10713_v61  ;;  %4276 = vmatprep.subr.bf16.mxu1 %v10716_v62  ;;  %v10807_v61 = vld [vmem:[%s15560_s2 + $0x5a4] ss:$16 sps:$4 sm:$0xff]   ;;  %v10810_v62 = vld [vmem:[%s15560_s2 + $0x5ac] ss:$16 sps:$4 sm:$0xff]  }
  0x7b   :  { %3800 = vmatpush1.bf16.msra.mxu0 %v10711_v63  ;;  %4277 = vmatpush1.bf16.msra.mxu1 %v10714_v0  ;;  %v10805_v63 = vld [vmem:[%s15560_s2 + $0x5a0] ss:$16 sps:$4 sm:$0xff]   ;;  %v10808_v0 = vld [vmem:[%s15560_s2 + $0x5a8] ss:$16 sps:$4 sm:$0xff]  }
  0x7c   :  { %3801 = vmatprep.subr.bf16.mxu0 %v10720_v1  ;;  %4278 = vmatprep.subr.bf16.mxu1 %v10723_v2  ;;  %v10815_v1 = vld [vmem:[%s15560_s2 + $0x5c4] ss:$16 sps:$4 sm:$0xff]   ;;  %v10818_v2 = vld [vmem:[%s15560_s2 + $0x5cc] ss:$16 sps:$4 sm:$0xff]  }
  0x7f   :  { %3802 = vmatpush1.bf16.msra.mxu0 %v10718_v3  ;;  %4279 = vmatpush1.bf16.msra.mxu1 %v10721_v4  ;;  %v10813_v3 = vld [vmem:[%s15560_s2 + $0x5c0] ss:$16 sps:$4 sm:$0xff]   ;;  %v10816_v4 = vld [vmem:[%s15560_s2 + $0x5c8] ss:$16 sps:$4 sm:$0xff]  }
  0x80   :  { %3824 = vmatprep.subr.bf16.mxu0 %v10729_v5  ;;  %4301 = vmatprep.subr.bf16.mxu1 %v10732_v6  ;;  %v10822_v5 = vld [vmem:[%s15560_s2 + $0x5e4] ss:$16 sps:$4 sm:$0xff]   ;;  %v10825_v6 = vld [vmem:[%s15560_s2 + $0x5ec] ss:$16 sps:$4 sm:$0xff]  }
  0x82   :  { %3804 = vmatmul.mubr.bf16.vlgmr.msra.gmra.mrb[0].mxu0 %v10724_v7  ;;  %4281 = vmatmul.mubr.bf16.vlgmr.msra.gmra.mrb[0].mxu1 %v10724_v7  ;;  %v10820_v7 = vld [vmem:[%s15560_s2 + $0x5e0] ss:$16 sps:$4 sm:$0xff]  }
  0x83   :  { %3825 = vmatpush1.bf16.msra.mxu0 %v10727_v8  ;;  %4302 = vmatpush1.bf16.msra.mxu1 %v10730_v9  ;;  %v10823_v8 = vld [vmem:[%s15560_s2 + $0x5e8] ss:$16 sps:$4 sm:$0xff]   ;;  %v10831_v9 = vld [vmem:[%s15560_s2 + $0x604] ss:$16 sps:$4 sm:$0xff]  }
  0x84   :  { %3826 = vmatprep.subr.bf16.mxu0 %v10735_v10  ;;  %4303 = vmatprep.subr.bf16.mxu1 %v10738_v11  ;;  %v10834_v10 = vld [vmem:[%s15560_s2 + $0x60c] ss:$16 sps:$4 sm:$0xff]   ;;  %v10826_v11 = vld [vmem:[%s15558_s0 + $0x10] ss:$72 sps:$4 sm:$0xff]  }
  0x85   :  { %3813 = vmatprep.mubr.bf16.mxu0 %v10811_v12  ;;  %4290 = vmatprep.mubr.bf16.mxu1 %v10811_v12  ;;  %v10829_v12 = vld [vmem:[%s15560_s2 + $0x600] ss:$16 sps:$4 sm:$0xff]  }
  0x87   :  { %3827 = vmatpush1.bf16.msra.mxu0 %v10733_v13  ;;  %4304 = vmatpush1.bf16.msra.mxu1 %v10736_v14  ;;  %v10832_v13 = vld [vmem:[%s15560_s2 + $0x608] ss:$16 sps:$4 sm:$0xff]   ;;  %v10837_v14 = vld [vmem:[%s15560_s2 + $0x624] ss:$16 sps:$4 sm:$0xff]  }
  0x88   :  { %3828 = vmatprep.subr.bf16.mxu0 %v10741_v15  ;;  %4305 = vmatprep.subr.bf16.mxu1 %v10744_v16  ;;  %v10840_v15 = vld [vmem:[%s15560_s2 + $0x62c] ss:$16 sps:$4 sm:$0xff]  }
  0x89   :  { %v10913_v16 = vld [vmem:[%s15558_s0 + $0xa4] ss:$72 sps:$4 sm:$0xff]  }
  0x8a   :  { %3814 = vmatmul.mubr.bf16.gmra.mrb[4].mxu0 %v10819_v19  ;;  %4291 = vmatmul.mubr.bf16.gmra.mrb[4].mxu1 %v10819_v19  ;;  %v10843_v19 = vld [vmem:[%s15560_s2 + $0x644] ss:$16 sps:$4 sm:$0xff]  }
  0x8b   :  { %3829 = vmatpush1.bf16.msra.mxu0 %v10739_v17  ;;  %4306 = vmatpush1.bf16.msra.mxu1 %v10742_v18  ;;  %v10835_v17 = vld [vmem:[%s15560_s2 + $0x620] ss:$16 sps:$4 sm:$0xff]   ;;  %v10838_v18 = vld [vmem:[%s15560_s2 + $0x628] ss:$16 sps:$4 sm:$0xff]  }
  0x8c   :  { %3830 = vmatprep.subr.bf16.mxu0 %v10747_v20  ;;  %4307 = vmatprep.subr.bf16.mxu1 %v10750_v21  ;;  %v10846_v20 = vld [vmem:[%s15560_s2 + $0x64c] ss:$16 sps:$4 sm:$0xff]   ;;  %v10841_v21 = vld [vmem:[%s15560_s2 + $0x640] ss:$16 sps:$4 sm:$0xff]  }
  0x8d   :  { %3856 = vmatprep.mubr.bf16.mxu0 %v10828_v22  ;;  %4333 = vmatprep.mubr.bf16.mxu1 %v10828_v22  ;;  %v10844_v22 = vld [vmem:[%s15560_s2 + $0x648] ss:$16 sps:$4 sm:$0xff]  }
  0x8f   :  { %3831 = vmatpush1.bf16.msra.mxu0 %v10745_v23  ;;  %4308 = vmatpush1.bf16.msra.mxu1 %v10748_v24  ;;  %v10921_v23 = vld [vmem:[%s15558_s0 + $0xa0] ss:$72 sps:$4 sm:$0xff]   ;;  %v10849_v24 = vld [vmem:[%s15560_s2 + $0x664] ss:$16 sps:$4 sm:$0xff]  }
  0x90   :  { %3832 = vmatprep.subr.bf16.mxu0 %v10753_v25  ;;  %4309 = vmatprep.subr.bf16.mxu1 %v10756_v26  ;;  %v10852_v25 = vld [vmem:[%s15560_s2 + $0x66c] ss:$16 sps:$4 sm:$0xff]  }
  0x91   :  { %v10930_v26 = vld [vmem:[%s15558_s0 + $0x1c] ss:$72 sps:$4 sm:$0xff]  }
  0x93   :  { %3833 = vmatpush1.bf16.msra.mxu0 %v10751_v27  ;;  %4310 = vmatpush1.bf16.msra.mxu1 %v10754_v28  ;;  %v10847_v27 = vld [vmem:[%s15560_s2 + $0x660] ss:$16 sps:$4 sm:$0xff]   ;;  %v10850_v28 = vld [vmem:[%s15560_s2 + $0x668] ss:$16 sps:$4 sm:$0xff]  }
  0x94   :  { %3834 = vmatprep.subr.bf16.mxu0 %v10759_v29  ;;  %4311 = vmatprep.subr.bf16.mxu1 %v10762_v30  ;;  %v10855_v29 = vld [vmem:[%s15560_s2 + $0x684] ss:$16 sps:$4 sm:$0xff]   ;;  %v10858_v30 = vld [vmem:[%s15560_s2 + $0x68c] ss:$16 sps:$4 sm:$0xff]  }
  0x97   :  { %3835 = vmatpush1.bf16.msra.mxu0 %v10757_v31  ;;  %4312 = vmatpush1.bf16.msra.mxu1 %v10760_v32  ;;  %v10853_v31 = vld [vmem:[%s15560_s2 + $0x680] ss:$16 sps:$4 sm:$0xff]   ;;  %v10856_v32 = vld [vmem:[%s15560_s2 + $0x688] ss:$16 sps:$4 sm:$0xff]  }
  0x98   :  { %3836 = vmatprep.subr.bf16.mxu0 %v10765_v33  ;;  %4313 = vmatprep.subr.bf16.mxu1 %v10768_v34  ;;  %v10861_v33 = vld [vmem:[%s15560_s2 + $0x6a4] ss:$16 sps:$4 sm:$0xff]   ;;  %v10864_v34 = vld [vmem:[%s15560_s2 + $0x6ac] ss:$16 sps:$4 sm:$0xff]  }
  0x9b   :  { %3837 = vmatpush1.bf16.msra.mxu0 %v10763_v35  ;;  %4314 = vmatpush1.bf16.msra.mxu1 %v10766_v36  ;;  %v10859_v35 = vld [vmem:[%s15560_s2 + $0x6a0] ss:$16 sps:$4 sm:$0xff]   ;;  %v10862_v36 = vld [vmem:[%s15560_s2 + $0x6a8] ss:$16 sps:$4 sm:$0xff]  }
  0x9c   :  { %3838 = vmatprep.subr.bf16.mxu0 %v10771_v37  ;;  %4315 = vmatprep.subr.bf16.mxu1 %v10774_v38  ;;  %v10867_v37 = vld [vmem:[%s15560_s2 + $0x6c4] ss:$16 sps:$4 sm:$0xff]   ;;  %v10870_v38 = vld [vmem:[%s15560_s2 + $0x6cc] ss:$16 sps:$4 sm:$0xff]  }
  0x9f   :  { %3839 = vmatpush1.bf16.msra.mxu0 %v10769_v39  ;;  %4316 = vmatpush1.bf16.msra.mxu1 %v10772_v40  ;;  %v10865_v39 = vld [vmem:[%s15560_s2 + $0x6c0] ss:$16 sps:$4 sm:$0xff]   ;;  %v10868_v40 = vld [vmem:[%s15560_s2 + $0x6c8] ss:$16 sps:$4 sm:$0xff]  }
  0xa0   :  { %3840 = vmatprep.subr.bf16.mxu0 %v10777_v41  ;;  %4317 = vmatprep.subr.bf16.mxu1 %v10780_v42  ;;  %v10873_v41 = vld [vmem:[%s15560_s2 + $0x6e4] ss:$16 sps:$4 sm:$0xff]   ;;  %v10876_v42 = vld [vmem:[%s15560_s2 + $0x6ec] ss:$16 sps:$4 sm:$0xff]  }
  0xa3   :  { %3841 = vmatpush1.bf16.msra.mxu0 %v10775_v43  ;;  %4318 = vmatpush1.bf16.msra.mxu1 %v10778_v44  ;;  %v10871_v43 = vld [vmem:[%s15560_s2 + $0x6e0] ss:$16 sps:$4 sm:$0xff]   ;;  %v10874_v44 = vld [vmem:[%s15560_s2 + $0x6e8] ss:$16 sps:$4 sm:$0xff]  }
  0xa4   :  { %3842 = vmatprep.subr.bf16.mxu0 %v10783_v45  ;;  %4319 = vmatprep.subr.bf16.mxu1 %v10786_v46  ;;  %v10879_v45 = vld [vmem:[%s15560_s2 + $0x704] ss:$16 sps:$4 sm:$0xff]   ;;  %v10882_v46 = vld [vmem:[%s15560_s2 + $0x70c] ss:$16 sps:$4 sm:$0xff]  }
  0xa7   :  { %3843 = vmatpush1.bf16.msra.mxu0 %v10781_v47  ;;  %4320 = vmatpush1.bf16.msra.mxu1 %v10784_v48  ;;  %v10877_v47 = vld [vmem:[%s15560_s2 + $0x700] ss:$16 sps:$4 sm:$0xff]   ;;  %v10880_v48 = vld [vmem:[%s15560_s2 + $0x708] ss:$16 sps:$4 sm:$0xff]  }
  0xa8   :  { %3844 = vmatprep.subr.bf16.mxu0 %v10789_v49  ;;  %4321 = vmatprep.subr.bf16.mxu1 %v10792_v50  ;;  %v10885_v49 = vld [vmem:[%s15560_s2 + $0x724] ss:$16 sps:$4 sm:$0xff]   ;;  %v10888_v50 = vld [vmem:[%s15560_s2 + $0x72c] ss:$16 sps:$4 sm:$0xff]  }
  0xab   :  { %3845 = vmatpush1.bf16.msra.mxu0 %v10787_v51  ;;  %4322 = vmatpush1.bf16.msra.mxu1 %v10790_v52  ;;  %v10883_v51 = vld [vmem:[%s15560_s2 + $0x720] ss:$16 sps:$4 sm:$0xff]   ;;  %v10886_v52 = vld [vmem:[%s15560_s2 + $0x728] ss:$16 sps:$4 sm:$0xff]  }
  0xac   :  { %3846 = vmatprep.subr.bf16.mxu0 %v10795_v53  ;;  %4323 = vmatprep.subr.bf16.mxu1 %v10798_v54  ;;  %v10891_v53 = vld [vmem:[%s15560_s2 + $0x744] ss:$16 sps:$4 sm:$0xff]   ;;  %v10894_v54 = vld [vmem:[%s15560_s2 + $0x74c] ss:$16 sps:$4 sm:$0xff]  }
  0xaf   :  { %3847 = vmatpush1.bf16.msra.mxu0 %v10793_v55  ;;  %4324 = vmatpush1.bf16.msra.mxu1 %v10796_v56  ;;  %v10889_v55 = vld [vmem:[%s15560_s2 + $0x740] ss:$16 sps:$4 sm:$0xff]   ;;  %v10892_v56 = vld [vmem:[%s15560_s2 + $0x748] ss:$16 sps:$4 sm:$0xff]  }
  0xb0   :  { %3848 = vmatprep.subr.bf16.mxu0 %v10801_v57  ;;  %4325 = vmatprep.subr.bf16.mxu1 %v10804_v58  ;;  %v10897_v57 = vld [vmem:[%s15560_s2 + $0x764] ss:$16 sps:$4 sm:$0xff]   ;;  %v10900_v58 = vld [vmem:[%s15560_s2 + $0x76c] ss:$16 sps:$4 sm:$0xff]  }
  0xb3   :  { %3849 = vmatpush1.bf16.msra.mxu0 %v10799_v59  ;;  %4326 = vmatpush1.bf16.msra.mxu1 %v10802_v60  ;;  %v10895_v59 = vld [vmem:[%s15560_s2 + $0x760] ss:$16 sps:$4 sm:$0xff]   ;;  %v10898_v60 = vld [vmem:[%s15560_s2 + $0x768] ss:$16 sps:$4 sm:$0xff]  }
  0xb4   :  { %3850 = vmatprep.subr.bf16.mxu0 %v10807_v61  ;;  %4327 = vmatprep.subr.bf16.mxu1 %v10810_v62  ;;  %v10903_v61 = vld [vmem:[%s15560_s2 + $0x784] ss:$16 sps:$4 sm:$0xff]   ;;  %v10906_v62 = vld [vmem:[%s15560_s2 + $0x78c] ss:$16 sps:$4 sm:$0xff]  }
  0xb7   :  { %3851 = vmatpush1.bf16.msra.mxu0 %v10805_v63  ;;  %4328 = vmatpush1.bf16.msra.mxu1 %v10808_v0  ;;  %v10901_v63 = vld [vmem:[%s15560_s2 + $0x780] ss:$16 sps:$4 sm:$0xff]   ;;  %v10904_v0 = vld [vmem:[%s15560_s2 + $0x788] ss:$16 sps:$4 sm:$0xff]  }
  0xb8   :  { %3852 = vmatprep.subr.bf16.mxu0 %v10815_v1  ;;  %4329 = vmatprep.subr.bf16.mxu1 %v10818_v2  ;;  %v10909_v1 = vld [vmem:[%s15560_s2 + $0x7a4] ss:$16 sps:$4 sm:$0xff]   ;;  %v10912_v2 = vld [vmem:[%s15560_s2 + $0x7ac] ss:$16 sps:$4 sm:$0xff]  }
  0xbb   :  { %3853 = vmatpush1.bf16.msra.mxu0 %v10813_v3  ;;  %4330 = vmatpush1.bf16.msra.mxu1 %v10816_v4  ;;  %v10907_v3 = vld [vmem:[%s15560_s2 + $0x7a0] ss:$16 sps:$4 sm:$0xff]   ;;  %v10910_v4 = vld [vmem:[%s15560_s2 + $0x7a8] ss:$16 sps:$4 sm:$0xff]  }
  0xbc   :  { %3854 = vmatprep.subr.bf16.mxu0 %v10822_v5  ;;  %4331 = vmatprep.subr.bf16.mxu1 %v10825_v6  ;;  %v10917_v5 = vld [vmem:[%s15560_s2 + $0x7c4] ss:$16 sps:$4 sm:$0xff]   ;;  %v10920_v6 = vld [vmem:[%s15560_s2 + $0x7cc] ss:$16 sps:$4 sm:$0xff]  }
  0xbf   :  { %3855 = vmatpush1.bf16.msra.mxu0 %v10820_v7  ;;  %4332 = vmatpush1.bf16.msra.mxu1 %v10823_v8  ;;  %v10915_v7 = vld [vmem:[%s15560_s2 + $0x7c0] ss:$16 sps:$4 sm:$0xff]   ;;  %v10918_v8 = vld [vmem:[%s15560_s2 + $0x7c8] ss:$16 sps:$4 sm:$0xff]  }
  0xc0   :  { %3877 = vmatprep.subr.bf16.mxu0 %v10831_v9  ;;  %4354 = vmatprep.subr.bf16.mxu1 %v10834_v10  ;;  %v10924_v9 = vld [vmem:[%s15560_s2 + $0x7e4] ss:$16 sps:$4 sm:$0xff]   ;;  %v10927_v10 = vld [vmem:[%s15560_s2 + $0x7ec] ss:$16 sps:$4 sm:$0xff]  }
  0xc2   :  { %3857 = vmatmul.mubr.bf16.vlgmr.msra.gmra.mrb[0].mxu0 %v10826_v11  ;;  %4334 = vmatmul.mubr.bf16.vlgmr.msra.gmra.mrb[0].mxu1 %v10826_v11  ;;  %v10922_v11 = vld [vmem:[%s15560_s2 + $0x7e0] ss:$16 sps:$4 sm:$0xff]  }
  0xc3   :  { %3878 = vmatpush1.bf16.msra.mxu0 %v10829_v12  ;;  %4355 = vmatpush1.bf16.msra.mxu1 %v10832_v13  ;;  %v10925_v12 = vld [vmem:[%s15560_s2 + $0x7e8] ss:$16 sps:$4 sm:$0xff]   ;;  %v10933_v13 = vld [vmem:[%s15560_s2 + $0x804] ss:$16 sps:$4 sm:$0xff]  }
  0xc4   :  { %3879 = vmatprep.subr.bf16.mxu0 %v10837_v14  ;;  %4356 = vmatprep.subr.bf16.mxu1 %v10840_v15  ;;  %v10936_v14 = vld [vmem:[%s15560_s2 + $0x80c] ss:$16 sps:$4 sm:$0xff]   ;;  %v10928_v15 = vld [vmem:[%s15558_s0 + $0x18] ss:$72 sps:$4 sm:$0xff]  }
  0xc5   :  { %3866 = vmatprep.mubr.bf16.mxu0 %v10913_v16  ;;  %4343 = vmatprep.mubr.bf16.mxu1 %v10913_v16  ;;  %v10931_v16 = vld [vmem:[%s15560_s2 + $0x800] ss:$16 sps:$4 sm:$0xff]  }
  0xc7   :  { %3880 = vmatpush1.bf16.msra.mxu0 %v10835_v17  ;;  %4357 = vmatpush1.bf16.msra.mxu1 %v10838_v18  ;;  %v10934_v17 = vld [vmem:[%s15560_s2 + $0x808] ss:$16 sps:$4 sm:$0xff]   ;;  %v10939_v18 = vld [vmem:[%s15560_s2 + $0x824] ss:$16 sps:$4 sm:$0xff]  }
  0xc8   :  { %3881 = vmatprep.subr.bf16.mxu0 %v10843_v19  ;;  %4358 = vmatprep.subr.bf16.mxu1 %v10846_v20  ;;  %v10942_v19 = vld [vmem:[%s15560_s2 + $0x82c] ss:$16 sps:$4 sm:$0xff]  }
  0xc9   :  { %v11015_v20 = vld [vmem:[%s15558_s0 + $0xac] ss:$72 sps:$4 sm:$0xff]  }
  0xca   :  { %3867 = vmatmul.mubr.bf16.gmra.mrb[4].mxu0 %v10921_v23  ;;  %4344 = vmatmul.mubr.bf16.gmra.mrb[4].mxu1 %v10921_v23  ;;  %v10945_v23 = vld [vmem:[%s15560_s2 + $0x844] ss:$16 sps:$4 sm:$0xff]  }
  0xcb   :  { %3882 = vmatpush1.bf16.msra.mxu0 %v10841_v21  ;;  %4359 = vmatpush1.bf16.msra.mxu1 %v10844_v22  ;;  %v10937_v21 = vld [vmem:[%s15560_s2 + $0x820] ss:$16 sps:$4 sm:$0xff]   ;;  %v10940_v22 = vld [vmem:[%s15560_s2 + $0x828] ss:$16 sps:$4 sm:$0xff]  }
  0xcc   :  { %3883 = vmatprep.subr.bf16.mxu0 %v10849_v24  ;;  %4360 = vmatprep.subr.bf16.mxu1 %v10852_v25  ;;  %v10948_v24 = vld [vmem:[%s15560_s2 + $0x84c] ss:$16 sps:$4 sm:$0xff]   ;;  %v10943_v25 = vld [vmem:[%s15560_s2 + $0x840] ss:$16 sps:$4 sm:$0xff]  }
  0xcd   :  { %3909 = vmatprep.mubr.bf16.mxu0 %v10930_v26  ;;  %4386 = vmatprep.mubr.bf16.mxu1 %v10930_v26  ;;  %v11023_v26 = vld [vmem:[%s15558_s0 + $0xa8] ss:$72 sps:$4 sm:$0xff]  }
  0xcf   :  { %3884 = vmatpush1.bf16.msra.mxu0 %v10847_v27  ;;  %4361 = vmatpush1.bf16.msra.mxu1 %v10850_v28  ;;  %v10946_v27 = vld [vmem:[%s15560_s2 + $0x848] ss:$16 sps:$4 sm:$0xff]   ;;  %v10951_v28 = vld [vmem:[%s15560_s2 + $0x864] ss:$16 sps:$4 sm:$0xff]  }
  0xd0   :  { %3885 = vmatprep.subr.bf16.mxu0 %v10855_v29  ;;  %4362 = vmatprep.subr.bf16.mxu1 %v10858_v30  ;;  %v10954_v29 = vld [vmem:[%s15560_s2 + $0x86c] ss:$16 sps:$4 sm:$0xff]  }
  0xd1   :  { %v11032_v30 = vld [vmem:[%s15558_s0 + $0x24] ss:$72 sps:$4 sm:$0xff]  }
  0xd3   :  { %3886 = vmatpush1.bf16.msra.mxu0 %v10853_v31  ;;  %4363 = vmatpush1.bf16.msra.mxu1 %v10856_v32  ;;  %v10949_v31 = vld [vmem:[%s15560_s2 + $0x860] ss:$16 sps:$4 sm:$0xff]   ;;  %v10952_v32 = vld [vmem:[%s15560_s2 + $0x868] ss:$16 sps:$4 sm:$0xff]  }
  0xd4   :  { %3887 = vmatprep.subr.bf16.mxu0 %v10861_v33  ;;  %4364 = vmatprep.subr.bf16.mxu1 %v10864_v34  ;;  %v10957_v33 = vld [vmem:[%s15560_s2 + $0x884] ss:$16 sps:$4 sm:$0xff]   ;;  %v10960_v34 = vld [vmem:[%s15560_s2 + $0x88c] ss:$16 sps:$4 sm:$0xff]  }
  0xd7   :  { %3888 = vmatpush1.bf16.msra.mxu0 %v10859_v35  ;;  %4365 = vmatpush1.bf16.msra.mxu1 %v10862_v36  ;;  %v10955_v35 = vld [vmem:[%s15560_s2 + $0x880] ss:$16 sps:$4 sm:$0xff]   ;;  %v10958_v36 = vld [vmem:[%s15560_s2 + $0x888] ss:$16 sps:$4 sm:$0xff]  }
  0xd8   :  { %3889 = vmatprep.subr.bf16.mxu0 %v10867_v37  ;;  %4366 = vmatprep.subr.bf16.mxu1 %v10870_v38  ;;  %v10963_v37 = vld [vmem:[%s15560_s2 + $0x8a4] ss:$16 sps:$4 sm:$0xff]   ;;  %v10966_v38 = vld [vmem:[%s15560_s2 + $0x8ac] ss:$16 sps:$4 sm:$0xff]  }
  0xdb   :  { %3890 = vmatpush1.bf16.msra.mxu0 %v10865_v39  ;;  %4367 = vmatpush1.bf16.msra.mxu1 %v10868_v40  ;;  %v10961_v39 = vld [vmem:[%s15560_s2 + $0x8a0] ss:$16 sps:$4 sm:$0xff]   ;;  %v10964_v40 = vld [vmem:[%s15560_s2 + $0x8a8] ss:$16 sps:$4 sm:$0xff]  }
  0xdc   :  { %3891 = vmatprep.subr.bf16.mxu0 %v10873_v41  ;;  %4368 = vmatprep.subr.bf16.mxu1 %v10876_v42  ;;  %v10969_v41 = vld [vmem:[%s15560_s2 + $0x8c4] ss:$16 sps:$4 sm:$0xff]   ;;  %v10972_v42 = vld [vmem:[%s15560_s2 + $0x8cc] ss:$16 sps:$4 sm:$0xff]  }
  0xdf   :  { %3892 = vmatpush1.bf16.msra.mxu0 %v10871_v43  ;;  %4369 = vmatpush1.bf16.msra.mxu1 %v10874_v44  ;;  %v10967_v43 = vld [vmem:[%s15560_s2 + $0x8c0] ss:$16 sps:$4 sm:$0xff]   ;;  %v10970_v44 = vld [vmem:[%s15560_s2 + $0x8c8] ss:$16 sps:$4 sm:$0xff]  }
  0xe0   :  { %3893 = vmatprep.subr.bf16.mxu0 %v10879_v45  ;;  %4370 = vmatprep.subr.bf16.mxu1 %v10882_v46  ;;  %v10975_v45 = vld [vmem:[%s15560_s2 + $0x8e4] ss:$16 sps:$4 sm:$0xff]   ;;  %v10978_v46 = vld [vmem:[%s15560_s2 + $0x8ec] ss:$16 sps:$4 sm:$0xff]  }
  0xe3   :  { %3894 = vmatpush1.bf16.msra.mxu0 %v10877_v47  ;;  %4371 = vmatpush1.bf16.msra.mxu1 %v10880_v48  ;;  %v10973_v47 = vld [vmem:[%s15560_s2 + $0x8e0] ss:$16 sps:$4 sm:$0xff]   ;;  %v10976_v48 = vld [vmem:[%s15560_s2 + $0x8e8] ss:$16 sps:$4 sm:$0xff]  }
  0xe4   :  { %3895 = vmatprep.subr.bf16.mxu0 %v10885_v49  ;;  %4372 = vmatprep.subr.bf16.mxu1 %v10888_v50  ;;  %v10981_v49 = vld [vmem:[%s15560_s2 + $0x904] ss:$16 sps:$4 sm:$0xff]   ;;  %v10984_v50 = vld [vmem:[%s15560_s2 + $0x90c] ss:$16 sps:$4 sm:$0xff]  }
  0xe7   :  { %3896 = vmatpush1.bf16.msra.mxu0 %v10883_v51  ;;  %4373 = vmatpush1.bf16.msra.mxu1 %v10886_v52  ;;  %v10979_v51 = vld [vmem:[%s15560_s2 + $0x900] ss:$16 sps:$4 sm:$0xff]   ;;  %v10982_v52 = vld [vmem:[%s15560_s2 + $0x908] ss:$16 sps:$4 sm:$0xff]  }
  0xe8   :  { %3897 = vmatprep.subr.bf16.mxu0 %v10891_v53  ;;  %4374 = vmatprep.subr.bf16.mxu1 %v10894_v54  ;;  %v10987_v53 = vld [vmem:[%s15560_s2 + $0x924] ss:$16 sps:$4 sm:$0xff]   ;;  %v10990_v54 = vld [vmem:[%s15560_s2 + $0x92c] ss:$16 sps:$4 sm:$0xff]  }
  0xeb   :  { %3898 = vmatpush1.bf16.msra.mxu0 %v10889_v55  ;;  %4375 = vmatpush1.bf16.msra.mxu1 %v10892_v56  ;;  %v10985_v55 = vld [vmem:[%s15560_s2 + $0x920] ss:$16 sps:$4 sm:$0xff]   ;;  %v10988_v56 = vld [vmem:[%s15560_s2 + $0x928] ss:$16 sps:$4 sm:$0xff]  }
  0xec   :  { %3899 = vmatprep.subr.bf16.mxu0 %v10897_v57  ;;  %4376 = vmatprep.subr.bf16.mxu1 %v10900_v58  ;;  %v10993_v57 = vld [vmem:[%s15560_s2 + $0x944] ss:$16 sps:$4 sm:$0xff]   ;;  %v10996_v58 = vld [vmem:[%s15560_s2 + $0x94c] ss:$16 sps:$4 sm:$0xff]  }
  0xef   :  { %3900 = vmatpush1.bf16.msra.mxu0 %v10895_v59  ;;  %4377 = vmatpush1.bf16.msra.mxu1 %v10898_v60  ;;  %v10991_v59 = vld [vmem:[%s15560_s2 + $0x940] ss:$16 sps:$4 sm:$0xff]   ;;  %v10994_v60 = vld [vmem:[%s15560_s2 + $0x948] ss:$16 sps:$4 sm:$0xff]  }
  0xf0   :  { %3901 = vmatprep.subr.bf16.mxu0 %v10903_v61  ;;  %4378 = vmatprep.subr.bf16.mxu1 %v10906_v62  ;;  %v10999_v61 = vld [vmem:[%s15560_s2 + $0x964] ss:$16 sps:$4 sm:$0xff]   ;;  %v11002_v62 = vld [vmem:[%s15560_s2 + $0x96c] ss:$16 sps:$4 sm:$0xff]  }
  0xf3   :  { %3902 = vmatpush1.bf16.msra.mxu0 %v10901_v63  ;;  %4379 = vmatpush1.bf16.msra.mxu1 %v10904_v0  ;;  %v10997_v63 = vld [vmem:[%s15560_s2 + $0x960] ss:$16 sps:$4 sm:$0xff]   ;;  %v11000_v0 = vld [vmem:[%s15560_s2 + $0x968] ss:$16 sps:$4 sm:$0xff]  }
  0xf4   :  { %3903 = vmatprep.subr.bf16.mxu0 %v10909_v1  ;;  %4380 = vmatprep.subr.bf16.mxu1 %v10912_v2  ;;  %v11005_v1 = vld [vmem:[%s15560_s2 + $0x984] ss:$16 sps:$4 sm:$0xff]   ;;  %v11008_v2 = vld [vmem:[%s15560_s2 + $0x98c] ss:$16 sps:$4 sm:$0xff]  }
  0xf7   :  { %3904 = vmatpush1.bf16.msra.mxu0 %v10907_v3  ;;  %4381 = vmatpush1.bf16.msra.mxu1 %v10910_v4  ;;  %v11003_v3 = vld [vmem:[%s15560_s2 + $0x980] ss:$16 sps:$4 sm:$0xff]   ;;  %v11006_v4 = vld [vmem:[%s15560_s2 + $0x988] ss:$16 sps:$4 sm:$0xff]  }
  0xf8   :  { %3905 = vmatprep.subr.bf16.mxu0 %v10917_v5  ;;  %4382 = vmatprep.subr.bf16.mxu1 %v10920_v6  ;;  %v11011_v5 = vld [vmem:[%s15560_s2 + $0x9a4] ss:$16 sps:$4 sm:$0xff]   ;;  %v11014_v6 = vld [vmem:[%s15560_s2 + $0x9ac] ss:$16 sps:$4 sm:$0xff]  }
  0xfb   :  { %3906 = vmatpush1.bf16.msra.mxu0 %v10915_v7  ;;  %4383 = vmatpush1.bf16.msra.mxu1 %v10918_v8  ;;  %v11009_v7 = vld [vmem:[%s15560_s2 + $0x9a0] ss:$16 sps:$4 sm:$0xff]   ;;  %v11012_v8 = vld [vmem:[%s15560_s2 + $0x9a8] ss:$16 sps:$4 sm:$0xff]  }
  0xfc   :  { %3907 = vmatprep.subr.bf16.mxu0 %v10924_v9  ;;  %4384 = vmatprep.subr.bf16.mxu1 %v10927_v10  ;;  %v11019_v9 = vld [vmem:[%s15560_s2 + $0x9c4] ss:$16 sps:$4 sm:$0xff]   ;;  %v11022_v10 = vld [vmem:[%s15560_s2 + $0x9cc] ss:$16 sps:$4 sm:$0xff]  }
  0xff   :  { %3908 = vmatpush1.bf16.msra.mxu0 %v10922_v11  ;;  %4385 = vmatpush1.bf16.msra.mxu1 %v10925_v12  ;;  %v11017_v11 = vld [vmem:[%s15560_s2 + $0x9c0] ss:$16 sps:$4 sm:$0xff]   ;;  %v11020_v12 = vld [vmem:[%s15560_s2 + $0x9c8] ss:$16 sps:$4 sm:$0xff]  }
 0x100   :  { %3930 = vmatprep.subr.bf16.mxu0 %v10933_v13  ;;  %4407 = vmatprep.subr.bf16.mxu1 %v10936_v14  ;;  %v11026_v13 = vld [vmem:[%s15560_s2 + $0x9e4] ss:$16 sps:$4 sm:$0xff]   ;;  %v11029_v14 = vld [vmem:[%s15560_s2 + $0x9ec] ss:$16 sps:$4 sm:$0xff]  }
 0x102   :  { %3910 = vmatmul.mubr.bf16.vlgmr.msra.gmra.mrb[0].mxu0 %v10928_v15  ;;  %4387 = vmatmul.mubr.bf16.vlgmr.msra.gmra.mrb[0].mxu1 %v10928_v15  ;;  %v11024_v15 = vld [vmem:[%s15560_s2 + $0x9e0] ss:$16 sps:$4 sm:$0xff]  }
 0x103   :  { %3931 = vmatpush1.bf16.msra.mxu0 %v10931_v16  ;;  %4408 = vmatpush1.bf16.msra.mxu1 %v10934_v17  ;;  %v11027_v16 = vld [vmem:[%s15560_s2 + $0x9e8] ss:$16 sps:$4 sm:$0xff]  }
 0x104   :  { %3932 = vmatprep.subr.bf16.mxu0 %v10939_v18  ;;  %4409 = vmatprep.subr.bf16.mxu1 %v10942_v19  ;;  %v11030_v17 = vld [vmem:[%s15558_s0 + $0x20] ss:$72 sps:$4 sm:$0xff]   ;;  %v11035_v18 = vld [vmem:[%s15560_s2 + $0xa04] ss:$16 sps:$4 sm:$0xff]   ;;  %v11038_v19 = vld [vmem:[%s15560_s2 + $0xa0c] ss:$16 sps:$4 sm:$0xff]  }
 0x105   :  { %3919 = vmatprep.mubr.bf16.mxu0 %v11015_v20  ;;  %4396 = vmatprep.mubr.bf16.mxu1 %v11015_v20  ;;  %v11033_v20 = vld [vmem:[%s15560_s2 + $0xa00] ss:$16 sps:$4 sm:$0xff]  }
 0x107   :  { %3933 = vmatpush1.bf16.msra.mxu0 %v10937_v21  ;;  %4410 = vmatpush1.bf16.msra.mxu1 %v10940_v22  ;;  %v11036_v21 = vld [vmem:[%s15560_s2 + $0xa08] ss:$16 sps:$4 sm:$0xff]   ;;  %v11041_v22 = vld [vmem:[%s15560_s2 + $0xa24] ss:$16 sps:$4 sm:$0xff]  }
 0x108   :  { %3934 = vmatprep.subr.bf16.mxu0 %v10945_v23  ;;  %4411 = vmatprep.subr.bf16.mxu1 %v10948_v24  ;;  %v11044_v23 = vld [vmem:[%s15560_s2 + $0xa2c] ss:$16 sps:$4 sm:$0xff]  }
 0x109   :  { %v11117_v24 = vld [vmem:[%s15558_s0 + $0xb4] ss:$72 sps:$4 sm:$0xff]  }
 0x10a   :  { %3920 = vmatmul.mubr.bf16.gmra.mrb[4].mxu0 %v11023_v26  ;;  %4397 = vmatmul.mubr.bf16.gmra.mrb[4].mxu1 %v11023_v26  ;;  %v11042_v26 = vld [vmem:[%s15560_s2 + $0xa28] ss:$16 sps:$4 sm:$0xff]  }
 0x10b   :  { %3935 = vmatpush1.bf16.msra.mxu0 %v10943_v25  ;;  %4412 = vmatpush1.bf16.msra.mxu1 %v10946_v27  ;;  %v11039_v25 = vld [vmem:[%s15560_s2 + $0xa20] ss:$16 sps:$4 sm:$0xff]   ;;  %v11047_v27 = vld [vmem:[%s15560_s2 + $0xa44] ss:$16 sps:$4 sm:$0xff]  }
 0x10c   :  { %3936 = vmatprep.subr.bf16.mxu0 %v10951_v28  ;;  %4413 = vmatprep.subr.bf16.mxu1 %v10954_v29  ;;  %v11050_v28 = vld [vmem:[%s15560_s2 + $0xa4c] ss:$16 sps:$4 sm:$0xff]   ;;  %v11125_v29 = vld [vmem:[%s15558_s0 + $0xb0] ss:$72 sps:$4 sm:$0xff]  }
 0x10d   :  { %3962 = vmatprep.mubr.bf16.mxu0 %v11032_v30  ;;  %4439 = vmatprep.mubr.bf16.mxu1 %v11032_v30  ;;  %v11045_v30 = vld [vmem:[%s15560_s2 + $0xa40] ss:$16 sps:$4 sm:$0xff]  }
 0x10f   :  { %3937 = vmatpush1.bf16.msra.mxu0 %v10949_v31  ;;  %4414 = vmatpush1.bf16.msra.mxu1 %v10952_v32  ;;  %v11048_v31 = vld [vmem:[%s15560_s2 + $0xa48] ss:$16 sps:$4 sm:$0xff]   ;;  %v11053_v32 = vld [vmem:[%s15560_s2 + $0xa64] ss:$16 sps:$4 sm:$0xff]  }
 0x110   :  { %3938 = vmatprep.subr.bf16.mxu0 %v10957_v33  ;;  %4415 = vmatprep.subr.bf16.mxu1 %v10960_v34  ;;  %v11056_v33 = vld [vmem:[%s15560_s2 + $0xa6c] ss:$16 sps:$4 sm:$0xff]  }
 0x111   :  { %v11134_v34 = vld [vmem:[%s15558_s0 + $0x2c] ss:$72 sps:$4 sm:$0xff]  }
 0x113   :  { %3939 = vmatpush1.bf16.msra.mxu0 %v10955_v35  ;;  %4416 = vmatpush1.bf16.msra.mxu1 %v10958_v36  ;;  %v11051_v35 = vld [vmem:[%s15560_s2 + $0xa60] ss:$16 sps:$4 sm:$0xff]   ;;  %v11054_v36 = vld [vmem:[%s15560_s2 + $0xa68] ss:$16 sps:$4 sm:$0xff]  }
 0x114   :  { %3940 = vmatprep.subr.bf16.mxu0 %v10963_v37  ;;  %4417 = vmatprep.subr.bf16.mxu1 %v10966_v38  ;;  %v11059_v37 = vld [vmem:[%s15560_s2 + $0xa84] ss:$16 sps:$4 sm:$0xff]   ;;  %v11062_v38 = vld [vmem:[%s15560_s2 + $0xa8c] ss:$16 sps:$4 sm:$0xff]  }
 0x117   :  { %3941 = vmatpush1.bf16.msra.mxu0 %v10961_v39  ;;  %4418 = vmatpush1.bf16.msra.mxu1 %v10964_v40  ;;  %v11057_v39 = vld [vmem:[%s15560_s2 + $0xa80] ss:$16 sps:$4 sm:$0xff]   ;;  %v11060_v40 = vld [vmem:[%s15560_s2 + $0xa88] ss:$16 sps:$4 sm:$0xff]  }
 0x118   :  { %3942 = vmatprep.subr.bf16.mxu0 %v10969_v41  ;;  %4419 = vmatprep.subr.bf16.mxu1 %v10972_v42  ;;  %v11065_v41 = vld [vmem:[%s15560_s2 + $0xaa4] ss:$16 sps:$4 sm:$0xff]   ;;  %v11068_v42 = vld [vmem:[%s15560_s2 + $0xaac] ss:$16 sps:$4 sm:$0xff]  }
 0x11b   :  { %3943 = vmatpush1.bf16.msra.mxu0 %v10967_v43  ;;  %4420 = vmatpush1.bf16.msra.mxu1 %v10970_v44  ;;  %v11063_v43 = vld [vmem:[%s15560_s2 + $0xaa0] ss:$16 sps:$4 sm:$0xff]   ;;  %v11066_v44 = vld [vmem:[%s15560_s2 + $0xaa8] ss:$16 sps:$4 sm:$0xff]  }
 0x11c   :  { %3944 = vmatprep.subr.bf16.mxu0 %v10975_v45  ;;  %4421 = vmatprep.subr.bf16.mxu1 %v10978_v46  ;;  %v11071_v45 = vld [vmem:[%s15560_s2 + $0xac4] ss:$16 sps:$4 sm:$0xff]   ;;  %v11074_v46 = vld [vmem:[%s15560_s2 + $0xacc] ss:$16 sps:$4 sm:$0xff]  }
 0x11f   :  { %3945 = vmatpush1.bf16.msra.mxu0 %v10973_v47  ;;  %4422 = vmatpush1.bf16.msra.mxu1 %v10976_v48  ;;  %v11069_v47 = vld [vmem:[%s15560_s2 + $0xac0] ss:$16 sps:$4 sm:$0xff]   ;;  %v11072_v48 = vld [vmem:[%s15560_s2 + $0xac8] ss:$16 sps:$4 sm:$0xff]  }
 0x120   :  { %3946 = vmatprep.subr.bf16.mxu0 %v10981_v49  ;;  %4423 = vmatprep.subr.bf16.mxu1 %v10984_v50  ;;  %v11077_v49 = vld [vmem:[%s15560_s2 + $0xae4] ss:$16 sps:$4 sm:$0xff]   ;;  %v11080_v50 = vld [vmem:[%s15560_s2 + $0xaec] ss:$16 sps:$4 sm:$0xff]  }
 0x123   :  { %3947 = vmatpush1.bf16.msra.mxu0 %v10979_v51  ;;  %4424 = vmatpush1.bf16.msra.mxu1 %v10982_v52  ;;  %v11075_v51 = vld [vmem:[%s15560_s2 + $0xae0] ss:$16 sps:$4 sm:$0xff]   ;;  %v11078_v52 = vld [vmem:[%s15560_s2 + $0xae8] ss:$16 sps:$4 sm:$0xff]  }
 0x124   :  { %3948 = vmatprep.subr.bf16.mxu0 %v10987_v53  ;;  %4425 = vmatprep.subr.bf16.mxu1 %v10990_v54  ;;  %v11083_v53 = vld [vmem:[%s15560_s2 + $0xb04] ss:$16 sps:$4 sm:$0xff]   ;;  %v11086_v54 = vld [vmem:[%s15560_s2 + $0xb0c] ss:$16 sps:$4 sm:$0xff]  }
 0x127   :  { %3949 = vmatpush1.bf16.msra.mxu0 %v10985_v55  ;;  %4426 = vmatpush1.bf16.msra.mxu1 %v10988_v56  ;;  %v11081_v55 = vld [vmem:[%s15560_s2 + $0xb00] ss:$16 sps:$4 sm:$0xff]   ;;  %v11084_v56 = vld [vmem:[%s15560_s2 + $0xb08] ss:$16 sps:$4 sm:$0xff]  }
 0x128   :  { %3950 = vmatprep.subr.bf16.mxu0 %v10993_v57  ;;  %4427 = vmatprep.subr.bf16.mxu1 %v10996_v58  ;;  %v11089_v57 = vld [vmem:[%s15560_s2 + $0xb24] ss:$16 sps:$4 sm:$0xff]   ;;  %v11092_v58 = vld [vmem:[%s15560_s2 + $0xb2c] ss:$16 sps:$4 sm:$0xff]  }
 0x12b   :  { %3951 = vmatpush1.bf16.msra.mxu0 %v10991_v59  ;;  %4428 = vmatpush1.bf16.msra.mxu1 %v10994_v60  ;;  %v11087_v59 = vld [vmem:[%s15560_s2 + $0xb20] ss:$16 sps:$4 sm:$0xff]   ;;  %v11090_v60 = vld [vmem:[%s15560_s2 + $0xb28] ss:$16 sps:$4 sm:$0xff]  }
 0x12c   :  { %3952 = vmatprep.subr.bf16.mxu0 %v10999_v61  ;;  %4429 = vmatprep.subr.bf16.mxu1 %v11002_v62  ;;  %v11095_v61 = vld [vmem:[%s15560_s2 + $0xb44] ss:$16 sps:$4 sm:$0xff]   ;;  %v11098_v62 = vld [vmem:[%s15560_s2 + $0xb4c] ss:$16 sps:$4 sm:$0xff]  }
 0x12f   :  { %3953 = vmatpush1.bf16.msra.mxu0 %v10997_v63  ;;  %4430 = vmatpush1.bf16.msra.mxu1 %v11000_v0  ;;  %v11093_v63 = vld [vmem:[%s15560_s2 + $0xb40] ss:$16 sps:$4 sm:$0xff]   ;;  %v11096_v0 = vld [vmem:[%s15560_s2 + $0xb48] ss:$16 sps:$4 sm:$0xff]  }
 0x130   :  { %3954 = vmatprep.subr.bf16.mxu0 %v11005_v1  ;;  %4431 = vmatprep.subr.bf16.mxu1 %v11008_v2  ;;  %v11101_v1 = vld [vmem:[%s15560_s2 + $0xb64] ss:$16 sps:$4 sm:$0xff]   ;;  %v11104_v2 = vld [vmem:[%s15560_s2 + $0xb6c] ss:$16 sps:$4 sm:$0xff]  }
 0x133   :  { %3955 = vmatpush1.bf16.msra.mxu0 %v11003_v3  ;;  %4432 = vmatpush1.bf16.msra.mxu1 %v11006_v4  ;;  %v11099_v3 = vld [vmem:[%s15560_s2 + $0xb60] ss:$16 sps:$4 sm:$0xff]   ;;  %v11102_v4 = vld [vmem:[%s15560_s2 + $0xb68] ss:$16 sps:$4 sm:$0xff]  }
 0x134   :  { %3956 = vmatprep.subr.bf16.mxu0 %v11011_v5  ;;  %4433 = vmatprep.subr.bf16.mxu1 %v11014_v6  ;;  %v11107_v5 = vld [vmem:[%s15560_s2 + $0xb84] ss:$16 sps:$4 sm:$0xff]   ;;  %v11110_v6 = vld [vmem:[%s15560_s2 + $0xb8c] ss:$16 sps:$4 sm:$0xff]  }
 0x137   :  { %3957 = vmatpush1.bf16.msra.mxu0 %v11009_v7  ;;  %4434 = vmatpush1.bf16.msra.mxu1 %v11012_v8  ;;  %v11105_v7 = vld [vmem:[%s15560_s2 + $0xb80] ss:$16 sps:$4 sm:$0xff]   ;;  %v11108_v8 = vld [vmem:[%s15560_s2 + $0xb88] ss:$16 sps:$4 sm:$0xff]  }
 0x138   :  { %3958 = vmatprep.subr.bf16.mxu0 %v11019_v9  ;;  %4435 = vmatprep.subr.bf16.mxu1 %v11022_v10  ;;  %v11113_v9 = vld [vmem:[%s15560_s2 + $0xba4] ss:$16 sps:$4 sm:$0xff]   ;;  %v11116_v10 = vld [vmem:[%s15560_s2 + $0xbac] ss:$16 sps:$4 sm:$0xff]  }
 0x13b   :  { %3959 = vmatpush1.bf16.msra.mxu0 %v11017_v11  ;;  %4436 = vmatpush1.bf16.msra.mxu1 %v11020_v12  ;;  %v11111_v11 = vld [vmem:[%s15560_s2 + $0xba0] ss:$16 sps:$4 sm:$0xff]   ;;  %v11114_v12 = vld [vmem:[%s15560_s2 + $0xba8] ss:$16 sps:$4 sm:$0xff]  }
 0x13c   :  { %3960 = vmatprep.subr.bf16.mxu0 %v11026_v13  ;;  %4437 = vmatprep.subr.bf16.mxu1 %v11029_v14  ;;  %v11121_v13 = vld [vmem:[%s15560_s2 + $0xbc4] ss:$16 sps:$4 sm:$0xff]   ;;  %v11124_v14 = vld [vmem:[%s15560_s2 + $0xbcc] ss:$16 sps:$4 sm:$0xff]  }
 0x13f   :  { %3961 = vmatpush1.bf16.msra.mxu0 %v11024_v15  ;;  %4438 = vmatpush1.bf16.msra.mxu1 %v11027_v16  ;;  %v11119_v15 = vld [vmem:[%s15560_s2 + $0xbc0] ss:$16 sps:$4 sm:$0xff]   ;;  %v11122_v16 = vld [vmem:[%s15560_s2 + $0xbc8] ss:$16 sps:$4 sm:$0xff]  }
 0x140   :  { %3983 = vmatprep.subr.bf16.mxu0 %v11035_v18  ;;  %4460 = vmatprep.subr.bf16.mxu1 %v11038_v19  ;;  %v11131_v18 = vld [vmem:[%s15560_s2 + $0xbec] ss:$16 sps:$4 sm:$0xff]   ;;  %v11126_v19 = vld [vmem:[%s15560_s2 + $0xbe0] ss:$16 sps:$4 sm:$0xff]  }
 0x142   :  { %3963 = vmatmul.mubr.bf16.vlgmr.msra.gmra.mrb[0].mxu0 %v11030_v17  ;;  %4440 = vmatmul.mubr.bf16.vlgmr.msra.gmra.mrb[0].mxu1 %v11030_v17  ;;  %v11128_v17 = vld [vmem:[%s15560_s2 + $0xbe4] ss:$16 sps:$4 sm:$0xff]  }
 0x143   :  { %3984 = vmatpush1.bf16.msra.mxu0 %v11033_v20  ;;  %4461 = vmatpush1.bf16.msra.mxu1 %v11036_v21  ;;  %v11129_v20 = vld [vmem:[%s15560_s2 + $0xbe8] ss:$16 sps:$4 sm:$0xff]  }
 0x144   :  { %3985 = vmatprep.subr.bf16.mxu0 %v11041_v22  ;;  %4462 = vmatprep.subr.bf16.mxu1 %v11044_v23  ;;  %v11132_v21 = vld [vmem:[%s15558_s0 + $0x28] ss:$72 sps:$4 sm:$0xff]   ;;  %v11137_v22 = vld [vmem:[%s15560_s2 + $0xc04] ss:$16 sps:$4 sm:$0xff]   ;;  %v11140_v23 = vld [vmem:[%s15560_s2 + $0xc0c] ss:$16 sps:$4 sm:$0xff]  }
 0x145   :  { %3972 = vmatprep.mubr.bf16.mxu0 %v11117_v24  ;;  %4449 = vmatprep.mubr.bf16.mxu1 %v11117_v24  ;;  %v11135_v24 = vld [vmem:[%s15560_s2 + $0xc00] ss:$16 sps:$4 sm:$0xff]  }
 0x147   :  { %3986 = vmatpush1.bf16.msra.mxu0 %v11039_v25  ;;  %4463 = vmatpush1.bf16.msra.mxu1 %v11042_v26  ;;  %v11138_v25 = vld [vmem:[%s15560_s2 + $0xc08] ss:$16 sps:$4 sm:$0xff]   ;;  %v11143_v26 = vld [vmem:[%s15560_s2 + $0xc24] ss:$16 sps:$4 sm:$0xff]  }
 0x148   :  { %3987 = vmatprep.subr.bf16.mxu0 %v11047_v27  ;;  %4464 = vmatprep.subr.bf16.mxu1 %v11050_v28  ;;  %v11146_v27 = vld [vmem:[%s15560_s2 + $0xc2c] ss:$16 sps:$4 sm:$0xff]  }
 0x149   :  { %v11219_v28 = vld [vmem:[%s15558_s0 + $0xbc] ss:$72 sps:$4 sm:$0xff]  }
 0x14a   :  { %3973 = vmatmul.mubr.bf16.gmra.mrb[4].mxu0 %v11125_v29  ;;  %4450 = vmatmul.mubr.bf16.gmra.mrb[4].mxu1 %v11125_v29  ;;  %v11141_v29 = vld [vmem:[%s15560_s2 + $0xc20] ss:$16 sps:$4 sm:$0xff]  }
 0x14b   :  { %3988 = vmatpush1.bf16.msra.mxu0 %v11045_v30  ;;  %4465 = vmatpush1.bf16.msra.mxu1 %v11048_v31  ;;  %v11144_v30 = vld [vmem:[%s15560_s2 + $0xc28] ss:$16 sps:$4 sm:$0xff]   ;;  %v11149_v31 = vld [vmem:[%s15560_s2 + $0xc44] ss:$16 sps:$4 sm:$0xff]  }
 0x14c   :  { %3989 = vmatprep.subr.bf16.mxu0 %v11053_v32  ;;  %4466 = vmatprep.subr.bf16.mxu1 %v11056_v33  ;;  %v11152_v32 = vld [vmem:[%s15560_s2 + $0xc4c] ss:$16 sps:$4 sm:$0xff]   ;;  %v11227_v33 = vld [vmem:[%s15558_s0 + $0xb8] ss:$72 sps:$4 sm:$0xff]  }
 0x14d   :  { %4015 = vmatprep.mubr.bf16.mxu0 %v11134_v34  ;;  %4492 = vmatprep.mubr.bf16.mxu1 %v11134_v34  ;;  %v11147_v34 = vld [vmem:[%s15560_s2 + $0xc40] ss:$16 sps:$4 sm:$0xff]  }
 0x14f   :  { %3990 = vmatpush1.bf16.msra.mxu0 %v11051_v35  ;;  %4467 = vmatpush1.bf16.msra.mxu1 %v11054_v36  ;;  %v11150_v35 = vld [vmem:[%s15560_s2 + $0xc48] ss:$16 sps:$4 sm:$0xff]   ;;  %v11155_v36 = vld [vmem:[%s15560_s2 + $0xc64] ss:$16 sps:$4 sm:$0xff]  }
 0x150   :  { %3991 = vmatprep.subr.bf16.mxu0 %v11059_v37  ;;  %4468 = vmatprep.subr.bf16.mxu1 %v11062_v38  ;;  %v11158_v37 = vld [vmem:[%s15560_s2 + $0xc6c] ss:$16 sps:$4 sm:$0xff]  }
 0x151   :  { %v11236_v38 = vld [vmem:[%s15558_s0 + $0x34] ss:$72 sps:$4 sm:$0xff]  }
 0x153   :  { %3992 = vmatpush1.bf16.msra.mxu0 %v11057_v39  ;;  %4469 = vmatpush1.bf16.msra.mxu1 %v11060_v40  ;;  %v11153_v39 = vld [vmem:[%s15560_s2 + $0xc60] ss:$16 sps:$4 sm:$0xff]   ;;  %v11156_v40 = vld [vmem:[%s15560_s2 + $0xc68] ss:$16 sps:$4 sm:$0xff]  }
 0x154   :  { %3993 = vmatprep.subr.bf16.mxu0 %v11065_v41  ;;  %4470 = vmatprep.subr.bf16.mxu1 %v11068_v42  ;;  %v11161_v41 = vld [vmem:[%s15560_s2 + $0xc84] ss:$16 sps:$4 sm:$0xff]   ;;  %v11164_v42 = vld [vmem:[%s15560_s2 + $0xc8c] ss:$16 sps:$4 sm:$0xff]  }
 0x157   :  { %3994 = vmatpush1.bf16.msra.mxu0 %v11063_v43  ;;  %4471 = vmatpush1.bf16.msra.mxu1 %v11066_v44  ;;  %v11159_v43 = vld [vmem:[%s15560_s2 + $0xc80] ss:$16 sps:$4 sm:$0xff]   ;;  %v11162_v44 = vld [vmem:[%s15560_s2 + $0xc88] ss:$16 sps:$4 sm:$0xff]  }
 0x158   :  { %3995 = vmatprep.subr.bf16.mxu0 %v11071_v45  ;;  %4472 = vmatprep.subr.bf16.mxu1 %v11074_v46  ;;  %v11167_v45 = vld [vmem:[%s15560_s2 + $0xca4] ss:$16 sps:$4 sm:$0xff]   ;;  %v11170_v46 = vld [vmem:[%s15560_s2 + $0xcac] ss:$16 sps:$4 sm:$0xff]  }
 0x15b   :  { %3996 = vmatpush1.bf16.msra.mxu0 %v11069_v47  ;;  %4473 = vmatpush1.bf16.msra.mxu1 %v11072_v48  ;;  %v11165_v47 = vld [vmem:[%s15560_s2 + $0xca0] ss:$16 sps:$4 sm:$0xff]   ;;  %v11168_v48 = vld [vmem:[%s15560_s2 + $0xca8] ss:$16 sps:$4 sm:$0xff]  }
 0x15c   :  { %3997 = vmatprep.subr.bf16.mxu0 %v11077_v49  ;;  %4474 = vmatprep.subr.bf16.mxu1 %v11080_v50  ;;  %v11173_v49 = vld [vmem:[%s15560_s2 + $0xcc4] ss:$16 sps:$4 sm:$0xff]   ;;  %v11176_v50 = vld [vmem:[%s15560_s2 + $0xccc] ss:$16 sps:$4 sm:$0xff]  }
 0x15f   :  { %3998 = vmatpush1.bf16.msra.mxu0 %v11075_v51  ;;  %4475 = vmatpush1.bf16.msra.mxu1 %v11078_v52  ;;  %v11171_v51 = vld [vmem:[%s15560_s2 + $0xcc0] ss:$16 sps:$4 sm:$0xff]   ;;  %v11174_v52 = vld [vmem:[%s15560_s2 + $0xcc8] ss:$16 sps:$4 sm:$0xff]  }
 0x160   :  { %3999 = vmatprep.subr.bf16.mxu0 %v11083_v53  ;;  %4476 = vmatprep.subr.bf16.mxu1 %v11086_v54  ;;  %v11179_v53 = vld [vmem:[%s15560_s2 + $0xce4] ss:$16 sps:$4 sm:$0xff]   ;;  %v11182_v54 = vld [vmem:[%s15560_s2 + $0xcec] ss:$16 sps:$4 sm:$0xff]  }
 0x163   :  { %4000 = vmatpush1.bf16.msra.mxu0 %v11081_v55  ;;  %4477 = vmatpush1.bf16.msra.mxu1 %v11084_v56  ;;  %v11177_v55 = vld [vmem:[%s15560_s2 + $0xce0] ss:$16 sps:$4 sm:$0xff]   ;;  %v11180_v56 = vld [vmem:[%s15560_s2 + $0xce8] ss:$16 sps:$4 sm:$0xff]  }
 0x164   :  { %4001 = vmatprep.subr.bf16.mxu0 %v11089_v57  ;;  %4478 = vmatprep.subr.bf16.mxu1 %v11092_v58  ;;  %v11185_v57 = vld [vmem:[%s15560_s2 + $0xd04] ss:$16 sps:$4 sm:$0xff]   ;;  %v11188_v58 = vld [vmem:[%s15560_s2 + $0xd0c] ss:$16 sps:$4 sm:$0xff]  }
 0x167   :  { %4002 = vmatpush1.bf16.msra.mxu0 %v11087_v59  ;;  %4479 = vmatpush1.bf16.msra.mxu1 %v11090_v60  ;;  %v11183_v59 = vld [vmem:[%s15560_s2 + $0xd00] ss:$16 sps:$4 sm:$0xff]   ;;  %v11186_v60 = vld [vmem:[%s15560_s2 + $0xd08] ss:$16 sps:$4 sm:$0xff]  }
 0x168   :  { %4003 = vmatprep.subr.bf16.mxu0 %v11095_v61  ;;  %4480 = vmatprep.subr.bf16.mxu1 %v11098_v62  ;;  %v11191_v61 = vld [vmem:[%s15560_s2 + $0xd24] ss:$16 sps:$4 sm:$0xff]   ;;  %v11194_v62 = vld [vmem:[%s15560_s2 + $0xd2c] ss:$16 sps:$4 sm:$0xff]  }
 0x16b   :  { %4004 = vmatpush1.bf16.msra.mxu0 %v11093_v63  ;;  %4481 = vmatpush1.bf16.msra.mxu1 %v11096_v0  ;;  %v11189_v63 = vld [vmem:[%s15560_s2 + $0xd20] ss:$16 sps:$4 sm:$0xff]   ;;  %v11192_v0 = vld [vmem:[%s15560_s2 + $0xd28] ss:$16 sps:$4 sm:$0xff]  }
 0x16c   :  { %4005 = vmatprep.subr.bf16.mxu0 %v11101_v1  ;;  %4482 = vmatprep.subr.bf16.mxu1 %v11104_v2  ;;  %v11197_v1 = vld [vmem:[%s15560_s2 + $0xd44] ss:$16 sps:$4 sm:$0xff]   ;;  %v11200_v2 = vld [vmem:[%s15560_s2 + $0xd4c] ss:$16 sps:$4 sm:$0xff]  }
 0x16f   :  { %4006 = vmatpush1.bf16.msra.mxu0 %v11099_v3  ;;  %4483 = vmatpush1.bf16.msra.mxu1 %v11102_v4  ;;  %v11195_v3 = vld [vmem:[%s15560_s2 + $0xd40] ss:$16 sps:$4 sm:$0xff]   ;;  %v11198_v4 = vld [vmem:[%s15560_s2 + $0xd48] ss:$16 sps:$4 sm:$0xff]  }
 0x170   :  { %4007 = vmatprep.subr.bf16.mxu0 %v11107_v5  ;;  %4484 = vmatprep.subr.bf16.mxu1 %v11110_v6  ;;  %v11203_v5 = vld [vmem:[%s15560_s2 + $0xd64] ss:$16 sps:$4 sm:$0xff]   ;;  %v11206_v6 = vld [vmem:[%s15560_s2 + $0xd6c] ss:$16 sps:$4 sm:$0xff]  }
 0x173   :  { %4008 = vmatpush1.bf16.msra.mxu0 %v11105_v7  ;;  %4485 = vmatpush1.bf16.msra.mxu1 %v11108_v8  ;;  %v11201_v7 = vld [vmem:[%s15560_s2 + $0xd60] ss:$16 sps:$4 sm:$0xff]   ;;  %v11204_v8 = vld [vmem:[%s15560_s2 + $0xd68] ss:$16 sps:$4 sm:$0xff]  }
 0x174   :  { %4009 = vmatprep.subr.bf16.mxu0 %v11113_v9  ;;  %4486 = vmatprep.subr.bf16.mxu1 %v11116_v10  ;;  %v11209_v9 = vld [vmem:[%s15560_s2 + $0xd84] ss:$16 sps:$4 sm:$0xff]   ;;  %v11212_v10 = vld [vmem:[%s15560_s2 + $0xd8c] ss:$16 sps:$4 sm:$0xff]  }
 0x177   :  { %4010 = vmatpush1.bf16.msra.mxu0 %v11111_v11  ;;  %4487 = vmatpush1.bf16.msra.mxu1 %v11114_v12  ;;  %v11207_v11 = vld [vmem:[%s15560_s2 + $0xd80] ss:$16 sps:$4 sm:$0xff]   ;;  %v11210_v12 = vld [vmem:[%s15560_s2 + $0xd88] ss:$16 sps:$4 sm:$0xff]  }
 0x178   :  { %4011 = vmatprep.subr.bf16.mxu0 %v11121_v13  ;;  %4488 = vmatprep.subr.bf16.mxu1 %v11124_v14  ;;  %v11215_v13 = vld [vmem:[%s15560_s2 + $0xda4] ss:$16 sps:$4 sm:$0xff]   ;;  %v11218_v14 = vld [vmem:[%s15560_s2 + $0xdac] ss:$16 sps:$4 sm:$0xff]  }
 0x17b   :  { %4012 = vmatpush1.bf16.msra.mxu0 %v11119_v15  ;;  %4489 = vmatpush1.bf16.msra.mxu1 %v11122_v16  ;;  %v11213_v15 = vld [vmem:[%s15560_s2 + $0xda0] ss:$16 sps:$4 sm:$0xff]   ;;  %v11216_v16 = vld [vmem:[%s15560_s2 + $0xda8] ss:$16 sps:$4 sm:$0xff]  }
 0x17c   :  { %4013 = vmatprep.subr.bf16.mxu0 %v11128_v17  ;;  %4490 = vmatprep.subr.bf16.mxu1 %v11131_v18  ;;  %v11223_v17 = vld [vmem:[%s15560_s2 + $0xdc4] ss:$16 sps:$4 sm:$0xff]   ;;  %v11226_v18 = vld [vmem:[%s15560_s2 + $0xdcc] ss:$16 sps:$4 sm:$0xff]  }
 0x17f   :  { %4014 = vmatpush1.bf16.msra.mxu0 %v11126_v19  ;;  %4491 = vmatpush1.bf16.msra.mxu1 %v11129_v20  ;;  %v11221_v19 = vld [vmem:[%s15560_s2 + $0xdc0] ss:$16 sps:$4 sm:$0xff]   ;;  %v11224_v20 = vld [vmem:[%s15560_s2 + $0xdc8] ss:$16 sps:$4 sm:$0xff]  }
 0x180   :  { %4036 = vmatprep.subr.bf16.mxu0 %v11137_v22  ;;  %4513 = vmatprep.subr.bf16.mxu1 %v11140_v23  ;;  %v11233_v22 = vld [vmem:[%s15560_s2 + $0xdec] ss:$16 sps:$4 sm:$0xff]   ;;  %v11228_v23 = vld [vmem:[%s15560_s2 + $0xde0] ss:$16 sps:$4 sm:$0xff]  }
 0x182   :  { %4016 = vmatmul.mubr.bf16.vlgmr.msra.gmra.mrb[0].mxu0 %v11132_v21  ;;  %4493 = vmatmul.mubr.bf16.vlgmr.msra.gmra.mrb[0].mxu1 %v11132_v21  ;;  %v11230_v21 = vld [vmem:[%s15560_s2 + $0xde4] ss:$16 sps:$4 sm:$0xff]  }
 0x183   :  { %4037 = vmatpush1.bf16.msra.mxu0 %v11135_v24  ;;  %4514 = vmatpush1.bf16.msra.mxu1 %v11138_v25  ;;  %v11231_v24 = vld [vmem:[%s15560_s2 + $0xde8] ss:$16 sps:$4 sm:$0xff]  }
 0x184   :  { %4038 = vmatprep.subr.bf16.mxu0 %v11143_v26  ;;  %4515 = vmatprep.subr.bf16.mxu1 %v11146_v27  ;;  %v11234_v25 = vld [vmem:[%s15558_s0 + $0x30] ss:$72 sps:$4 sm:$0xff]   ;;  %v11239_v26 = vld [vmem:[%s15560_s2 + $0xe04] ss:$16 sps:$4 sm:$0xff]   ;;  %v11242_v27 = vld [vmem:[%s15560_s2 + $0xe0c] ss:$16 sps:$4 sm:$0xff]  }
 0x185   :  { %4025 = vmatprep.mubr.bf16.mxu0 %v11219_v28  ;;  %4502 = vmatprep.mubr.bf16.mxu1 %v11219_v28  ;;  %v11237_v28 = vld [vmem:[%s15560_s2 + $0xe00] ss:$16 sps:$4 sm:$0xff]  }
 0x187   :  { %4039 = vmatpush1.bf16.msra.mxu0 %v11141_v29  ;;  %4516 = vmatpush1.bf16.msra.mxu1 %v11144_v30  ;;  %v11240_v29 = vld [vmem:[%s15560_s2 + $0xe08] ss:$16 sps:$4 sm:$0xff]   ;;  %v11245_v30 = vld [vmem:[%s15560_s2 + $0xe24] ss:$16 sps:$4 sm:$0xff]  }
 0x188   :  { %4040 = vmatprep.subr.bf16.mxu0 %v11149_v31  ;;  %4517 = vmatprep.subr.bf16.mxu1 %v11152_v32  ;;  %v11248_v31 = vld [vmem:[%s15560_s2 + $0xe2c] ss:$16 sps:$4 sm:$0xff]  }
 0x189   :  { %v11321_v32 = vld [vmem:[%s15558_s0 + $0xc4] ss:$72 sps:$4 sm:$0xff]  }
 0x18a   :  { %4026 = vmatmul.mubr.bf16.gmra.mrb[4].mxu0 %v11227_v33  ;;  %4503 = vmatmul.mubr.bf16.gmra.mrb[4].mxu1 %v11227_v33  ;;  %v11243_v33 = vld [vmem:[%s15560_s2 + $0xe20] ss:$16 sps:$4 sm:$0xff]  }
 0x18b   :  { %4041 = vmatpush1.bf16.msra.mxu0 %v11147_v34  ;;  %4518 = vmatpush1.bf16.msra.mxu1 %v11150_v35  ;;  %v11246_v34 = vld [vmem:[%s15560_s2 + $0xe28] ss:$16 sps:$4 sm:$0xff]   ;;  %v11251_v35 = vld [vmem:[%s15560_s2 + $0xe44] ss:$16 sps:$4 sm:$0xff]  }
 0x18c   :  { %4042 = vmatprep.subr.bf16.mxu0 %v11155_v36  ;;  %4519 = vmatprep.subr.bf16.mxu1 %v11158_v37  ;;  %v11254_v36 = vld [vmem:[%s15560_s2 + $0xe4c] ss:$16 sps:$4 sm:$0xff]   ;;  %v11329_v37 = vld [vmem:[%s15558_s0 + $0xc0] ss:$72 sps:$4 sm:$0xff]  }
 0x18d   :  { %4068 = vmatprep.mubr.bf16.mxu0 %v11236_v38  ;;  %4545 = vmatprep.mubr.bf16.mxu1 %v11236_v38  ;;  %v11249_v38 = vld [vmem:[%s15560_s2 + $0xe40] ss:$16 sps:$4 sm:$0xff]  }
 0x18f   :  { %4043 = vmatpush1.bf16.msra.mxu0 %v11153_v39  ;;  %4520 = vmatpush1.bf16.msra.mxu1 %v11156_v40  ;;  %v11252_v39 = vld [vmem:[%s15560_s2 + $0xe48] ss:$16 sps:$4 sm:$0xff]   ;;  %v11257_v40 = vld [vmem:[%s15560_s2 + $0xe64] ss:$16 sps:$4 sm:$0xff]  }
 0x190   :  { %4044 = vmatprep.subr.bf16.mxu0 %v11161_v41  ;;  %4521 = vmatprep.subr.bf16.mxu1 %v11164_v42  ;;  %v11260_v41 = vld [vmem:[%s15560_s2 + $0xe6c] ss:$16 sps:$4 sm:$0xff]  }
 0x191   :  { %v11338_v42 = vld [vmem:[%s15558_s0 + $0x3c] ss:$72 sps:$4 sm:$0xff]  }
 0x193   :  { %4045 = vmatpush1.bf16.msra.mxu0 %v11159_v43  ;;  %4522 = vmatpush1.bf16.msra.mxu1 %v11162_v44  ;;  %v11255_v43 = vld [vmem:[%s15560_s2 + $0xe60] ss:$16 sps:$4 sm:$0xff]   ;;  %v11258_v44 = vld [vmem:[%s15560_s2 + $0xe68] ss:$16 sps:$4 sm:$0xff]  }
 0x194   :  { %4046 = vmatprep.subr.bf16.mxu0 %v11167_v45  ;;  %4523 = vmatprep.subr.bf16.mxu1 %v11170_v46  ;;  %v11263_v45 = vld [vmem:[%s15560_s2 + $0xe84] ss:$16 sps:$4 sm:$0xff]   ;;  %v11266_v46 = vld [vmem:[%s15560_s2 + $0xe8c] ss:$16 sps:$4 sm:$0xff]  }
 0x197   :  { %4047 = vmatpush1.bf16.msra.mxu0 %v11165_v47  ;;  %4524 = vmatpush1.bf16.msra.mxu1 %v11168_v48  ;;  %v11261_v47 = vld [vmem:[%s15560_s2 + $0xe80] ss:$16 sps:$4 sm:$0xff]   ;;  %v11264_v48 = vld [vmem:[%s15560_s2 + $0xe88] ss:$16 sps:$4 sm:$0xff]  }
 0x198   :  { %4048 = vmatprep.subr.bf16.mxu0 %v11173_v49  ;;  %4525 = vmatprep.subr.bf16.mxu1 %v11176_v50  ;;  %v11269_v49 = vld [vmem:[%s15560_s2 + $0xea4] ss:$16 sps:$4 sm:$0xff]   ;;  %v11272_v50 = vld [vmem:[%s15560_s2 + $0xeac] ss:$16 sps:$4 sm:$0xff]  }
 0x19b   :  { %4049 = vmatpush1.bf16.msra.mxu0 %v11171_v51  ;;  %4526 = vmatpush1.bf16.msra.mxu1 %v11174_v52  ;;  %v11267_v51 = vld [vmem:[%s15560_s2 + $0xea0] ss:$16 sps:$4 sm:$0xff]   ;;  %v11270_v52 = vld [vmem:[%s15560_s2 + $0xea8] ss:$16 sps:$4 sm:$0xff]  }
 0x19c   :  { %4050 = vmatprep.subr.bf16.mxu0 %v11179_v53  ;;  %4527 = vmatprep.subr.bf16.mxu1 %v11182_v54  ;;  %v11275_v53 = vld [vmem:[%s15560_s2 + $0xec4] ss:$16 sps:$4 sm:$0xff]   ;;  %v11278_v54 = vld [vmem:[%s15560_s2 + $0xecc] ss:$16 sps:$4 sm:$0xff]  }
 0x19f   :  { %4051 = vmatpush1.bf16.msra.mxu0 %v11177_v55  ;;  %4528 = vmatpush1.bf16.msra.mxu1 %v11180_v56  ;;  %v11273_v55 = vld [vmem:[%s15560_s2 + $0xec0] ss:$16 sps:$4 sm:$0xff]   ;;  %v11276_v56 = vld [vmem:[%s15560_s2 + $0xec8] ss:$16 sps:$4 sm:$0xff]  }
 0x1a0   :  { %4052 = vmatprep.subr.bf16.mxu0 %v11185_v57  ;;  %4529 = vmatprep.subr.bf16.mxu1 %v11188_v58  ;;  %v11281_v57 = vld [vmem:[%s15560_s2 + $0xee4] ss:$16 sps:$4 sm:$0xff]   ;;  %v11284_v58 = vld [vmem:[%s15560_s2 + $0xeec] ss:$16 sps:$4 sm:$0xff]  }
 0x1a3   :  { %4053 = vmatpush1.bf16.msra.mxu0 %v11183_v59  ;;  %4530 = vmatpush1.bf16.msra.mxu1 %v11186_v60  ;;  %v11279_v59 = vld [vmem:[%s15560_s2 + $0xee0] ss:$16 sps:$4 sm:$0xff]   ;;  %v11282_v60 = vld [vmem:[%s15560_s2 + $0xee8] ss:$16 sps:$4 sm:$0xff]  }
 0x1a4   :  { %4054 = vmatprep.subr.bf16.mxu0 %v11191_v61  ;;  %4531 = vmatprep.subr.bf16.mxu1 %v11194_v62  ;;  %v11287_v61 = vld [vmem:[%s15560_s2 + $0xf04] ss:$16 sps:$4 sm:$0xff]   ;;  %v11290_v62 = vld [vmem:[%s15560_s2 + $0xf0c] ss:$16 sps:$4 sm:$0xff]  }
 0x1a7   :  { %4055 = vmatpush1.bf16.msra.mxu0 %v11189_v63  ;;  %4532 = vmatpush1.bf16.msra.mxu1 %v11192_v0  ;;  %v11285_v63 = vld [vmem:[%s15560_s2 + $0xf00] ss:$16 sps:$4 sm:$0xff]   ;;  %v11288_v0 = vld [vmem:[%s15560_s2 + $0xf08] ss:$16 sps:$4 sm:$0xff]  }
 0x1a8   :  { %4056 = vmatprep.subr.bf16.mxu0 %v11197_v1  ;;  %4533 = vmatprep.subr.bf16.mxu1 %v11200_v2  ;;  %v11293_v1 = vld [vmem:[%s15560_s2 + $0xf24] ss:$16 sps:$4 sm:$0xff]   ;;  %v11296_v2 = vld [vmem:[%s15560_s2 + $0xf2c] ss:$16 sps:$4 sm:$0xff]  }
 0x1ab   :  { %4057 = vmatpush1.bf16.msra.mxu0 %v11195_v3  ;;  %4534 = vmatpush1.bf16.msra.mxu1 %v11198_v4  ;;  %v11291_v3 = vld [vmem:[%s15560_s2 + $0xf20] ss:$16 sps:$4 sm:$0xff]   ;;  %v11294_v4 = vld [vmem:[%s15560_s2 + $0xf28] ss:$16 sps:$4 sm:$0xff]  }
 0x1ac   :  { %4058 = vmatprep.subr.bf16.mxu0 %v11203_v5  ;;  %4535 = vmatprep.subr.bf16.mxu1 %v11206_v6  ;;  %v11299_v5 = vld [vmem:[%s15560_s2 + $0xf44] ss:$16 sps:$4 sm:$0xff]   ;;  %v11302_v6 = vld [vmem:[%s15560_s2 + $0xf4c] ss:$16 sps:$4 sm:$0xff]  }
 0x1af   :  { %4059 = vmatpush1.bf16.msra.mxu0 %v11201_v7  ;;  %4536 = vmatpush1.bf16.msra.mxu1 %v11204_v8  ;;  %v11297_v7 = vld [vmem:[%s15560_s2 + $0xf40] ss:$16 sps:$4 sm:$0xff]   ;;  %v11300_v8 = vld [vmem:[%s15560_s2 + $0xf48] ss:$16 sps:$4 sm:$0xff]  }
 0x1b0   :  { %4060 = vmatprep.subr.bf16.mxu0 %v11209_v9  ;;  %4537 = vmatprep.subr.bf16.mxu1 %v11212_v10  ;;  %v11305_v9 = vld [vmem:[%s15560_s2 + $0xf64] ss:$16 sps:$4 sm:$0xff]   ;;  %v11308_v10 = vld [vmem:[%s15560_s2 + $0xf6c] ss:$16 sps:$4 sm:$0xff]  }
 0x1b3   :  { %4061 = vmatpush1.bf16.msra.mxu0 %v11207_v11  ;;  %4538 = vmatpush1.bf16.msra.mxu1 %v11210_v12  ;;  %v11303_v11 = vld [vmem:[%s15560_s2 + $0xf60] ss:$16 sps:$4 sm:$0xff]   ;;  %v11306_v12 = vld [vmem:[%s15560_s2 + $0xf68] ss:$16 sps:$4 sm:$0xff]  }
 0x1b4   :  { %4062 = vmatprep.subr.bf16.mxu0 %v11215_v13  ;;  %4539 = vmatprep.subr.bf16.mxu1 %v11218_v14  ;;  %v11311_v13 = vld [vmem:[%s15560_s2 + $0xf84] ss:$16 sps:$4 sm:$0xff]   ;;  %v11314_v14 = vld [vmem:[%s15560_s2 + $0xf8c] ss:$16 sps:$4 sm:$0xff]  }
 0x1b7   :  { %4063 = vmatpush1.bf16.msra.mxu0 %v11213_v15  ;;  %4540 = vmatpush1.bf16.msra.mxu1 %v11216_v16  ;;  %v11309_v15 = vld [vmem:[%s15560_s2 + $0xf80] ss:$16 sps:$4 sm:$0xff]   ;;  %v11312_v16 = vld [vmem:[%s15560_s2 + $0xf88] ss:$16 sps:$4 sm:$0xff]  }
 0x1b8   :  { %4064 = vmatprep.subr.bf16.mxu0 %v11223_v17  ;;  %4541 = vmatprep.subr.bf16.mxu1 %v11226_v18  ;;  %v11317_v17 = vld [vmem:[%s15560_s2 + $0xfa4] ss:$16 sps:$4 sm:$0xff]   ;;  %v11320_v18 = vld [vmem:[%s15560_s2 + $0xfac] ss:$16 sps:$4 sm:$0xff]  }
 0x1bb   :  { %4065 = vmatpush1.bf16.msra.mxu0 %v11221_v19  ;;  %4542 = vmatpush1.bf16.msra.mxu1 %v11224_v20  ;;  %v11315_v19 = vld [vmem:[%s15560_s2 + $0xfa0] ss:$16 sps:$4 sm:$0xff]   ;;  %v11318_v20 = vld [vmem:[%s15560_s2 + $0xfa8] ss:$16 sps:$4 sm:$0xff]  }
 0x1bc   :  { %4066 = vmatprep.subr.bf16.mxu0 %v11230_v21  ;;  %4543 = vmatprep.subr.bf16.mxu1 %v11233_v22  ;;  %v11325_v21 = vld [vmem:[%s15560_s2 + $0xfc4] ss:$16 sps:$4 sm:$0xff]   ;;  %v11328_v22 = vld [vmem:[%s15560_s2 + $0xfcc] ss:$16 sps:$4 sm:$0xff]  }
 0x1bf   :  { %4067 = vmatpush1.bf16.msra.mxu0 %v11228_v23  ;;  %4544 = vmatpush1.bf16.msra.mxu1 %v11231_v24  ;;  %v11323_v23 = vld [vmem:[%s15560_s2 + $0xfc0] ss:$16 sps:$4 sm:$0xff]   ;;  %v11326_v24 = vld [vmem:[%s15560_s2 + $0xfc8] ss:$16 sps:$4 sm:$0xff]  }
 0x1c0   :  { %4089 = vmatprep.subr.bf16.mxu0 %v11239_v26  ;;  %4566 = vmatprep.subr.bf16.mxu1 %v11242_v27  ;;  %v11335_v26 = vld [vmem:[%s15560_s2 + $0xfec] ss:$16 sps:$4 sm:$0xff]   ;;  %v11330_v27 = vld [vmem:[%s15560_s2 + $0xfe0] ss:$16 sps:$4 sm:$0xff]  }
 0x1c2   :  { %4069 = vmatmul.mubr.bf16.vlgmr.msra.gmra.mrb[0].mxu0 %v11234_v25  ;;  %4546 = vmatmul.mubr.bf16.vlgmr.msra.gmra.mrb[0].mxu1 %v11234_v25  ;;  %v11332_v25 = vld [vmem:[%s15560_s2 + $0xfe4] ss:$16 sps:$4 sm:$0xff]  }
 0x1c3   :  { %4090 = vmatpush1.bf16.msra.mxu0 %v11237_v28  ;;  %4567 = vmatpush1.bf16.msra.mxu1 %v11240_v29  ;;  %v11333_v28 = vld [vmem:[%s15560_s2 + $0xfe8] ss:$16 sps:$4 sm:$0xff]   ;;  %v11341_v29 = vld [vmem:[%s15560_s2 + $0x1004] ss:$16 sps:$4 sm:$0xff]  }
 0x1c4   :  { %4091 = vmatprep.subr.bf16.mxu0 %v11245_v30  ;;  %4568 = vmatprep.subr.bf16.mxu1 %v11248_v31  ;;  %v11344_v30 = vld [vmem:[%s15560_s2 + $0x100c] ss:$16 sps:$4 sm:$0xff]   ;;  %v11336_v31 = vld [vmem:[%s15558_s0 + $0x38] ss:$72 sps:$4 sm:$0xff]  }
 0x1c5   :  { %4078 = vmatprep.mubr.bf16.mxu0 %v11321_v32  ;;  %4555 = vmatprep.mubr.bf16.mxu1 %v11321_v32  ;;  %v11339_v32 = vld [vmem:[%s15560_s2 + $0x1000] ss:$16 sps:$4 sm:$0xff]  }
 0x1c7   :  { %4092 = vmatpush1.bf16.msra.mxu0 %v11243_v33  ;;  %4569 = vmatpush1.bf16.msra.mxu1 %v11246_v34  ;;  %v11342_v33 = vld [vmem:[%s15560_s2 + $0x1008] ss:$16 sps:$4 sm:$0xff]   ;;  %v11347_v34 = vld [vmem:[%s15560_s2 + $0x1024] ss:$16 sps:$4 sm:$0xff]  }
 0x1c8   :  { %4093 = vmatprep.subr.bf16.mxu0 %v11251_v35  ;;  %4570 = vmatprep.subr.bf16.mxu1 %v11254_v36  ;;  %v11350_v35 = vld [vmem:[%s15560_s2 + $0x102c] ss:$16 sps:$4 sm:$0xff]  }
 0x1c9   :  { %v11423_v36 = vld [vmem:[%s15558_s0 + $0xcc] ss:$72 sps:$4 sm:$0xff]  }
 0x1ca   :  { %4079 = vmatmul.mubr.bf16.gmra.mrb[4].mxu0 %v11329_v37  ;;  %4556 = vmatmul.mubr.bf16.gmra.mrb[4].mxu1 %v11329_v37 }
 0x1cb   :  { %4094 = vmatpush1.bf16.msra.mxu0 %v11249_v38  ;;  %4571 = vmatpush1.bf16.msra.mxu1 %v11252_v39 }
 0x1cc   :  { %4095 = vmatprep.subr.bf16.mxu0 %v11257_v40  ;;  %4572 = vmatprep.subr.bf16.mxu1 %v11260_v41 }
 0x1cd   :  { %4121 = vmatprep.mubr.bf16.mxu0 %v11338_v42  ;;  %4598 = vmatprep.mubr.bf16.mxu1 %v11338_v42 }
 0x1cf   :  { %4096 = vmatpush1.bf16.msra.mxu0 %v11255_v43  ;;  %4573 = vmatpush1.bf16.msra.mxu1 %v11258_v44 }
 0x1d0   :  { %4097 = vmatprep.subr.bf16.mxu0 %v11263_v45  ;;  %4574 = vmatprep.subr.bf16.mxu1 %v11266_v46 }
 0x1d3   :  { %4098 = vmatpush1.bf16.msra.mxu0 %v11261_v47  ;;  %4575 = vmatpush1.bf16.msra.mxu1 %v11264_v48 }
 0x1d4   :  { %4099 = vmatprep.subr.bf16.mxu0 %v11269_v49  ;;  %4576 = vmatprep.subr.bf16.mxu1 %v11272_v50 }
 0x1d7   :  { %4100 = vmatpush1.bf16.msra.mxu0 %v11267_v51  ;;  %4577 = vmatpush1.bf16.msra.mxu1 %v11270_v52 }
 0x1d8   :  { %4101 = vmatprep.subr.bf16.mxu0 %v11275_v53  ;;  %4578 = vmatprep.subr.bf16.mxu1 %v11278_v54 }
 0x1db   :  { %4102 = vmatpush1.bf16.msra.mxu0 %v11273_v55  ;;  %4579 = vmatpush1.bf16.msra.mxu1 %v11276_v56 }
 0x1dc   :  { %4103 = vmatprep.subr.bf16.mxu0 %v11281_v57  ;;  %4580 = vmatprep.subr.bf16.mxu1 %v11284_v58 }
 0x1df   :  { %4104 = vmatpush1.bf16.msra.mxu0 %v11279_v59  ;;  %4581 = vmatpush1.bf16.msra.mxu1 %v11282_v60 }
 0x1e0   :  { %4105 = vmatprep.subr.bf16.mxu0 %v11287_v61  ;;  %4582 = vmatprep.subr.bf16.mxu1 %v11290_v62 }
 0x1e3   :  { %4106 = vmatpush1.bf16.msra.mxu0 %v11285_v63  ;;  %4583 = vmatpush1.bf16.msra.mxu1 %v11288_v0 }
 0x1e4   :  { %4107 = vmatprep.subr.bf16.mxu0 %v11293_v1  ;;  %4584 = vmatprep.subr.bf16.mxu1 %v11296_v2 }
 0x1e7   :  { %4108 = vmatpush1.bf16.msra.mxu0 %v11291_v3  ;;  %4585 = vmatpush1.bf16.msra.mxu1 %v11294_v4 }
 0x1e8   :  { %4109 = vmatprep.subr.bf16.mxu0 %v11299_v5  ;;  %4586 = vmatprep.subr.bf16.mxu1 %v11302_v6 }
 0x1eb   :  { %4110 = vmatpush1.bf16.msra.mxu0 %v11297_v7  ;;  %4587 = vmatpush1.bf16.msra.mxu1 %v11300_v8 }
 0x1ec   :  { %4111 = vmatprep.subr.bf16.mxu0 %v11305_v9  ;;  %4588 = vmatprep.subr.bf16.mxu1 %v11308_v10 }
 0x1ef   :  { %4112 = vmatpush1.bf16.msra.mxu0 %v11303_v11  ;;  %4589 = vmatpush1.bf16.msra.mxu1 %v11306_v12 }
 0x1f0   :  { %4113 = vmatprep.subr.bf16.mxu0 %v11311_v13  ;;  %4590 = vmatprep.subr.bf16.mxu1 %v11314_v14 }
 0x1f3   :  { %4114 = vmatpush1.bf16.msra.mxu0 %v11309_v15  ;;  %4591 = vmatpush1.bf16.msra.mxu1 %v11312_v16 }
 0x1f4   :  { %4115 = vmatprep.subr.bf16.mxu0 %v11317_v17  ;;  %4592 = vmatprep.subr.bf16.mxu1 %v11320_v18 }
 0x1f7   :  { %4116 = vmatpush1.bf16.msra.mxu0 %v11315_v19  ;;  %4593 = vmatpush1.bf16.msra.mxu1 %v11318_v20 }
 0x1f8   :  { %4117 = vmatprep.subr.bf16.mxu0 %v11325_v21  ;;  %4594 = vmatprep.subr.bf16.mxu1 %v11328_v22 }
 0x1fb   :  { %4118 = vmatpush1.bf16.msra.mxu0 %v11323_v23  ;;  %4595 = vmatpush1.bf16.msra.mxu1 %v11326_v24 }
 0x1fc   :  { %4119 = vmatprep.subr.bf16.mxu0 %v11332_v25  ;;  %4596 = vmatprep.subr.bf16.mxu1 %v11335_v26 }
 0x1ff   :  { %4120 = vmatpush1.bf16.msra.mxu0 %v11330_v27  ;;  %4597 = vmatpush1.bf16.msra.mxu1 %v11333_v28 }
 0x200   :  { %4142 = vmatprep.subr.bf16.mxu0 %v11341_v29  ;;  %4619 = vmatprep.subr.bf16.mxu1 %v11344_v30 }
 0x201   :  { %18 = vsyncpa [#allocation3], 0  ;;  %v11345_v37 = vld [vmem:[%s15560_s2 + $0x1020] ss:$16 sps:$4 sm:$0xff]   ;;  %v11348_v38 = vld [vmem:[%s15560_s2 + $0x1028] ss:$16 sps:$4 sm:$0xff]  }
 0x202   :  { %4122 = vmatmul.mubr.bf16.vlgmr.msra.gmra.mrb[0].mxu0 %v11336_v31  ;;  %4599 = vmatmul.mubr.bf16.vlgmr.msra.gmra.mrb[0].mxu1 %v11336_v31  ;;  %v11353_v39 = vld [vmem:[%s15560_s2 + $0x1044] ss:$16 sps:$4 sm:$0xff]   ;;  %v11356_v40 = vld [vmem:[%s15560_s2 + $0x104c] ss:$16 sps:$4 sm:$0xff]   ;;  %v11425_v41 = vld [vmem:[%s15558_s0 + $0xc8] ss:$72 sps:$4 sm:$0xff]  }
 0x203   :  { %4143 = vmatpush1.bf16.msra.mxu0 %v11339_v32  ;;  %4620 = vmatpush1.bf16.msra.mxu1 %v11342_v33  ;;  %v11351_v42 = vld [vmem:[%s15560_s2 + $0x1040] ss:$16 sps:$4 sm:$0xff]   ;;  %v11354_v43 = vld [vmem:[%s15560_s2 + $0x1048] ss:$16 sps:$4 sm:$0xff]   ;;  %v11359_v44 = vld [vmem:[%s15560_s2 + $0x1064] ss:$16 sps:$4 sm:$0xff]  }
 0x204   :  { %4144 = vmatprep.subr.bf16.mxu0 %v11347_v34  ;;  %4621 = vmatprep.subr.bf16.mxu1 %v11350_v35  ;;  %v11362_v45 = vld [vmem:[%s15560_s2 + $0x106c] ss:$16 sps:$4 sm:$0xff]   ;;  %v11357_v47 = vld [vmem:[%s15560_s2 + $0x1060] ss:$16 sps:$4 sm:$0xff]   ;;  %v11360_v48 = vld [vmem:[%s15560_s2 + $0x1068] ss:$16 sps:$4 sm:$0xff]  }
 0x205   :  { %4131 = vmatprep.mubr.bf16.mxu0 %v11423_v36  ;;  %4608 = vmatprep.mubr.bf16.mxu1 %v11423_v36  ;;  %v11440_v46 = vld [vmem:[%s15558_s0 + $0x44] ss:$72 sps:$4 sm:$0xff]   ;;  %v11363_v51 = vld [vmem:[%s15560_s2 + $0x1080] ss:$16 sps:$4 sm:$0xff]   ;;  %v11366_v52 = vld [vmem:[%s15560_s2 + $0x1088] ss:$16 sps:$4 sm:$0xff]  }
 0x206   :  { %v11365_v49 = vld [vmem:[%s15560_s2 + $0x1084] ss:$16 sps:$4 sm:$0xff]   ;;  %v11368_v50 = vld [vmem:[%s15560_s2 + $0x108c] ss:$16 sps:$4 sm:$0xff]   ;;  %v11369_v55 = vld [vmem:[%s15560_s2 + $0x10a0] ss:$16 sps:$4 sm:$0xff]  }
 0x207   :  { %4145 = vmatpush1.bf16.msra.mxu0 %v11345_v37  ;;  %4622 = vmatpush1.bf16.msra.mxu1 %v11348_v38  ;;  %v11371_v53 = vld [vmem:[%s15560_s2 + $0x10a4] ss:$16 sps:$4 sm:$0xff]   ;;  %v11374_v54 = vld [vmem:[%s15560_s2 + $0x10ac] ss:$16 sps:$4 sm:$0xff]   ;;  %v11372_v56 = vld [vmem:[%s15560_s2 + $0x10a8] ss:$16 sps:$4 sm:$0xff]   ;;  %v4686_v37 = vlaneseq }
 0x208   :  { %4146 = vmatprep.subr.bf16.mxu0 %v11353_v39  ;;  %4623 = vmatprep.subr.bf16.mxu1 %v11356_v40  ;;  %v11377_v57 = vld [vmem:[%s15560_s2 + $0x10c4] ss:$16 sps:$4 sm:$0xff]   ;;  %v11380_v58 = vld [vmem:[%s15560_s2 + $0x10cc] ss:$16 sps:$4 sm:$0xff]   ;;  %v11375_v59 = vld [vmem:[%s15560_s2 + $0x10c0] ss:$16 sps:$4 sm:$0xff]  }
 0x209   :  { %v11378_v60 = vld [vmem:[%s15560_s2 + $0x10c8] ss:$16 sps:$4 sm:$0xff]   ;;  %v11383_v61 = vld [vmem:[%s15560_s2 + $0x10e4] ss:$16 sps:$4 sm:$0xff]   ;;  %v11386_v62 = vld [vmem:[%s15560_s2 + $0x10ec] ss:$16 sps:$4 sm:$0xff]  }
 0x20a   :  { %4132 = vmatmul.mubr.bf16.gmra.mrb[4].mxu0 %v11425_v41  ;;  %4609 = vmatmul.mubr.bf16.gmra.mrb[4].mxu1 %v11425_v41  ;;  %v11381_v63 = vld [vmem:[%s15560_s2 + $0x10e0] ss:$16 sps:$4 sm:$0xff]   ;;  %v11384_v0 = vld [vmem:[%s15560_s2 + $0x10e8] ss:$16 sps:$4 sm:$0xff]   ;;  %v11389_v1 = vld [vmem:[%s15560_s2 + $0x1104] ss:$16 sps:$4 sm:$0xff]  }
 0x20b   :  { %4147 = vmatpush1.bf16.msra.mxu0 %v11351_v42  ;;  %4624 = vmatpush1.bf16.msra.mxu1 %v11354_v43  ;;  %v11392_v2 = vld [vmem:[%s15560_s2 + $0x110c] ss:$16 sps:$4 sm:$0xff]   ;;  %v11387_v3 = vld [vmem:[%s15560_s2 + $0x1100] ss:$16 sps:$4 sm:$0xff]   ;;  %v11390_v4 = vld [vmem:[%s15560_s2 + $0x1108] ss:$16 sps:$4 sm:$0xff]  }
 0x20c   :  { %4148 = vmatprep.subr.bf16.mxu0 %v11359_v44  ;;  %4625 = vmatprep.subr.bf16.mxu1 %v11362_v45  ;;  %v11395_v5 = vld [vmem:[%s15560_s2 + $0x1124] ss:$16 sps:$4 sm:$0xff]   ;;  %v11398_v6 = vld [vmem:[%s15560_s2 + $0x112c] ss:$16 sps:$4 sm:$0xff]   ;;  %v11393_v7 = vld [vmem:[%s15560_s2 + $0x1120] ss:$16 sps:$4 sm:$0xff]  }
 0x20d   :  { %4174 = vmatprep.mubr.bf16.mxu0 %v11440_v46  ;;  %4651 = vmatprep.mubr.bf16.mxu1 %v11440_v46  ;;  %v11396_v8 = vld [vmem:[%s15560_s2 + $0x1128] ss:$16 sps:$4 sm:$0xff]   ;;  %v11401_v9 = vld [vmem:[%s15560_s2 + $0x1144] ss:$16 sps:$4 sm:$0xff]   ;;  %v11404_v10 = vld [vmem:[%s15560_s2 + $0x114c] ss:$16 sps:$4 sm:$0xff]  }
 0x20e   :  { %v11399_v11 = vld [vmem:[%s15560_s2 + $0x1140] ss:$16 sps:$4 sm:$0xff]   ;;  %v11402_v12 = vld [vmem:[%s15560_s2 + $0x1148] ss:$16 sps:$4 sm:$0xff]   ;;  %v11407_v13 = vld [vmem:[%s15560_s2 + $0x1164] ss:$16 sps:$4 sm:$0xff]  }
 0x20f   :  { %4149 = vmatpush1.bf16.msra.mxu0 %v11357_v47  ;;  %4626 = vmatpush1.bf16.msra.mxu1 %v11360_v48  ;;  %v11410_v14 = vld [vmem:[%s15560_s2 + $0x116c] ss:$16 sps:$4 sm:$0xff]   ;;  %v11405_v15 = vld [vmem:[%s15560_s2 + $0x1160] ss:$16 sps:$4 sm:$0xff]   ;;  %v11408_v16 = vld [vmem:[%s15560_s2 + $0x1168] ss:$16 sps:$4 sm:$0xff]  }
 0x210   :  { %4150 = vmatprep.subr.bf16.mxu0 %v11365_v49  ;;  %4627 = vmatprep.subr.bf16.mxu1 %v11368_v50  ;;  %v11413_v17 = vld [vmem:[%s15560_s2 + $0x1184] ss:$16 sps:$4 sm:$0xff]   ;;  %v11416_v18 = vld [vmem:[%s15560_s2 + $0x118c] ss:$16 sps:$4 sm:$0xff]   ;;  %v11411_v19 = vld [vmem:[%s15560_s2 + $0x1180] ss:$16 sps:$4 sm:$0xff]  }
 0x211   :  { %v11414_v20 = vld [vmem:[%s15560_s2 + $0x1188] ss:$16 sps:$4 sm:$0xff]   ;;  %v11419_v21 = vld [vmem:[%s15560_s2 + $0x11a4] ss:$16 sps:$4 sm:$0xff]   ;;  %v11422_v22 = vld [vmem:[%s15560_s2 + $0x11ac] ss:$16 sps:$4 sm:$0xff]  }
 0x212   :  { %v11417_v23 = vld [vmem:[%s15560_s2 + $0x11a0] ss:$16 sps:$4 sm:$0xff]   ;;  %v11420_v24 = vld [vmem:[%s15560_s2 + $0x11a8] ss:$16 sps:$4 sm:$0xff]   ;;  %v11428_v25 = vld [vmem:[%s15560_s2 + $0x11c4] ss:$16 sps:$4 sm:$0xff]  }
 0x213   :  { %4151 = vmatpush1.bf16.msra.mxu0 %v11363_v51  ;;  %4628 = vmatpush1.bf16.msra.mxu1 %v11366_v52  ;;  %v11431_v26 = vld [vmem:[%s15560_s2 + $0x11cc] ss:$16 sps:$4 sm:$0xff]   ;;  %v11426_v27 = vld [vmem:[%s15560_s2 + $0x11c0] ss:$16 sps:$4 sm:$0xff]   ;;  %v11429_v28 = vld [vmem:[%s15560_s2 + $0x11c8] ss:$16 sps:$4 sm:$0xff]  }
 0x214   :  { %4152 = vmatprep.subr.bf16.mxu0 %v11371_v53  ;;  %4629 = vmatprep.subr.bf16.mxu1 %v11374_v54  ;;  %v11434_v29 = vld [vmem:[%s15560_s2 + $0x11e4] ss:$16 sps:$4 sm:$0xff]   ;;  %v11437_v30 = vld [vmem:[%s15560_s2 + $0x11ec] ss:$16 sps:$4 sm:$0xff]   ;;  %v11432_v31 = vld [vmem:[%s15560_s2 + $0x11e0] ss:$16 sps:$4 sm:$0xff]  }
 0x215   :  { %v11435_v32 = vld [vmem:[%s15560_s2 + $0x11e8] ss:$16 sps:$4 sm:$0xff]   ;;  %v11441_v34 = vld [vmem:[%s15558_s0 + $0xd4] ss:$72 sps:$4 sm:$0xff]   ;;  %v11884_v36 = vmov 0.0   ;;  %v13792_v48 = vshrl.u32 %v4686_v37, 7 }
 0x216   :  { %v11438_v33 = vld [vmem:[%s15558_s0 + $0x40] ss:$72 sps:$4 sm:$0xff]   ;;  %v11443_v35 = vld [vmem:[%s15558_s0 + $0xd0] ss:$72 sps:$4 sm:$0xff]   ;;  %vm4741_vm0 = vcmask 64512  }
 0x217   :  { %4153 = vmatpush1.bf16.msra.mxu0 %v11369_v55  ;;  %4630 = vmatpush1.bf16.msra.mxu1 %v11372_v56  ;;  %v13795_v51 = vsub.s32 0, %v13792_v48  ;;  %v13798_v52 = vsub.s32 2, %v13792_v48  ;;  %v4684_v55 = vld [vmem:[%s15561_s3] sm:$0xf]  ;;  %v13804_v56 = vsub.s32 1, %v13792_v48 }
 0x218   :  { %4154 = vmatprep.subr.bf16.mxu0 %v11377_v57  ;;  %4631 = vmatprep.subr.bf16.mxu1 %v11380_v58  ;;  %v13807_v57 = vsub.s32 3, %v13792_v48  ;;  %v4740_v37 = vld [vmem:[%s15559_s1] sm:$0x3] }
 0x21b   :  { %4155 = vmatpush1.bf16.msra.mxu0 %v11375_v59  ;;  %4632 = vmatpush1.bf16.msra.mxu1 %v11378_v60 }
 0x21c   :  { %4156 = vmatprep.subr.bf16.mxu0 %v11383_v61  ;;  %4633 = vmatprep.subr.bf16.mxu1 %v11386_v62 }
 0x21f   :  { %4157 = vmatpush1.bf16.msra.mxu0 %v11381_v63  ;;  %4634 = vmatpush1.bf16.msra.mxu1 %v11384_v0  ;;  %v4689_v63 = vrot.slane %v4684_v55, %v13795_v51 }
 0x220   :  { %4158 = vmatprep.subr.bf16.mxu0 %v11389_v1  ;;  %4635 = vmatprep.subr.bf16.mxu1 %v11392_v2  ;;  %v4697_v1 = vrot.slane %v4684_v55, %v13798_v52 }
 0x223   :  { %4159 = vmatpush1.bf16.msra.mxu0 %v11387_v3  ;;  %4636 = vmatpush1.bf16.msra.mxu1 %v11390_v4 }
 0x224   :  { %4160 = vmatprep.subr.bf16.mxu0 %v11395_v5  ;;  %4637 = vmatprep.subr.bf16.mxu1 %v11398_v6  ;;  %v4693_v5 = vrot.slane %v4684_v55, %v13804_v56 }
 0x227   :  { %4161 = vmatpush1.bf16.msra.mxu0 %v11393_v7  ;;  %4638 = vmatpush1.bf16.msra.mxu1 %v11396_v8  ;;  %v4701_v7 = vrot.slane %v4684_v55, %v13807_v57  ;;  %v4915_v55 = vld [vmem:[%s15563_s5 + $0xc0] sm:$0xff] }
 0x228   :  { %4162 = vmatprep.subr.bf16.mxu0 %v11401_v9  ;;  %4639 = vmatprep.subr.bf16.mxu1 %v11404_v10  ;;  %v4714_v9 = vld [vmem:[%s15562_s4] sm:$0xf] }
 0x22b   :  { %4163 = vmatpush1.bf16.msra.mxu0 %v11399_v11  ;;  %4640 = vmatpush1.bf16.msra.mxu1 %v11402_v12 }
 0x22c   :  { %4164 = vmatprep.subr.bf16.mxu0 %v11407_v13  ;;  %4641 = vmatprep.subr.bf16.mxu1 %v11410_v14 }
 0x22f   :  { %4165 = vmatpush1.bf16.msra.mxu0 %v11405_v15  ;;  %4642 = vmatpush1.bf16.msra.mxu1 %v11408_v16 }
 0x230   :  { %4166 = vmatprep.subr.bf16.mxu0 %v11413_v17  ;;  %4643 = vmatprep.subr.bf16.mxu1 %v11416_v18  ;;  %v4723_v17 = vrot.slane %v4714_v9, %v13804_v56  ;;  %v4731_v18 = vrot.slane %v4714_v9, %v13807_v57 }
 0x233   :  { %4167 = vmatpush1.bf16.msra.mxu0 %v11411_v19  ;;  %4644 = vmatpush1.bf16.msra.mxu1 %v11414_v20  ;;  %v4719_v20 = vrot.slane %v4714_v9, %v13795_v51 }
 0x234   :  { %4168 = vmatprep.subr.bf16.mxu0 %v11419_v21  ;;  %4645 = vmatprep.subr.bf16.mxu1 %v11422_v22  ;;  %v4727_v22 = vrot.slane %v4714_v9, %v13798_v52  ;;  %v4931_v9 = vld [vmem:[%s15563_s5 + $0x140] sm:$0xff] }
 0x237   :  { %4169 = vmatpush1.bf16.msra.mxu0 %v11417_v23  ;;  %4646 = vmatpush1.bf16.msra.mxu1 %v11420_v24  ;;  %v4891_v23 = vld [vmem:[%s15563_s5] sm:$0xff] }
 0x238   :  { %4170 = vmatprep.subr.bf16.mxu0 %v11428_v25  ;;  %4647 = vmatprep.subr.bf16.mxu1 %v11431_v26  ;;  %v4895_v26 = vld [vmem:[%s15563_s5 + $0x20] sm:$0xff] }
 0x23b   :  { %4171 = vmatpush1.bf16.msra.mxu0 %v11426_v27  ;;  %4648 = vmatpush1.bf16.msra.mxu1 %v11429_v28  ;;  %v4892_v27 = vld [vmem:[%s15563_s5 + $0x8] sm:$0xff] }
 0x23c   :  { %4172 = vmatprep.subr.bf16.mxu0 %v11434_v29  ;;  %4649 = vmatprep.subr.bf16.mxu1 %v11437_v30  ;;  %v4896_v28 = vld [vmem:[%s15563_s5 + $0x28] sm:$0xff]  ;;  %v4899_v29 = vld [vmem:[%s15563_s5 + $0x40] sm:$0xff] }
 0x23f   :  { %4173 = vmatpush1.bf16.msra.mxu0 %v11432_v31  ;;  %4650 = vmatpush1.bf16.msra.mxu1 %v11435_v32  ;;  %v4903_v32 = vld [vmem:[%s15563_s5 + $0x60] sm:$0xff] }
 0x242   :  { %4175 = vmatmul.mubr.bf16.vlgmr.msra.gmra.mrb[0].mxu0 %v11438_v33  ;;  %4652 = vmatmul.mubr.bf16.vlgmr.msra.gmra.mrb[0].mxu1 %v11438_v33  ;;  %v4900_v33 = vld [vmem:[%s15563_s5 + $0x48] sm:$0xff] }
 0x243   :  { %4184 = vmatprep.mubr.bf16.mxu0 %v11441_v34  ;;  %4661 = vmatprep.mubr.bf16.mxu1 %v11441_v34  ;;  %v4904_v34 = vld [vmem:[%s15563_s5 + $0x68] sm:$0xff] }
 0x24a   :  { %4185 = vmatmul.mubr.bf16.gmra.mrb[4].mxu0 %v11443_v35  ;;  %4662 = vmatmul.mubr.bf16.gmra.mrb[4].mxu1 %v11443_v35 }
 0x24b   :  { %4809 = vmatprep.mubr.f32.mxu0 %v11884_v36  ;;  %4880 = vmatprep.mubr.f32.mxu1 %v11884_v36 }
 0x315   :  { %v4176_v38 = vpop.f32.mrb[0].mxu0  ;;  %v4653_v39 = vpop.f32.mrb[0].mxu1 }
 0x316   :  { %v4178_v40 = vpop.f32.mrb[1].mxu0  ;;  %v4655_v41 = vpop.f32.mrb[1].mxu1 }
 0x317   :  { %v4180_v42 = vpop.f32.mrb[2].mxu0  ;;  %v4657_v43 = vpop.f32.mrb[2].mxu1 }
 0x318   :  { %v4672_v44 = vmax.f32 %v4176_v38, %v4180_v42  ;;  %v4674_v45 = vmax.f32 %v4653_v39, %v4657_v43  ;;  %v4182_v46 = vpop.f32.mrb[3].mxu0  ;;  %v4659_v47 = vpop.f32.mrb[3].mxu1  ;;  %v9756_v38 = vcombine.high %v4891_v23, %v4895_v26  ;;  %v9758_v39 = vcombine.high %v4892_v27, %v4896_v28 }
 0x319   :  { %v4673_v49 = vmax.f32 %v4178_v40, %v4182_v46  ;;  %v4675_v50 = vmax.f32 %v4655_v41, %v4659_v47  ;;  %v9755_v40 = vcombine.low %v4891_v23, %v4895_v26  ;;  %v9757_v41 = vcombine.low %v4892_v27, %v4896_v28  ;;  %v4908_v46 = vld [vmem:[%s15563_s5 + $0x88] sm:$0xff]  ;;  %v4951_v26 = vld [vmem:[%s15563_s5 + $0x1e0] sm:$0xff] }
 0x31a   :  { %v9764_v42 = vcombine.high %v4899_v29, %v4903_v32  ;;  %v9766_v43 = vcombine.high %v4900_v33, %v4904_v34  ;;  %v4912_v47 = vld [vmem:[%s15563_s5 + $0xa8] sm:$0xff] }
 0x31b   :  { %v4948_v27 = vld [vmem:[%s15563_s5 + $0x1c8] sm:$0xff] }
 0x31c   :  { %v4952_v28 = vld [vmem:[%s15563_s5 + $0x1e8] sm:$0xff] }
 0x31d   :  { %v4186_v53 = vpop.f32.mrb[4].mxu0  ;;  %v4663_v54 = vpop.f32.mrb[4].mxu1 }
 0x31e   :  { %v4188_v58 = vpop.f32.mrb[5].mxu0  ;;  %v4665_v59 = vpop.f32.mrb[5].mxu1 }
 0x31f   :  { %v4190_v60 = vpop.f32.mrb[6].mxu0  ;;  %v4667_v61 = vpop.f32.mrb[6].mxu1 }
 0x320   :  { %v4676_v62 = vmax.f32 %v4186_v53, %v4190_v60  ;;  %v4678_v0 = vmax.f32 %v4663_v54, %v4667_v61  ;;  %v4192_v2 = vpop.f32.mrb[7].mxu0  ;;  %v4669_v3 = vpop.f32.mrb[7].mxu1  ;;  %v9774_v54 = vcombine.high %v4908_v46, %v4912_v47  ;;  %v4920_v60 = vld [vmem:[%s15563_s5 + $0xe8] sm:$0xff] }
 0x321   :  { %v4677_v4 = vmax.f32 %v4188_v58, %v4192_v2  ;;  %v4679_v6 = vmax.f32 %v4665_v59, %v4669_v3  ;;  %v4919_v58 = vld [vmem:[%s15563_s5 + $0xe0] sm:$0xff]  ;;  %v4916_v59 = vld [vmem:[%s15563_s5 + $0xc8] sm:$0xff] }
 0x322   :  { %v4680_v8 = vmax.f32 %v4672_v44, %v4676_v62  ;;  %v4682_v10 = vmax.f32 %v4674_v45, %v4678_v0  ;;  %v4907_v44 = vld [vmem:[%s15563_s5 + $0x80] sm:$0xff]  ;;  %v9773_v62 = vcombine.low %v4908_v46, %v4912_v47  ;;  %v9782_v0 = vcombine.high %v4916_v59, %v4920_v60  ;;  %v4924_v3 = vld [vmem:[%s15563_s5 + $0x108] sm:$0xff] }
 0x323   :  { %v4681_v11 = vmax.f32 %v4673_v49, %v4677_v4  ;;  %v4683_v12 = vmax.f32 %v4675_v50, %v4679_v6  ;;  %v4911_v45 = vld [vmem:[%s15563_s5 + $0xa0] sm:$0xff]  ;;  %v9763_v49 = vcombine.low %v4899_v29, %v4903_v32  ;;  %v9765_v50 = vcombine.low %v4900_v33, %v4904_v34  ;;  %v4928_v4 = vld [vmem:[%s15563_s5 + $0x128] sm:$0xff] }
 0x324   :  { %v4706_v13 = vadd.f32 %v4689_v63, %v4680_v8  ;;  %v4708_v14 = vadd.f32 %v4697_v1, %v4682_v10  ;;  %v9772_v53 = vcombine.high %v4907_v44, %v4911_v45  ;;  %v9771_v61 = vcombine.low %v4907_v44, %v4911_v45  ;;  %v4923_v1 = vld [vmem:[%s15563_s5 + $0x100] sm:$0xff]  ;;  %v4968_v44 = vld [vmem:[%s15563_s5 + $0x268] sm:$0xff] }
 0x325   :  { %v4707_v15 = vadd.f32 %v4693_v5, %v4681_v11  ;;  %v4709_v16 = vadd.f32 %v4701_v7, %v4683_v12  ;;  %v9780_v63 = vcombine.high %v4915_v55, %v4919_v58  ;;  %v4927_v2 = vld [vmem:[%s15563_s5 + $0x120] sm:$0xff]  ;;  %v9779_v5 = vcombine.low %v4915_v55, %v4919_v58  ;;  %v4932_v11 = vld [vmem:[%s15563_s5 + $0x148] sm:$0xff] }
 0x326   :  { %v4710_v19 = vmax.f32 %v4706_v13, 0.0  ;;  %v4712_v21 = vmax.f32 %v4708_v14, 0.0  ;;  %v9781_v6 = vcombine.low %v4916_v59, %v4920_v60  ;;  %v9788_v7 = vcombine.high %v4923_v1, %v4927_v2  ;;  %v4935_v10 = vld [vmem:[%s15563_s5 + $0x160] sm:$0xff]  ;;  %v4936_v12 = vld [vmem:[%s15563_s5 + $0x168] sm:$0xff] }
 0x327   :  { %v4711_v24 = vmax.f32 %v4707_v15, 0.0  ;;  %v4713_v25 = vmax.f32 %v4709_v16, 0.0  ;;  %v9790_v8 = vcombine.high %v4924_v3, %v4928_v4  ;;  %v9787_v13 = vcombine.low %v4923_v1, %v4927_v2  ;;  %v4955_v33 = vld [vmem:[%s15563_s5 + $0x200] sm:$0xff]  ;;  %v4976_v55 = vld [vmem:[%s15563_s5 + $0x2a8] sm:$0xff] }
 0x328   :  { %v4736_v35 = vadd.f32 %v4719_v20, %v4710_v19  ;;  %v4738_v36 = vadd.f32 %v4727_v22, %v4712_v21  ;;  %v9789_v14 = vcombine.low %v4924_v3, %v4928_v4  ;;  %v9796_v15 = vcombine.high %v4931_v9, %v4935_v10  ;;  %v4940_v19 = vld [vmem:[%s15563_s5 + $0x188] sm:$0xff]  ;;  %v4959_v34 = vld [vmem:[%s15563_s5 + $0x220] sm:$0xff] }
 0x329   :  { %v4737_v30 = vadd.f32 %v4723_v17, %v4711_v24  ;;  %v4739_v31 = vadd.f32 %v4731_v18, %v4713_v25  ;;  %v9798_v16 = vcombine.high %v4932_v11, %v4936_v12  ;;  %v4939_v17 = vld [vmem:[%s15563_s5 + $0x180] sm:$0xff]  ;;  %v4944_v20 = vld [vmem:[%s15563_s5 + $0x1a8] sm:$0xff]  ;;  %v9795_v21 = vcombine.low %v4931_v9, %v4935_v10 }
 0x32a   :  { %v4943_v18 = vld [vmem:[%s15563_s5 + $0x1a0] sm:$0xff]  ;;  %v9797_v22 = vcombine.low %v4932_v11, %v4936_v12  ;;  %v9806_v24 = vcombine.high %v4940_v19, %v4944_v20  ;;  %v9814_v32 = vcombine.high %v4948_v27, %v4952_v28  ;;  %v9819_v45 = vcombine.low %v4955_v33, %v4959_v34  ;;  %v4984_v1 = vld [vmem:[%s15563_s5 + $0x2e8] sm:$0xff] }
 0x32b   :  { %4745 = vmatprep.subr.mxu0 %v4737_v30  ;;  %4816 = vmatprep.subr.mxu1 %v4739_v31  ;;  %v9804_v23 = vcombine.high %v4939_v17, %v4943_v18  ;;  %v4947_v25 = vld [vmem:[%s15563_s5 + $0x1c0] sm:$0xff]  ;;  %v9803_v29 = vcombine.low %v4939_v17, %v4943_v18  ;;  %v9805_v30 = vcombine.low %v4940_v19, %v4944_v20  ;;  %v4992_v9 = vld [vmem:[%s15563_s5 + $0x328] sm:$0xff] }
 0x32c   :  { %4746 = vmatpush1.msra.mxu0 %v4736_v35  ;;  %4817 = vmatpush1.msra.mxu1 %v4738_v36  ;;  %v9812_v31 = vcombine.high %v4947_v25, %v4951_v26  ;;  %v4956_v35 = vld [vmem:[%s15563_s5 + $0x208] sm:$0xff] }
 0x32d   :  { %9753 = vmatmul.mubr.msk.f32.vlgmr.msra.gmra.mrb[8].mxu0 %vm4741_vm0, %v4740_v37  ;;  %9754 = vmatmul.mubr.msk.f32.vlgmr.msra.gmra.mrb[8].mxu1 %vm4741_vm0, %v4740_v37  ;;  %v4960_v36 = vld [vmem:[%s15563_s5 + $0x228] sm:$0xff]  ;;  %v9811_v37 = vcombine.low %v4947_v25, %v4951_v26 }
 0x32e   :  { %6469 = vmatprep.subr.bf16.mxu0 %v9756_v38  ;;  %6551 = vmatprep.subr.bf16.mxu1 %v9758_v39  ;;  %v9813_v38 = vcombine.low %v4948_v27, %v4952_v28  ;;  %v9820_v39 = vcombine.high %v4955_v33, %v4959_v34  ;;  %v9821_v46 = vcombine.low %v4956_v35, %v4960_v36  ;;  %v5000_v17 = vld [vmem:[%s15563_s5 + $0x368] sm:$0xff]  ;;  %v5015_v33 = vld [vmem:[%s15563_s5 + $0x3e0] sm:$0xff] }
 0x32f   :  { %6470 = vmatpush1.bf16.msra.mxu0 %v9755_v40  ;;  %6552 = vmatpush1.bf16.msra.mxu1 %v9757_v41  ;;  %v9822_v40 = vcombine.high %v4956_v35, %v4960_v36  ;;  %v4963_v41 = vld [vmem:[%s15563_s5 + $0x240] sm:$0xff]  ;;  %v5008_v25 = vld [vmem:[%s15563_s5 + $0x3a8] sm:$0xff] }
 0x330   :  { %6471 = vmatprep.subr.bf16.mxu0 %v9764_v42  ;;  %6553 = vmatprep.subr.bf16.mxu1 %v9766_v43  ;;  %v4967_v42 = vld [vmem:[%s15563_s5 + $0x260] sm:$0xff]  ;;  %v4964_v43 = vld [vmem:[%s15563_s5 + $0x248] sm:$0xff] }
 0x331   :  { %v9828_v47 = vcombine.high %v4963_v41, %v4967_v42  ;;  %v9827_v58 = vcombine.low %v4963_v41, %v4967_v42  ;;  %v9829_v59 = vcombine.low %v4964_v43, %v4968_v44  ;;  %v5012_v34 = vld [vmem:[%s15563_s5 + $0x3c8] sm:$0xff]  ;;  %v5023_v41 = vld [vmem:[%s15563_s5 + $0x420] sm:$0xff] }
 0x332   :  { %v5016_v36 = vld [vmem:[%s15563_s5 + $0x3e8] sm:$0xff] }
 0x333   :  { %6472 = vmatpush1.bf16.msra.mxu0 %v9763_v49  ;;  %6554 = vmatpush1.bf16.msra.mxu1 %v9765_v50  ;;  %v9830_v49 = vcombine.high %v4964_v43, %v4968_v44  ;;  %v4971_v50 = vld [vmem:[%s15563_s5 + $0x280] sm:$0xff]  ;;  %v5020_v42 = vld [vmem:[%s15563_s5 + $0x408] sm:$0xff] }
 0x334   :  { %6473 = vmatprep.subr.bf16.mxu0 %v9772_v53  ;;  %6555 = vmatprep.subr.bf16.mxu1 %v9774_v54  ;;  %v4975_v53 = vld [vmem:[%s15563_s5 + $0x2a0] sm:$0xff]  ;;  %v4972_v54 = vld [vmem:[%s15563_s5 + $0x288] sm:$0xff] }
 0x335   :  { %v9836_v60 = vcombine.high %v4971_v50, %v4975_v53  ;;  %v9835_v2 = vcombine.low %v4971_v50, %v4975_v53  ;;  %v9837_v3 = vcombine.low %v4972_v54, %v4976_v55  ;;  %v5024_v44 = vld [vmem:[%s15563_s5 + $0x428] sm:$0xff]  ;;  %v5031_v53 = vld [vmem:[%s15563_s5 + $0x460] sm:$0xff] }
 0x337   :  { %6474 = vmatpush1.bf16.msra.mxu0 %v9771_v61  ;;  %6556 = vmatpush1.bf16.msra.mxu1 %v9773_v62  ;;  %v9838_v61 = vcombine.high %v4972_v54, %v4976_v55  ;;  %v4979_v62 = vld [vmem:[%s15563_s5 + $0x2c0] sm:$0xff]  ;;  %v5028_v54 = vld [vmem:[%s15563_s5 + $0x448] sm:$0xff] }
 0x338   :  { %6475 = vmatprep.subr.bf16.mxu0 %v9780_v63  ;;  %6557 = vmatprep.subr.bf16.mxu1 %v9782_v0  ;;  %v4983_v63 = vld [vmem:[%s15563_s5 + $0x2e0] sm:$0xff]  ;;  %v4980_v0 = vld [vmem:[%s15563_s5 + $0x2c8] sm:$0xff] }
 0x339   :  { %v9844_v4 = vcombine.high %v4979_v62, %v4983_v63  ;;  %v9843_v10 = vcombine.low %v4979_v62, %v4983_v63  ;;  %v9845_v11 = vcombine.low %v4980_v0, %v4984_v1  ;;  %v5032_v55 = vld [vmem:[%s15563_s5 + $0x468] sm:$0xff] }
 0x33b   :  { %6476 = vmatpush1.bf16.msra.mxu0 %v9779_v5  ;;  %6558 = vmatpush1.bf16.msra.mxu1 %v9781_v6  ;;  %v9846_v5 = vcombine.high %v4980_v0, %v4984_v1  ;;  %v4987_v6 = vld [vmem:[%s15563_s5 + $0x300] sm:$0xff]  ;;  %v9894_v0 = vcombine.high %v5028_v54, %v5032_v55 }
 0x33c   :  { %6477 = vmatprep.subr.bf16.mxu0 %v9788_v7  ;;  %6559 = vmatprep.subr.bf16.mxu1 %v9790_v8  ;;  %v4991_v7 = vld [vmem:[%s15563_s5 + $0x320] sm:$0xff]  ;;  %v4988_v8 = vld [vmem:[%s15563_s5 + $0x308] sm:$0xff] }
 0x33d   :  { %v9852_v12 = vcombine.high %v4987_v6, %v4991_v7  ;;  %v9851_v18 = vcombine.low %v4987_v6, %v4991_v7  ;;  %v9853_v19 = vcombine.low %v4988_v8, %v4992_v9  ;;  %v5035_v1 = vld [vmem:[%s15563_s5 + $0x480] sm:$0xff]  ;;  %v9893_v7 = vcombine.low %v5028_v54, %v5032_v55  ;;  %v5084_v55 = vld [vmem:[%s15563_s5 + $0x608] sm:$0xff] }
 0x33e   :  { %v5087_v54 = vld [vmem:[%s15563_s5 + $0x620] sm:$0xff] }
 0x33f   :  { %6478 = vmatpush1.bf16.msra.mxu0 %v9787_v13  ;;  %6560 = vmatpush1.bf16.msra.mxu1 %v9789_v14  ;;  %v9854_v13 = vcombine.high %v4988_v8, %v4992_v9  ;;  %v4995_v14 = vld [vmem:[%s15563_s5 + $0x340] sm:$0xff] }
 0x340   :  { %6479 = vmatprep.subr.bf16.mxu0 %v9796_v15  ;;  %6561 = vmatprep.subr.bf16.mxu1 %v9798_v16  ;;  %v4999_v15 = vld [vmem:[%s15563_s5 + $0x360] sm:$0xff]  ;;  %v4996_v16 = vld [vmem:[%s15563_s5 + $0x348] sm:$0xff] }
 0x341   :  { %v9860_v20 = vcombine.high %v4995_v14, %v4999_v15  ;;  %v9859_v26 = vcombine.low %v4995_v14, %v4999_v15  ;;  %v9861_v27 = vcombine.low %v4996_v16, %v5000_v17 }
 0x343   :  { %6480 = vmatpush1.bf16.msra.mxu0 %v9795_v21  ;;  %6562 = vmatpush1.bf16.msra.mxu1 %v9797_v22  ;;  %v9862_v21 = vcombine.high %v4996_v16, %v5000_v17  ;;  %v5003_v22 = vld [vmem:[%s15563_s5 + $0x380] sm:$0xff] }
 0x344   :  { %6481 = vmatprep.subr.bf16.mxu0 %v9804_v23  ;;  %6563 = vmatprep.subr.bf16.mxu1 %v9806_v24  ;;  %v5007_v23 = vld [vmem:[%s15563_s5 + $0x3a0] sm:$0xff]  ;;  %v5004_v24 = vld [vmem:[%s15563_s5 + $0x388] sm:$0xff] }
 0x345   :  { %v9868_v28 = vcombine.high %v5003_v22, %v5007_v23 }
 0x347   :  { %6482 = vmatpush1.bf16.msra.mxu0 %v9803_v29  ;;  %6564 = vmatpush1.bf16.msra.mxu1 %v9805_v30  ;;  %v9870_v29 = vcombine.high %v5004_v24, %v5008_v25  ;;  %v9867_v30 = vcombine.low %v5003_v22, %v5007_v23 }
 0x348   :  { %6483 = vmatprep.subr.bf16.mxu0 %v9812_v31  ;;  %6565 = vmatprep.subr.bf16.mxu1 %v9814_v32  ;;  %v9869_v31 = vcombine.low %v5004_v24, %v5008_v25  ;;  %v5011_v32 = vld [vmem:[%s15563_s5 + $0x3c0] sm:$0xff] }
 0x349   :  { %v9876_v35 = vcombine.high %v5011_v32, %v5015_v33 }
 0x34b   :  { %6484 = vmatpush1.bf16.msra.mxu0 %v9811_v37  ;;  %6566 = vmatpush1.bf16.msra.mxu1 %v9813_v38  ;;  %v9875_v37 = vcombine.low %v5011_v32, %v5015_v33  ;;  %v9877_v38 = vcombine.low %v5012_v34, %v5016_v36 }
 0x34c   :  { %6485 = vmatprep.subr.bf16.mxu0 %v9820_v39  ;;  %6567 = vmatprep.subr.bf16.mxu1 %v9822_v40  ;;  %v9878_v39 = vcombine.high %v5012_v34, %v5016_v36  ;;  %v5019_v40 = vld [vmem:[%s15563_s5 + $0x400] sm:$0xff]  ;;  %v5068_v36 = vld [vmem:[%s15563_s5 + $0x588] sm:$0xff] }
 0x34d   :  { %v9884_v43 = vcombine.high %v5019_v40, %v5023_v41  ;;  %v5067_v34 = vld [vmem:[%s15563_s5 + $0x580] sm:$0xff] }
 0x34f   :  { %6486 = vmatpush1.bf16.msra.mxu0 %v9819_v45  ;;  %6568 = vmatpush1.bf16.msra.mxu1 %v9821_v46  ;;  %v9883_v45 = vcombine.low %v5019_v40, %v5023_v41  ;;  %v9885_v46 = vcombine.low %v5020_v42, %v5024_v44 }
 0x350   :  { %6487 = vmatprep.subr.bf16.mxu0 %v9828_v47  ;;  %6569 = vmatprep.subr.bf16.mxu1 %v9830_v49  ;;  %v9886_v47 = vcombine.high %v5020_v42, %v5024_v44  ;;  %v5027_v49 = vld [vmem:[%s15563_s5 + $0x440] sm:$0xff]  ;;  %v5076_v44 = vld [vmem:[%s15563_s5 + $0x5c8] sm:$0xff] }
 0x351   :  { %v9892_v63 = vcombine.high %v5027_v49, %v5031_v53  ;;  %v9891_v6 = vcombine.low %v5027_v49, %v5031_v53  ;;  %v5075_v42 = vld [vmem:[%s15563_s5 + $0x5c0] sm:$0xff] }
 0x352   :  { %v5083_v53 = vld [vmem:[%s15563_s5 + $0x600] sm:$0xff] }
 0x353   :  { %6488 = vmatpush1.bf16.msra.mxu0 %v9827_v58  ;;  %6570 = vmatpush1.bf16.msra.mxu1 %v9829_v59 }
 0x354   :  { %6489 = vmatprep.subr.bf16.mxu0 %v9836_v60  ;;  %6571 = vmatprep.subr.bf16.mxu1 %v9838_v61 }
 0x357   :  { %6490 = vmatpush1.bf16.msra.mxu0 %v9835_v2  ;;  %6572 = vmatpush1.bf16.msra.mxu1 %v9837_v3  ;;  %v5039_v2 = vld [vmem:[%s15563_s5 + $0x4a0] sm:$0xff]  ;;  %v5036_v3 = vld [vmem:[%s15563_s5 + $0x488] sm:$0xff] }
 0x358   :  { %6491 = vmatprep.subr.bf16.mxu0 %v9844_v4  ;;  %6573 = vmatprep.subr.bf16.mxu1 %v9846_v5  ;;  %v5040_v4 = vld [vmem:[%s15563_s5 + $0x4a8] sm:$0xff]  ;;  %v9900_v8 = vcombine.high %v5035_v1, %v5039_v2  ;;  %v9899_v14 = vcombine.low %v5035_v1, %v5039_v2  ;;  %v5091_v2 = vld [vmem:[%s15563_s5 + $0x640] sm:$0xff] }
 0x359   :  { %v9902_v9 = vcombine.high %v5036_v3, %v5040_v4  ;;  %v9901_v15 = vcombine.low %v5036_v3, %v5040_v4  ;;  %v5095_v3 = vld [vmem:[%s15563_s5 + $0x660] sm:$0xff]  ;;  %v5092_v4 = vld [vmem:[%s15563_s5 + $0x648] sm:$0xff] }
 0x35b   :  { %6492 = vmatpush1.bf16.msra.mxu0 %v9843_v10  ;;  %6574 = vmatpush1.bf16.msra.mxu1 %v9845_v11  ;;  %v5043_v10 = vld [vmem:[%s15563_s5 + $0x4c0] sm:$0xff] }
 0x35c   :  { %6493 = vmatprep.subr.bf16.mxu0 %v9852_v12  ;;  %6575 = vmatprep.subr.bf16.mxu1 %v9854_v13  ;;  %v5047_v11 = vld [vmem:[%s15563_s5 + $0x4e0] sm:$0xff]  ;;  %v5044_v12 = vld [vmem:[%s15563_s5 + $0x4c8] sm:$0xff] }
 0x35d   :  { %v5048_v13 = vld [vmem:[%s15563_s5 + $0x4e8] sm:$0xff]  ;;  %v9908_v16 = vcombine.high %v5043_v10, %v5047_v11  ;;  %v9907_v22 = vcombine.low %v5043_v10, %v5047_v11  ;;  %v5099_v11 = vld [vmem:[%s15563_s5 + $0x680] sm:$0xff] }
 0x35e   :  { %v9910_v17 = vcombine.high %v5044_v12, %v5048_v13  ;;  %v9909_v23 = vcombine.low %v5044_v12, %v5048_v13  ;;  %v5103_v12 = vld [vmem:[%s15563_s5 + $0x6a0] sm:$0xff]  ;;  %v5100_v13 = vld [vmem:[%s15563_s5 + $0x688] sm:$0xff] }
 0x35f   :  { %6494 = vmatpush1.bf16.msra.mxu0 %v9851_v18  ;;  %6576 = vmatpush1.bf16.msra.mxu1 %v9853_v19  ;;  %v5051_v18 = vld [vmem:[%s15563_s5 + $0x500] sm:$0xff] }
 0x360   :  { %6495 = vmatprep.subr.bf16.mxu0 %v9860_v20  ;;  %6577 = vmatprep.subr.bf16.mxu1 %v9862_v21  ;;  %v5055_v19 = vld [vmem:[%s15563_s5 + $0x520] sm:$0xff]  ;;  %v5052_v20 = vld [vmem:[%s15563_s5 + $0x508] sm:$0xff] }
 0x361   :  { %v5056_v21 = vld [vmem:[%s15563_s5 + $0x528] sm:$0xff]  ;;  %v9916_v24 = vcombine.high %v5051_v18, %v5055_v19 }
 0x362   :  { %v9918_v25 = vcombine.high %v5052_v20, %v5056_v21 }
 0x363   :  { %6496 = vmatpush1.bf16.msra.mxu0 %v9859_v26  ;;  %6578 = vmatpush1.bf16.msra.mxu1 %v9861_v27  ;;  %v5059_v26 = vld [vmem:[%s15563_s5 + $0x540] sm:$0xff] }
 0x364   :  { %6497 = vmatprep.subr.bf16.mxu0 %v9868_v28  ;;  %6579 = vmatprep.subr.bf16.mxu1 %v9870_v29  ;;  %v5063_v27 = vld [vmem:[%s15563_s5 + $0x560] sm:$0xff]  ;;  %v5060_v28 = vld [vmem:[%s15563_s5 + $0x548] sm:$0xff] }
 0x365   :  { %v5064_v29 = vld [vmem:[%s15563_s5 + $0x568] sm:$0xff]  ;;  %v9924_v32 = vcombine.high %v5059_v26, %v5063_v27 }
 0x366   :  { %v9926_v33 = vcombine.high %v5060_v28, %v5064_v29 }
 0x367   :  { %6498 = vmatpush1.bf16.msra.mxu0 %v9867_v30  ;;  %6580 = vmatpush1.bf16.msra.mxu1 %v9869_v31  ;;  %v9915_v30 = vcombine.low %v5051_v18, %v5055_v19  ;;  %v9917_v31 = vcombine.low %v5052_v20, %v5056_v21  ;;  %v5107_v19 = vld [vmem:[%s15563_s5 + $0x6c0] sm:$0xff]  ;;  %v5108_v21 = vld [vmem:[%s15563_s5 + $0x6c8] sm:$0xff] }
 0x368   :  { %6499 = vmatprep.subr.bf16.mxu0 %v9876_v35  ;;  %6581 = vmatprep.subr.bf16.mxu1 %v9878_v39  ;;  %v5071_v35 = vld [vmem:[%s15563_s5 + $0x5a0] sm:$0xff]  ;;  %v9925_v39 = vcombine.low %v5060_v28, %v5064_v29  ;;  %v5116_v29 = vld [vmem:[%s15563_s5 + $0x708] sm:$0xff] }
 0x369   :  { %v9932_v40 = vcombine.high %v5067_v34, %v5071_v35  ;;  %v5111_v20 = vld [vmem:[%s15563_s5 + $0x6e0] sm:$0xff] }
 0x36a   :  { %v5119_v28 = vld [vmem:[%s15563_s5 + $0x720] sm:$0xff] }
 0x36b   :  { %6500 = vmatpush1.bf16.msra.mxu0 %v9875_v37  ;;  %6582 = vmatpush1.bf16.msra.mxu1 %v9877_v38  ;;  %v5072_v37 = vld [vmem:[%s15563_s5 + $0x5a8] sm:$0xff]  ;;  %v9923_v38 = vcombine.low %v5059_v26, %v5063_v27  ;;  %v5115_v27 = vld [vmem:[%s15563_s5 + $0x700] sm:$0xff] }
 0x36c   :  { %6510 = vmatprep.subr.bf16.mxu0 %v9884_v43  ;;  %6592 = vmatprep.subr.bf16.mxu1 %v9886_v47  ;;  %v9934_v41 = vcombine.high %v5068_v36, %v5072_v37  ;;  %v5079_v43 = vld [vmem:[%s15563_s5 + $0x5e0] sm:$0xff]  ;;  %v9933_v47 = vcombine.low %v5068_v36, %v5072_v37  ;;  %v5124_v37 = vld [vmem:[%s15563_s5 + $0x748] sm:$0xff] }
 0x36d   :  { %v9940_v49 = vcombine.high %v5075_v42, %v5079_v43  ;;  %v5127_v36 = vld [vmem:[%s15563_s5 + $0x760] sm:$0xff] }
 0x400   :  { %v4811_v50 = vpop.f32.mrb[8].mxu0  ;;  %v14041_v58 = vpop.f32.mrb[8].mxu1 }
 0x401   :  { %v4813_v59 = vpop.f32.mrb[9].mxu0  ;;  %v4884_v60 = vpop.f32.mrb[9].mxu1  ;;  %v14045_v62 = vpack.c.bf16 %v4811_v50, %v4811_v50 }
 0x402   :  { %v14043_v61 = vpack.c.bf16 %v4813_v59, %v4813_v59  ;;  %v14061_v5 = vpack.c.bf16 %v4884_v60, %v4884_v60  ;;  %v5088_v59 = vld [vmem:[%s15563_s5 + $0x628] sm:$0xff]  ;;  %v9939_v60 = vcombine.low %v5075_v42, %v5079_v43  ;;  %v5131_v43 = vld [vmem:[%s15563_s5 + $0x780] sm:$0xff] }
 0x403   :  { %v9950_v1 = vcombine.high %v5084_v55, %v5088_v59 }
 0x404   :  { %6501 = vmatprep.mubr.bf16.mxu0 %v14043_v61  ;;  %6583 = vmatprep.mubr.bf16.mxu1 %v14043_v61 }
 0x405   :  { %6502 = vmatmul.mubr.bf16.vlgmr.msra.gmra.mrb[12].mxu0 %v14045_v62  ;;  %6584 = vmatmul.mubr.bf16.vlgmr.msra.gmra.mrb[12].mxu1 %v14045_v62 }
 0x406   :  { %6511 = vmatpush1.bf16.msra.mxu0 %v9883_v45  ;;  %6593 = vmatpush1.bf16.msra.mxu1 %v9885_v46  ;;  %v5080_v45 = vld [vmem:[%s15563_s5 + $0x5e8] sm:$0xff]  ;;  %v9931_v46 = vcombine.low %v5067_v34, %v5071_v35  ;;  %v5123_v35 = vld [vmem:[%s15563_s5 + $0x740] sm:$0xff] }
 0x407   :  { %6512 = vmatprep.subr.bf16.mxu0 %v9892_v63  ;;  %6594 = vmatprep.subr.bf16.mxu1 %v9894_v0  ;;  %v9942_v50 = vcombine.high %v5076_v44, %v5080_v45  ;;  %v9941_v63 = vcombine.low %v5076_v44, %v5080_v45  ;;  %v9948_v0 = vcombine.high %v5083_v53, %v5087_v54  ;;  %v5135_v44 = vld [vmem:[%s15563_s5 + $0x7a0] sm:$0xff]  ;;  %v5132_v45 = vld [vmem:[%s15563_s5 + $0x788] sm:$0xff] }
 0x408   :  { %6542 = vmatprep.mubr.bf16.mxu0 %v14061_v5  ;;  %6624 = vmatprep.mubr.bf16.mxu1 %v14061_v5 }
 0x40a   :  { %6513 = vmatpush1.bf16.msra.mxu0 %v9891_v6  ;;  %6595 = vmatpush1.bf16.msra.mxu1 %v9893_v7  ;;  %v5096_v6 = vld [vmem:[%s15563_s5 + $0x668] sm:$0xff]  ;;  %v9947_v7 = vcombine.low %v5083_v53, %v5087_v54  ;;  %v5139_v54 = vld [vmem:[%s15563_s5 + $0x7c0] sm:$0xff] }
 0x40b   :  { %6514 = vmatprep.subr.bf16.mxu0 %v9900_v8  ;;  %6596 = vmatprep.subr.bf16.mxu1 %v9902_v9  ;;  %v9949_v8 = vcombine.low %v5084_v55, %v5088_v59  ;;  %v9956_v9 = vcombine.high %v5091_v2, %v5095_v3  ;;  %v9958_v10 = vcombine.high %v5092_v4, %v5096_v6  ;;  %v5143_v55 = vld [vmem:[%s15563_s5 + $0x7e0] sm:$0xff]  ;;  %v5140_v59 = vld [vmem:[%s15563_s5 + $0x7c8] sm:$0xff] }
 0x40e   :  { %6515 = vmatpush1.bf16.msra.mxu0 %v9899_v14  ;;  %6597 = vmatpush1.bf16.msra.mxu1 %v9901_v15  ;;  %v5104_v14 = vld [vmem:[%s15563_s5 + $0x6a8] sm:$0xff]  ;;  %v9955_v15 = vcombine.low %v5091_v2, %v5095_v3  ;;  %v4893_v3 = vld [vmem:[%s15563_s5 + $0x10] sm:$0xff] }
 0x40f   :  { %6516 = vmatprep.subr.bf16.mxu0 %v9908_v16  ;;  %6598 = vmatprep.subr.bf16.mxu1 %v9910_v17  ;;  %v9957_v16 = vcombine.low %v5092_v4, %v5096_v6  ;;  %v9964_v17 = vcombine.high %v5099_v11, %v5103_v12  ;;  %v9966_v18 = vcombine.high %v5100_v13, %v5104_v14  ;;  %v4897_v4 = vld [vmem:[%s15563_s5 + $0x30] sm:$0xff]  ;;  %v4894_v6 = vld [vmem:[%s15563_s5 + $0x18] sm:$0xff] }
 0x412   :  { %6517 = vmatpush1.bf16.msra.mxu0 %v9907_v22  ;;  %6599 = vmatpush1.bf16.msra.mxu1 %v9909_v23  ;;  %v5112_v22 = vld [vmem:[%s15563_s5 + $0x6e8] sm:$0xff]  ;;  %v9963_v23 = vcombine.low %v5099_v11, %v5103_v12  ;;  %v4901_v12 = vld [vmem:[%s15563_s5 + $0x50] sm:$0xff] }
 0x413   :  { %6518 = vmatprep.subr.bf16.mxu0 %v9916_v24  ;;  %6600 = vmatprep.subr.bf16.mxu1 %v9918_v25  ;;  %v9965_v24 = vcombine.low %v5100_v13, %v5104_v14  ;;  %v9972_v25 = vcombine.high %v5107_v19, %v5111_v20  ;;  %v9974_v26 = vcombine.high %v5108_v21, %v5112_v22  ;;  %v4905_v13 = vld [vmem:[%s15563_s5 + $0x70] sm:$0xff]  ;;  %v4902_v14 = vld [vmem:[%s15563_s5 + $0x58] sm:$0xff] }
 0x416   :  { %6519 = vmatpush1.bf16.msra.mxu0 %v9915_v30  ;;  %6601 = vmatpush1.bf16.msra.mxu1 %v9917_v31  ;;  %v5120_v30 = vld [vmem:[%s15563_s5 + $0x728] sm:$0xff]  ;;  %v9971_v31 = vcombine.low %v5107_v19, %v5111_v20  ;;  %v9768_v19 = vcombine.high %v4901_v12, %v4905_v13 }
 0x417   :  { %6520 = vmatprep.subr.bf16.mxu0 %v9924_v32  ;;  %6602 = vmatprep.subr.bf16.mxu1 %v9926_v33  ;;  %v9973_v32 = vcombine.low %v5108_v21, %v5112_v22  ;;  %v9980_v33 = vcombine.high %v5115_v27, %v5119_v28  ;;  %v9982_v34 = vcombine.high %v5116_v29, %v5120_v30  ;;  %v4909_v21 = vld [vmem:[%s15563_s5 + $0x90] sm:$0xff] }
 0x418   :  { %v4913_v22 = vld [vmem:[%s15563_s5 + $0xb0] sm:$0xff] }
 0x41a   :  { %6521 = vmatpush1.bf16.msra.mxu0 %v9923_v38  ;;  %6603 = vmatpush1.bf16.msra.mxu1 %v9925_v39  ;;  %v5128_v38 = vld [vmem:[%s15563_s5 + $0x768] sm:$0xff]  ;;  %v9979_v39 = vcombine.low %v5115_v27, %v5119_v28  ;;  %v4917_v28 = vld [vmem:[%s15563_s5 + $0xd0] sm:$0xff] }
 0x41b   :  { %6522 = vmatprep.subr.bf16.mxu0 %v9932_v40  ;;  %6604 = vmatprep.subr.bf16.mxu1 %v9934_v41  ;;  %v9981_v40 = vcombine.low %v5116_v29, %v5120_v30  ;;  %v9988_v41 = vcombine.high %v5123_v35, %v5127_v36  ;;  %v9990_v42 = vcombine.high %v5124_v37, %v5128_v38  ;;  %v4921_v29 = vld [vmem:[%s15563_s5 + $0xf0] sm:$0xff]  ;;  %v4918_v30 = vld [vmem:[%s15563_s5 + $0xd8] sm:$0xff] }
 0x41e   :  { %6523 = vmatpush1.bf16.msra.mxu0 %v9931_v46  ;;  %6605 = vmatpush1.bf16.msra.mxu1 %v9933_v47  ;;  %v5136_v46 = vld [vmem:[%s15563_s5 + $0x7a8] sm:$0xff]  ;;  %v9987_v47 = vcombine.low %v5123_v35, %v5127_v36  ;;  %v4925_v35 = vld [vmem:[%s15563_s5 + $0x110] sm:$0xff] }
 0x41f   :  { %6524 = vmatprep.subr.bf16.mxu0 %v9940_v49  ;;  %6606 = vmatprep.subr.bf16.mxu1 %v9942_v50  ;;  %v9989_v49 = vcombine.low %v5124_v37, %v5128_v38  ;;  %v9996_v50 = vcombine.high %v5131_v43, %v5135_v44  ;;  %v9998_v53 = vcombine.high %v5132_v45, %v5136_v46  ;;  %v4929_v36 = vld [vmem:[%s15563_s5 + $0x130] sm:$0xff]  ;;  %v4926_v37 = vld [vmem:[%s15563_s5 + $0x118] sm:$0xff] }
 0x420   :  { %v4930_v38 = vld [vmem:[%s15563_s5 + $0x138] sm:$0xff] }
 0x422   :  { %6525 = vmatpush1.bf16.msra.mxu0 %v9939_v60  ;;  %6607 = vmatpush1.bf16.msra.mxu1 %v9941_v63  ;;  %v5144_v60 = vld [vmem:[%s15563_s5 + $0x7e8] sm:$0xff]  ;;  %v9995_v63 = vcombine.low %v5131_v43, %v5135_v44  ;;  %v4933_v43 = vld [vmem:[%s15563_s5 + $0x150] sm:$0xff] }
 0x423   :  { %6526 = vmatprep.subr.bf16.mxu0 %v9948_v0  ;;  %6608 = vmatprep.subr.bf16.mxu1 %v9950_v1  ;;  %v9997_v0 = vcombine.low %v5132_v45, %v5136_v46  ;;  %v10004_v1 = vcombine.high %v5139_v54, %v5143_v55  ;;  %v10006_v2 = vcombine.high %v5140_v59, %v5144_v60  ;;  %v4937_v44 = vld [vmem:[%s15563_s5 + $0x170] sm:$0xff]  ;;  %v4934_v45 = vld [vmem:[%s15563_s5 + $0x158] sm:$0xff] }
 0x424   :  { %v4938_v46 = vld [vmem:[%s15563_s5 + $0x178] sm:$0xff] }
 0x426   :  { %6527 = vmatpush1.bf16.msra.mxu0 %v9947_v7  ;;  %6609 = vmatpush1.bf16.msra.mxu1 %v9949_v8  ;;  %v4898_v7 = vld [vmem:[%s15563_s5 + $0x38] sm:$0xff]  ;;  %v10003_v8 = vcombine.low %v5139_v54, %v5143_v55  ;;  %v4941_v54 = vld [vmem:[%s15563_s5 + $0x190] sm:$0xff] }
 0x427   :  { %6528 = vmatprep.subr.bf16.mxu0 %v9956_v9  ;;  %6610 = vmatprep.subr.bf16.mxu1 %v9958_v10  ;;  %v10005_v9 = vcombine.low %v5140_v59, %v5144_v60  ;;  %v9760_v10 = vcombine.high %v4893_v3, %v4897_v4  ;;  %v9762_v11 = vcombine.high %v4894_v6, %v4898_v7  ;;  %v4945_v55 = vld [vmem:[%s15563_s5 + $0x1b0] sm:$0xff]  ;;  %v4942_v59 = vld [vmem:[%s15563_s5 + $0x198] sm:$0xff] }
 0x428   :  { %v4946_v60 = vld [vmem:[%s15563_s5 + $0x1b8] sm:$0xff] }
 0x42a   :  { %6529 = vmatpush1.bf16.msra.mxu0 %v9955_v15  ;;  %6611 = vmatpush1.bf16.msra.mxu1 %v9957_v16  ;;  %v4906_v15 = vld [vmem:[%s15563_s5 + $0x78] sm:$0xff]  ;;  %v9759_v16 = vcombine.low %v4893_v3, %v4897_v4  ;;  %v4949_v3 = vld [vmem:[%s15563_s5 + $0x1d0] sm:$0xff] }
 0x42b   :  { %6530 = vmatprep.subr.bf16.mxu0 %v9964_v17  ;;  %6612 = vmatprep.subr.bf16.mxu1 %v9966_v18  ;;  %v14249_v17 = vpack.c.bf16 %v14041_v58, %v14041_v58  ;;  %v9761_v18 = vcombine.low %v4894_v6, %v4898_v7  ;;  %v9770_v20 = vcombine.high %v4902_v14, %v4906_v15  ;;  %v4910_v58 = vld [vmem:[%s15563_s5 + $0x98] sm:$0xff]  ;;  %v4953_v4 = vld [vmem:[%s15563_s5 + $0x1f0] sm:$0xff] }
 0x42c   :  { %v4950_v6 = vld [vmem:[%s15563_s5 + $0x1d8] sm:$0xff] }
 0x42d   :  { %v4954_v7 = vld [vmem:[%s15563_s5 + $0x1f8] sm:$0xff] }
 0x42e   :  { %6531 = vmatpush1.bf16.msra.mxu0 %v9963_v23  ;;  %6613 = vmatpush1.bf16.msra.mxu1 %v9965_v24  ;;  %v4914_v23 = vld [vmem:[%s15563_s5 + $0xb8] sm:$0xff]  ;;  %v9767_v24 = vcombine.low %v4901_v12, %v4905_v13  ;;  %v4957_v12 = vld [vmem:[%s15563_s5 + $0x210] sm:$0xff] }
 0x42f   :  { %6532 = vmatprep.subr.bf16.mxu0 %v9972_v25  ;;  %6614 = vmatprep.subr.bf16.mxu1 %v9974_v26  ;;  %v9769_v25 = vcombine.low %v4902_v14, %v4906_v15  ;;  %v9776_v26 = vcombine.high %v4909_v21, %v4913_v22  ;;  %v9778_v27 = vcombine.high %v4910_v58, %v4914_v23  ;;  %v4961_v13 = vld [vmem:[%s15563_s5 + $0x230] sm:$0xff]  ;;  %v4958_v14 = vld [vmem:[%s15563_s5 + $0x218] sm:$0xff] }
 0x430   :  { %v4962_v15 = vld [vmem:[%s15563_s5 + $0x238] sm:$0xff] }
 0x432   :  { %6533 = vmatpush1.bf16.msra.mxu0 %v9971_v31  ;;  %6615 = vmatpush1.bf16.msra.mxu1 %v9973_v32  ;;  %v9775_v31 = vcombine.low %v4909_v21, %v4913_v22  ;;  %v9777_v32 = vcombine.low %v4910_v58, %v4914_v23  ;;  %v4965_v21 = vld [vmem:[%s15563_s5 + $0x250] sm:$0xff]  ;;  %v4966_v58 = vld [vmem:[%s15563_s5 + $0x258] sm:$0xff] }
 0x433   :  { %6534 = vmatprep.subr.bf16.mxu0 %v9980_v33  ;;  %6616 = vmatprep.subr.bf16.mxu1 %v9982_v34  ;;  %v9784_v33 = vcombine.high %v4917_v28, %v4921_v29  ;;  %v4969_v22 = vld [vmem:[%s15563_s5 + $0x270] sm:$0xff]  ;;  %v4970_v23 = vld [vmem:[%s15563_s5 + $0x278] sm:$0xff] }
 0x436   :  { %6535 = vmatpush1.bf16.msra.mxu0 %v9979_v39  ;;  %6617 = vmatpush1.bf16.msra.mxu1 %v9981_v40  ;;  %v9783_v39 = vcombine.low %v4917_v28, %v4921_v29  ;;  %v4973_v28 = vld [vmem:[%s15563_s5 + $0x290] sm:$0xff] }
 0x437   :  { %6536 = vmatprep.subr.bf16.mxu0 %v9988_v41  ;;  %6618 = vmatprep.subr.bf16.mxu1 %v9990_v42  ;;  %v9792_v41 = vcombine.high %v4925_v35, %v4929_v36  ;;  %v9794_v42 = vcombine.high %v4926_v37, %v4930_v38  ;;  %v4977_v29 = vld [vmem:[%s15563_s5 + $0x2b0] sm:$0xff] }
 0x43a   :  { %6537 = vmatpush1.bf16.msra.mxu0 %v9987_v47  ;;  %6619 = vmatpush1.bf16.msra.mxu1 %v9989_v49  ;;  %v9791_v47 = vcombine.low %v4925_v35, %v4929_v36  ;;  %v9793_v49 = vcombine.low %v4926_v37, %v4930_v38  ;;  %v4981_v35 = vld [vmem:[%s15563_s5 + $0x2d0] sm:$0xff]  ;;  %v4982_v37 = vld [vmem:[%s15563_s5 + $0x2d8] sm:$0xff] }
 0x43b   :  { %6538 = vmatprep.subr.bf16.mxu0 %v9996_v50  ;;  %6620 = vmatprep.subr.bf16.mxu1 %v9998_v53  ;;  %v9800_v50 = vcombine.high %v4933_v43, %v4937_v44  ;;  %v9802_v53 = vcombine.high %v4934_v45, %v4938_v46  ;;  %v4985_v36 = vld [vmem:[%s15563_s5 + $0x2f0] sm:$0xff]  ;;  %v4986_v38 = vld [vmem:[%s15563_s5 + $0x2f8] sm:$0xff] }
 0x43e   :  { %6539 = vmatpush1.bf16.msra.mxu0 %v9995_v63  ;;  %6621 = vmatpush1.bf16.msra.mxu1 %v9997_v0  ;;  %v9799_v63 = vcombine.low %v4933_v43, %v4937_v44  ;;  %v9801_v0 = vcombine.low %v4934_v45, %v4938_v46  ;;  %v4989_v43 = vld [vmem:[%s15563_s5 + $0x310] sm:$0xff]  ;;  %v4990_v45 = vld [vmem:[%s15563_s5 + $0x318] sm:$0xff] }
 0x43f   :  { %6540 = vmatprep.subr.bf16.mxu0 %v10004_v1  ;;  %6622 = vmatprep.subr.bf16.mxu1 %v10006_v2  ;;  %v9808_v1 = vcombine.high %v4941_v54, %v4945_v55  ;;  %v9810_v2 = vcombine.high %v4942_v59, %v4946_v60  ;;  %v4993_v44 = vld [vmem:[%s15563_s5 + $0x330] sm:$0xff]  ;;  %v4994_v46 = vld [vmem:[%s15563_s5 + $0x338] sm:$0xff] }
 0x442   :  { %6541 = vmatpush1.bf16.msra.mxu0 %v10003_v8  ;;  %6623 = vmatpush1.bf16.msra.mxu1 %v10005_v9  ;;  %v9807_v8 = vcombine.low %v4941_v54, %v4945_v55  ;;  %v9809_v9 = vcombine.low %v4942_v59, %v4946_v60  ;;  %v4997_v54 = vld [vmem:[%s15563_s5 + $0x350] sm:$0xff]  ;;  %v4998_v59 = vld [vmem:[%s15563_s5 + $0x358] sm:$0xff] }
 0x443   :  { %6633 = vmatprep.subr.bf16.mxu0 %v9760_v10  ;;  %6715 = vmatprep.subr.bf16.mxu1 %v9762_v11  ;;  %v9816_v10 = vcombine.high %v4949_v3, %v4953_v4  ;;  %v9818_v11 = vcombine.high %v4950_v6, %v4954_v7  ;;  %v5001_v55 = vld [vmem:[%s15563_s5 + $0x370] sm:$0xff]  ;;  %v5002_v60 = vld [vmem:[%s15563_s5 + $0x378] sm:$0xff] }
 0x445   :  { %6543 = vmatmul.mubr.bf16.vlgmr.msra.gmra.mrb[12].mxu0 %v14249_v17  ;;  %6625 = vmatmul.mubr.bf16.vlgmr.msra.gmra.mrb[12].mxu1 %v14249_v17 }
 0x446   :  { %6634 = vmatpush1.bf16.msra.mxu0 %v9759_v16  ;;  %6665 = vmatprep.mubr.bf16.mxu0 %v14043_v61  ;;  %v9815_v16 = vcombine.low %v4949_v3, %v4953_v4  ;;  %v5005_v3 = vld [vmem:[%s15563_s5 + $0x390] sm:$0xff] }
 0x447   :  { %6716 = vmatpush1.bf16.msra.mxu1 %v9761_v18  ;;  %6747 = vmatprep.mubr.bf16.mxu1 %v14043_v61  ;;  %v4922_v61 = vld [vmem:[%s15563_s5 + $0xf8] sm:$0xff]  ;;  %v9817_v18 = vcombine.low %v4950_v6, %v4954_v7  ;;  %v5009_v4 = vld [vmem:[%s15563_s5 + $0x3b0] sm:$0xff] }
 0x448   :  { %6635 = vmatprep.subr.bf16.mxu0 %v9768_v19  ;;  %6717 = vmatprep.subr.bf16.mxu1 %v9770_v20  ;;  %v9786_v34 = vcombine.high %v4918_v30, %v4922_v61  ;;  %v9785_v40 = vcombine.low %v4918_v30, %v4922_v61  ;;  %v9824_v19 = vcombine.high %v4957_v12, %v4961_v13  ;;  %v4974_v30 = vld [vmem:[%s15563_s5 + $0x298] sm:$0xff] }
 0x449   :  { %v9826_v20 = vcombine.high %v4958_v14, %v4962_v15  ;;  %v4978_v61 = vld [vmem:[%s15563_s5 + $0x2b8] sm:$0xff] }
 0x44a   :  { %6636 = vmatpush1.bf16.msra.mxu0 %v9767_v24  ;;  %v9823_v24 = vcombine.low %v4957_v12, %v4961_v13  ;;  %v5006_v6 = vld [vmem:[%s15563_s5 + $0x398] sm:$0xff]  ;;  %v5013_v12 = vld [vmem:[%s15563_s5 + $0x3d0] sm:$0xff] }
 0x44b   :  { %6718 = vmatpush1.bf16.msra.mxu1 %v9769_v25  ;;  %6637 = vmatprep.subr.bf16.mxu0 %v9776_v26  ;;  %v9825_v25 = vcombine.low %v4958_v14, %v4962_v15  ;;  %v9832_v26 = vcombine.high %v4965_v21, %v4969_v22  ;;  %v5010_v7 = vld [vmem:[%s15563_s5 + $0x3b8] sm:$0xff]  ;;  %v5017_v13 = vld [vmem:[%s15563_s5 + $0x3f0] sm:$0xff] }
 0x44c   :  { %6719 = vmatprep.subr.bf16.mxu1 %v9778_v27  ;;  %v9834_v27 = vcombine.high %v4966_v58, %v4970_v23  ;;  %v5014_v14 = vld [vmem:[%s15563_s5 + $0x3d8] sm:$0xff] }
 0x44d   :  { %v5018_v15 = vld [vmem:[%s15563_s5 + $0x3f8] sm:$0xff] }
 0x44e   :  { %6638 = vmatpush1.bf16.msra.mxu0 %v9775_v31  ;;  %v9831_v31 = vcombine.low %v4965_v21, %v4969_v22  ;;  %v5021_v21 = vld [vmem:[%s15563_s5 + $0x410] sm:$0xff] }
 0x44f   :  { %6720 = vmatpush1.bf16.msra.mxu1 %v9777_v32  ;;  %6639 = vmatprep.subr.bf16.mxu0 %v9784_v33  ;;  %v9833_v32 = vcombine.low %v4966_v58, %v4970_v23  ;;  %v9840_v33 = vcombine.high %v4973_v28, %v4977_v29  ;;  %v5025_v22 = vld [vmem:[%s15563_s5 + $0x430] sm:$0xff]  ;;  %v5022_v58 = vld [vmem:[%s15563_s5 + $0x418] sm:$0xff] }
 0x450   :  { %6721 = vmatprep.subr.bf16.mxu1 %v9786_v34  ;;  %v9842_v34 = vcombine.high %v4974_v30, %v4978_v61  ;;  %v5026_v23 = vld [vmem:[%s15563_s5 + $0x438] sm:$0xff] }
 0x452   :  { %6640 = vmatpush1.bf16.msra.mxu0 %v9783_v39  ;;  %v9839_v39 = vcombine.low %v4973_v28, %v4977_v29  ;;  %v5029_v28 = vld [vmem:[%s15563_s5 + $0x450] sm:$0xff] }
 0x453   :  { %6722 = vmatpush1.bf16.msra.mxu1 %v9785_v40  ;;  %6641 = vmatprep.subr.bf16.mxu0 %v9792_v41  ;;  %v9841_v40 = vcombine.low %v4974_v30, %v4978_v61  ;;  %v9848_v41 = vcombine.high %v4981_v35, %v4985_v36  ;;  %v5033_v29 = vld [vmem:[%s15563_s5 + $0x470] sm:$0xff]  ;;  %v9887_v30 = vcombine.low %v5021_v21, %v5025_v22  ;;  %v5030_v61 = vld [vmem:[%s15563_s5 + $0x458] sm:$0xff] }
 0x454   :  { %6723 = vmatprep.subr.bf16.mxu1 %v9794_v42  ;;  %v9850_v42 = vcombine.high %v4982_v37, %v4986_v38 }
 0x456   :  { %6642 = vmatpush1.bf16.msra.mxu0 %v9791_v47  ;;  %v9847_v47 = vcombine.low %v4981_v35, %v4985_v36  ;;  %v5041_v35 = vld [vmem:[%s15563_s5 + $0x4b0] sm:$0xff] }
 0x457   :  { %6724 = vmatpush1.bf16.msra.mxu1 %v9793_v49  ;;  %6643 = vmatprep.subr.bf16.mxu0 %v9800_v50  ;;  %v9849_v49 = vcombine.low %v4982_v37, %v4986_v38  ;;  %v9856_v50 = vcombine.high %v4989_v43, %v4993_v44  ;;  %v5038_v37 = vld [vmem:[%s15563_s5 + $0x498] sm:$0xff] }
 0x458   :  { %6725 = vmatprep.subr.bf16.mxu1 %v9802_v53  ;;  %v9858_v53 = vcombine.high %v4990_v45, %v4994_v46  ;;  %v5042_v38 = vld [vmem:[%s15563_s5 + $0x4b8] sm:$0xff] }
 0x45a   :  { %6644 = vmatpush1.bf16.msra.mxu0 %v9799_v63  ;;  %v9855_v63 = vcombine.low %v4989_v43, %v4993_v44  ;;  %v5045_v43 = vld [vmem:[%s15563_s5 + $0x4d0] sm:$0xff] }
 0x45b   :  { %6726 = vmatpush1.bf16.msra.mxu1 %v9801_v0  ;;  %6645 = vmatprep.subr.bf16.mxu0 %v9808_v1  ;;  %v9857_v0 = vcombine.low %v4990_v45, %v4994_v46  ;;  %v9864_v1 = vcombine.high %v4997_v54, %v5001_v55  ;;  %v5049_v44 = vld [vmem:[%s15563_s5 + $0x4f0] sm:$0xff]  ;;  %v5050_v45 = vld [vmem:[%s15563_s5 + $0x4f8] sm:$0xff]  ;;  %v9905_v46 = vcombine.low %v5038_v37, %v5042_v38 }
 0x45c   :  { %6727 = vmatprep.subr.bf16.mxu1 %v9810_v2  ;;  %v9866_v2 = vcombine.high %v4998_v59, %v5002_v60 }
 0x45e   :  { %6646 = vmatpush1.bf16.msra.mxu0 %v9807_v8  ;;  %v9863_v8 = vcombine.low %v4997_v54, %v5001_v55  ;;  %v5054_v54 = vld [vmem:[%s15563_s5 + $0x518] sm:$0xff] }
 0x45f   :  { %6728 = vmatpush1.bf16.msra.mxu1 %v9809_v9  ;;  %6647 = vmatprep.subr.bf16.mxu0 %v9816_v10  ;;  %v9865_v9 = vcombine.low %v4998_v59, %v5002_v60  ;;  %v9872_v10 = vcombine.high %v5005_v3, %v5009_v4  ;;  %v5058_v55 = vld [vmem:[%s15563_s5 + $0x538] sm:$0xff]  ;;  %v9911_v59 = vcombine.low %v5045_v43, %v5049_v44 }
 0x460   :  { %6729 = vmatprep.subr.bf16.mxu1 %v9818_v11  ;;  %v9874_v11 = vcombine.high %v5006_v6, %v5010_v7 }
 0x462   :  { %6648 = vmatpush1.bf16.msra.mxu0 %v9815_v16  ;;  %v9871_v16 = vcombine.low %v5005_v3, %v5009_v4  ;;  %v5062_v3 = vld [vmem:[%s15563_s5 + $0x558] sm:$0xff] }
 0x463   :  { %6730 = vmatpush1.bf16.msra.mxu1 %v9817_v18  ;;  %6649 = vmatprep.subr.bf16.mxu0 %v9824_v19  ;;  %v9873_v18 = vcombine.low %v5006_v6, %v5010_v7  ;;  %v9880_v19 = vcombine.high %v5013_v12, %v5017_v13  ;;  %v5066_v4 = vld [vmem:[%s15563_s5 + $0x578] sm:$0xff]  ;;  %v9921_v7 = vcombine.low %v5054_v54, %v5058_v55 }
 0x464   :  { %6731 = vmatprep.subr.bf16.mxu1 %v9826_v20  ;;  %v9882_v20 = vcombine.high %v5014_v14, %v5018_v15 }
 0x466   :  { %6650 = vmatpush1.bf16.msra.mxu0 %v9823_v24  ;;  %v9879_v24 = vcombine.low %v5013_v12, %v5017_v13  ;;  %v5070_v12 = vld [vmem:[%s15563_s5 + $0x598] sm:$0xff] }
 0x467   :  { %6732 = vmatpush1.bf16.msra.mxu1 %v9825_v25  ;;  %6651 = vmatprep.subr.bf16.mxu0 %v9832_v26  ;;  %v9881_v25 = vcombine.low %v5014_v14, %v5018_v15  ;;  %v9888_v26 = vcombine.high %v5021_v21, %v5025_v22  ;;  %v5074_v13 = vld [vmem:[%s15563_s5 + $0x5b8] sm:$0xff]  ;;  %v9929_v15 = vcombine.low %v5062_v3, %v5066_v4 }
 0x468   :  { %6733 = vmatprep.subr.bf16.mxu1 %v9834_v27  ;;  %v9890_v27 = vcombine.high %v5022_v58, %v5026_v23  ;;  %v5078_v21 = vld [vmem:[%s15563_s5 + $0x5d8] sm:$0xff] }
 0x469   :  { %v5082_v22 = vld [vmem:[%s15563_s5 + $0x5f8] sm:$0xff] }
 0x46a   :  { %6652 = vmatpush1.bf16.msra.mxu0 %v9831_v31  ;;  %v5034_v31 = vld [vmem:[%s15563_s5 + $0x478] sm:$0xff] }
 0x46b   :  { %6734 = vmatpush1.bf16.msra.mxu1 %v9833_v32  ;;  %6653 = vmatprep.subr.bf16.mxu0 %v9840_v33  ;;  %v9889_v32 = vcombine.low %v5022_v58, %v5026_v23  ;;  %v9896_v33 = vcombine.high %v5029_v28, %v5033_v29  ;;  %v9898_v36 = vcombine.high %v5030_v61, %v5034_v31 }
 0x46c   :  { %6735 = vmatprep.subr.bf16.mxu1 %v9842_v34  ;;  %v5037_v34 = vld [vmem:[%s15563_s5 + $0x490] sm:$0xff]  ;;  %v9937_v23 = vcombine.low %v5070_v12, %v5074_v13 }
 0x46e   :  { %6654 = vmatpush1.bf16.msra.mxu0 %v9839_v39  ;;  %v9895_v39 = vcombine.low %v5029_v28, %v5033_v29  ;;  %v5086_v28 = vld [vmem:[%s15563_s5 + $0x618] sm:$0xff] }
 0x46f   :  { %6736 = vmatpush1.bf16.msra.mxu1 %v9841_v40  ;;  %6655 = vmatprep.subr.bf16.mxu0 %v9848_v41  ;;  %v9897_v40 = vcombine.low %v5030_v61, %v5034_v31  ;;  %v9904_v41 = vcombine.high %v5037_v34, %v5041_v35  ;;  %v5090_v29 = vld [vmem:[%s15563_s5 + $0x638] sm:$0xff]  ;;  %v9945_v61 = vcombine.low %v5078_v21, %v5082_v22 }
 0x470   :  { %6737 = vmatprep.subr.bf16.mxu1 %v9850_v42  ;;  %v9906_v42 = vcombine.high %v5038_v37, %v5042_v38  ;;  %v9953_v38 = vcombine.low %v5086_v28, %v5090_v29 }
 0x472   :  { %6656 = vmatpush1.bf16.msra.mxu0 %v9847_v47  ;;  %v9912_v47 = vcombine.high %v5045_v43, %v5049_v44  ;;  %v5102_v43 = vld [vmem:[%s15563_s5 + $0x698] sm:$0xff] }
 0x473   :  { %6738 = vmatpush1.bf16.msra.mxu1 %v9849_v49  ;;  %6657 = vmatprep.subr.bf16.mxu0 %v9856_v50  ;;  %v5053_v50 = vld [vmem:[%s15563_s5 + $0x510] sm:$0xff]  ;;  %v5106_v44 = vld [vmem:[%s15563_s5 + $0x6b8] sm:$0xff] }
 0x474   :  { %6739 = vmatprep.subr.bf16.mxu1 %v9858_v53  ;;  %v5057_v53 = vld [vmem:[%s15563_s5 + $0x530] sm:$0xff] }
 0x475   :  { %v9919_v6 = vcombine.low %v5053_v50, %v5057_v53 }
 0x476   :  { %6658 = vmatpush1.bf16.msra.mxu0 %v9855_v63  ;;  %v9920_v63 = vcombine.high %v5053_v50, %v5057_v53  ;;  %v5110_v50 = vld [vmem:[%s15563_s5 + $0x6d8] sm:$0xff] }
 0x477   :  { %6740 = vmatpush1.bf16.msra.mxu1 %v9857_v0  ;;  %6659 = vmatprep.subr.bf16.mxu0 %v9864_v1  ;;  %v9922_v0 = vcombine.high %v5054_v54, %v5058_v55  ;;  %v5061_v1 = vld [vmem:[%s15563_s5 + $0x550] sm:$0xff]  ;;  %v5114_v53 = vld [vmem:[%s15563_s5 + $0x6f8] sm:$0xff]  ;;  %v9969_v55 = vcombine.low %v5102_v43, %v5106_v44 }
 0x478   :  { %6741 = vmatprep.subr.bf16.mxu1 %v9866_v2  ;;  %v5065_v2 = vld [vmem:[%s15563_s5 + $0x570] sm:$0xff] }
 0x479   :  { %v9927_v14 = vcombine.low %v5061_v1, %v5065_v2 }
 0x47a   :  { %6660 = vmatpush1.bf16.msra.mxu0 %v9863_v8  ;;  %v9928_v8 = vcombine.high %v5061_v1, %v5065_v2  ;;  %v5118_v1 = vld [vmem:[%s15563_s5 + $0x718] sm:$0xff] }
 0x47b   :  { %6742 = vmatpush1.bf16.msra.mxu1 %v9865_v9  ;;  %6661 = vmatprep.subr.bf16.mxu0 %v9872_v10  ;;  %v9930_v9 = vcombine.high %v5062_v3, %v5066_v4  ;;  %v5069_v10 = vld [vmem:[%s15563_s5 + $0x590] sm:$0xff]  ;;  %v5122_v2 = vld [vmem:[%s15563_s5 + $0x738] sm:$0xff]  ;;  %v9977_v4 = vcombine.low %v5110_v50, %v5114_v53 }
 0x47c   :  { %6743 = vmatprep.subr.bf16.mxu1 %v9874_v11  ;;  %v5073_v11 = vld [vmem:[%s15563_s5 + $0x5b0] sm:$0xff] }
 0x47d   :  { %v9935_v58 = vcombine.low %v5069_v10, %v5073_v11 }
 0x47e   :  { %6662 = vmatpush1.bf16.msra.mxu0 %v9871_v16  ;;  %v9936_v16 = vcombine.high %v5069_v10, %v5073_v11  ;;  %v5126_v10 = vld [vmem:[%s15563_s5 + $0x758] sm:$0xff] }
 0x47f   :  { %6744 = vmatpush1.bf16.msra.mxu1 %v9873_v18  ;;  %6663 = vmatprep.subr.bf16.mxu0 %v9880_v19  ;;  %v9938_v18 = vcombine.high %v5070_v12, %v5074_v13  ;;  %v5077_v19 = vld [vmem:[%s15563_s5 + $0x5d0] sm:$0xff]  ;;  %v5130_v11 = vld [vmem:[%s15563_s5 + $0x778] sm:$0xff]  ;;  %v9985_v13 = vcombine.low %v5118_v1, %v5122_v2 }
 0x480   :  { %6745 = vmatprep.subr.bf16.mxu1 %v9882_v20  ;;  %v5081_v20 = vld [vmem:[%s15563_s5 + $0x5f0] sm:$0xff] }
 0x482   :  { %6664 = vmatpush1.bf16.msra.mxu0 %v9879_v24  ;;  %v9944_v24 = vcombine.high %v5077_v19, %v5081_v20 }
 0x483   :  { %6746 = vmatpush1.bf16.msra.mxu1 %v9881_v25  ;;  %6674 = vmatprep.subr.bf16.mxu0 %v9888_v26  ;;  %v9946_v25 = vcombine.high %v5078_v21, %v5082_v22  ;;  %v5085_v26 = vld [vmem:[%s15563_s5 + $0x610] sm:$0xff]  ;;  %v9993_v22 = vcombine.low %v5126_v10, %v5130_v11 }
 0x484   :  { %6756 = vmatprep.subr.bf16.mxu1 %v9890_v27  ;;  %v5089_v27 = vld [vmem:[%s15563_s5 + $0x630] sm:$0xff] }
 0x485   :  { %6666 = vmatmul.mubr.bf16.vlgmr.msra.gmra.mrb[16].mxu0 %v14045_v62  ;;  %v9952_v31 = vcombine.high %v5085_v26, %v5089_v27  ;;  %v9951_v37 = vcombine.low %v5085_v26, %v5089_v27  ;;  %v5142_v26 = vld [vmem:[%s15563_s5 + $0x7d8] sm:$0xff] }
 0x486   :  { %6748 = vmatmul.mubr.bf16.vlgmr.msra.gmra.mrb[16].mxu1 %v14045_v62  ;;  %6675 = vmatpush1.bf16.msra.mxu0 %v9887_v30  ;;  %v5046_v62 = vld [vmem:[%s15563_s5 + $0x4d8] sm:$0xff]  ;;  %v9943_v30 = vcombine.low %v5077_v19, %v5081_v20 }
 0x487   :  { %6706 = vmatprep.mubr.bf16.mxu0 %v14061_v5  ;;  %6757 = vmatpush1.bf16.msra.mxu1 %v9889_v32  ;;  %v9914_v49 = vcombine.high %v5046_v62, %v5050_v45  ;;  %v9913_v60 = vcombine.low %v5046_v62, %v5050_v45  ;;  %v9954_v32 = vcombine.high %v5086_v28, %v5090_v29  ;;  %v5134_v19 = vld [vmem:[%s15563_s5 + $0x798] sm:$0xff] }
 0x488   :  { %6788 = vmatprep.mubr.bf16.mxu1 %v14061_v5  ;;  %6676 = vmatprep.subr.bf16.mxu0 %v9896_v33  ;;  %v9903_v5 = vcombine.low %v5037_v34, %v5041_v35  ;;  %v5093_v33 = vld [vmem:[%s15563_s5 + $0x650] sm:$0xff]  ;;  %v5094_v35 = vld [vmem:[%s15563_s5 + $0x658] sm:$0xff] }
 0x489   :  { %6758 = vmatprep.subr.bf16.mxu1 %v9898_v36  ;;  %v5097_v34 = vld [vmem:[%s15563_s5 + $0x670] sm:$0xff]  ;;  %v5098_v36 = vld [vmem:[%s15563_s5 + $0x678] sm:$0xff] }
 0x48a   :  { %6677 = vmatpush1.bf16.msra.mxu0 %v9895_v39  ;;  %v9960_v39 = vcombine.high %v5093_v33, %v5097_v34  ;;  %v9959_v62 = vcombine.low %v5093_v33, %v5097_v34  ;;  %v9961_v45 = vcombine.low %v5094_v35, %v5098_v36  ;;  %v5138_v20 = vld [vmem:[%s15563_s5 + $0x7b8] sm:$0xff]  ;;  %v11446_v33 = vld [vmem:[%s15566_s8 + $0x4] ss:$16 sps:$4 sm:$0xff]  }
 0x48b   :  { %6759 = vmatpush1.bf16.msra.mxu1 %v9897_v40  ;;  %6678 = vmatprep.subr.bf16.mxu0 %v9904_v41  ;;  %v9962_v40 = vcombine.high %v5094_v35, %v5098_v36  ;;  %v5101_v41 = vld [vmem:[%s15563_s5 + $0x690] sm:$0xff]  ;;  %v5146_v27 = vld [vmem:[%s15563_s5 + $0x7f8] sm:$0xff]  ;;  %v10001_v29 = vcombine.low %v5134_v19, %v5138_v20 }
 0x48c   :  { %6760 = vmatprep.subr.bf16.mxu1 %v9906_v42  ;;  %v5105_v42 = vld [vmem:[%s15563_s5 + $0x6b0] sm:$0xff]  ;;  %v11449_v34 = vld [vmem:[%s15566_s8 + $0xc] ss:$16 sps:$4 sm:$0xff]   ;;  %v11447_v36 = vld [vmem:[%s15566_s8 + $0x8] ss:$16 sps:$4 sm:$0xff]  }
 0x48d   :  { %v9967_v54 = vcombine.low %v5101_v41, %v5105_v42  ;;  %v11444_v35 = vld [vmem:[%s15566_s8] ss:$16 sps:$4 sm:$0xff]  }
 0x48e   :  { %6679 = vmatpush1.bf16.msra.mxu0 %v9903_v5  ;;  %v9968_v5 = vcombine.high %v5101_v41, %v5105_v42  ;;  %v11458_v41 = vld [vmem:[%s15566_s8 + $0x44] ss:$16 sps:$4 sm:$0xff]   ;;  %v11456_v42 = vld [vmem:[%s15566_s8 + $0x40] ss:$16 sps:$4 sm:$0xff]  }
 0x48f   :  { %6761 = vmatpush1.bf16.msra.mxu1 %v9905_v46  ;;  %6680 = vmatprep.subr.bf16.mxu0 %v9912_v47  ;;  %v9970_v46 = vcombine.high %v5102_v43, %v5106_v44  ;;  %v5109_v47 = vld [vmem:[%s15563_s5 + $0x6d0] sm:$0xff]  ;;  %v11459_v43 = vld [vmem:[%s15566_s8 + $0x48] ss:$16 sps:$4 sm:$0xff]  }
 0x490   :  { %6762 = vmatprep.subr.bf16.mxu1 %v9914_v49  ;;  %v5113_v49 = vld [vmem:[%s15563_s5 + $0x6f0] sm:$0xff] }
 0x491   :  { %v9975_v3 = vcombine.low %v5109_v47, %v5113_v49  ;;  %v11464_v44 = vld [vmem:[%s15566_s8 + $0x64] ss:$16 sps:$4 sm:$0xff]  }
 0x492   :  { %6681 = vmatpush1.bf16.msra.mxu0 %v9911_v59  ;;  %v9976_v59 = vcombine.high %v5109_v47, %v5113_v49  ;;  %v11473_v47 = vld [vmem:[%s15566_s8 + $0x8c] ss:$16 sps:$4 sm:$0xff]   ;;  %v11468_v49 = vld [vmem:[%s15566_s8 + $0x80] ss:$16 sps:$4 sm:$0xff]  }
 0x493   :  { %6763 = vmatpush1.bf16.msra.mxu1 %v9913_v60  ;;  %6682 = vmatprep.subr.bf16.mxu0 %v9920_v63  ;;  %v9978_v60 = vcombine.high %v5110_v50, %v5114_v53  ;;  %v5117_v63 = vld [vmem:[%s15563_s5 + $0x710] sm:$0xff]  ;;  %v11471_v50 = vld [vmem:[%s15566_s8 + $0x88] ss:$16 sps:$4 sm:$0xff]  }
 0x494   :  { %6764 = vmatprep.subr.bf16.mxu1 %v9922_v0  ;;  %v5121_v0 = vld [vmem:[%s15563_s5 + $0x730] sm:$0xff] }
 0x495   :  { %v9983_v12 = vcombine.low %v5117_v63, %v5121_v0  ;;  %v11476_v53 = vld [vmem:[%s15566_s8 + $0xa4] ss:$16 sps:$4 sm:$0xff]  }
 0x496   :  { %6683 = vmatpush1.bf16.msra.mxu0 %v9919_v6  ;;  %v9984_v6 = vcombine.high %v5117_v63, %v5121_v0  ;;  %v11485_v63 = vld [vmem:[%s15566_s8 + $0xcc] ss:$16 sps:$4 sm:$0xff]   ;;  %v11480_v0 = vld [vmem:[%s15566_s8 + $0xc0] ss:$16 sps:$4 sm:$0xff]  }
 0x497   :  { %6765 = vmatpush1.bf16.msra.mxu1 %v9921_v7  ;;  %6684 = vmatprep.subr.bf16.mxu0 %v9928_v8  ;;  %v9986_v7 = vcombine.high %v5118_v1, %v5122_v2  ;;  %v5125_v8 = vld [vmem:[%s15563_s5 + $0x750] sm:$0xff]  ;;  %v11483_v1 = vld [vmem:[%s15566_s8 + $0xc8] ss:$16 sps:$4 sm:$0xff]  }
 0x498   :  { %6766 = vmatprep.subr.bf16.mxu1 %v9930_v9  ;;  %v5129_v9 = vld [vmem:[%s15563_s5 + $0x770] sm:$0xff] }
 0x499   :  { %v9991_v21 = vcombine.low %v5125_v8, %v5129_v9  ;;  %v11488_v2 = vld [vmem:[%s15566_s8 + $0xe4] ss:$16 sps:$4 sm:$0xff]  }
 0x49a   :  { %6685 = vmatpush1.bf16.msra.mxu0 %v9927_v14  ;;  %v9992_v14 = vcombine.high %v5125_v8, %v5129_v9  ;;  %v11497_v8 = vld [vmem:[%s15566_s8 + $0x10c] ss:$16 sps:$4 sm:$0xff]   ;;  %v11492_v9 = vld [vmem:[%s15566_s8 + $0x100] ss:$16 sps:$4 sm:$0xff]  }
 0x49b   :  { %6767 = vmatpush1.bf16.msra.mxu1 %v9929_v15  ;;  %6686 = vmatprep.subr.bf16.mxu0 %v9936_v16  ;;  %v9994_v15 = vcombine.high %v5126_v10, %v5130_v11  ;;  %v5133_v16 = vld [vmem:[%s15563_s5 + $0x790] sm:$0xff]  ;;  %v11495_v10 = vld [vmem:[%s15566_s8 + $0x108] ss:$16 sps:$4 sm:$0xff]  }
 0x49c   :  { %6768 = vmatprep.subr.bf16.mxu1 %v9938_v18  ;;  %v5137_v18 = vld [vmem:[%s15563_s5 + $0x7b0] sm:$0xff] }
 0x49d   :  { %v9999_v28 = vcombine.low %v5133_v16, %v5137_v18  ;;  %v11500_v11 = vld [vmem:[%s15566_s8 + $0x124] ss:$16 sps:$4 sm:$0xff]  }
 0x49e   :  { %6687 = vmatpush1.bf16.msra.mxu0 %v9935_v58  ;;  %v10000_v58 = vcombine.high %v5133_v16, %v5137_v18  ;;  %v11509_v16 = vld [vmem:[%s15566_s8 + $0x14c] ss:$16 sps:$4 sm:$0xff]   ;;  %v11504_v18 = vld [vmem:[%s15566_s8 + $0x140] ss:$16 sps:$4 sm:$0xff]  }
 0x49f   :  { %6769 = vmatpush1.bf16.msra.mxu1 %v9937_v23  ;;  %6688 = vmatprep.subr.bf16.mxu0 %v9944_v24  ;;  %v10002_v23 = vcombine.high %v5134_v19, %v5138_v20  ;;  %v5141_v24 = vld [vmem:[%s15563_s5 + $0x7d0] sm:$0xff]  ;;  %v11507_v19 = vld [vmem:[%s15566_s8 + $0x148] ss:$16 sps:$4 sm:$0xff]  }
 0x4a0   :  { %6770 = vmatprep.subr.bf16.mxu1 %v9946_v25  ;;  %v5145_v25 = vld [vmem:[%s15563_s5 + $0x7f0] sm:$0xff] }
 0x4a1   :  { %v11512_v20 = vld [vmem:[%s15566_s8 + $0x164] ss:$16 sps:$4 sm:$0xff]  }
 0x4a2   :  { %6689 = vmatpush1.bf16.msra.mxu0 %v9943_v30  ;;  %v10008_v30 = vcombine.high %v5141_v24, %v5145_v25 }
 0x4a3   :  { %6771 = vmatpush1.bf16.msra.mxu1 %v9945_v61  ;;  %6690 = vmatprep.subr.bf16.mxu0 %v9952_v31  ;;  %v10010_v61 = vcombine.high %v5142_v26, %v5146_v27  ;;  %v10007_v31 = vcombine.low %v5141_v24, %v5145_v25  ;;  %v11521_v24 = vld [vmem:[%s15566_s8 + $0x18c] ss:$16 sps:$4 sm:$0xff]   ;;  %v11516_v25 = vld [vmem:[%s15566_s8 + $0x180] ss:$16 sps:$4 sm:$0xff]  }
 0x4a4   :  { %6772 = vmatprep.subr.bf16.mxu1 %v9954_v32  ;;  %v10009_v32 = vcombine.low %v5142_v26, %v5146_v27  ;;  %v11519_v26 = vld [vmem:[%s15566_s8 + $0x188] ss:$16 sps:$4 sm:$0xff]   ;;  %v11524_v27 = vld [vmem:[%s15566_s8 + $0x1a4] ss:$16 sps:$4 sm:$0xff]  }
 0x4a6   :  { %6691 = vmatpush1.bf16.msra.mxu0 %v9951_v37  ;;  %v11452_v37 = vld [vmem:[%s15566_s8 + $0x24] ss:$16 sps:$4 sm:$0xff]  }
 0x4a7   :  { %6773 = vmatpush1.bf16.msra.mxu1 %v9953_v38  ;;  %6692 = vmatprep.subr.bf16.mxu0 %v9960_v39  ;;  %v11455_v38 = vld [vmem:[%s15566_s8 + $0x2c] ss:$16 sps:$4 sm:$0xff]   ;;  %v11450_v39 = vld [vmem:[%s15566_s8 + $0x20] ss:$16 sps:$4 sm:$0xff]  }
 0x4a8   :  { %6774 = vmatprep.subr.bf16.mxu1 %v9962_v40  ;;  %v11453_v40 = vld [vmem:[%s15566_s8 + $0x28] ss:$16 sps:$4 sm:$0xff]  }
 0x4aa   :  { %6693 = vmatpush1.bf16.msra.mxu0 %v9959_v62  ;;  %v11467_v62 = vld [vmem:[%s15566_s8 + $0x6c] ss:$16 sps:$4 sm:$0xff]  }
 0x4ab   :  { %6775 = vmatpush1.bf16.msra.mxu1 %v9961_v45  ;;  %6694 = vmatprep.subr.bf16.mxu0 %v9968_v5  ;;  %v11462_v45 = vld [vmem:[%s15566_s8 + $0x60] ss:$16 sps:$4 sm:$0xff]   ;;  %v11465_v5 = vld [vmem:[%s15566_s8 + $0x68] ss:$16 sps:$4 sm:$0xff]  }
 0x4ac   :  { %6776 = vmatprep.subr.bf16.mxu1 %v9970_v46  ;;  %v11470_v46 = vld [vmem:[%s15566_s8 + $0x84] ss:$16 sps:$4 sm:$0xff]  }
 0x4ae   :  { %6695 = vmatpush1.bf16.msra.mxu0 %v9967_v54  ;;  %v11479_v54 = vld [vmem:[%s15566_s8 + $0xac] ss:$16 sps:$4 sm:$0xff]  }
 0x4af   :  { %6777 = vmatpush1.bf16.msra.mxu1 %v9969_v55  ;;  %6696 = vmatprep.subr.bf16.mxu0 %v9976_v59  ;;  %v11474_v55 = vld [vmem:[%s15566_s8 + $0xa0] ss:$16 sps:$4 sm:$0xff]   ;;  %v11477_v59 = vld [vmem:[%s15566_s8 + $0xa8] ss:$16 sps:$4 sm:$0xff]  }
 0x4b0   :  { %6778 = vmatprep.subr.bf16.mxu1 %v9978_v60  ;;  %v11482_v60 = vld [vmem:[%s15566_s8 + $0xc4] ss:$16 sps:$4 sm:$0xff]  }
 0x4b2   :  { %6697 = vmatpush1.bf16.msra.mxu0 %v9975_v3  ;;  %v11491_v3 = vld [vmem:[%s15566_s8 + $0xec] ss:$16 sps:$4 sm:$0xff]  }
 0x4b3   :  { %6779 = vmatpush1.bf16.msra.mxu1 %v9977_v4  ;;  %6698 = vmatprep.subr.bf16.mxu0 %v9984_v6  ;;  %v11486_v4 = vld [vmem:[%s15566_s8 + $0xe0] ss:$16 sps:$4 sm:$0xff]   ;;  %v11489_v6 = vld [vmem:[%s15566_s8 + $0xe8] ss:$16 sps:$4 sm:$0xff]  }
 0x4b4   :  { %6780 = vmatprep.subr.bf16.mxu1 %v9986_v7  ;;  %v11494_v7 = vld [vmem:[%s15566_s8 + $0x104] ss:$16 sps:$4 sm:$0xff]  }
 0x4b6   :  { %6699 = vmatpush1.bf16.msra.mxu0 %v9983_v12  ;;  %v11503_v12 = vld [vmem:[%s15566_s8 + $0x12c] ss:$16 sps:$4 sm:$0xff]  }
 0x4b7   :  { %6781 = vmatpush1.bf16.msra.mxu1 %v9985_v13  ;;  %6700 = vmatprep.subr.bf16.mxu0 %v9992_v14  ;;  %v11498_v13 = vld [vmem:[%s15566_s8 + $0x120] ss:$16 sps:$4 sm:$0xff]   ;;  %v11501_v14 = vld [vmem:[%s15566_s8 + $0x128] ss:$16 sps:$4 sm:$0xff]  }
 0x4b8   :  { %6782 = vmatprep.subr.bf16.mxu1 %v9994_v15  ;;  %v11506_v15 = vld [vmem:[%s15566_s8 + $0x144] ss:$16 sps:$4 sm:$0xff]  }
 0x4ba   :  { %6701 = vmatpush1.bf16.msra.mxu0 %v9991_v21  ;;  %v11515_v21 = vld [vmem:[%s15566_s8 + $0x16c] ss:$16 sps:$4 sm:$0xff]  }
 0x4bb   :  { %6783 = vmatpush1.bf16.msra.mxu1 %v9993_v22  ;;  %6702 = vmatprep.subr.bf16.mxu0 %v10000_v58  ;;  %v11510_v22 = vld [vmem:[%s15566_s8 + $0x160] ss:$16 sps:$4 sm:$0xff]   ;;  %v11513_v58 = vld [vmem:[%s15566_s8 + $0x168] ss:$16 sps:$4 sm:$0xff]  }
 0x4bc   :  { %6784 = vmatprep.subr.bf16.mxu1 %v10002_v23  ;;  %v11518_v23 = vld [vmem:[%s15566_s8 + $0x184] ss:$16 sps:$4 sm:$0xff]  }
 0x4be   :  { %6703 = vmatpush1.bf16.msra.mxu0 %v9999_v28  ;;  %v11527_v28 = vld [vmem:[%s15566_s8 + $0x1ac] ss:$16 sps:$4 sm:$0xff]  }
 0x4bf   :  { %6785 = vmatpush1.bf16.msra.mxu1 %v10001_v29  ;;  %6704 = vmatprep.subr.bf16.mxu0 %v10008_v30  ;;  %v11522_v29 = vld [vmem:[%s15566_s8 + $0x1a0] ss:$16 sps:$4 sm:$0xff]   ;;  %v11525_v30 = vld [vmem:[%s15566_s8 + $0x1a8] ss:$16 sps:$4 sm:$0xff]  }
 0x4c0   :  { %6786 = vmatprep.subr.bf16.mxu1 %v10010_v61  ;;  %v11530_v61 = vld [vmem:[%s15566_s8 + $0x1c4] ss:$16 sps:$4 sm:$0xff]  }
 0x4c2   :  { %6705 = vmatpush1.bf16.msra.mxu0 %v10007_v31  ;;  %v11533_v31 = vld [vmem:[%s15566_s8 + $0x1cc] ss:$16 sps:$4 sm:$0xff]  }
 0x4c3   :  { %6787 = vmatpush1.bf16.msra.mxu1 %v10009_v32  ;;  %8421 = vmatprep.subr.bf16.mxu0 %v11446_v33  ;;  %v11528_v32 = vld [vmem:[%s15566_s8 + $0x1c0] ss:$16 sps:$4 sm:$0xff]   ;;  %v11531_v33 = vld [vmem:[%s15566_s8 + $0x1c8] ss:$16 sps:$4 sm:$0xff]  }
 0x4c4   :  { %8585 = vmatprep.subr.bf16.mxu1 %v11449_v34  ;;  %v11536_v34 = vld [vmem:[%s15566_s8 + $0x1e4] ss:$16 sps:$4 sm:$0xff]  }
 0x4c5   :  { %6707 = vmatmul.mubr.bf16.vlgmr.msra.gmra.mrb[16].mxu0 %v14249_v17 }
 0x4c6   :  { %6789 = vmatmul.mubr.bf16.vlgmr.msra.gmra.mrb[16].mxu1 %v14249_v17  ;;  %8422 = vmatpush1.bf16.msra.mxu0 %v11444_v35  ;;  %v11461_v17 = vld [vmem:[%s15566_s8 + $0x4c] ss:$16 sps:$4 sm:$0xff]  }
 0x4c7   :  { %8586 = vmatpush1.bf16.msra.mxu1 %v11447_v36  ;;  %8423 = vmatprep.subr.bf16.mxu0 %v11452_v37  ;;  %v11539_v35 = vld [vmem:[%s15566_s8 + $0x1ec] ss:$16 sps:$4 sm:$0xff]   ;;  %v11534_v36 = vld [vmem:[%s15566_s8 + $0x1e0] ss:$16 sps:$4 sm:$0xff]   ;;  %v11537_v37 = vld [vmem:[%s15566_s8 + $0x1e8] ss:$16 sps:$4 sm:$0xff]  }
 0x4c8   :  { %8587 = vmatprep.subr.bf16.mxu1 %v11455_v38  ;;  %v11542_v38 = vld [vmem:[%s15566_s8 + $0x204] ss:$16 sps:$4 sm:$0xff]  }
 0x4ca   :  { %8424 = vmatpush1.bf16.msra.mxu0 %v11450_v39  ;;  %v11545_v39 = vld [vmem:[%s15566_s8 + $0x20c] ss:$16 sps:$4 sm:$0xff]  }
 0x4cb   :  { %8588 = vmatpush1.bf16.msra.mxu1 %v11453_v40  ;;  %8425 = vmatprep.subr.bf16.mxu0 %v11458_v41  ;;  %v14822_v40 = vld [vmem:[%s15564_s6] sm:$0xff] }
 0x4cc   :  { %8589 = vmatprep.subr.bf16.mxu1 %v11461_v17  ;;  %v5152_v41 = vrot.slane %v14822_v40, %v13795_v51  ;;  %v14829_v17 = vld [vmem:[%s15565_s7] sm:$0xff] }
 0x4ce   :  { %8426 = vmatpush1.bf16.msra.mxu0 %v11456_v42  ;;  %v5156_v42 = vrot.slane %v14822_v40, %v13804_v56 }
 0x4cf   :  { %8590 = vmatpush1.bf16.msra.mxu1 %v11459_v43  ;;  %8427 = vmatprep.subr.bf16.mxu0 %v11464_v44  ;;  %v5164_v43 = vrot.slane %v14822_v40, %v13807_v57 }
 0x4d0   :  { %8591 = vmatprep.subr.bf16.mxu1 %v11467_v62 }
 0x4d2   :  { %8428 = vmatpush1.bf16.msra.mxu0 %v11462_v45 }
 0x4d3   :  { %8592 = vmatpush1.bf16.msra.mxu1 %v11465_v5  ;;  %8429 = vmatprep.subr.bf16.mxu0 %v11470_v46  ;;  %v6810_v5 = vrot.slane %v14829_v17, %v13795_v51 }
 0x4d4   :  { %8593 = vmatprep.subr.bf16.mxu1 %v11473_v47 }
 0x4d6   :  { %8430 = vmatpush1.bf16.msra.mxu0 %v11468_v49 }
 0x4d7   :  { %8594 = vmatpush1.bf16.msra.mxu1 %v11471_v50  ;;  %8431 = vmatprep.subr.bf16.mxu0 %v11476_v53  ;;  %v6814_v50 = vrot.slane %v14829_v17, %v13804_v56 }
 0x4d8   :  { %8595 = vmatprep.subr.bf16.mxu1 %v11479_v54 }
 0x4da   :  { %8432 = vmatpush1.bf16.msra.mxu0 %v11474_v55 }
 0x4db   :  { %8596 = vmatpush1.bf16.msra.mxu1 %v11477_v59  ;;  %8433 = vmatprep.subr.bf16.mxu0 %v11482_v60  ;;  %v6822_v60 = vrot.slane %v14829_v17, %v13807_v57 }
 0x4dc   :  { %8597 = vmatprep.subr.bf16.mxu1 %v11485_v63 }
 0x4de   :  { %8434 = vmatpush1.bf16.msra.mxu0 %v11480_v0 }
 0x4df   :  { %8598 = vmatpush1.bf16.msra.mxu1 %v11483_v1  ;;  %8435 = vmatprep.subr.bf16.mxu0 %v11488_v2 }
 0x4e0   :  { %8599 = vmatprep.subr.bf16.mxu1 %v11491_v3 }
 0x4e2   :  { %8436 = vmatpush1.bf16.msra.mxu0 %v11486_v4 }
 0x4e3   :  { %8600 = vmatpush1.bf16.msra.mxu1 %v11489_v6  ;;  %8437 = vmatprep.subr.bf16.mxu0 %v11494_v7 }
 0x4e4   :  { %8601 = vmatprep.subr.bf16.mxu1 %v11497_v8  ;;  %v11540_v8 = vld [vmem:[%s15566_s8 + $0x200] ss:$16 sps:$4 sm:$0xff]  }
 0x4e6   :  { %8438 = vmatpush1.bf16.msra.mxu0 %v11492_v9  ;;  %v11543_v9 = vld [vmem:[%s15566_s8 + $0x208] ss:$16 sps:$4 sm:$0xff]  }
 0x4e7   :  { %8602 = vmatpush1.bf16.msra.mxu1 %v11495_v10  ;;  %8439 = vmatprep.subr.bf16.mxu0 %v11500_v11  ;;  %v11548_v11 = vld [vmem:[%s15566_s8 + $0x224] ss:$16 sps:$4 sm:$0xff]  }
 0x4e8   :  { %8603 = vmatprep.subr.bf16.mxu1 %v11503_v12  ;;  %v11551_v12 = vld [vmem:[%s15566_s8 + $0x22c] ss:$16 sps:$4 sm:$0xff]  }
 0x4ea   :  { %8440 = vmatpush1.bf16.msra.mxu0 %v11498_v13 }
 0x4eb   :  { %8604 = vmatpush1.bf16.msra.mxu1 %v11501_v14  ;;  %8441 = vmatprep.subr.bf16.mxu0 %v11506_v15  ;;  %v11546_v14 = vld [vmem:[%s15566_s8 + $0x220] ss:$16 sps:$4 sm:$0xff]   ;;  %v11549_v15 = vld [vmem:[%s15566_s8 + $0x228] ss:$16 sps:$4 sm:$0xff]  }
 0x4ec   :  { %8605 = vmatprep.subr.bf16.mxu1 %v11509_v16  ;;  %v11554_v16 = vld [vmem:[%s15566_s8 + $0x244] ss:$16 sps:$4 sm:$0xff]  }
 0x4ee   :  { %8442 = vmatpush1.bf16.msra.mxu0 %v11504_v18  ;;  %v11557_v18 = vld [vmem:[%s15566_s8 + $0x24c] ss:$16 sps:$4 sm:$0xff]  }
 0x4ef   :  { %8606 = vmatpush1.bf16.msra.mxu1 %v11507_v19  ;;  %8443 = vmatprep.subr.bf16.mxu0 %v11512_v20  ;;  %v11552_v19 = vld [vmem:[%s15566_s8 + $0x240] ss:$16 sps:$4 sm:$0xff]   ;;  %v11555_v20 = vld [vmem:[%s15566_s8 + $0x248] ss:$16 sps:$4 sm:$0xff]  }
 0x4f0   :  { %8607 = vmatprep.subr.bf16.mxu1 %v11515_v21  ;;  %v11560_v21 = vld [vmem:[%s15566_s8 + $0x264] ss:$16 sps:$4 sm:$0xff]  }
 0x4f2   :  { %8444 = vmatpush1.bf16.msra.mxu0 %v11510_v22  ;;  %v11563_v22 = vld [vmem:[%s15566_s8 + $0x26c] ss:$16 sps:$4 sm:$0xff]  }
 0x4f3   :  { %8608 = vmatpush1.bf16.msra.mxu1 %v11513_v58  ;;  %8445 = vmatprep.subr.bf16.mxu0 %v11518_v23  ;;  %v11558_v58 = vld [vmem:[%s15566_s8 + $0x260] ss:$16 sps:$4 sm:$0xff]   ;;  %v11561_v23 = vld [vmem:[%s15566_s8 + $0x268] ss:$16 sps:$4 sm:$0xff]  }
 0x4f4   :  { %8609 = vmatprep.subr.bf16.mxu1 %v11521_v24  ;;  %v11566_v24 = vld [vmem:[%s15566_s8 + $0x284] ss:$16 sps:$4 sm:$0xff]  }
 0x4f6   :  { %8446 = vmatpush1.bf16.msra.mxu0 %v11516_v25  ;;  %v11569_v25 = vld [vmem:[%s15566_s8 + $0x28c] ss:$16 sps:$4 sm:$0xff]  }
 0x4f7   :  { %8610 = vmatpush1.bf16.msra.mxu1 %v11519_v26  ;;  %8447 = vmatprep.subr.bf16.mxu0 %v11524_v27  ;;  %v11564_v26 = vld [vmem:[%s15566_s8 + $0x280] ss:$16 sps:$4 sm:$0xff]   ;;  %v11567_v27 = vld [vmem:[%s15566_s8 + $0x288] ss:$16 sps:$4 sm:$0xff]  }
 0x4f8   :  { %8611 = vmatprep.subr.bf16.mxu1 %v11527_v28  ;;  %v11572_v28 = vld [vmem:[%s15566_s8 + $0x2a4] ss:$16 sps:$4 sm:$0xff]  }
 0x4fa   :  { %8448 = vmatpush1.bf16.msra.mxu0 %v11522_v29  ;;  %v11575_v29 = vld [vmem:[%s15566_s8 + $0x2ac] ss:$16 sps:$4 sm:$0xff]  }
 0x4fb   :  { %8612 = vmatpush1.bf16.msra.mxu1 %v11525_v30  ;;  %8449 = vmatprep.subr.bf16.mxu0 %v11530_v61  ;;  %v11570_v30 = vld [vmem:[%s15566_s8 + $0x2a0] ss:$16 sps:$4 sm:$0xff]   ;;  %v11573_v61 = vld [vmem:[%s15566_s8 + $0x2a8] ss:$16 sps:$4 sm:$0xff]  }
 0x4fc   :  { %8613 = vmatprep.subr.bf16.mxu1 %v11533_v31  ;;  %v11578_v31 = vld [vmem:[%s15566_s8 + $0x2c4] ss:$16 sps:$4 sm:$0xff]  }
 0x4fe   :  { %8450 = vmatpush1.bf16.msra.mxu0 %v11528_v32  ;;  %v11581_v32 = vld [vmem:[%s15566_s8 + $0x2cc] ss:$16 sps:$4 sm:$0xff]  }
 0x4ff   :  { %8614 = vmatpush1.bf16.msra.mxu1 %v11531_v33  ;;  %8451 = vmatprep.subr.bf16.mxu0 %v11536_v34  ;;  %v11576_v33 = vld [vmem:[%s15566_s8 + $0x2c0] ss:$16 sps:$4 sm:$0xff]   ;;  %v11579_v34 = vld [vmem:[%s15566_s8 + $0x2c8] ss:$16 sps:$4 sm:$0xff]  }
 0x500   :  { %8615 = vmatprep.subr.bf16.mxu1 %v11539_v35  ;;  %v11584_v35 = vld [vmem:[%s15566_s8 + $0x2e4] ss:$16 sps:$4 sm:$0xff]  }
 0x502   :  { %8452 = vmatpush1.bf16.msra.mxu0 %v11534_v36  ;;  %v11587_v36 = vld [vmem:[%s15566_s8 + $0x2ec] ss:$16 sps:$4 sm:$0xff]  }
 0x503   :  { %8616 = vmatpush1.bf16.msra.mxu1 %v11537_v37  ;;  %8462 = vmatprep.subr.bf16.mxu0 %v11542_v38  ;;  %v11582_v37 = vld [vmem:[%s15566_s8 + $0x2e0] ss:$16 sps:$4 sm:$0xff]   ;;  %v11585_v38 = vld [vmem:[%s15566_s8 + $0x2e8] ss:$16 sps:$4 sm:$0xff]  }
 0x504   :  { %8626 = vmatprep.subr.bf16.mxu1 %v11545_v39  ;;  %v11590_v39 = vld [vmem:[%s15566_s8 + $0x304] ss:$16 sps:$4 sm:$0xff]  }
 0x518   :  { %v6544_v44 = vpop.f32.mrb[12].mxu0  ;;  %v14835_v62 = vpop.f32.mrb[12].mxu1 }
 0x519   :  { %v10344_v45 = vadd.f32 %v6544_v44, %v5152_v41  ;;  %v6546_v46 = vpop.f32.mrb[13].mxu0  ;;  %v6628_v47 = vpop.f32.mrb[13].mxu1  ;;  %v11593_v41 = vld [vmem:[%s15566_s8 + $0x30c] ss:$16 sps:$4 sm:$0xff]   ;;  %v11596_v44 = vld [vmem:[%s15566_s8 + $0x324] ss:$16 sps:$4 sm:$0xff]  }
 0x51a   :  { %v10345_v49 = vadd.f32 %v6546_v46, %v5156_v42  ;;  %v10347_v53 = vadd.f32 %v6628_v47, %v5164_v43  ;;  %v6548_v54 = vpop.f32.mrb[14].mxu0  ;;  %v6630_v55 = vpop.f32.mrb[14].mxu1  ;;  %v11588_v42 = vld [vmem:[%s15566_s8 + $0x300] ss:$16 sps:$4 sm:$0xff]   ;;  %v11591_v43 = vld [vmem:[%s15566_s8 + $0x308] ss:$16 sps:$4 sm:$0xff]  }
 0x51b   :  { %v6797_v59 = vmax.f32 %v10344_v45, 0.0  ;;  %v6549_v63 = vpop.f32.mrb[15].mxu0  ;;  %v6631_v0 = vpop.f32.mrb[15].mxu1  ;;  %v11599_v45 = vld [vmem:[%s15566_s8 + $0x32c] ss:$16 sps:$4 sm:$0xff]  }
 0x51c   :  { %v6798_v1 = vmax.f32 %v10345_v49, 0.0  ;;  %v6800_v2 = vmax.f32 %v10347_v53, 0.0  ;;  %v11597_v46 = vld [vmem:[%s15566_s8 + $0x328] ss:$16 sps:$4 sm:$0xff]   ;;  %v11602_v47 = vld [vmem:[%s15566_s8 + $0x344] ss:$16 sps:$4 sm:$0xff]  }
 0x51d   :  { %v6847_v3 = vadd.f32 %v6810_v5, %v6797_v59  ;;  %v11594_v5 = vld [vmem:[%s15566_s8 + $0x320] ss:$16 sps:$4 sm:$0xff]   ;;  %v11605_v49 = vld [vmem:[%s15566_s8 + $0x34c] ss:$16 sps:$4 sm:$0xff]   ;;  %v11603_v53 = vld [vmem:[%s15566_s8 + $0x348] ss:$16 sps:$4 sm:$0xff]  }
 0x51e   :  { %v6848_v4 = vadd.f32 %v6814_v50, %v6798_v1  ;;  %v6850_v6 = vadd.f32 %v6822_v60, %v6800_v2  ;;  %v11600_v50 = vld [vmem:[%s15566_s8 + $0x340] ss:$16 sps:$4 sm:$0xff]   ;;  %v11608_v54 = vld [vmem:[%s15566_s8 + $0x364] ss:$16 sps:$4 sm:$0xff]   ;;  %v11611_v55 = vld [vmem:[%s15566_s8 + $0x36c] ss:$16 sps:$4 sm:$0xff]  }
 0x51f   :  { %v6855_v10 = vpack.c.bf16 %v6847_v3, %v6847_v3  ;;  %v11606_v59 = vld [vmem:[%s15566_s8 + $0x360] ss:$16 sps:$4 sm:$0xff]   ;;  %v11609_v60 = vld [vmem:[%s15566_s8 + $0x368] ss:$16 sps:$4 sm:$0xff]   ;;  %v11614_v63 = vld [vmem:[%s15566_s8 + $0x384] ss:$16 sps:$4 sm:$0xff]   ;;  %v5160_v3 = vrot.slane %v14822_v40, %v13798_v52 }
 0x520   :  { %v6856_v7 = vpack.c.bf16 %v6848_v4, %v6848_v4  ;;  %v6858_v13 = vpack.c.bf16 %v6850_v6, %v6850_v6  ;;  %v11617_v0 = vld [vmem:[%s15566_s8 + $0x38c] ss:$16 sps:$4 sm:$0xff]   ;;  %v11612_v1 = vld [vmem:[%s15566_s8 + $0x380] ss:$16 sps:$4 sm:$0xff]   ;;  %v11615_v2 = vld [vmem:[%s15566_s8 + $0x388] ss:$16 sps:$4 sm:$0xff]  }
 0x521   :  { %v11620_v4 = vld [vmem:[%s15566_s8 + $0x3a4] ss:$16 sps:$4 sm:$0xff]   ;;  %v11623_v6 = vld [vmem:[%s15566_s8 + $0x3ac] ss:$16 sps:$4 sm:$0xff]  }
 0x522   :  { %8453 = vmatprep.mubr.bf16.mxu0 %v6856_v7  ;;  %8617 = vmatprep.mubr.bf16.mxu1 %v6856_v7  ;;  %v11618_v7 = vld [vmem:[%s15566_s8 + $0x3a0] ss:$16 sps:$4 sm:$0xff]  }
 0x523   :  { %8454 = vmatmul.mubr.bf16.vlgmr.msra.gmra.mrb[20].mxu0 %v6855_v10  ;;  %8618 = vmatmul.mubr.bf16.vlgmr.msra.gmra.mrb[20].mxu1 %v6855_v10  ;;  %v11626_v10 = vld [vmem:[%s15566_s8 + $0x3c4] ss:$16 sps:$4 sm:$0xff]  }
 0x524   :  { %8463 = vmatpush1.bf16.msra.mxu0 %v11540_v8  ;;  %8627 = vmatpush1.bf16.msra.mxu1 %v11543_v9  ;;  %v11621_v8 = vld [vmem:[%s15566_s8 + $0x3a8] ss:$16 sps:$4 sm:$0xff]   ;;  %v10346_v9 = vadd.f32 %v14835_v62, %v5160_v3 }
 0x525   :  { %8494 = vmatprep.mubr.bf16.mxu0 %v6858_v13  ;;  %8658 = vmatprep.mubr.bf16.mxu1 %v6858_v13  ;;  %v11627_v62 = vld [vmem:[%s15566_s8 + $0x3c8] ss:$16 sps:$4 sm:$0xff]  }
 0x526   :  { %8464 = vmatprep.subr.bf16.mxu0 %v11548_v11  ;;  %8628 = vmatprep.subr.bf16.mxu1 %v11551_v12  ;;  %v11629_v11 = vld [vmem:[%s15566_s8 + $0x3cc] ss:$16 sps:$4 sm:$0xff]   ;;  %v11624_v12 = vld [vmem:[%s15566_s8 + $0x3c0] ss:$16 sps:$4 sm:$0xff]   ;;  %v6799_v13 = vmax.f32 %v10346_v9, 0.0 }
 0x527   :  { %v11693_v3 = vld [vmem:[%s15566_s8 + $0x528] ss:$16 sps:$4 sm:$0xff]   ;;  %v11704_v9 = vld [vmem:[%s15566_s8 + $0x564] ss:$16 sps:$4 sm:$0xff]  }
 0x528   :  { %8465 = vmatpush1.bf16.msra.mxu0 %v11546_v14  ;;  %8629 = vmatpush1.bf16.msra.mxu1 %v11549_v15  ;;  %v6818_v14 = vrot.slane %v14829_v17, %v13798_v52  ;;  %v11632_v15 = vld [vmem:[%s15566_s8 + $0x3e4] ss:$16 sps:$4 sm:$0xff]  }
 0x529   :  { %8466 = vmatprep.subr.bf16.mxu0 %v11554_v16  ;;  %8630 = vmatprep.subr.bf16.mxu1 %v11557_v18  ;;  %v11635_v16 = vld [vmem:[%s15566_s8 + $0x3ec] ss:$16 sps:$4 sm:$0xff]   ;;  %v11630_v18 = vld [vmem:[%s15566_s8 + $0x3e0] ss:$16 sps:$4 sm:$0xff]  }
 0x52c   :  { %8467 = vmatpush1.bf16.msra.mxu0 %v11552_v19  ;;  %8631 = vmatpush1.bf16.msra.mxu1 %v11555_v20  ;;  %v11633_v19 = vld [vmem:[%s15566_s8 + $0x3e8] ss:$16 sps:$4 sm:$0xff]   ;;  %v6849_v20 = vadd.f32 %v6818_v14, %v6799_v13  ;;  %v11713_v13 = vld [vmem:[%s15566_s8 + $0x58c] ss:$16 sps:$4 sm:$0xff]   ;;  %v11708_v14 = vld [vmem:[%s15566_s8 + $0x580] ss:$16 sps:$4 sm:$0xff]  }
 0x52d   :  { %8468 = vmatprep.subr.bf16.mxu0 %v11560_v21  ;;  %8632 = vmatprep.subr.bf16.mxu1 %v11563_v22  ;;  %v11638_v21 = vld [vmem:[%s15566_s8 + $0x404] ss:$16 sps:$4 sm:$0xff]   ;;  %v11641_v22 = vld [vmem:[%s15566_s8 + $0x40c] ss:$16 sps:$4 sm:$0xff]  }
 0x530   :  { %8469 = vmatpush1.bf16.msra.mxu0 %v11558_v58  ;;  %8633 = vmatpush1.bf16.msra.mxu1 %v11561_v23  ;;  %v11636_v58 = vld [vmem:[%s15566_s8 + $0x400] ss:$16 sps:$4 sm:$0xff]   ;;  %v11639_v23 = vld [vmem:[%s15566_s8 + $0x408] ss:$16 sps:$4 sm:$0xff]  }
 0x531   :  { %8470 = vmatprep.subr.bf16.mxu0 %v11566_v24  ;;  %8634 = vmatprep.subr.bf16.mxu1 %v11569_v25  ;;  %v6857_v24 = vpack.c.bf16 %v6849_v20, %v6849_v20  ;;  %v11644_v25 = vld [vmem:[%s15566_s8 + $0x424] ss:$16 sps:$4 sm:$0xff]   ;;  %v5171_v20 = vsub.s32 5, %v13792_v48 }
 0x534   :  { %8471 = vmatpush1.bf16.msra.mxu0 %v11564_v26  ;;  %8635 = vmatpush1.bf16.msra.mxu1 %v11567_v27  ;;  %v11647_v26 = vld [vmem:[%s15566_s8 + $0x42c] ss:$16 sps:$4 sm:$0xff]   ;;  %v11642_v27 = vld [vmem:[%s15566_s8 + $0x420] ss:$16 sps:$4 sm:$0xff]  }
 0x535   :  { %8472 = vmatprep.subr.bf16.mxu0 %v11572_v28  ;;  %8636 = vmatprep.subr.bf16.mxu1 %v11575_v29  ;;  %v11645_v28 = vld [vmem:[%s15566_s8 + $0x428] ss:$16 sps:$4 sm:$0xff]   ;;  %v11650_v29 = vld [vmem:[%s15566_s8 + $0x444] ss:$16 sps:$4 sm:$0xff]  }
 0x538   :  { %8473 = vmatpush1.bf16.msra.mxu0 %v11570_v30  ;;  %8637 = vmatpush1.bf16.msra.mxu1 %v11573_v61  ;;  %v11653_v30 = vld [vmem:[%s15566_s8 + $0x44c] ss:$16 sps:$4 sm:$0xff]   ;;  %v11648_v61 = vld [vmem:[%s15566_s8 + $0x440] ss:$16 sps:$4 sm:$0xff]  }
 0x539   :  { %8474 = vmatprep.subr.bf16.mxu0 %v11578_v31  ;;  %8638 = vmatprep.subr.bf16.mxu1 %v11581_v32  ;;  %v11651_v31 = vld [vmem:[%s15566_s8 + $0x448] ss:$16 sps:$4 sm:$0xff]   ;;  %v11656_v32 = vld [vmem:[%s15566_s8 + $0x464] ss:$16 sps:$4 sm:$0xff]  }
 0x53c   :  { %8475 = vmatpush1.bf16.msra.mxu0 %v11576_v33  ;;  %8639 = vmatpush1.bf16.msra.mxu1 %v11579_v34  ;;  %v11659_v33 = vld [vmem:[%s15566_s8 + $0x46c] ss:$16 sps:$4 sm:$0xff]   ;;  %v11654_v34 = vld [vmem:[%s15566_s8 + $0x460] ss:$16 sps:$4 sm:$0xff]  }
 0x53d   :  { %8476 = vmatprep.subr.bf16.mxu0 %v11584_v35  ;;  %8640 = vmatprep.subr.bf16.mxu1 %v11587_v36  ;;  %v11657_v35 = vld [vmem:[%s15566_s8 + $0x468] ss:$16 sps:$4 sm:$0xff]   ;;  %v11662_v36 = vld [vmem:[%s15566_s8 + $0x484] ss:$16 sps:$4 sm:$0xff]  }
 0x540   :  { %8477 = vmatpush1.bf16.msra.mxu0 %v11582_v37  ;;  %8641 = vmatpush1.bf16.msra.mxu1 %v11585_v38  ;;  %v11665_v37 = vld [vmem:[%s15566_s8 + $0x48c] ss:$16 sps:$4 sm:$0xff]   ;;  %v11660_v38 = vld [vmem:[%s15566_s8 + $0x480] ss:$16 sps:$4 sm:$0xff]  }
 0x541   :  { %8478 = vmatprep.subr.bf16.mxu0 %v11590_v39  ;;  %8642 = vmatprep.subr.bf16.mxu1 %v11593_v41  ;;  %v11663_v39 = vld [vmem:[%s15566_s8 + $0x488] ss:$16 sps:$4 sm:$0xff]   ;;  %v11668_v41 = vld [vmem:[%s15566_s8 + $0x4a4] ss:$16 sps:$4 sm:$0xff]  }
 0x544   :  { %8479 = vmatpush1.bf16.msra.mxu0 %v11588_v42  ;;  %8643 = vmatpush1.bf16.msra.mxu1 %v11591_v43  ;;  %v11671_v42 = vld [vmem:[%s15566_s8 + $0x4ac] ss:$16 sps:$4 sm:$0xff]   ;;  %v11666_v43 = vld [vmem:[%s15566_s8 + $0x4a0] ss:$16 sps:$4 sm:$0xff]  }
 0x545   :  { %8480 = vmatprep.subr.bf16.mxu0 %v11596_v44  ;;  %8644 = vmatprep.subr.bf16.mxu1 %v11599_v45  ;;  %v11669_v44 = vld [vmem:[%s15566_s8 + $0x4a8] ss:$16 sps:$4 sm:$0xff]   ;;  %v11674_v45 = vld [vmem:[%s15566_s8 + $0x4c4] ss:$16 sps:$4 sm:$0xff]  }
 0x548   :  { %8481 = vmatpush1.bf16.msra.mxu0 %v11594_v5  ;;  %8645 = vmatpush1.bf16.msra.mxu1 %v11597_v46  ;;  %v11677_v5 = vld [vmem:[%s15566_s8 + $0x4cc] ss:$16 sps:$4 sm:$0xff]   ;;  %v11672_v46 = vld [vmem:[%s15566_s8 + $0x4c0] ss:$16 sps:$4 sm:$0xff]  }
 0x549   :  { %8482 = vmatprep.subr.bf16.mxu0 %v11602_v47  ;;  %8646 = vmatprep.subr.bf16.mxu1 %v11605_v49  ;;  %v11675_v47 = vld [vmem:[%s15566_s8 + $0x4c8] ss:$16 sps:$4 sm:$0xff]   ;;  %v11680_v49 = vld [vmem:[%s15566_s8 + $0x4e4] ss:$16 sps:$4 sm:$0xff]  }
 0x54c   :  { %8483 = vmatpush1.bf16.msra.mxu0 %v11600_v50  ;;  %8647 = vmatpush1.bf16.msra.mxu1 %v11603_v53  ;;  %v11683_v50 = vld [vmem:[%s15566_s8 + $0x4ec] ss:$16 sps:$4 sm:$0xff]   ;;  %v11678_v53 = vld [vmem:[%s15566_s8 + $0x4e0] ss:$16 sps:$4 sm:$0xff]  }
 0x54d   :  { %8484 = vmatprep.subr.bf16.mxu0 %v11608_v54  ;;  %8648 = vmatprep.subr.bf16.mxu1 %v11611_v55  ;;  %v11681_v54 = vld [vmem:[%s15566_s8 + $0x4e8] ss:$16 sps:$4 sm:$0xff]   ;;  %v11686_v55 = vld [vmem:[%s15566_s8 + $0x504] ss:$16 sps:$4 sm:$0xff]  }
 0x550   :  { %8485 = vmatpush1.bf16.msra.mxu0 %v11606_v59  ;;  %8649 = vmatpush1.bf16.msra.mxu1 %v11609_v60  ;;  %v11689_v59 = vld [vmem:[%s15566_s8 + $0x50c] ss:$16 sps:$4 sm:$0xff]   ;;  %v11684_v60 = vld [vmem:[%s15566_s8 + $0x500] ss:$16 sps:$4 sm:$0xff]  }
 0x551   :  { %8486 = vmatprep.subr.bf16.mxu0 %v11614_v63  ;;  %8650 = vmatprep.subr.bf16.mxu1 %v11617_v0  ;;  %v11687_v63 = vld [vmem:[%s15566_s8 + $0x508] ss:$16 sps:$4 sm:$0xff]   ;;  %v11692_v0 = vld [vmem:[%s15566_s8 + $0x524] ss:$16 sps:$4 sm:$0xff]  }
 0x554   :  { %8487 = vmatpush1.bf16.msra.mxu0 %v11612_v1  ;;  %8651 = vmatpush1.bf16.msra.mxu1 %v11615_v2  ;;  %v11695_v1 = vld [vmem:[%s15566_s8 + $0x52c] ss:$16 sps:$4 sm:$0xff]   ;;  %v11690_v2 = vld [vmem:[%s15566_s8 + $0x520] ss:$16 sps:$4 sm:$0xff]  }
 0x555   :  { %8488 = vmatprep.subr.bf16.mxu0 %v11620_v4  ;;  %8652 = vmatprep.subr.bf16.mxu1 %v11623_v6  ;;  %v11698_v4 = vld [vmem:[%s15566_s8 + $0x544] ss:$16 sps:$4 sm:$0xff]   ;;  %v11701_v6 = vld [vmem:[%s15566_s8 + $0x54c] ss:$16 sps:$4 sm:$0xff]  }
 0x558   :  { %8489 = vmatpush1.bf16.msra.mxu0 %v11618_v7  ;;  %8653 = vmatpush1.bf16.msra.mxu1 %v11621_v8  ;;  %v11696_v7 = vld [vmem:[%s15566_s8 + $0x540] ss:$16 sps:$4 sm:$0xff]   ;;  %v11699_v8 = vld [vmem:[%s15566_s8 + $0x548] ss:$16 sps:$4 sm:$0xff]  }
 0x559   :  { %8490 = vmatprep.subr.bf16.mxu0 %v11626_v10  ;;  %8654 = vmatprep.subr.bf16.mxu1 %v11629_v11  ;;  %v11707_v10 = vld [vmem:[%s15566_s8 + $0x56c] ss:$16 sps:$4 sm:$0xff]   ;;  %v11702_v11 = vld [vmem:[%s15566_s8 + $0x560] ss:$16 sps:$4 sm:$0xff]  }
 0x55c   :  { %8491 = vmatpush1.bf16.msra.mxu0 %v11624_v12  ;;  %8655 = vmatpush1.bf16.msra.mxu1 %v11627_v62  ;;  %v11705_v12 = vld [vmem:[%s15566_s8 + $0x568] ss:$16 sps:$4 sm:$0xff]   ;;  %v11710_v62 = vld [vmem:[%s15566_s8 + $0x584] ss:$16 sps:$4 sm:$0xff]  }
 0x55d   :  { %8492 = vmatprep.subr.bf16.mxu0 %v11632_v15  ;;  %8656 = vmatprep.subr.bf16.mxu1 %v11635_v16  ;;  %v11711_v15 = vld [vmem:[%s15566_s8 + $0x588] ss:$16 sps:$4 sm:$0xff]   ;;  %v11716_v16 = vld [vmem:[%s15566_s8 + $0x5a4] ss:$16 sps:$4 sm:$0xff]  }
 0x560   :  { %8493 = vmatpush1.bf16.msra.mxu0 %v11630_v18  ;;  %8657 = vmatpush1.bf16.msra.mxu1 %v11633_v19  ;;  %v11719_v18 = vld [vmem:[%s15566_s8 + $0x5ac] ss:$16 sps:$4 sm:$0xff]   ;;  %v5167_v19 = vsub.s32 4, %v13792_v48 }
 0x561   :  { %8503 = vmatprep.subr.bf16.mxu0 %v11638_v21  ;;  %8667 = vmatprep.subr.bf16.mxu1 %v11641_v22  ;;  %v5179_v21 = vsub.s32 7, %v13792_v48  ;;  %v11714_v22 = vld [vmem:[%s15566_s8 + $0x5a0] ss:$16 sps:$4 sm:$0xff]  }
 0x563   :  { %8495 = vmatmul.mubr.bf16.vlgmr.msra.gmra.mrb[20].mxu0 %v6857_v24  ;;  %8659 = vmatmul.mubr.bf16.vlgmr.msra.gmra.mrb[20].mxu1 %v6857_v24  ;;  %v11722_v24 = vld [vmem:[%s15566_s8 + $0x5c4] ss:$16 sps:$4 sm:$0xff]  }
 0x564   :  { %8504 = vmatpush1.bf16.msra.mxu0 %v11636_v58  ;;  %8668 = vmatpush1.bf16.msra.mxu1 %v11639_v23  ;;  %v11717_v58 = vld [vmem:[%s15566_s8 + $0x5a8] ss:$16 sps:$4 sm:$0xff]   ;;  %v5168_v23 = vrot.slane %v14822_v40, %v5167_v19 }
 0x565   :  { %8505 = vmatprep.subr.bf16.mxu0 %v11644_v25  ;;  %8669 = vmatprep.subr.bf16.mxu1 %v11647_v26  ;;  %v11725_v25 = vld [vmem:[%s15566_s8 + $0x5cc] ss:$16 sps:$4 sm:$0xff]   ;;  %v5172_v26 = vrot.slane %v14822_v40, %v5171_v20 }
 0x568   :  { %8506 = vmatpush1.bf16.msra.mxu0 %v11642_v27  ;;  %8670 = vmatpush1.bf16.msra.mxu1 %v11645_v28  ;;  %v5180_v27 = vrot.slane %v14822_v40, %v5179_v21 }
 0x569   :  { %8507 = vmatprep.subr.bf16.mxu0 %v11650_v29  ;;  %8671 = vmatprep.subr.bf16.mxu1 %v11653_v30  ;;  %v11720_v29 = vld [vmem:[%s15566_s8 + $0x5c0] ss:$16 sps:$4 sm:$0xff]   ;;  %v11723_v30 = vld [vmem:[%s15566_s8 + $0x5c8] ss:$16 sps:$4 sm:$0xff]  }
 0x56c   :  { %8508 = vmatpush1.bf16.msra.mxu0 %v11648_v61  ;;  %8672 = vmatpush1.bf16.msra.mxu1 %v11651_v31  ;;  %v6826_v31 = vrot.slane %v14829_v17, %v5167_v19  ;;  %v11756_v19 = vld [vmem:[%s15566_s8 + $0x680] ss:$16 sps:$4 sm:$0xff]  }
 0x56d   :  { %8509 = vmatprep.subr.bf16.mxu0 %v11656_v32  ;;  %8673 = vmatprep.subr.bf16.mxu1 %v11659_v33 }
 0x570   :  { %8510 = vmatpush1.bf16.msra.mxu0 %v11654_v34  ;;  %8674 = vmatpush1.bf16.msra.mxu1 %v11657_v35  ;;  %v11728_v34 = vld [vmem:[%s15566_s8 + $0x5e4] ss:$16 sps:$4 sm:$0xff]   ;;  %v11731_v35 = vld [vmem:[%s15566_s8 + $0x5ec] ss:$16 sps:$4 sm:$0xff]  }
 0x571   :  { %8511 = vmatprep.subr.bf16.mxu0 %v11662_v36  ;;  %8675 = vmatprep.subr.bf16.mxu1 %v11665_v37  ;;  %v6830_v37 = vrot.slane %v14829_v17, %v5171_v20  ;;  %v11759_v20 = vld [vmem:[%s15566_s8 + $0x688] ss:$16 sps:$4 sm:$0xff]  }
 0x574   :  { %8512 = vmatpush1.bf16.msra.mxu0 %v11660_v38  ;;  %8676 = vmatpush1.bf16.msra.mxu1 %v11663_v39 }
 0x575   :  { %8513 = vmatprep.subr.bf16.mxu0 %v11668_v41  ;;  %8677 = vmatprep.subr.bf16.mxu1 %v11671_v42 }
 0x578   :  { %8514 = vmatpush1.bf16.msra.mxu0 %v11666_v43  ;;  %8678 = vmatpush1.bf16.msra.mxu1 %v11669_v44  ;;  %v6838_v43 = vrot.slane %v14829_v17, %v5179_v21  ;;  %v11764_v21 = vld [vmem:[%s15566_s8 + $0x6a4] ss:$16 sps:$4 sm:$0xff]  }
 0x579   :  { %8515 = vmatprep.subr.bf16.mxu0 %v11674_v45  ;;  %8679 = vmatprep.subr.bf16.mxu1 %v11677_v5 }
 0x57c   :  { %8516 = vmatpush1.bf16.msra.mxu0 %v11672_v46  ;;  %8680 = vmatpush1.bf16.msra.mxu1 %v11675_v47  ;;  %v11726_v47 = vld [vmem:[%s15566_s8 + $0x5e0] ss:$16 sps:$4 sm:$0xff]  }
 0x57d   :  { %8517 = vmatprep.subr.bf16.mxu0 %v11680_v49  ;;  %8681 = vmatprep.subr.bf16.mxu1 %v11683_v50  ;;  %v11729_v49 = vld [vmem:[%s15566_s8 + $0x5e8] ss:$16 sps:$4 sm:$0xff]  }
 0x580   :  { %8518 = vmatpush1.bf16.msra.mxu0 %v11678_v53  ;;  %8682 = vmatpush1.bf16.msra.mxu1 %v11681_v54  ;;  %v11734_v54 = vld [vmem:[%s15566_s8 + $0x604] ss:$16 sps:$4 sm:$0xff]  }
 0x581   :  { %8519 = vmatprep.subr.bf16.mxu0 %v11686_v55  ;;  %8683 = vmatprep.subr.bf16.mxu1 %v11689_v59  ;;  %v11737_v55 = vld [vmem:[%s15566_s8 + $0x60c] ss:$16 sps:$4 sm:$0xff]  }
 0x584   :  { %8520 = vmatpush1.bf16.msra.mxu0 %v11684_v60  ;;  %8684 = vmatpush1.bf16.msra.mxu1 %v11687_v63 }
 0x585   :  { %8521 = vmatprep.subr.bf16.mxu0 %v11692_v0  ;;  %8685 = vmatprep.subr.bf16.mxu1 %v11695_v1  ;;  %v11732_v0 = vld [vmem:[%s15566_s8 + $0x600] ss:$16 sps:$4 sm:$0xff]   ;;  %v11735_v1 = vld [vmem:[%s15566_s8 + $0x608] ss:$16 sps:$4 sm:$0xff]  }
 0x588   :  { %8522 = vmatpush1.bf16.msra.mxu0 %v11690_v2  ;;  %8686 = vmatpush1.bf16.msra.mxu1 %v11693_v3  ;;  %v11740_v3 = vld [vmem:[%s15566_s8 + $0x624] ss:$16 sps:$4 sm:$0xff]  }
 0x589   :  { %8523 = vmatprep.subr.bf16.mxu0 %v11698_v4  ;;  %8687 = vmatprep.subr.bf16.mxu1 %v11701_v6  ;;  %v11743_v4 = vld [vmem:[%s15566_s8 + $0x62c] ss:$16 sps:$4 sm:$0xff]  }
 0x58c   :  { %8524 = vmatpush1.bf16.msra.mxu0 %v11696_v7  ;;  %8688 = vmatpush1.bf16.msra.mxu1 %v11699_v8  ;;  %v11738_v7 = vld [vmem:[%s15566_s8 + $0x620] ss:$16 sps:$4 sm:$0xff]   ;;  %v11741_v8 = vld [vmem:[%s15566_s8 + $0x628] ss:$16 sps:$4 sm:$0xff]  }
 0x58d   :  { %8525 = vmatprep.subr.bf16.mxu0 %v11704_v9  ;;  %8689 = vmatprep.subr.bf16.mxu1 %v11707_v10  ;;  %v11746_v9 = vld [vmem:[%s15566_s8 + $0x644] ss:$16 sps:$4 sm:$0xff]   ;;  %v11749_v10 = vld [vmem:[%s15566_s8 + $0x64c] ss:$16 sps:$4 sm:$0xff]  }
 0x590   :  { %8526 = vmatpush1.bf16.msra.mxu0 %v11702_v11  ;;  %8690 = vmatpush1.bf16.msra.mxu1 %v11705_v12  ;;  %v11744_v11 = vld [vmem:[%s15566_s8 + $0x640] ss:$16 sps:$4 sm:$0xff]   ;;  %v11747_v12 = vld [vmem:[%s15566_s8 + $0x648] ss:$16 sps:$4 sm:$0xff]  }
 0x591   :  { %8527 = vmatprep.subr.bf16.mxu0 %v11710_v62  ;;  %8691 = vmatprep.subr.bf16.mxu1 %v11713_v13  ;;  %v11752_v62 = vld [vmem:[%s15566_s8 + $0x664] ss:$16 sps:$4 sm:$0xff]   ;;  %v11755_v13 = vld [vmem:[%s15566_s8 + $0x66c] ss:$16 sps:$4 sm:$0xff]  }
 0x594   :  { %8528 = vmatpush1.bf16.msra.mxu0 %v11708_v14  ;;  %8692 = vmatpush1.bf16.msra.mxu1 %v11711_v15  ;;  %v11750_v14 = vld [vmem:[%s15566_s8 + $0x660] ss:$16 sps:$4 sm:$0xff]   ;;  %v11753_v15 = vld [vmem:[%s15566_s8 + $0x668] ss:$16 sps:$4 sm:$0xff]  }
 0x595   :  { %8529 = vmatprep.subr.bf16.mxu0 %v11716_v16  ;;  %8693 = vmatprep.subr.bf16.mxu1 %v11719_v18  ;;  %v11758_v16 = vld [vmem:[%s15566_s8 + $0x684] ss:$16 sps:$4 sm:$0xff]   ;;  %v11761_v18 = vld [vmem:[%s15566_s8 + $0x68c] ss:$16 sps:$4 sm:$0xff]  }
 0x598   :  { %8530 = vmatpush1.bf16.msra.mxu0 %v11714_v22  ;;  %8694 = vmatpush1.bf16.msra.mxu1 %v11717_v58  ;;  %v6708_v28 = vpop.f32.mrb[16].mxu0  ;;  %v11767_v22 = vld [vmem:[%s15566_s8 + $0x6ac] ss:$16 sps:$4 sm:$0xff]   ;;  %v11762_v58 = vld [vmem:[%s15566_s8 + $0x6a0] ss:$16 sps:$4 sm:$0xff]  }
 0x599   :  { %v10348_v61 = vadd.f32 %v6708_v28, %v5168_v23  ;;  %v15221_v32 = vpop.f32.mrb[16].mxu1  ;;  %v6710_v33 = vpop.f32.mrb[17].mxu0  ;;  %8531 = vmatprep.subr.bf16.mxu0 %v11722_v24  ;;  %8695 = vmatprep.subr.bf16.mxu1 %v11725_v25  ;;  %v11765_v23 = vld [vmem:[%s15566_s8 + $0x6a8] ss:$16 sps:$4 sm:$0xff]   ;;  %v11770_v24 = vld [vmem:[%s15566_s8 + $0x6c4] ss:$16 sps:$4 sm:$0xff]  }
 0x59a   :  { %v10349_v36 = vadd.f32 %v6710_v33, %v5172_v26  ;;  %v6792_v38 = vpop.f32.mrb[17].mxu1  ;;  %v6712_v39 = vpop.f32.mrb[18].mxu0  ;;  %v11773_v25 = vld [vmem:[%s15566_s8 + $0x6cc] ss:$16 sps:$4 sm:$0xff]   ;;  %v11768_v26 = vld [vmem:[%s15566_s8 + $0x6c0] ss:$16 sps:$4 sm:$0xff]  }
 0x59b   :  { %v6801_v41 = vmax.f32 %v10348_v61, 0.0  ;;  %v10351_v42 = vadd.f32 %v6792_v38, %v5180_v27  ;;  %v6794_v44 = vpop.f32.mrb[18].mxu1  ;;  %v6713_v45 = vpop.f32.mrb[19].mxu0  ;;  %v11771_v27 = vld [vmem:[%s15566_s8 + $0x6c8] ss:$16 sps:$4 sm:$0xff]  }
 0x59c   :  { %v6802_v5 = vmax.f32 %v10349_v36, 0.0  ;;  %v6795_v46 = vpop.f32.mrb[19].mxu1  ;;  %8532 = vmatpush1.bf16.msra.mxu0 %v11720_v29  ;;  %8696 = vmatpush1.bf16.msra.mxu1 %v11723_v30  ;;  %v11776_v28 = vld [vmem:[%s15566_s8 + $0x6e4] ss:$16 sps:$4 sm:$0xff]   ;;  %v11779_v29 = vld [vmem:[%s15566_s8 + $0x6ec] ss:$16 sps:$4 sm:$0xff]  }
 0x59d   :  { %v6851_v50 = vadd.f32 %v6826_v31, %v6801_v41  ;;  %v6804_v53 = vmax.f32 %v10351_v42, 0.0  ;;  %8533 = vmatprep.subr.bf16.mxu0 %v11728_v34  ;;  %8697 = vmatprep.subr.bf16.mxu1 %v11731_v35  ;;  %v11774_v30 = vld [vmem:[%s15566_s8 + $0x6e0] ss:$16 sps:$4 sm:$0xff]   ;;  %v11777_v61 = vld [vmem:[%s15566_s8 + $0x6e8] ss:$16 sps:$4 sm:$0xff]  }
 0x59e   :  { %v6852_v59 = vadd.f32 %v6830_v37, %v6802_v5  ;;  %v11782_v31 = vld [vmem:[%s15566_s8 + $0x704] ss:$16 sps:$4 sm:$0xff]   ;;  %v11785_v33 = vld [vmem:[%s15566_s8 + $0x70c] ss:$16 sps:$4 sm:$0xff]   ;;  %v11780_v34 = vld [vmem:[%s15566_s8 + $0x700] ss:$16 sps:$4 sm:$0xff]  }
 0x59f   :  { %v6854_v60 = vadd.f32 %v6838_v43, %v6804_v53  ;;  %v6859_v2 = vpack.c.bf16 %v6851_v50, %v6851_v50  ;;  %v11783_v35 = vld [vmem:[%s15566_s8 + $0x708] ss:$16 sps:$4 sm:$0xff]   ;;  %v11788_v36 = vld [vmem:[%s15566_s8 + $0x724] ss:$16 sps:$4 sm:$0xff]   ;;  %v11791_v37 = vld [vmem:[%s15566_s8 + $0x72c] ss:$16 sps:$4 sm:$0xff]  }
 0x5a0   :  { %v6860_v63 = vpack.c.bf16 %v6852_v59, %v6852_v59  ;;  %8534 = vmatpush1.bf16.msra.mxu0 %v11726_v47  ;;  %8698 = vmatpush1.bf16.msra.mxu1 %v11729_v49  ;;  %v11786_v38 = vld [vmem:[%s15566_s8 + $0x720] ss:$16 sps:$4 sm:$0xff]   ;;  %v11789_v39 = vld [vmem:[%s15566_s8 + $0x728] ss:$16 sps:$4 sm:$0xff]   ;;  %v11794_v41 = vld [vmem:[%s15566_s8 + $0x744] ss:$16 sps:$4 sm:$0xff]  }
 0x5a1   :  { %8544 = vmatprep.subr.bf16.mxu0 %v11734_v54  ;;  %8708 = vmatprep.subr.bf16.mxu1 %v11737_v55  ;;  %v6862_v6 = vpack.c.bf16 %v6854_v60, %v6854_v60  ;;  %v11797_v42 = vld [vmem:[%s15566_s8 + $0x74c] ss:$16 sps:$4 sm:$0xff]   ;;  %v11792_v43 = vld [vmem:[%s15566_s8 + $0x740] ss:$16 sps:$4 sm:$0xff]   ;;  %v11795_v44 = vld [vmem:[%s15566_s8 + $0x748] ss:$16 sps:$4 sm:$0xff]  }
 0x5a2   :  { %8535 = vmatprep.mubr.bf16.mxu0 %v6860_v63  ;;  %8699 = vmatprep.mubr.bf16.mxu1 %v6860_v63  ;;  %v11800_v45 = vld [vmem:[%s15566_s8 + $0x764] ss:$16 sps:$4 sm:$0xff]   ;;  %v11803_v5 = vld [vmem:[%s15566_s8 + $0x76c] ss:$16 sps:$4 sm:$0xff]   ;;  %v11798_v46 = vld [vmem:[%s15566_s8 + $0x760] ss:$16 sps:$4 sm:$0xff]  }
 0x5a3   :  { %8536 = vmatmul.mubr.bf16.vlgmr.msra.gmra.mrb[20].mxu0 %v6859_v2  ;;  %8700 = vmatmul.mubr.bf16.vlgmr.msra.gmra.mrb[20].mxu1 %v6859_v2  ;;  %v11801_v47 = vld [vmem:[%s15566_s8 + $0x768] ss:$16 sps:$4 sm:$0xff]   ;;  %v5175_v49 = vsub.s32 6, %v13792_v48  ;;  %v11806_v50 = vld [vmem:[%s15566_s8 + $0x784] ss:$16 sps:$4 sm:$0xff]  }
 0x5a4   :  { %8545 = vmatpush1.bf16.msra.mxu0 %v11732_v0  ;;  %8709 = vmatpush1.bf16.msra.mxu1 %v11735_v1  ;;  %v11809_v53 = vld [vmem:[%s15566_s8 + $0x78c] ss:$16 sps:$4 sm:$0xff]   ;;  %v11804_v54 = vld [vmem:[%s15566_s8 + $0x780] ss:$16 sps:$4 sm:$0xff]   ;;  %v11807_v48 = vld [vmem:[%s15566_s8 + $0x788] ss:$16 sps:$4 sm:$0xff]  }
 0x5a5   :  { %8576 = vmatprep.mubr.bf16.mxu0 %v6862_v6  ;;  %8740 = vmatprep.mubr.bf16.mxu1 %v6862_v6  ;;  %v5176_v55 = vrot.slane %v14822_v40, %v5175_v49  ;;  %v11812_v59 = vld [vmem:[%s15566_s8 + $0x7a4] ss:$16 sps:$4 sm:$0xff]   ;;  %v11815_v60 = vld [vmem:[%s15566_s8 + $0x7ac] ss:$16 sps:$4 sm:$0xff]   ;;  %v11810_v63 = vld [vmem:[%s15566_s8 + $0x7a0] ss:$16 sps:$4 sm:$0xff]   ;;  %v6834_v6 = vrot.slane %v14829_v17, %v5175_v49 }
 0x5a6   :  { %8546 = vmatprep.subr.bf16.mxu0 %v11740_v3  ;;  %8710 = vmatprep.subr.bf16.mxu1 %v11743_v4  ;;  %v11813_v40 = vld [vmem:[%s15566_s8 + $0x7a8] ss:$16 sps:$4 sm:$0xff]   ;;  %v11818_v1 = vld [vmem:[%s15566_s8 + $0x7c4] ss:$16 sps:$4 sm:$0xff]   ;;  %v11821_v2 = vld [vmem:[%s15566_s8 + $0x7cc] ss:$16 sps:$4 sm:$0xff]  }
 0x5a7   :  { %v10350_v0 = vadd.f32 %v15221_v32, %v5176_v55  ;;  %v11816_v3 = vld [vmem:[%s15566_s8 + $0x7c0] ss:$16 sps:$4 sm:$0xff]   ;;  %v11819_v32 = vld [vmem:[%s15566_s8 + $0x7c8] ss:$16 sps:$4 sm:$0xff]  }
 0x5a8   :  { %8547 = vmatpush1.bf16.msra.mxu0 %v11738_v7  ;;  %8711 = vmatpush1.bf16.msra.mxu1 %v11741_v8  ;;  %v11824_v7 = vld [vmem:[%s15566_s8 + $0x7e4] ss:$16 sps:$4 sm:$0xff]   ;;  %v11827_v8 = vld [vmem:[%s15566_s8 + $0x7ec] ss:$16 sps:$4 sm:$0xff]   ;;  %v11825_v17 = vld [vmem:[%s15566_s8 + $0x7e8] ss:$16 sps:$4 sm:$0xff]  }
 0x5a9   :  { %8548 = vmatprep.subr.bf16.mxu0 %v11746_v9  ;;  %8712 = vmatprep.subr.bf16.mxu1 %v11749_v10  ;;  %v6803_v4 = vmax.f32 %v10350_v0, 0.0  ;;  %v11822_v9 = vld [vmem:[%s15566_s8 + $0x7e0] ss:$16 sps:$4 sm:$0xff]  }
 0x5ab   :  { %v6853_v10 = vadd.f32 %v6834_v6, %v6803_v4 }
 0x5ac   :  { %8549 = vmatpush1.bf16.msra.mxu0 %v11744_v11  ;;  %8713 = vmatpush1.bf16.msra.mxu1 %v11747_v12  ;;  %v11828_v11 = vld [vmem:[%s15569_s11 + $0x40] sm:$0xff]  }
 0x5ad   :  { %8550 = vmatprep.subr.bf16.mxu0 %v11752_v62  ;;  %8714 = vmatprep.subr.bf16.mxu1 %v11755_v13  ;;  %v11829_v12 = vld [vmem:[%s15569_s11 + $0xc0] sm:$0xff]  }
 0x5ae   :  { %v11830_v62 = vld [vmem:[%s15569_s11] sm:$0xff]  }
 0x5af   :  { %v11831_v13 = vld [vmem:[%s15569_s11 + $0x80] sm:$0xff]  }
 0x5b0   :  { %8551 = vmatpush1.bf16.msra.mxu0 %v11750_v14  ;;  %8715 = vmatpush1.bf16.msra.mxu1 %v11753_v15  ;;  %v6861_v14 = vpack.c.bf16 %v6853_v10, %v6853_v10  ;;  %v11832_v15 = vld [vmem:[%s15569_s11 + $0x48] sm:$0xff]  }
 0x5b1   :  { %8552 = vmatprep.subr.bf16.mxu0 %v11758_v16  ;;  %8716 = vmatprep.subr.bf16.mxu1 %v11761_v18  ;;  %v11833_v16 = vld [vmem:[%s15569_s11 + $0xc8] sm:$0xff]  }
 0x5b2   :  { %v11834_v18 = vld [vmem:[%s15569_s11 + $0x8] sm:$0xff]  }
 0x5b4   :  { %8553 = vmatpush1.bf16.msra.mxu0 %v11756_v19  ;;  %8717 = vmatpush1.bf16.msra.mxu1 %v11759_v20  ;;  %v11835_v19 = vld [vmem:[%s15569_s11 + $0x88] sm:$0xff]   ;;  %v11836_v20 = vld [vmem:[%s15569_s11 + $0x50] sm:$0xff]  }
 0x5b5   :  { %8554 = vmatprep.subr.bf16.mxu0 %v11764_v21  ;;  %8718 = vmatprep.subr.bf16.mxu1 %v11767_v22  ;;  %v11837_v21 = vld [vmem:[%s15569_s11 + $0xd0] sm:$0xff]  }
 0x5b6   :  { %v11838_v22 = vld [vmem:[%s15569_s11 + $0x10] sm:$0xff]  }
 0x5b8   :  { %8555 = vmatpush1.bf16.msra.mxu0 %v11762_v58  ;;  %8719 = vmatpush1.bf16.msra.mxu1 %v11765_v23  ;;  %v11839_v58 = vld [vmem:[%s15569_s11 + $0x90] sm:$0xff]   ;;  %v11840_v23 = vld [vmem:[%s15569_s11 + $0x58] sm:$0xff]  }
 0x5b9   :  { %8556 = vmatprep.subr.bf16.mxu0 %v11770_v24  ;;  %8720 = vmatprep.subr.bf16.mxu1 %v11773_v25  ;;  %v11841_v24 = vld [vmem:[%s15569_s11 + $0xd8] sm:$0xff]  }
 0x5ba   :  { %v11842_v25 = vld [vmem:[%s15569_s11 + $0x18] sm:$0xff]  }
 0x5bc   :  { %8557 = vmatpush1.bf16.msra.mxu0 %v11768_v26  ;;  %8721 = vmatpush1.bf16.msra.mxu1 %v11771_v27  ;;  %v11843_v26 = vld [vmem:[%s15569_s11 + $0x98] sm:$0xff]   ;;  %v11844_v27 = vld [vmem:[%s15569_s11 + $0x60] sm:$0xff]  }
 0x5bd   :  { %8558 = vmatprep.subr.bf16.mxu0 %v11776_v28  ;;  %8722 = vmatprep.subr.bf16.mxu1 %v11779_v29  ;;  %v11845_v28 = vld [vmem:[%s15569_s11 + $0xe0] sm:$0xff]  }
 0x5be   :  { %v11846_v29 = vld [vmem:[%s15569_s11 + $0x20] sm:$0xff]  }
 0x5c0   :  { %8559 = vmatpush1.bf16.msra.mxu0 %v11774_v30  ;;  %8723 = vmatpush1.bf16.msra.mxu1 %v11777_v61  ;;  %v11847_v30 = vld [vmem:[%s15569_s11 + $0xa0] sm:$0xff]   ;;  %v11848_v61 = vld [vmem:[%s15569_s11 + $0x68] sm:$0xff]  }
 0x5c1   :  { %8560 = vmatprep.subr.bf16.mxu0 %v11782_v31  ;;  %8724 = vmatprep.subr.bf16.mxu1 %v11785_v33  ;;  %v11849_v31 = vld [vmem:[%s15569_s11 + $0xe8] sm:$0xff]  }
 0x5c2   :  { %v11850_v33 = vld [vmem:[%s15569_s11 + $0x28] sm:$0xff]  }
 0x5c4   :  { %8561 = vmatpush1.bf16.msra.mxu0 %v11780_v34  ;;  %8725 = vmatpush1.bf16.msra.mxu1 %v11783_v35  ;;  %v11851_v34 = vld [vmem:[%s15569_s11 + $0xa8] sm:$0xff]   ;;  %v11852_v35 = vld [vmem:[%s15569_s11 + $0x70] sm:$0xff]  }
 0x5c5   :  { %8562 = vmatprep.subr.bf16.mxu0 %v11788_v36  ;;  %8726 = vmatprep.subr.bf16.mxu1 %v11791_v37  ;;  %v11853_v36 = vld [vmem:[%s15569_s11 + $0xf0] sm:$0xff]  }
 0x5c6   :  { %v11854_v37 = vld [vmem:[%s15569_s11 + $0x30] sm:$0xff]  }
 0x5c8   :  { %8563 = vmatpush1.bf16.msra.mxu0 %v11786_v38  ;;  %8727 = vmatpush1.bf16.msra.mxu1 %v11789_v39  ;;  %v11855_v38 = vld [vmem:[%s15569_s11 + $0xb0] sm:$0xff]   ;;  %v11856_v39 = vld [vmem:[%s15569_s11 + $0x78] sm:$0xff]  }
 0x5c9   :  { %8564 = vmatprep.subr.bf16.mxu0 %v11794_v41  ;;  %8728 = vmatprep.subr.bf16.mxu1 %v11797_v42  ;;  %v11857_v41 = vld [vmem:[%s15569_s11 + $0xf8] sm:$0xff]  }
 0x5ca   :  { %v11858_v42 = vld [vmem:[%s15569_s11 + $0x38] sm:$0xff]  }
 0x5cc   :  { %8565 = vmatpush1.bf16.msra.mxu0 %v11792_v43  ;;  %8729 = vmatpush1.bf16.msra.mxu1 %v11795_v44  ;;  %v11859_v43 = vld [vmem:[%s15569_s11 + $0xb8] sm:$0xff]   ;;  %v7119_v44 = vld [vmem:[%s15567_s9] sm:$0xf]  ;;  %s11885_s11 = smov [#allocation2]  }
 0x5cd   :  { %8566 = vmatprep.subr.bf16.mxu0 %v11800_v45  ;;  %8730 = vmatprep.subr.bf16.mxu1 %v11803_v5  ;;  %v7124_v45 = vrot.slane %v7119_v44, %v13795_v51  ;;  %v7132_v5 = vrot.slane %v7119_v44, %v13798_v52  ;;  %v7136_v49 = vrot.slane %v7119_v44, %v13807_v57  ;;  %s9133_s27 = sshll.u32 %s11885_s11, 4  ;;  %s9134_s27 = int_to_ptr.vmem [resolvable:$true] %s9133_s27 }
 0x5ce   :  { %s11860_s4 = scalar_lea.vmem %s9134_s27, 32  ;;  %p11865_p1 = scmp.lt.s32.totalorder %s9134_s27, %s9134_s27 }
 0x5cf   :  { %p11861_p0 = scmp.ne.s32.totalorder %s9134_s27, %s11860_s4  ;;  %p11866_p2 = scmp.lt.s32.totalorder %s11860_s4, %s11860_s4 }
 0x5d0   :  { %8567 = vmatpush1.bf16.msra.mxu0 %v11798_v46  ;;  %8731 = vmatpush1.bf16.msra.mxu1 %v11801_v47  ;;  %v8753_v46 = vld [vmem:[%s15568_s10] sm:$0xf]  ;;  %v7128_v47 = vrot.slane %v7119_v44, %v13804_v56 }
 0x5d1   :  { %8568 = vmatprep.subr.bf16.mxu0 %v11806_v50  ;;  %8732 = vmatprep.subr.bf16.mxu1 %v11809_v53  ;;  %v8762_v0 = vrot.slane %v8753_v46, %v13804_v56  ;;  %p11867_p3 = por %p11866_p2, %p11865_p1 }
 0x5d3   :  { %p11868_p4 = pnand %p11867_p3, %p11861_p0 }
 0x5d4   :  { %8569 = vmatpush1.bf16.msra.mxu0 %v11804_v54  ;;  %8733 = vmatpush1.bf16.msra.mxu1 %v11807_v48  ;;  %v8758_v48 = vrot.slane %v8753_v46, %v13795_v51 }
 0x5d5   :  { %8570 = vmatprep.subr.bf16.mxu0 %v11812_v59  ;;  %8734 = vmatprep.subr.bf16.mxu1 %v11815_v60  ;;  %v8766_v59 = vrot.slane %v8753_v46, %v13798_v52 }
 0x5d8   :  { %8571 = vmatpush1.bf16.msra.mxu0 %v11810_v63  ;;  %8735 = vmatpush1.bf16.msra.mxu1 %v11813_v40 }
 0x5d9   :  { %8572 = vmatprep.subr.bf16.mxu0 %v11818_v1  ;;  %8736 = vmatprep.subr.bf16.mxu1 %v11821_v2  ;;  %v8770_v2 = vrot.slane %v8753_v46, %v13807_v57 }
 0x5dc   :  { %8573 = vmatpush1.bf16.msra.mxu0 %v11816_v3  ;;  %8737 = vmatpush1.bf16.msra.mxu1 %v11819_v32 }
 0x5dd   :  { %8574 = vmatprep.subr.bf16.mxu0 %v11824_v7  ;;  %8738 = vmatprep.subr.bf16.mxu1 %v11827_v8 }
 0x5e0   :  { %8575 = vmatpush1.bf16.msra.mxu0 %v11822_v9  ;;  %8739 = vmatpush1.bf16.msra.mxu1 %v11825_v17 }
 0x5e1   :  { %10300 = vmatprep.subr.bf16.mxu0 %v11828_v11  ;;  %10322 = vmatprep.subr.bf16.mxu1 %v11829_v12 }
 0x5e3   :  { %8577 = vmatmul.mubr.bf16.vlgmr.msra.gmra.mrb[20].mxu0 %v6861_v14  ;;  %8741 = vmatmul.mubr.bf16.vlgmr.msra.gmra.mrb[20].mxu1 %v6861_v14 }
 0x5e4   :  { %10301 = vmatpush3.bf16.msra.mxu0 %v11830_v62  ;;  %10323 = vmatpush3.bf16.msra.mxu1 %v11831_v13 }
 0x5e5   :  { %10302 = vmatprep.subr.bf16.mxu0 %v11832_v15  ;;  %10324 = vmatprep.subr.bf16.mxu1 %v11833_v16  ;;  %v10267_v15 = vld [vmem:[%s15570_s12] ss:$0 sm:$0xff] }
 0x5e8   :  { %10303 = vmatpush3.bf16.msra.mxu0 %v11834_v18  ;;  %10325 = vmatpush3.bf16.msra.mxu1 %v11835_v19 }
 0x5e9   :  { %10304 = vmatprep.subr.bf16.mxu0 %v11836_v20  ;;  %10326 = vmatprep.subr.bf16.mxu1 %v11837_v21 }
 0x5ec   :  { %10305 = vmatpush3.bf16.msra.mxu0 %v11838_v22  ;;  %10327 = vmatpush3.bf16.msra.mxu1 %v11839_v58 }
 0x5ed   :  { %10306 = vmatprep.subr.bf16.mxu0 %v11840_v23  ;;  %10328 = vmatprep.subr.bf16.mxu1 %v11841_v24 }
 0x5f0   :  { %10307 = vmatpush3.bf16.msra.mxu0 %v11842_v25  ;;  %10329 = vmatpush3.bf16.msra.mxu1 %v11843_v26 }
 0x5f1   :  { %10308 = vmatprep.subr.bf16.mxu0 %v11844_v27  ;;  %10330 = vmatprep.subr.bf16.mxu1 %v11845_v28 }
 0x5f4   :  { %10309 = vmatpush3.bf16.msra.mxu0 %v11846_v29  ;;  %10331 = vmatpush3.bf16.msra.mxu1 %v11847_v30 }
 0x5f5   :  { %10310 = vmatprep.subr.bf16.mxu0 %v11848_v61  ;;  %10332 = vmatprep.subr.bf16.mxu1 %v11849_v31 }
 0x5f8   :  { %10311 = vmatpush3.bf16.msra.mxu0 %v11850_v33  ;;  %10333 = vmatpush3.bf16.msra.mxu1 %v11851_v34 }
 0x5f9   :  { %10312 = vmatprep.subr.bf16.mxu0 %v11852_v35  ;;  %10334 = vmatprep.subr.bf16.mxu1 %v11853_v36 }
 0x5fc   :  { %10313 = vmatpush3.bf16.msra.mxu0 %v11854_v37  ;;  %10335 = vmatpush3.bf16.msra.mxu1 %v11855_v38 }
 0x5fd   :  { %10314 = vmatprep.subr.bf16.mxu0 %v11856_v39  ;;  %10336 = vmatprep.subr.bf16.mxu1 %v11857_v41 }
 0x600   :  { %10315 = vmatpush3.bf16.msra.mxu0 %v11858_v42  ;;  %10337 = vmatpush3.bf16.msra.mxu1 %v11859_v43 }
 0x6b6   :  { %v8578_v50 = vpop.f32.mrb[20].mxu0  ;;  %v8742_v53 = vpop.f32.mrb[20].mxu1 }
 0x6b7   :  { %v10352_v54 = vadd.f32 %v8578_v50, %v7124_v45  ;;  %v10354_v55 = vadd.f32 %v8742_v53, %v7132_v5  ;;  %v8580_v60 = vpop.f32.mrb[21].mxu0  ;;  %v8744_v63 = vpop.f32.mrb[21].mxu1 }
 0x6b8   :  { %v10353_v40 = vadd.f32 %v8580_v60, %v7128_v47  ;;  %v10355_v1 = vadd.f32 %v8744_v63, %v7136_v49  ;;  %v8582_v3 = vpop.f32.mrb[22].mxu0  ;;  %v8746_v32 = vpop.f32.mrb[22].mxu1 }
 0x6b9   :  { %v8749_v4 = vmax.f32 %v10352_v54, 0.0  ;;  %v8751_v6 = vmax.f32 %v10354_v55, 0.0  ;;  %v8583_v7 = vpop.f32.mrb[23].mxu0  ;;  %v8747_v8 = vpop.f32.mrb[23].mxu1 }
 0x6ba   :  { %v8750_v9 = vmax.f32 %v10353_v40, 0.0  ;;  %v8752_v17 = vmax.f32 %v10355_v1, 0.0 }
 0x6bb   :  { %v8775_v51 = vadd.f32 %v8758_v48, %v8749_v4  ;;  %v8777_v10 = vadd.f32 %v8766_v59, %v8751_v6 }
 0x6bc   :  { %v8776_v11 = vadd.f32 %v8762_v0, %v8750_v9  ;;  %v8778_v52 = vadd.f32 %v8770_v2, %v8752_v17 }
 0x6bd   :  { %v8779_v13 = vpack.c.bf16 %v8775_v51, %v8775_v51  ;;  %v8781_v14 = vpack.c.bf16 %v8777_v10, %v8777_v10 }
 0x6be   :  { %v8780_v12 = vpack.c.bf16 %v8776_v11, %v8776_v11  ;;  %v8782_v62 = vpack.c.bf16 %v8778_v52, %v8778_v52 }
 0x6c0   :  { %9078 = vmatprep.mubr.bf16.mxu0 %v8780_v12  ;;  %9118 = vmatprep.mubr.bf16.mxu1 %v8782_v62 }
 0x6c1   :  { %9079 = vmatmul.mubr.bf16.vlgmr.msra.gmra.mrb[24].mxu0 %v8779_v13  ;;  %9119 = vmatmul.mubr.bf16.vlgmr.msra.gmra.mrb[24].mxu1 %v8781_v14 }
 0x794   :  { %v10316_v56 = vpop.f32.mrb[24].mxu0  ;;  %v10338_v57 = vpop.f32.mrb[24].mxu1 }
 0x795   :  { %v10317_v16 = vpop.f32.mrb[25].mxu0  ;;  %v10339_v18 = vpop.f32.mrb[25].mxu1 }
 0x796   :  { %v10318_v19 = vadd.f32 %v10317_v16, %v10316_v56  ;;  %v10340_v20 = vadd.f32 %v10339_v18, %v10338_v57  ;;  %v10319_v21 = vpop.f32.mrb[26].mxu0  ;;  %v10341_v22 = vpop.f32.mrb[26].mxu1 }
 0x797   :  { %v10320_v58 = vpop.f32.mrb[27].mxu0  ;;  %v10342_v23 = vpop.f32.mrb[27].mxu1 }
 0x798   :  { %v9081_v24 = vadd.f32 %v10318_v19, %v10267_v15 }
 0x79a   :  { %v9121_v25 = vadd.f32 %v10340_v20, %v9081_v24 }
 0x79c   :  { %9126 = vst [vmem:[#allocation2] sm:$0x3] %v9121_v25 }
 0x79d   :  { %11871 = shalt.err (!%p11868_p4)
}
 0x79e   :  { %s11872_s29 = scalar_lea.hbm %s15571_s13, 32 }
 0x79f   :  { %p11873_p5 = scmp.ne.s32.totalorder %s15571_s13, %s11872_s29  ;;  %p11876_p6 = scmp.lt.u32.totalorder %s11872_s29, %s15571_s13 }
 0x7a1   :  { %p11878_p7 = pnand %p11876_p6, %p11873_p5 }
 0x7a3   :  { %11881 = shalt.err (!%p11878_p7)
}
 0x7a4   :  { %9136 = dma.vmem_to_hbm [thread:$0]  %s9134_s27, 32, %s15571_s13, [#allocation3]  }
 0x7a5   :  { %11882 = dma.done.wait [#allocation3], 32  }
 0x7a6   :  { %11883 = vsyncadd [#allocation3], 4294967264 }
 0x7a7   :  { %9140 = vsyncpa [#allocation3], 1 }

</bundles_post_ra>
